<compile_context>
chip_gen: v7x
topology: tpu7x:2x2x1
jax: 0.10.0
libtpu: 0.0.40
codegen_flags: <defaults>
</compile_context>

<pallas_src>
import math

import jax
import jax.numpy as jnp
from jax.experimental import pallas as pl
from jax.experimental.pallas import tpu as pltpu

F32 = jnp.float32
BN_EPS = 1e-5
VMEM_LIMIT = 32 * 1024 * 1024


def _pick_tile(n_points):
    """Largest multiple of 128 that divides N and is <= 1024 (v7x-friendly)."""
    assert n_points % 128 == 0, "num_points must be a multiple of 128"
    tile = 128
    while tile * 2 <= 1024 and n_points % (tile * 2) == 0:
        tile *= 2
    return tile


# ---------------------------------------------------------------------------
# Layer 1: conv1 (no bias) + per-channel sum / sum-of-squares accumulation.
# ---------------------------------------------------------------------------
def _conv1_stats_call(pc, w1, tile):
    B, c_in, N = pc.shape
    c_out = w1.shape[0]
    nt = N // tile
    R = B * N
    inv_r = 1.0 / float(R)

    def kernel(pc_ref, w_ref, y_ref, mean_ref, rstd_ref, s_ref, ss_ref):
        b = pl.program_id(0)
        t = pl.program_id(1)

        @pl.when(jnp.logical_and(b == 0, t == 0))
        def _init():
            s_ref[...] = jnp.zeros_like(s_ref)
            ss_ref[...] = jnp.zeros_like(ss_ref)

        y = jnp.dot(w_ref[...], pc_ref[...], preferred_element_type=jnp.float32)
        y_ref[...] = y
        s_ref[...] += jnp.sum(y, axis=1, keepdims=True)
        ss_ref[...] += jnp.sum(y * y, axis=1, keepdims=True)

        @pl.when(jnp.logical_and(b == pl.num_programs(0) - 1,
                                 t == pl.num_programs(1) - 1))
        def _finalize():
            m = s_ref[...] * inv_r
            var = jnp.maximum(ss_ref[...] * inv_r - m * m, 0.0)
            mean_ref[...] = m
            rstd_ref[...] = jax.lax.rsqrt(var + BN_EPS)

    grid_spec = pltpu.PrefetchScalarGridSpec(
        num_scalar_prefetch=0,
        grid=(B, nt),
        in_specs=[
            pl.BlockSpec((None, c_in, tile), lambda b, t: (b, 0, t)),
            pl.BlockSpec((c_out, c_in), lambda b, t: (0, 0)),
        ],
        out_specs=(
            pl.BlockSpec((c_out, tile), lambda b, t: (0, b * nt + t)),
            pl.BlockSpec((c_out, 1), lambda b, t: (0, 0)),
            pl.BlockSpec((c_out, 1), lambda b, t: (0, 0)),
        ),
        scratch_shapes=[pltpu.VMEM((c_out, 1), F32),
                        pltpu.VMEM((c_out, 1), F32)],
    )
    return pl.pallas_call(
        kernel,
        out_shape=(jax.ShapeDtypeStruct((c_out, R), F32),
                   jax.ShapeDtypeStruct((c_out, 1), F32),
                   jax.ShapeDtypeStruct((c_out, 1), F32)),
        grid_spec=grid_spec,
        compiler_params=pltpu.CompilerParams(
            dimension_semantics=("arbitrary", "arbitrary"),
            vmem_limit_bytes=VMEM_LIMIT),
    )(pc, w1)


# ---------------------------------------------------------------------------
# Layers 2 & 3: apply previous BN + ReLU, matmul, accumulate this layer's stats.
# ---------------------------------------------------------------------------
def _bn_matmul_stats_call(y_in, mean_in, rstd_in, gamma, beta, w, tile):
    c_in, R = y_in.shape
    c_out = w.shape[0]
    nt = R // tile
    inv_r = 1.0 / float(R)

    def kernel(y_in_ref, mean_ref, rstd_ref, g_ref, be_ref, w_ref,
               y_out_ref, mean_out_ref, rstd_out_ref, s_ref, ss_ref):
        t = pl.program_id(0)

        @pl.when(t == 0)
        def _init():
            s_ref[...] = jnp.zeros_like(s_ref)
            ss_ref[...] = jnp.zeros_like(ss_ref)

        # BN(prev layer) + ReLU, folded to a single fused scale/shift.
        scale = rstd_ref[...] * g_ref[...]
        shift = be_ref[...] - mean_ref[...] * scale
        x = jnp.maximum(y_in_ref[...] * scale + shift, 0.0)

        y = jnp.dot(w_ref[...], x, preferred_element_type=jnp.float32)
        y_out_ref[...] = y
        s_ref[...] += jnp.sum(y, axis=1, keepdims=True)
        ss_ref[...] += jnp.sum(y * y, axis=1, keepdims=True)

        @pl.when(t == pl.num_programs(0) - 1)
        def _finalize():
            m = s_ref[...] * inv_r
            var = jnp.maximum(ss_ref[...] * inv_r - m * m, 0.0)
            mean_out_ref[...] = m
            rstd_out_ref[...] = jax.lax.rsqrt(var + BN_EPS)

    grid_spec = pltpu.PrefetchScalarGridSpec(
        num_scalar_prefetch=0,
        grid=(nt,),
        in_specs=[
            pl.BlockSpec((c_in, tile), lambda t: (0, t)),
            pl.BlockSpec((c_in, 1), lambda t: (0, 0)),
            pl.BlockSpec((c_in, 1), lambda t: (0, 0)),
            pl.BlockSpec((c_in, 1), lambda t: (0, 0)),
            pl.BlockSpec((c_in, 1), lambda t: (0, 0)),
            pl.BlockSpec((c_out, c_in), lambda t: (0, 0)),
        ],
        out_specs=(
            pl.BlockSpec((c_out, tile), lambda t: (0, t)),
            pl.BlockSpec((c_out, 1), lambda t: (0, 0)),
            pl.BlockSpec((c_out, 1), lambda t: (0, 0)),
        ),
        scratch_shapes=[pltpu.VMEM((c_out, 1), F32),
                        pltpu.VMEM((c_out, 1), F32)],
    )
    return pl.pallas_call(
        kernel,
        out_shape=(jax.ShapeDtypeStruct((c_out, R), F32),
                   jax.ShapeDtypeStruct((c_out, 1), F32),
                   jax.ShapeDtypeStruct((c_out, 1), F32)),
        grid_spec=grid_spec,
        compiler_params=pltpu.CompilerParams(
            dimension_semantics=("arbitrary",),
            vmem_limit_bytes=VMEM_LIMIT),
    )(y_in, mean_in, rstd_in, gamma, beta, w)


# ---------------------------------------------------------------------------
# Apply BN3 + ReLU and per-batch global max-pool into a resident (C, B) output.
# ---------------------------------------------------------------------------
def _bn_maxpool_call(y3, mean3, rstd3, gamma, beta, B, N, tile):
    C, R = y3.shape
    nt = N // tile

    def kernel(y_ref, mean_ref, rstd_ref, g_ref, be_ref, pooled_ref):
        b = pl.program_id(0)
        t = pl.program_id(1)

        @pl.when(jnp.logical_and(b == 0, t == 0))
        def _init():
            pooled_ref[...] = jnp.full_like(pooled_ref, -jnp.inf)

        scale = rstd_ref[...] * g_ref[...]
        shift = be_ref[...] - mean_ref[...] * scale
        x = jnp.maximum(y_ref[...] * scale + shift, 0.0)
        tile_max = jnp.max(x, axis=1, keepdims=True)            # (C, 1)

        col = jax.lax.broadcasted_iota(jnp.int32, (C, B), 1)
        cur = pooled_ref[...]
        pooled_ref[...] = jnp.where(col == b, jnp.maximum(cur, tile_max), cur)

    grid_spec = pltpu.PrefetchScalarGridSpec(
        num_scalar_prefetch=0,
        grid=(B, nt),
        in_specs=[
            pl.BlockSpec((C, tile), lambda b, t: (0, b * nt + t)),
            pl.BlockSpec((C, 1), lambda b, t: (0, 0)),
            pl.BlockSpec((C, 1), lambda b, t: (0, 0)),
            pl.BlockSpec((C, 1), lambda b, t: (0, 0)),
            pl.BlockSpec((C, 1), lambda b, t: (0, 0)),
        ],
        out_specs=pl.BlockSpec((C, B), lambda b, t: (0, 0)),
    )
    return pl.pallas_call(
        kernel,
        out_shape=jax.ShapeDtypeStruct((C, B), F32),
        grid_spec=grid_spec,
        compiler_params=pltpu.CompilerParams(
            dimension_semantics=("arbitrary", "arbitrary"),
            vmem_limit_bytes=VMEM_LIMIT),
    )(y3, mean3, rstd3, gamma, beta)


# ---------------------------------------------------------------------------
# Encoder FC head + reparameterize + decoder (tiny, whole-array, batch-major).
# ---------------------------------------------------------------------------
def _head_call(pooled, imu, eps, p, num_points, latent_dim):
    B = pooled.shape[0]

    def kernel(pooled_ref, imu_ref, eps_ref,
               fe1a_ref, fe1b_ref, fe1bias_ref,
               wmu_ref, bmu_ref, wlv_ref, blv_ref,
               fd1a_ref, fd1b_ref, fd1bias_ref,
               fd2_ref, fd2b_ref, fd3_ref, fd3b_ref,
               out_ref, mulv_ref):
        pooled_v = pooled_ref[...]
        imu_v = imu_ref[...]

        # fc1 on concat([pooled, imu]) expressed with split weights.
        h = jnp.maximum(
            jnp.dot(pooled_v, fe1a_ref[...], preferred_element_type=jnp.float32)
            + jnp.dot(imu_v, fe1b_ref[...], preferred_element_type=jnp.float32)
            + fe1bias_ref[...], 0.0)

        mu = jnp.dot(h, wmu_ref[...], preferred_element_type=jnp.float32) + bmu_ref[...]
        logvar = jnp.dot(h, wlv_ref[...], preferred_element_type=jnp.float32) + blv_ref[...]

        # Reparameterize (noise supplied as an input).
        z = mu + eps_ref[...] * jnp.exp(0.5 * logvar)

        # Decoder.
        d = jnp.maximum(
            jnp.dot(z, fd1a_ref[...], preferred_element_type=jnp.float32)
            + jnp.dot(imu_v, fd1b_ref[...], preferred_element_type=jnp.float32)
            + fd1bias_ref[...], 0.0)
        d = jnp.maximum(
            jnp.dot(d, fd2_ref[...], preferred_element_type=jnp.float32) + fd2b_ref[...],
            0.0)
        out_ref[...] = (jnp.dot(d, fd3_ref[...], preferred_element_type=jnp.float32)
                        + fd3b_ref[...])
        # Packed lane-dense (B, 2*latent) output: [mu | logvar].
        mulv_ref[...] = jnp.concatenate([mu, logvar], axis=1)

    vmem = pl.BlockSpec(memory_space=pltpu.MemorySpace.VMEM)
    inputs = [pooled, imu, eps,
              p["fe1a"], p["fe1b"], p["fe1bias"],
              p["wmu"], p["bmu"], p["wlv"], p["blv"],
              p["fd1a"], p["fd1b"], p["fd1bias"],
              p["fd2"], p["fd2b"], p["fd3"], p["fd3b"]]
    return pl.pallas_call(
        kernel,
        out_shape=(jax.ShapeDtypeStruct((B, 4 * num_points), F32),
                   jax.ShapeDtypeStruct((B, 2 * latent_dim), F32)),
        in_specs=[vmem] * len(inputs),
        out_specs=(vmem, vmem),
        compiler_params=pltpu.CompilerParams(vmem_limit_bytes=VMEM_LIMIT),
    )(*inputs)


# ---------------------------------------------------------------------------
# Parameters (PyTorch-default-style uniform +/- 1/sqrt(fan_in) init).
# ---------------------------------------------------------------------------
def init_params(key, imu_gps_dim, latent_dim, num_points):
    ks = iter(jax.random.split(key, 32))

    def lin(fan_in, fan_out):
        bound = 1.0 / math.sqrt(fan_in)
        w = jax.random.uniform(next(ks), (fan_in, fan_out), F32, -bound, bound)
        b = jax.random.uniform(next(ks), (1, fan_out), F32, -bound, bound)
        return w, b

    def conv_w(c_in, c_out):
        bound = 1.0 / math.sqrt(c_in)
        return jax.random.uniform(next(ks), (c_out, c_in), F32, -bound, bound)

    p = {}
    # Pointwise convs stored (C_out, C_in); conv biases omitted — a bias added
    # before training-mode BatchNorm is exactly cancelled by the mean subtraction.
    p["w1"] = conv_w(4, 64)
    p["g1"], p["be1"] = jnp.ones((64, 1), F32), jnp.zeros((64, 1), F32)
    p["w2"] = conv_w(64, 128)
    p["g2"], p["be2"] = jnp.ones((128, 1), F32), jnp.zeros((128, 1), F32)
    p["w3"] = conv_w(128, 256)
    p["g3"], p["be3"] = jnp.ones((256, 1), F32), jnp.zeros((256, 1), F32)
    # Encoder fc1 on concat([pooled(256), imu]) -> split weights.
    fe1_w, fe1_b = lin(256 + imu_gps_dim, 128)
    p["fe1a"], p["fe1b"], p["fe1bias"] = fe1_w[:256, :], fe1_w[256:, :], fe1_b
    p["wmu"], p["bmu"] = lin(128, latent_dim)
    p["wlv"], p["blv"] = lin(128, latent_dim)
    # Decoder fc1 on concat([z, imu]) -> split weights.
    fd1_w, fd1_b = lin(latent_dim + imu_gps_dim, 256)
    p["fd1a"], p["fd1b"], p["fd1bias"] = fd1_w[:latent_dim, :], fd1_w[latent_dim:, :], fd1_b
    p["fd2"], p["fd2b"] = lin(256, 512)
    p["fd3"], p["fd3b"] = lin(512, num_points * 4)
    return p


# ---------------------------------------------------------------------------
# Forward pass.
# ---------------------------------------------------------------------------
def pointnet_cvae_forward(point_cloud, imu_gps_seq, eps, params, num_points, latent_dim):
    """point_cloud: (B, 4, N) f32, imu_gps_seq: (B, T, F) f32, eps: (B, latent_dim) f32."""
    B, C, N = point_cloud.shape
    assert C == 4 and N == num_points
    tile = _pick_tile(N)
    p = params

    # Conv stack, channels-major (C, B*N), row-tiled with BN stats/apply split.
    y1, m1, r1 = _conv1_stats_call(point_cloud, p["w1"], tile)                    # (64,  B*N)
    y2, m2, r2 = _bn_matmul_stats_call(y1, m1, r1, p["g1"], p["be1"], p["w2"], tile)  # (128, B*N)
    y3, m3, r3 = _bn_matmul_stats_call(y2, m2, r2, p["g2"], p["be2"], p["w3"], tile)  # (256, B*N)
    pooled_t = _bn_maxpool_call(y3, m3, r3, p["g3"], p["be3"], B, N, tile)        # (256, B)

    pooled = pooled_t.T                      # tiny (256, B) -> (B, 256) glue
    imu = imu_gps_seq.reshape(B, -1)
    out_flat, mulv = _head_call(pooled, imu, eps, p, num_points, latent_dim)

    generated = out_flat.reshape(B, 4, num_points)   # matches torch .view(-1, 4, N)
    mu = mulv[:, :latent_dim]
    logvar = mulv[:, latent_dim:]
    return generated, mu, logvar


if __name__ == "__main__":
    B = 2
    NUM_POINTS = 128
    IMU_T, IMU_F = 2, 4                   # imu_gps_seq (B, 2, 4) -> imu_gps_dim = 8
    IMU_GPS_DIM = IMU_T * IMU_F
    LATENT_DIM = 16

    root = jax.random.PRNGKey(0)
    k_pc, k_imu, k_eps, k_params = jax.random.split(root, 4)

    point_cloud = jax.random.normal(k_pc, (B, 4, NUM_POINTS), dtype=F32)
    imu_gps_seq = jax.random.normal(k_imu, (B, IMU_T, IMU_F), dtype=F32)
    eps = jax.random.normal(k_eps, (B, LATENT_DIM), dtype=F32)  # reparameterization noise

    params = init_params(k_params, IMU_GPS_DIM, LATENT_DIM, NUM_POINTS)

    fwd = jax.jit(pointnet_cvae_forward, static_argnums=(4, 5))
    generated, mu, logvar = fwd(point_cloud, imu_gps_seq, eps, params,
                                NUM_POINTS, LATENT_DIM)
    jax.block_until_ready((generated, mu, logvar))

    assert generated.shape == (B, 4, NUM_POINTS)
    assert mu.shape == (B, LATENT_DIM)
    assert logvar.shape == (B, LATENT_DIM)
    print("KERNEL_OK")
</pallas_src>

<mosaic_0001>
module attributes {stable_mosaic.version = 11 : i64} {
  func.func @kernel(%arg0: i32, %arg1: i32, %arg2: memref<1x4x128xf32, #tpu.memory_space<vmem>>, %arg3: memref<64x4xf32, #tpu.memory_space<vmem>>, %arg4: memref<64x128xf32, #tpu.memory_space<vmem>>, %arg5: memref<64x1xf32, #tpu.memory_space<vmem>>, %arg6: memref<64x1xf32, #tpu.memory_space<vmem>>, %arg7: memref<64x1xf32, #tpu.memory_space<vmem>>, %arg8: memref<64x1xf32, #tpu.memory_space<vmem>>) attributes {dimension_semantics = [#tpu.dimension_semantics<arbitrary>, #tpu.dimension_semantics<arbitrary>], iteration_bounds = array<i64: 2, 1>, scalar_prefetch = 0 : i64, scratch_operands = 2 : i64, tpu.core_type = #tpu.core_type<tc>, window_params = [{transform_indices = @transform_0, window_bounds = array<i64: 1, 4, 128>}, {pipeline_mode = #tpu.pipeline_mode<synchronous>, transform_indices = @transform_1, window_bounds = array<i64: 64, 4>}, {transform_indices = @transform_2, window_bounds = array<i64: 64, 128>}, {pipeline_mode = #tpu.pipeline_mode<synchronous>, transform_indices = @transform_3, window_bounds = array<i64: 64, 1>}, {pipeline_mode = #tpu.pipeline_mode<synchronous>, transform_indices = @transform_4, window_bounds = array<i64: 64, 1>}]} {
    %c0_i32 = arith.constant 0 : i32
    %0 = arith.cmpi eq, %arg0, %c0_i32 : i32
    %c0_i32_0 = arith.constant 0 : i32
    %1 = arith.cmpi eq, %arg1, %c0_i32_0 : i32
    %2 = arith.andi %0, %1 : i1
    %3 = arith.extui %2 : i1 to i32
    %c0_i32_1 = arith.constant 0 : i32
    %4 = arith.cmpi ne, %3, %c0_i32_1 : i32
    scf.if %4 {
      %cst_20 = arith.constant 0.000000e+00 : f32
      %26 = vector.broadcast %cst_20 : f32 to vector<64x1xf32>
      %c0_21 = arith.constant 0 : index
      %c0_22 = arith.constant 0 : index
      %27 = vector.load %arg7[%c0_21, %c0_22] : memref<64x1xf32, #tpu.memory_space<vmem>>, vector<64x1xf32>
      tpu.vector_store %arg7[%c0_21, %c0_22], %26 {strides = array<i32>} : memref<64x1xf32, #tpu.memory_space<vmem>>, vector<64x1xf32>,
      %cst_23 = arith.constant 0.000000e+00 : f32
      %28 = vector.broadcast %cst_23 : f32 to vector<64x1xf32>
      %c0_24 = arith.constant 0 : index
      %c0_25 = arith.constant 0 : index
      %29 = vector.load %arg8[%c0_24, %c0_25] : memref<64x1xf32, #tpu.memory_space<vmem>>, vector<64x1xf32>
      tpu.vector_store %arg8[%c0_24, %c0_25], %28 {strides = array<i32>} : memref<64x1xf32, #tpu.memory_space<vmem>>, vector<64x1xf32>,
    } else {
    }
    %c0 = arith.constant 0 : index
    %c0_2 = arith.constant 0 : index
    %5 = vector.load %arg3[%c0, %c0_2] : memref<64x4xf32, #tpu.memory_space<vmem>>, vector<64x4xf32>
    %c0_3 = arith.constant 0 : index
    %c0_4 = arith.constant 0 : index
    %c0_5 = arith.constant 0 : index
    %6 = vector.load %arg2[%c0_3, %c0_4, %c0_5] : memref<1x4x128xf32, #tpu.memory_space<vmem>>, vector<1x4x128xf32>
    %7 = vector.shape_cast %6 : vector<1x4x128xf32> to vector<4x128xf32>
    %cst = arith.constant dense<0.000000e+00> : vector<64x128xf32>
    %8 = tpu.matmul %5, %7, %cst {dimension_numbers = #tpu.dot_dimension_numbers<[1], [0], [0], [1], [0, 0, 1, 1], [], []>} : vector<64x4xf32>, vector<4x128xf32>, vector<64x128xf32> -> vector<64x128xf32>
    %c0_6 = arith.constant 0 : index
    %c0_7 = arith.constant 0 : index
    %9 = vector.load %arg4[%c0_6, %c0_7] : memref<64x128xf32, #tpu.memory_space<vmem>>, vector<64x128xf32>
    tpu.vector_store %arg4[%c0_6, %c0_7], %8 {strides = array<i32>} : memref<64x128xf32, #tpu.memory_space<vmem>>, vector<64x128xf32>,
    %c0_8 = arith.constant 0 : index
    %c0_9 = arith.constant 0 : index
    %10 = vector.load %arg7[%c0_8, %c0_9] : memref<64x1xf32, #tpu.memory_space<vmem>>, vector<64x1xf32>
    %cst_10 = arith.constant dense<0.000000e+00> : vector<64xf32>
    %11 = vector.multi_reduction <add>, %8, %cst_10 [1] : vector<64x128xf32> to vector<64xf32>
    %12 = vector.shape_cast %11 : vector<64xf32> to vector<64x1xf32>
    %13 = arith.addf %10, %12 : vector<64x1xf32>
    %c0_11 = arith.constant 0 : index
    %c0_12 = arith.constant 0 : index
    %14 = vector.load %arg7[%c0_11, %c0_12] : memref<64x1xf32, #tpu.memory_space<vmem>>, vector<64x1xf32>
    tpu.vector_store %arg7[%c0_11, %c0_12], %13 {strides = array<i32>} : memref<64x1xf32, #tpu.memory_space<vmem>>, vector<64x1xf32>,
    %c0_13 = arith.constant 0 : index
    %c0_14 = arith.constant 0 : index
    %15 = vector.load %arg8[%c0_13, %c0_14] : memref<64x1xf32, #tpu.memory_space<vmem>>, vector<64x1xf32>
    %16 = arith.mulf %8, %8 : vector<64x128xf32>
    %cst_15 = arith.constant dense<0.000000e+00> : vector<64xf32>
    %17 = vector.multi_reduction <add>, %16, %cst_15 [1] : vector<64x128xf32> to vector<64xf32>
    %18 = vector.shape_cast %17 : vector<64xf32> to vector<64x1xf32>
    %19 = arith.addf %15, %18 : vector<64x1xf32>
    %c0_16 = arith.constant 0 : index
    %c0_17 = arith.constant 0 : index
    %20 = vector.load %arg8[%c0_16, %c0_17] : memref<64x1xf32, #tpu.memory_space<vmem>>, vector<64x1xf32>
    tpu.vector_store %arg8[%c0_16, %c0_17], %19 {strides = array<i32>} : memref<64x1xf32, #tpu.memory_space<vmem>>, vector<64x1xf32>,
    %c1_i32 = arith.constant 1 : i32
    %21 = arith.cmpi eq, %arg0, %c1_i32 : i32
    %c0_i32_18 = arith.constant 0 : i32
    %22 = arith.cmpi eq, %arg1, %c0_i32_18 : i32
    %23 = arith.andi %21, %22 : i1
    %24 = arith.extui %23 : i1 to i32
    %c0_i32_19 = arith.constant 0 : i32
    %25 = arith.cmpi ne, %24, %c0_i32_19 : i32
    scf.if %25 {
      %c0_20 = arith.constant 0 : index
      %c0_21 = arith.constant 0 : index
      %26 = vector.load %arg7[%c0_20, %c0_21] : memref<64x1xf32, #tpu.memory_space<vmem>>, vector<64x1xf32>
      %cst_22 = arith.constant 3.906250e-03 : f32
      %27 = vector.broadcast %cst_22 : f32 to vector<64x1xf32>
      %28 = arith.mulf %26, %27 : vector<64x1xf32>
      %c0_23 = arith.constant 0 : index
      %c0_24 = arith.constant 0 : index
      %29 = vector.load %arg8[%c0_23, %c0_24] : memref<64x1xf32, #tpu.memory_space<vmem>>, vector<64x1xf32>
      %cst_25 = arith.constant 3.906250e-03 : f32
      %30 = vector.broadcast %cst_25 : f32 to vector<64x1xf32>
      %31 = arith.mulf %29, %30 : vector<64x1xf32>
      %32 = arith.mulf %28, %28 : vector<64x1xf32>
      %33 = arith.subf %31, %32 : vector<64x1xf32>
      %cst_26 = arith.constant 0.000000e+00 : f32
      %34 = vector.broadcast %cst_26 : f32 to vector<64x1xf32>
      %35 = arith.maximumf %33, %34 : vector<64x1xf32>
      %c0_27 = arith.constant 0 : index
      %c0_28 = arith.constant 0 : index
      %36 = vector.load %arg5[%c0_27, %c0_28] : memref<64x1xf32, #tpu.memory_space<vmem>>, vector<64x1xf32>
      tpu.vector_store %arg5[%c0_27, %c0_28], %28 {strides = array<i32>} : memref<64x1xf32, #tpu.memory_space<vmem>>, vector<64x1xf32>,
      %cst_29 = arith.constant 9.99999974E-6 : f32
      %37 = vector.broadcast %cst_29 : f32 to vector<64x1xf32>
      %38 = arith.addf %35, %37 : vector<64x1xf32>
      %39 = math.rsqrt %38 : vector<64x1xf32>
      %c0_30 = arith.constant 0 : index
      %c0_31 = arith.constant 0 : index
      %40 = vector.load %arg6[%c0_30, %c0_31] : memref<64x1xf32, #tpu.memory_space<vmem>>, vector<64x1xf32>
      tpu.vector_store %arg6[%c0_30, %c0_31], %39 {strides = array<i32>} : memref<64x1xf32, #tpu.memory_space<vmem>>, vector<64x1xf32>,
    } else {
    }
    return
  }
  func.func @transform_0(%arg0: i32, %arg1: i32) -> (i32, i32, i32) {
    %c0_i32 = arith.constant 0 : i32
    %c0_i32_0 = arith.constant 0 : i32
    return %arg0, %c0_i32, %arg1 : i32, i32, i32
  }
  func.func @transform_1(%arg0: i32, %arg1: i32) -> (i32, i32) {
    %c0_i32 = arith.constant 0 : i32
    %c0_i32_0 = arith.constant 0 : i32
    %c0_i32_1 = arith.constant 0 : i32
    return %c0_i32, %c0_i32_0 : i32, i32
  }
  func.func @transform_2(%arg0: i32, %arg1: i32) -> (i32, i32) {
    %c1_i32 = arith.constant 1 : i32
    %0 = arith.muli %arg0, %c1_i32 : i32
    %1 = arith.addi %0, %arg1 : i32
    %c0_i32 = arith.constant 0 : i32
    %c0_i32_0 = arith.constant 0 : i32
    return %c0_i32, %1 : i32, i32
  }
  func.func @transform_3(%arg0: i32, %arg1: i32) -> (i32, i32) {
    %c0_i32 = arith.constant 0 : i32
    %c0_i32_0 = arith.constant 0 : i32
    %c0_i32_1 = arith.constant 0 : i32
    return %c0_i32, %c0_i32_0 : i32, i32
  }
  func.func @transform_4(%arg0: i32, %arg1: i32) -> (i32, i32) {
    %c0_i32 = arith.constant 0 : i32
    %c0_i32_0 = arith.constant 0 : i32
    %c0_i32_1 = arith.constant 0 : i32
    return %c0_i32, %c0_i32_0 : i32, i32
  }
}

module attributes {stable_mosaic.version = 11 : i64} {
  func.func @kernel(%arg0: i32, %arg1: memref<128x128xf32, #tpu.memory_space<vmem>>, %arg2: memref<128x1xf32, #tpu.memory_space<vmem>>, %arg3: memref<128x1xf32, #tpu.memory_space<vmem>>, %arg4: memref<128x1xf32, #tpu.memory_space<vmem>>, %arg5: memref<128x1xf32, #tpu.memory_space<vmem>>, %arg6: memref<256x128xf32, #tpu.memory_space<vmem>>, %arg7: memref<256x128xf32, #tpu.memory_space<vmem>>, %arg8: memref<256x1xf32, #tpu.memory_space<vmem>>, %arg9: memref<256x1xf32, #tpu.memory_space<vmem>>, %arg10: memref<256x1xf32, #tpu.memory_space<vmem>>, %arg11: memref<256x1xf32, #tpu.memory_space<vmem>>) attributes {dimension_semantics = [#tpu.dimension_semantics<arbitrary>], iteration_bounds = array<i64: 2>, scalar_prefetch = 0 : i64, scratch_operands = 2 : i64, tpu.core_type = #tpu.core_type<tc>, window_params = [{transform_indices = @transform_0, window_bounds = array<i64: 128, 128>}, {pipeline_mode = #tpu.pipeline_mode<synchronous>, transform_indices = @transform_1, window_bounds = array<i64: 128, 1>}, {pipeline_mode = #tpu.pipeline_mode<synchronous>, transform_indices = @transform_2, window_bounds = array<i64: 128, 1>}, {pipeline_mode = #tpu.pipeline_mode<synchronous>, transform_indices = @transform_3, window_bounds = array<i64: 128, 1>}, {pipeline_mode = #tpu.pipeline_mode<synchronous>, transform_indices = @transform_4, window_bounds = array<i64: 128, 1>}, {pipeline_mode = #tpu.pipeline_mode<synchronous>, transform_indices = @transform_5, window_bounds = array<i64: 256, 128>}, {transform_indices = @transform_6, window_bounds = array<i64: 256, 128>}, {pipeline_mode = #tpu.pipeline_mode<synchronous>, transform_indices = @transform_7, window_bounds = array<i64: 256, 1>}, {pipeline_mode = #tpu.pipeline_mode<synchronous>, transform_indices = @transform_8, window_bounds = array<i64: 256, 1>}]} {
    %c0_i32 = arith.constant 0 : i32
    %0 = arith.cmpi eq, %arg0, %c0_i32 : i32
    %1 = arith.extui %0 : i1 to i32
    %c0_i32_0 = arith.constant 0 : i32
    %2 = arith.cmpi ne, %1, %c0_i32_0 : i32
    scf.if %2 {
      %cst_26 = arith.constant 0.000000e+00 : f32
      %34 = vector.broadcast %cst_26 : f32 to vector<256x1xf32>
      %c0_27 = arith.constant 0 : index
      %c0_28 = arith.constant 0 : index
      %35 = vector.load %arg10[%c0_27, %c0_28] : memref<256x1xf32, #tpu.memory_space<vmem>>, vector<256x1xf32>
      tpu.vector_store %arg10[%c0_27, %c0_28], %34 {strides = array<i32>} : memref<256x1xf32, #tpu.memory_space<vmem>>, vector<256x1xf32>,
      %cst_29 = arith.constant 0.000000e+00 : f32
      %36 = vector.broadcast %cst_29 : f32 to vector<256x1xf32>
      %c0_30 = arith.constant 0 : index
      %c0_31 = arith.constant 0 : index
      %37 = vector.load %arg11[%c0_30, %c0_31] : memref<256x1xf32, #tpu.memory_space<vmem>>, vector<256x1xf32>
      tpu.vector_store %arg11[%c0_30, %c0_31], %36 {strides = array<i32>} : memref<256x1xf32, #tpu.memory_space<vmem>>, vector<256x1xf32>,
    } else {
    }
    %c0 = arith.constant 0 : index
    %c0_1 = arith.constant 0 : index
    %3 = vector.load %arg3[%c0, %c0_1] : memref<128x1xf32, #tpu.memory_space<vmem>>, vector<128x1xf32>
    %c0_2 = arith.constant 0 : index
    %c0_3 = arith.constant 0 : index
    %4 = vector.load %arg4[%c0_2, %c0_3] : memref<128x1xf32, #tpu.memory_space<vmem>>, vector<128x1xf32>
    %5 = arith.mulf %3, %4 : vector<128x1xf32>
    %c0_4 = arith.constant 0 : index
    %c0_5 = arith.constant 0 : index
    %6 = vector.load %arg5[%c0_4, %c0_5] : memref<128x1xf32, #tpu.memory_space<vmem>>, vector<128x1xf32>
    %c0_6 = arith.constant 0 : index
    %c0_7 = arith.constant 0 : index
    %7 = vector.load %arg2[%c0_6, %c0_7] : memref<128x1xf32, #tpu.memory_space<vmem>>, vector<128x1xf32>
    %8 = arith.mulf %7, %5 : vector<128x1xf32>
    %9 = arith.subf %6, %8 : vector<128x1xf32>
    %c0_8 = arith.constant 0 : index
    %c0_9 = arith.constant 0 : index
    %10 = vector.load %arg1[%c0_8, %c0_9] : memref<128x128xf32, #tpu.memory_space<vmem>>, vector<128x128xf32>
    %11 = vector.broadcast %5 : vector<128x1xf32> to vector<128x128xf32>
    %12 = arith.mulf %10, %11 : vector<128x128xf32>
    %13 = vector.broadcast %9 : vector<128x1xf32> to vector<128x128xf32>
    %14 = arith.addf %12, %13 : vector<128x128xf32>
    %cst = arith.constant 0.000000e+00 : f32
    %15 = vector.broadcast %cst : f32 to vector<128x128xf32>
    %16 = arith.maximumf %14, %15 : vector<128x128xf32>
    %c0_10 = arith.constant 0 : index
    %c0_11 = arith.constant 0 : index
    %17 = vector.load %arg6[%c0_10, %c0_11] : memref<256x128xf32, #tpu.memory_space<vmem>>, vector<256x128xf32>
    %cst_12 = arith.constant dense<0.000000e+00> : vector<256x128xf32>
    %18 = tpu.matmul %17, %16, %cst_12 {dimension_numbers = #tpu.dot_dimension_numbers<[1], [0], [0], [1], [0, 0, 1, 1], [], []>} : vector<256x128xf32>, vector<128x128xf32>, vector<256x128xf32> -> vector<256x128xf32>
    %c0_13 = arith.constant 0 : index
    %c0_14 = arith.constant 0 : index
    %19 = vector.load %arg7[%c0_13, %c0_14] : memref<256x128xf32, #tpu.memory_space<vmem>>, vector<256x128xf32>
    tpu.vector_store %arg7[%c0_13, %c0_14], %18 {strides = array<i32>} : memref<256x128xf32, #tpu.memory_space<vmem>>, vector<256x128xf32>,
    %c0_15 = arith.constant 0 : index
    %c0_16 = arith.constant 0 : index
    %20 = vector.load %arg10[%c0_15, %c0_16] : memref<256x1xf32, #tpu.memory_space<vmem>>, vector<256x1xf32>
    %cst_17 = arith.constant dense<0.000000e+00> : vector<256xf32>
    %21 = vector.multi_reduction <add>, %18, %cst_17 [1] : vector<256x128xf32> to vector<256xf32>
    %22 = vector.shape_cast %21 : vector<256xf32> to vector<256x1xf32>
    %23 = arith.addf %20, %22 : vector<256x1xf32>
    %c0_18 = arith.constant 0 : index
    %c0_19 = arith.constant 0 : index
    %24 = vector.load %arg10[%c0_18, %c0_19] : memref<256x1xf32, #tpu.memory_space<vmem>>, vector<256x1xf32>
    tpu.vector_store %arg10[%c0_18, %c0_19], %23 {strides = array<i32>} : memref<256x1xf32, #tpu.memory_space<vmem>>, vector<256x1xf32>,
    %c0_20 = arith.constant 0 : index
    %c0_21 = arith.constant 0 : index
    %25 = vector.load %arg11[%c0_20, %c0_21] : memref<256x1xf32, #tpu.memory_space<vmem>>, vector<256x1xf32>
    %26 = arith.mulf %18, %18 : vector<256x128xf32>
    %cst_22 = arith.constant dense<0.000000e+00> : vector<256xf32>
    %27 = vector.multi_reduction <add>, %26, %cst_22 [1] : vector<256x128xf32> to vector<256xf32>
    %28 = vector.shape_cast %27 : vector<256xf32> to vector<256x1xf32>
    %29 = arith.addf %25, %28 : vector<256x1xf32>
    %c0_23 = arith.constant 0 : index
    %c0_24 = arith.constant 0 : index
    %30 = vector.load %arg11[%c0_23, %c0_24] : memref<256x1xf32, #tpu.memory_space<vmem>>, vector<256x1xf32>
    tpu.vector_store %arg11[%c0_23, %c0_24], %29 {strides = array<i32>} : memref<256x1xf32, #tpu.memory_space<vmem>>, vector<256x1xf32>,
    %c1_i32 = arith.constant 1 : i32
    %31 = arith.cmpi eq, %arg0, %c1_i32 : i32
    %32 = arith.extui %31 : i1 to i32
    %c0_i32_25 = arith.constant 0 : i32
    %33 = arith.cmpi ne, %32, %c0_i32_25 : i32
    scf.if %33 {
      %c0_26 = arith.constant 0 : index
      %c0_27 = arith.constant 0 : index
      %34 = vector.load %arg10[%c0_26, %c0_27] : memref<256x1xf32, #tpu.memory_space<vmem>>, vector<256x1xf32>
      %cst_28 = arith.constant 3.906250e-03 : f32
      %35 = vector.broadcast %cst_28 : f32 to vector<256x1xf32>
      %36 = arith.mulf %34, %35 : vector<256x1xf32>
      %c0_29 = arith.constant 0 : index
      %c0_30 = arith.constant 0 : index
      %37 = vector.load %arg11[%c0_29, %c0_30] : memref<256x1xf32, #tpu.memory_space<vmem>>, vector<256x1xf32>
      %cst_31 = arith.constant 3.906250e-03 : f32
      %38 = vector.broadcast %cst_31 : f32 to vector<256x1xf32>
      %39 = arith.mulf %37, %38 : vector<256x1xf32>
      %40 = arith.mulf %36, %36 : vector<256x1xf32>
      %41 = arith.subf %39, %40 : vector<256x1xf32>
      %cst_32 = arith.constant 0.000000e+00 : f32
      %42 = vector.broadcast %cst_32 : f32 to vector<256x1xf32>
      %43 = arith.maximumf %41, %42 : vector<256x1xf32>
      %c0_33 = arith.constant 0 : index
      %c0_34 = arith.constant 0 : index
      %44 = vector.load %arg8[%c0_33, %c0_34] : memref<256x1xf32, #tpu.memory_space<vmem>>, vector<256x1xf32>
      tpu.vector_store %arg8[%c0_33, %c0_34], %36 {strides = array<i32>} : memref<256x1xf32, #tpu.memory_space<vmem>>, vector<256x1xf32>,
      %cst_35 = arith.constant 9.99999974E-6 : f32
      %45 = vector.broadcast %cst_35 : f32 to vector<256x1xf32>
      %46 = arith.addf %43, %45 : vector<256x1xf32>
      %47 = math.rsqrt %46 : vector<256x1xf32>
      %c0_36 = arith.constant 0 : index
      %c0_37 = arith.constant 0 : index
      %48 = vector.load %arg9[%c0_36, %c0_37] : memref<256x1xf32, #tpu.memory_space<vmem>>, vector<256x1xf32>
      tpu.vector_store %arg9[%c0_36, %c0_37], %47 {strides = array<i32>} : memref<256x1xf32, #tpu.memory_space<vmem>>, vector<256x1xf32>,
    } else {
    }
    return
  }
  func.func @transform_0(%arg0: i32) -> (i32, i32) {
    %c0_i32 = arith.constant 0 : i32
    %c0_i32_0 = arith.constant 0 : i32
    return %c0_i32, %arg0 : i32, i32
  }
  func.func @transform_1(%arg0: i32) -> (i32, i32) {
    %c0_i32 = arith.constant 0 : i32
    %c0_i32_0 = arith.constant 0 : i32
    %c0_i32_1 = arith.constant 0 : i32
    return %c0_i32, %c0_i32_0 : i32, i32
  }
  func.func @transform_2(%arg0: i32) -> (i32, i32) {
    %c0_i32 = arith.constant 0 : i32
    %c0_i32_0 = arith.constant 0 : i32
    %c0_i32_1 = arith.constant 0 : i32
    return %c0_i32, %c0_i32_0 : i32, i32
  }
  func.func @transform_3(%arg0: i32) -> (i32, i32) {
    %c0_i32 = arith.constant 0 : i32
    %c0_i32_0 = arith.constant 0 : i32
    %c0_i32_1 = arith.constant 0 : i32
    return %c0_i32, %c0_i32_0 : i32, i32
  }
  func.func @transform_4(%arg0: i32) -> (i32, i32) {
    %c0_i32 = arith.constant 0 : i32
    %c0_i32_0 = arith.constant 0 : i32
    %c0_i32_1 = arith.constant 0 : i32
    return %c0_i32, %c0_i32_0 : i32, i32
  }
  func.func @transform_5(%arg0: i32) -> (i32, i32) {
    %c0_i32 = arith.constant 0 : i32
    %c0_i32_0 = arith.constant 0 : i32
    %c0_i32_1 = arith.constant 0 : i32
    return %c0_i32, %c0_i32_0 : i32, i32
  }
  func.func @transform_6(%arg0: i32) -> (i32, i32) {
    %c0_i32 = arith.constant 0 : i32
    %c0_i32_0 = arith.constant 0 : i32
    return %c0_i32, %arg0 : i32, i32
  }
  func.func @transform_7(%arg0: i32) -> (i32, i32) {
    %c0_i32 = arith.constant 0 : i32
    %c0_i32_0 = arith.constant 0 : i32
    %c0_i32_1 = arith.constant 0 : i32
    return %c0_i32, %c0_i32_0 : i32, i32
  }
  func.func @transform_8(%arg0: i32) -> (i32, i32) {
    %c0_i32 = arith.constant 0 : i32
    %c0_i32_0 = arith.constant 0 : i32
    %c0_i32_1 = arith.constant 0 : i32
    return %c0_i32, %c0_i32_0 : i32, i32
  }
}

module attributes {stable_mosaic.version = 11 : i64} {
  func.func @kernel(%arg0: i32, %arg1: memref<64x128xf32, #tpu.memory_space<vmem>>, %arg2: memref<64x1xf32, #tpu.memory_space<vmem>>, %arg3: memref<64x1xf32, #tpu.memory_space<vmem>>, %arg4: memref<64x1xf32, #tpu.memory_space<vmem>>, %arg5: memref<64x1xf32, #tpu.memory_space<vmem>>, %arg6: memref<128x64xf32, #tpu.memory_space<vmem>>, %arg7: memref<128x128xf32, #tpu.memory_space<vmem>>, %arg8: memref<128x1xf32, #tpu.memory_space<vmem>>, %arg9: memref<128x1xf32, #tpu.memory_space<vmem>>, %arg10: memref<128x1xf32, #tpu.memory_space<vmem>>, %arg11: memref<128x1xf32, #tpu.memory_space<vmem>>) attributes {dimension_semantics = [#tpu.dimension_semantics<arbitrary>], iteration_bounds = array<i64: 2>, scalar_prefetch = 0 : i64, scratch_operands = 2 : i64, tpu.core_type = #tpu.core_type<tc>, window_params = [{transform_indices = @transform_0, window_bounds = array<i64: 64, 128>}, {pipeline_mode = #tpu.pipeline_mode<synchronous>, transform_indices = @transform_1, window_bounds = array<i64: 64, 1>}, {pipeline_mode = #tpu.pipeline_mode<synchronous>, transform_indices = @transform_2, window_bounds = array<i64: 64, 1>}, {pipeline_mode = #tpu.pipeline_mode<synchronous>, transform_indices = @transform_3, window_bounds = array<i64: 64, 1>}, {pipeline_mode = #tpu.pipeline_mode<synchronous>, transform_indices = @transform_4, window_bounds = array<i64: 64, 1>}, {pipeline_mode = #tpu.pipeline_mode<synchronous>, transform_indices = @transform_5, window_bounds = array<i64: 128, 64>}, {transform_indices = @transform_6, window_bounds = array<i64: 128, 128>}, {pipeline_mode = #tpu.pipeline_mode<synchronous>, transform_indices = @transform_7, window_bounds = array<i64: 128, 1>}, {pipeline_mode = #tpu.pipeline_mode<synchronous>, transform_indices = @transform_8, window_bounds = array<i64: 128, 1>}]} {
    %c0_i32 = arith.constant 0 : i32
    %0 = arith.cmpi eq, %arg0, %c0_i32 : i32
    %1 = arith.extui %0 : i1 to i32
    %c0_i32_0 = arith.constant 0 : i32
    %2 = arith.cmpi ne, %1, %c0_i32_0 : i32
    scf.if %2 {
      %cst_26 = arith.constant 0.000000e+00 : f32
      %34 = vector.broadcast %cst_26 : f32 to vector<128x1xf32>
      %c0_27 = arith.constant 0 : index
      %c0_28 = arith.constant 0 : index
      %35 = vector.load %arg10[%c0_27, %c0_28] : memref<128x1xf32, #tpu.memory_space<vmem>>, vector<128x1xf32>
      tpu.vector_store %arg10[%c0_27, %c0_28], %34 {strides = array<i32>} : memref<128x1xf32, #tpu.memory_space<vmem>>, vector<128x1xf32>,
      %cst_29 = arith.constant 0.000000e+00 : f32
      %36 = vector.broadcast %cst_29 : f32 to vector<128x1xf32>
      %c0_30 = arith.constant 0 : index
      %c0_31 = arith.constant 0 : index
      %37 = vector.load %arg11[%c0_30, %c0_31] : memref<128x1xf32, #tpu.memory_space<vmem>>, vector<128x1xf32>
      tpu.vector_store %arg11[%c0_30, %c0_31], %36 {strides = array<i32>} : memref<128x1xf32, #tpu.memory_space<vmem>>, vector<128x1xf32>,
    } else {
    }
    %c0 = arith.constant 0 : index
    %c0_1 = arith.constant 0 : index
    %3 = vector.load %arg3[%c0, %c0_1] : memref<64x1xf32, #tpu.memory_space<vmem>>, vector<64x1xf32>
    %c0_2 = arith.constant 0 : index
    %c0_3 = arith.constant 0 : index
    %4 = vector.load %arg4[%c0_2, %c0_3] : memref<64x1xf32, #tpu.memory_space<vmem>>, vector<64x1xf32>
    %5 = arith.mulf %3, %4 : vector<64x1xf32>
    %c0_4 = arith.constant 0 : index
    %c0_5 = arith.constant 0 : index
    %6 = vector.load %arg5[%c0_4, %c0_5] : memref<64x1xf32, #tpu.memory_space<vmem>>, vector<64x1xf32>
    %c0_6 = arith.constant 0 : index
    %c0_7 = arith.constant 0 : index
    %7 = vector.load %arg2[%c0_6, %c0_7] : memref<64x1xf32, #tpu.memory_space<vmem>>, vector<64x1xf32>
    %8 = arith.mulf %7, %5 : vector<64x1xf32>
    %9 = arith.subf %6, %8 : vector<64x1xf32>
    %c0_8 = arith.constant 0 : index
    %c0_9 = arith.constant 0 : index
    %10 = vector.load %arg1[%c0_8, %c0_9] : memref<64x128xf32, #tpu.memory_space<vmem>>, vector<64x128xf32>
    %11 = vector.broadcast %5 : vector<64x1xf32> to vector<64x128xf32>
    %12 = arith.mulf %10, %11 : vector<64x128xf32>
    %13 = vector.broadcast %9 : vector<64x1xf32> to vector<64x128xf32>
    %14 = arith.addf %12, %13 : vector<64x128xf32>
    %cst = arith.constant 0.000000e+00 : f32
    %15 = vector.broadcast %cst : f32 to vector<64x128xf32>
    %16 = arith.maximumf %14, %15 : vector<64x128xf32>
    %c0_10 = arith.constant 0 : index
    %c0_11 = arith.constant 0 : index
    %17 = vector.load %arg6[%c0_10, %c0_11] : memref<128x64xf32, #tpu.memory_space<vmem>>, vector<128x64xf32>
    %cst_12 = arith.constant dense<0.000000e+00> : vector<128x128xf32>
    %18 = tpu.matmul %17, %16, %cst_12 {dimension_numbers = #tpu.dot_dimension_numbers<[1], [0], [0], [1], [0, 0, 1, 1], [], []>} : vector<128x64xf32>, vector<64x128xf32>, vector<128x128xf32> -> vector<128x128xf32>
    %c0_13 = arith.constant 0 : index
    %c0_14 = arith.constant 0 : index
    %19 = vector.load %arg7[%c0_13, %c0_14] : memref<128x128xf32, #tpu.memory_space<vmem>>, vector<128x128xf32>
    tpu.vector_store %arg7[%c0_13, %c0_14], %18 {strides = array<i32>} : memref<128x128xf32, #tpu.memory_space<vmem>>, vector<128x128xf32>,
    %c0_15 = arith.constant 0 : index
    %c0_16 = arith.constant 0 : index
    %20 = vector.load %arg10[%c0_15, %c0_16] : memref<128x1xf32, #tpu.memory_space<vmem>>, vector<128x1xf32>
    %cst_17 = arith.constant dense<0.000000e+00> : vector<128xf32>
    %21 = vector.multi_reduction <add>, %18, %cst_17 [1] : vector<128x128xf32> to vector<128xf32>
    %22 = vector.shape_cast %21 : vector<128xf32> to vector<128x1xf32>
    %23 = arith.addf %20, %22 : vector<128x1xf32>
    %c0_18 = arith.constant 0 : index
    %c0_19 = arith.constant 0 : index
    %24 = vector.load %arg10[%c0_18, %c0_19] : memref<128x1xf32, #tpu.memory_space<vmem>>, vector<128x1xf32>
    tpu.vector_store %arg10[%c0_18, %c0_19], %23 {strides = array<i32>} : memref<128x1xf32, #tpu.memory_space<vmem>>, vector<128x1xf32>,
    %c0_20 = arith.constant 0 : index
    %c0_21 = arith.constant 0 : index
    %25 = vector.load %arg11[%c0_20, %c0_21] : memref<128x1xf32, #tpu.memory_space<vmem>>, vector<128x1xf32>
    %26 = arith.mulf %18, %18 : vector<128x128xf32>
    %cst_22 = arith.constant dense<0.000000e+00> : vector<128xf32>
    %27 = vector.multi_reduction <add>, %26, %cst_22 [1] : vector<128x128xf32> to vector<128xf32>
    %28 = vector.shape_cast %27 : vector<128xf32> to vector<128x1xf32>
    %29 = arith.addf %25, %28 : vector<128x1xf32>
    %c0_23 = arith.constant 0 : index
    %c0_24 = arith.constant 0 : index
    %30 = vector.load %arg11[%c0_23, %c0_24] : memref<128x1xf32, #tpu.memory_space<vmem>>, vector<128x1xf32>
    tpu.vector_store %arg11[%c0_23, %c0_24], %29 {strides = array<i32>} : memref<128x1xf32, #tpu.memory_space<vmem>>, vector<128x1xf32>,
    %c1_i32 = arith.constant 1 : i32
    %31 = arith.cmpi eq, %arg0, %c1_i32 : i32
    %32 = arith.extui %31 : i1 to i32
    %c0_i32_25 = arith.constant 0 : i32
    %33 = arith.cmpi ne, %32, %c0_i32_25 : i32
    scf.if %33 {
      %c0_26 = arith.constant 0 : index
      %c0_27 = arith.constant 0 : index
      %34 = vector.load %arg10[%c0_26, %c0_27] : memref<128x1xf32, #tpu.memory_space<vmem>>, vector<128x1xf32>
      %cst_28 = arith.constant 3.906250e-03 : f32
      %35 = vector.broadcast %cst_28 : f32 to vector<128x1xf32>
      %36 = arith.mulf %34, %35 : vector<128x1xf32>
      %c0_29 = arith.constant 0 : index
      %c0_30 = arith.constant 0 : index
      %37 = vector.load %arg11[%c0_29, %c0_30] : memref<128x1xf32, #tpu.memory_space<vmem>>, vector<128x1xf32>
      %cst_31 = arith.constant 3.906250e-03 : f32
      %38 = vector.broadcast %cst_31 : f32 to vector<128x1xf32>
      %39 = arith.mulf %37, %38 : vector<128x1xf32>
      %40 = arith.mulf %36, %36 : vector<128x1xf32>
      %41 = arith.subf %39, %40 : vector<128x1xf32>
      %cst_32 = arith.constant 0.000000e+00 : f32
      %42 = vector.broadcast %cst_32 : f32 to vector<128x1xf32>
      %43 = arith.maximumf %41, %42 : vector<128x1xf32>
      %c0_33 = arith.constant 0 : index
      %c0_34 = arith.constant 0 : index
      %44 = vector.load %arg8[%c0_33, %c0_34] : memref<128x1xf32, #tpu.memory_space<vmem>>, vector<128x1xf32>
      tpu.vector_store %arg8[%c0_33, %c0_34], %36 {strides = array<i32>} : memref<128x1xf32, #tpu.memory_space<vmem>>, vector<128x1xf32>,
      %cst_35 = arith.constant 9.99999974E-6 : f32
      %45 = vector.broadcast %cst_35 : f32 to vector<128x1xf32>
      %46 = arith.addf %43, %45 : vector<128x1xf32>
      %47 = math.rsqrt %46 : vector<128x1xf32>
      %c0_36 = arith.constant 0 : index
      %c0_37 = arith.constant 0 : index
      %48 = vector.load %arg9[%c0_36, %c0_37] : memref<128x1xf32, #tpu.memory_space<vmem>>, vector<128x1xf32>
      tpu.vector_store %arg9[%c0_36, %c0_37], %47 {strides = array<i32>} : memref<128x1xf32, #tpu.memory_space<vmem>>, vector<128x1xf32>,
    } else {
    }
    return
  }
  func.func @transform_0(%arg0: i32) -> (i32, i32) {
    %c0_i32 = arith.constant 0 : i32
    %c0_i32_0 = arith.constant 0 : i32
    return %c0_i32, %arg0 : i32, i32
  }
  func.func @transform_1(%arg0: i32) -> (i32, i32) {
    %c0_i32 = arith.constant 0 : i32
    %c0_i32_0 = arith.constant 0 : i32
    %c0_i32_1 = arith.constant 0 : i32
    return %c0_i32, %c0_i32_0 : i32, i32
  }
  func.func @transform_2(%arg0: i32) -> (i32, i32) {
    %c0_i32 = arith.constant 0 : i32
    %c0_i32_0 = arith.constant 0 : i32
    %c0_i32_1 = arith.constant 0 : i32
    return %c0_i32, %c0_i32_0 : i32, i32
  }
  func.func @transform_3(%arg0: i32) -> (i32, i32) {
    %c0_i32 = arith.constant 0 : i32
    %c0_i32_0 = arith.constant 0 : i32
    %c0_i32_1 = arith.constant 0 : i32
    return %c0_i32, %c0_i32_0 : i32, i32
  }
  func.func @transform_4(%arg0: i32) -> (i32, i32) {
    %c0_i32 = arith.constant 0 : i32
    %c0_i32_0 = arith.constant 0 : i32
    %c0_i32_1 = arith.constant 0 : i32
    return %c0_i32, %c0_i32_0 : i32, i32
  }
  func.func @transform_5(%arg0: i32) -> (i32, i32) {
    %c0_i32 = arith.constant 0 : i32
    %c0_i32_0 = arith.constant 0 : i32
    %c0_i32_1 = arith.constant 0 : i32
    return %c0_i32, %c0_i32_0 : i32, i32
  }
  func.func @transform_6(%arg0: i32) -> (i32, i32) {
    %c0_i32 = arith.constant 0 : i32
    %c0_i32_0 = arith.constant 0 : i32
    return %c0_i32, %arg0 : i32, i32
  }
  func.func @transform_7(%arg0: i32) -> (i32, i32) {
    %c0_i32 = arith.constant 0 : i32
    %c0_i32_0 = arith.constant 0 : i32
    %c0_i32_1 = arith.constant 0 : i32
    return %c0_i32, %c0_i32_0 : i32, i32
  }
  func.func @transform_8(%arg0: i32) -> (i32, i32) {
    %c0_i32 = arith.constant 0 : i32
    %c0_i32_0 = arith.constant 0 : i32
    %c0_i32_1 = arith.constant 0 : i32
    return %c0_i32, %c0_i32_0 : i32, i32
  }
}

module attributes {stable_mosaic.version = 11 : i64} {
  func.func @kernel(%arg0: i32, %arg1: i32, %arg2: memref<256x128xf32, #tpu.memory_space<vmem>>, %arg3: memref<256x1xf32, #tpu.memory_space<vmem>>, %arg4: memref<256x1xf32, #tpu.memory_space<vmem>>, %arg5: memref<256x1xf32, #tpu.memory_space<vmem>>, %arg6: memref<256x1xf32, #tpu.memory_space<vmem>>, %arg7: memref<256x2xf32, #tpu.memory_space<vmem>>) attributes {dimension_semantics = [#tpu.dimension_semantics<arbitrary>, #tpu.dimension_semantics<arbitrary>], iteration_bounds = array<i64: 2, 1>, scalar_prefetch = 0 : i64, scratch_operands = 0 : i64, tpu.core_type = #tpu.core_type<tc>, window_params = [{transform_indices = @transform_0, window_bounds = array<i64: 256, 128>}, {pipeline_mode = #tpu.pipeline_mode<synchronous>, transform_indices = @transform_1, window_bounds = array<i64: 256, 1>}, {pipeline_mode = #tpu.pipeline_mode<synchronous>, transform_indices = @transform_2, window_bounds = array<i64: 256, 1>}, {pipeline_mode = #tpu.pipeline_mode<synchronous>, transform_indices = @transform_3, window_bounds = array<i64: 256, 1>}, {pipeline_mode = #tpu.pipeline_mode<synchronous>, transform_indices = @transform_4, window_bounds = array<i64: 256, 1>}, {pipeline_mode = #tpu.pipeline_mode<synchronous>, transform_indices = @transform_5, window_bounds = array<i64: 256, 2>}]} {
    %c0_i32 = arith.constant 0 : i32
    %0 = arith.cmpi eq, %arg0, %c0_i32 : i32
    %c0_i32_0 = arith.constant 0 : i32
    %1 = arith.cmpi eq, %arg1, %c0_i32_0 : i32
    %2 = arith.andi %0, %1 : i1
    %3 = arith.extui %2 : i1 to i32
    %c0_i32_1 = arith.constant 0 : i32
    %4 = arith.cmpi ne, %3, %c0_i32_1 : i32
    scf.if %4 {
      %cst_16 = arith.constant 0xFF800000 : f32
      %29 = vector.broadcast %cst_16 : f32 to vector<256x2xf32>
      %c0_17 = arith.constant 0 : index
      %c0_18 = arith.constant 0 : index
      %30 = vector.load %arg7[%c0_17, %c0_18] : memref<256x2xf32, #tpu.memory_space<vmem>>, vector<256x2xf32>
      tpu.vector_store %arg7[%c0_17, %c0_18], %29 {strides = array<i32>} : memref<256x2xf32, #tpu.memory_space<vmem>>, vector<256x2xf32>,
    } else {
    }
    %c0 = arith.constant 0 : index
    %c0_2 = arith.constant 0 : index
    %5 = vector.load %arg4[%c0, %c0_2] : memref<256x1xf32, #tpu.memory_space<vmem>>, vector<256x1xf32>
    %c0_3 = arith.constant 0 : index
    %c0_4 = arith.constant 0 : index
    %6 = vector.load %arg5[%c0_3, %c0_4] : memref<256x1xf32, #tpu.memory_space<vmem>>, vector<256x1xf32>
    %7 = arith.mulf %5, %6 : vector<256x1xf32>
    %c0_5 = arith.constant 0 : index
    %c0_6 = arith.constant 0 : index
    %8 = vector.load %arg6[%c0_5, %c0_6] : memref<256x1xf32, #tpu.memory_space<vmem>>, vector<256x1xf32>
    %c0_7 = arith.constant 0 : index
    %c0_8 = arith.constant 0 : index
    %9 = vector.load %arg3[%c0_7, %c0_8] : memref<256x1xf32, #tpu.memory_space<vmem>>, vector<256x1xf32>
    %10 = arith.mulf %9, %7 : vector<256x1xf32>
    %11 = arith.subf %8, %10 : vector<256x1xf32>
    %c0_9 = arith.constant 0 : index
    %c0_10 = arith.constant 0 : index
    %12 = vector.load %arg2[%c0_9, %c0_10] : memref<256x128xf32, #tpu.memory_space<vmem>>, vector<256x128xf32>
    %13 = vector.broadcast %7 : vector<256x1xf32> to vector<256x128xf32>
    %14 = arith.mulf %12, %13 : vector<256x128xf32>
    %15 = vector.broadcast %11 : vector<256x1xf32> to vector<256x128xf32>
    %16 = arith.addf %14, %15 : vector<256x128xf32>
    %cst = arith.constant 0.000000e+00 : f32
    %17 = vector.broadcast %cst : f32 to vector<256x128xf32>
    %18 = arith.maximumf %16, %17 : vector<256x128xf32>
    %cst_11 = arith.constant dense<0xFF800000> : vector<256xf32>
    %19 = vector.multi_reduction <maximumf>, %18, %cst_11 [1] : vector<256x128xf32> to vector<256xf32>
    %20 = vector.shape_cast %19 : vector<256xf32> to vector<256x1xf32>
    %21 = tpu.iota {dimensions = array<i32: 1>} : vector<256x2xi32>
    %c0_12 = arith.constant 0 : index
    %c0_13 = arith.constant 0 : index
    %22 = vector.load %arg7[%c0_12, %c0_13] : memref<256x2xf32, #tpu.memory_space<vmem>>, vector<256x2xf32>
    %23 = vector.broadcast %arg0 : i32 to vector<256x2xi32>
    %24 = arith.cmpi eq, %21, %23 : vector<256x2xi32>
    %25 = vector.broadcast %20 : vector<256x1xf32> to vector<256x2xf32>
    %26 = arith.maximumf %22, %25 : vector<256x2xf32>
    %27 = arith.select %24, %26, %22 : vector<256x2xi1>, vector<256x2xf32>
    %c0_14 = arith.constant 0 : index
    %c0_15 = arith.constant 0 : index
    %28 = vector.load %arg7[%c0_14, %c0_15] : memref<256x2xf32, #tpu.memory_space<vmem>>, vector<256x2xf32>
    tpu.vector_store %arg7[%c0_14, %c0_15], %27 {strides = array<i32>} : memref<256x2xf32, #tpu.memory_space<vmem>>, vector<256x2xf32>,
    return
  }
  func.func @transform_0(%arg0: i32, %arg1: i32) -> (i32, i32) {
    %c1_i32 = arith.constant 1 : i32
    %0 = arith.muli %arg0, %c1_i32 : i32
    %1 = arith.addi %0, %arg1 : i32
    %c0_i32 = arith.constant 0 : i32
    %c0_i32_0 = arith.constant 0 : i32
    return %c0_i32, %1 : i32, i32
  }
  func.func @transform_1(%arg0: i32, %arg1: i32) -> (i32, i32) {
    %c0_i32 = arith.constant 0 : i32
    %c0_i32_0 = arith.constant 0 : i32
    %c0_i32_1 = arith.constant 0 : i32
    return %c0_i32, %c0_i32_0 : i32, i32
  }
  func.func @transform_2(%arg0: i32, %arg1: i32) -> (i32, i32) {
    %c0_i32 = arith.constant 0 : i32
    %c0_i32_0 = arith.constant 0 : i32
    %c0_i32_1 = arith.constant 0 : i32
    return %c0_i32, %c0_i32_0 : i32, i32
  }
  func.func @transform_3(%arg0: i32, %arg1: i32) -> (i32, i32) {
    %c0_i32 = arith.constant 0 : i32
    %c0_i32_0 = arith.constant 0 : i32
    %c0_i32_1 = arith.constant 0 : i32
    return %c0_i32, %c0_i32_0 : i32, i32
  }
  func.func @transform_4(%arg0: i32, %arg1: i32) -> (i32, i32) {
    %c0_i32 = arith.constant 0 : i32
    %c0_i32_0 = arith.constant 0 : i32
    %c0_i32_1 = arith.constant 0 : i32
    return %c0_i32, %c0_i32_0 : i32, i32
  }
  func.func @transform_5(%arg0: i32, %arg1: i32) -> (i32, i32) {
    %c0_i32 = arith.constant 0 : i32
    %c0_i32_0 = arith.constant 0 : i32
    %c0_i32_1 = arith.constant 0 : i32
    return %c0_i32, %c0_i32_0 : i32, i32
  }
}

module attributes {stable_mosaic.version = 11 : i64} {
  func.func @kernel(%arg0: memref<2x256xf32, #tpu.memory_space<vmem>>, %arg1: memref<2x8xf32, #tpu.memory_space<vmem>>, %arg2: memref<2x16xf32, #tpu.memory_space<vmem>>, %arg3: memref<256x128xf32, #tpu.memory_space<vmem>>, %arg4: memref<8x128xf32, #tpu.memory_space<vmem>>, %arg5: memref<1x128xf32, #tpu.memory_space<vmem>>, %arg6: memref<128x16xf32, #tpu.memory_space<vmem>>, %arg7: memref<1x16xf32, #tpu.memory_space<vmem>>, %arg8: memref<128x16xf32, #tpu.memory_space<vmem>>, %arg9: memref<1x16xf32, #tpu.memory_space<vmem>>, %arg10: memref<16x256xf32, #tpu.memory_space<vmem>>, %arg11: memref<8x256xf32, #tpu.memory_space<vmem>>, %arg12: memref<1x256xf32, #tpu.memory_space<vmem>>, %arg13: memref<256x512xf32, #tpu.memory_space<vmem>>, %arg14: memref<1x512xf32, #tpu.memory_space<vmem>>, %arg15: memref<512x512xf32, #tpu.memory_space<vmem>>, %arg16: memref<1x512xf32, #tpu.memory_space<vmem>>, %arg17: memref<2x512xf32, #tpu.memory_space<vmem>>, %arg18: memref<2x32xf32, #tpu.memory_space<vmem>>) attributes {dimension_semantics = [], scalar_prefetch = 0 : i64, scratch_operands = 0 : i64, tpu.core_type = #tpu.core_type<tc>} {
    %c0 = arith.constant 0 : index
    %c0_0 = arith.constant 0 : index
    %0 = vector.load %arg0[%c0, %c0_0] : memref<2x256xf32, #tpu.memory_space<vmem>>, vector<2x256xf32>
    %c0_1 = arith.constant 0 : index
    %c0_2 = arith.constant 0 : index
    %1 = vector.load %arg1[%c0_1, %c0_2] : memref<2x8xf32, #tpu.memory_space<vmem>>, vector<2x8xf32>
    %c0_3 = arith.constant 0 : index
    %c0_4 = arith.constant 0 : index
    %2 = vector.load %arg3[%c0_3, %c0_4] : memref<256x128xf32, #tpu.memory_space<vmem>>, vector<256x128xf32>
    %cst = arith.constant dense<0.000000e+00> : vector<2x128xf32>
    %3 = tpu.matmul %0, %2, %cst {dimension_numbers = #tpu.dot_dimension_numbers<[1], [0], [0], [1], [0, 0, 1, 1], [], []>} : vector<2x256xf32>, vector<256x128xf32>, vector<2x128xf32> -> vector<2x128xf32>
    %c0_5 = arith.constant 0 : index
    %c0_6 = arith.constant 0 : index
    %4 = vector.load %arg4[%c0_5, %c0_6] : memref<8x128xf32, #tpu.memory_space<vmem>>, vector<8x128xf32>
    %cst_7 = arith.constant dense<0.000000e+00> : vector<2x128xf32>
    %5 = tpu.matmul %1, %4, %cst_7 {dimension_numbers = #tpu.dot_dimension_numbers<[1], [0], [0], [1], [0, 0, 1, 1], [], []>} : vector<2x8xf32>, vector<8x128xf32>, vector<2x128xf32> -> vector<2x128xf32>
    %6 = arith.addf %3, %5 : vector<2x128xf32>
    %c0_8 = arith.constant 0 : index
    %c0_9 = arith.constant 0 : index
    %7 = vector.load %arg5[%c0_8, %c0_9] : memref<1x128xf32, #tpu.memory_space<vmem>>, vector<1x128xf32>
    %8 = vector.broadcast %7 : vector<1x128xf32> to vector<2x128xf32>
    %9 = arith.addf %6, %8 : vector<2x128xf32>
    %cst_10 = arith.constant 0.000000e+00 : f32
    %10 = vector.broadcast %cst_10 : f32 to vector<2x128xf32>
    %11 = arith.maximumf %9, %10 : vector<2x128xf32>
    %c0_11 = arith.constant 0 : index
    %c0_12 = arith.constant 0 : index
    %12 = vector.load %arg6[%c0_11, %c0_12] : memref<128x16xf32, #tpu.memory_space<vmem>>, vector<128x16xf32>
    %cst_13 = arith.constant dense<0.000000e+00> : vector<2x16xf32>
    %13 = tpu.matmul %11, %12, %cst_13 {dimension_numbers = #tpu.dot_dimension_numbers<[1], [0], [0], [1], [0, 0, 1, 1], [], []>} : vector<2x128xf32>, vector<128x16xf32>, vector<2x16xf32> -> vector<2x16xf32>
    %c0_14 = arith.constant 0 : index
    %c0_15 = arith.constant 0 : index
    %14 = vector.load %arg7[%c0_14, %c0_15] : memref<1x16xf32, #tpu.memory_space<vmem>>, vector<1x16xf32>
    %15 = vector.broadcast %14 : vector<1x16xf32> to vector<2x16xf32>
    %16 = arith.addf %13, %15 : vector<2x16xf32>
    %c0_16 = arith.constant 0 : index
    %c0_17 = arith.constant 0 : index
    %17 = vector.load %arg8[%c0_16, %c0_17] : memref<128x16xf32, #tpu.memory_space<vmem>>, vector<128x16xf32>
    %cst_18 = arith.constant dense<0.000000e+00> : vector<2x16xf32>
    %18 = tpu.matmul %11, %17, %cst_18 {dimension_numbers = #tpu.dot_dimension_numbers<[1], [0], [0], [1], [0, 0, 1, 1], [], []>} : vector<2x128xf32>, vector<128x16xf32>, vector<2x16xf32> -> vector<2x16xf32>
    %c0_19 = arith.constant 0 : index
    %c0_20 = arith.constant 0 : index
    %19 = vector.load %arg9[%c0_19, %c0_20] : memref<1x16xf32, #tpu.memory_space<vmem>>, vector<1x16xf32>
    %20 = vector.broadcast %19 : vector<1x16xf32> to vector<2x16xf32>
    %21 = arith.addf %18, %20 : vector<2x16xf32>
    %c0_21 = arith.constant 0 : index
    %c0_22 = arith.constant 0 : index
    %22 = vector.load %arg2[%c0_21, %c0_22] : memref<2x16xf32, #tpu.memory_space<vmem>>, vector<2x16xf32>
    %cst_23 = arith.constant 5.000000e-01 : f32
    %23 = vector.broadcast %cst_23 : f32 to vector<2x16xf32>
    %24 = arith.mulf %23, %21 : vector<2x16xf32>
    %25 = math.exp %24 : vector<2x16xf32>
    %26 = arith.mulf %22, %25 : vector<2x16xf32>
    %27 = arith.addf %16, %26 : vector<2x16xf32>
    %c0_24 = arith.constant 0 : index
    %c0_25 = arith.constant 0 : index
    %28 = vector.load %arg10[%c0_24, %c0_25] : memref<16x256xf32, #tpu.memory_space<vmem>>, vector<16x256xf32>
    %cst_26 = arith.constant dense<0.000000e+00> : vector<2x256xf32>
    %29 = tpu.matmul %27, %28, %cst_26 {dimension_numbers = #tpu.dot_dimension_numbers<[1], [0], [0], [1], [0, 0, 1, 1], [], []>} : vector<2x16xf32>, vector<16x256xf32>, vector<2x256xf32> -> vector<2x256xf32>
    %c0_27 = arith.constant 0 : index
    %c0_28 = arith.constant 0 : index
    %30 = vector.load %arg11[%c0_27, %c0_28] : memref<8x256xf32, #tpu.memory_space<vmem>>, vector<8x256xf32>
    %cst_29 = arith.constant dense<0.000000e+00> : vector<2x256xf32>
    %31 = tpu.matmul %1, %30, %cst_29 {dimension_numbers = #tpu.dot_dimension_numbers<[1], [0], [0], [1], [0, 0, 1, 1], [], []>} : vector<2x8xf32>, vector<8x256xf32>, vector<2x256xf32> -> vector<2x256xf32>
    %32 = arith.addf %29, %31 : vector<2x256xf32>
    %c0_30 = arith.constant 0 : index
    %c0_31 = arith.constant 0 : index
    %33 = vector.load %arg12[%c0_30, %c0_31] : memref<1x256xf32, #tpu.memory_space<vmem>>, vector<1x256xf32>
    %34 = vector.broadcast %33 : vector<1x256xf32> to vector<2x256xf32>
    %35 = arith.addf %32, %34 : vector<2x256xf32>
    %cst_32 = arith.constant 0.000000e+00 : f32
    %36 = vector.broadcast %cst_32 : f32 to vector<2x256xf32>
    %37 = arith.maximumf %35, %36 : vector<2x256xf32>
    %c0_33 = arith.constant 0 : index
    %c0_34 = arith.constant 0 : index
    %38 = vector.load %arg13[%c0_33, %c0_34] : memref<256x512xf32, #tpu.memory_space<vmem>>, vector<256x512xf32>
    %cst_35 = arith.constant dense<0.000000e+00> : vector<2x512xf32>
    %39 = tpu.matmul %37, %38, %cst_35 {dimension_numbers = #tpu.dot_dimension_numbers<[1], [0], [0], [1], [0, 0, 1, 1], [], []>} : vector<2x256xf32>, vector<256x512xf32>, vector<2x512xf32> -> vector<2x512xf32>
    %c0_36 = arith.constant 0 : index
    %c0_37 = arith.constant 0 : index
    %40 = vector.load %arg14[%c0_36, %c0_37] : memref<1x512xf32, #tpu.memory_space<vmem>>, vector<1x512xf32>
    %41 = vector.broadcast %40 : vector<1x512xf32> to vector<2x512xf32>
    %42 = arith.addf %39, %41 : vector<2x512xf32>
    %cst_38 = arith.constant 0.000000e+00 : f32
    %43 = vector.broadcast %cst_38 : f32 to vector<2x512xf32>
    %44 = arith.maximumf %42, %43 : vector<2x512xf32>
    %c0_39 = arith.constant 0 : index
    %c0_40 = arith.constant 0 : index
    %45 = vector.load %arg15[%c0_39, %c0_40] : memref<512x512xf32, #tpu.memory_space<vmem>>, vector<512x512xf32>
    %cst_41 = arith.constant dense<0.000000e+00> : vector<2x512xf32>
    %46 = tpu.matmul %44, %45, %cst_41 {dimension_numbers = #tpu.dot_dimension_numbers<[1], [0], [0], [1], [0, 0, 1, 1], [], []>} : vector<2x512xf32>, vector<512x512xf32>, vector<2x512xf32> -> vector<2x512xf32>
    %c0_42 = arith.constant 0 : index
    %c0_43 = arith.constant 0 : index
    %47 = vector.load %arg16[%c0_42, %c0_43] : memref<1x512xf32, #tpu.memory_space<vmem>>, vector<1x512xf32>
    %48 = vector.broadcast %47 : vector<1x512xf32> to vector<2x512xf32>
    %49 = arith.addf %46, %48 : vector<2x512xf32>
    %c0_44 = arith.constant 0 : index
    %c0_45 = arith.constant 0 : index
    %50 = vector.load %arg17[%c0_44, %c0_45] : memref<2x512xf32, #tpu.memory_space<vmem>>, vector<2x512xf32>
    tpu.vector_store %arg17[%c0_44, %c0_45], %49 {strides = array<i32>} : memref<2x512xf32, #tpu.memory_space<vmem>>, vector<2x512xf32>,
    %51 = tpu.concatenate %16, %21 in 1 : vector<2x16xf32>, vector<2x16xf32> -> vector<2x32xf32>
    %c0_46 = arith.constant 0 : index
    %c0_47 = arith.constant 0 : index
    %52 = vector.load %arg18[%c0_46, %c0_47] : memref<2x32xf32, #tpu.memory_space<vmem>>, vector<2x32xf32>
    tpu.vector_store %arg18[%c0_46, %c0_47], %51 {strides = array<i32>} : memref<2x32xf32, #tpu.memory_space<vmem>>, vector<2x32xf32>,
    return
  }
}

</mosaic_0001>

<bundles_post_ra>
// kernel: pointnet_cvae_forward.5
= control target key start
LH: loop header
LB: loop body
LE: loop exit
PB: predicated region body
PF: predicated region fallthrough
CT: control target
= control target key end

     0   :  { %s883_s15 = smov 0   ;;  %s885_s16 = smov 0   ;;  %s1099_s0 = inlined_call_operand.vmem [shape: f32[2,4,128], index: 0, kind: input, shape index: {}]   ;;  %s1100_s1 = inlined_call_operand.vmem [shape: f32[64,4], index: 1, kind: input, shape index: {}]   ;;  %s1101_s2 = inlined_call_operand.vmem [shape: f32[64,256], index: 2, kind: output, shape index: {0}]   ;;  %s1102_s3 = inlined_call_operand.vmem [shape: f32[64,1], index: 3, kind: output, shape index: {1}]   ;;  %s1103_s4 = inlined_call_operand.vmem [shape: f32[64,1], index: 4, kind: output, shape index: {2}]  }
   0x1   :  { %s887_s17 = smov 0   ;;  %s889_s18 = smov 0  }
   0x2   :  { %s891_s19 = smov 0  }
   0x3 LB: > { %s711_s20 = sadd.s32 4294967295, %s855_s19   ;;  %s27_s21 = sadd.s32 1, %s851_s18  ;;  %s855_s19 = sphi %s891_s19, %s15_s19   ;;  %s851_s18 = sphi %s889_s18, %s1108_s18   ;;  %s847_s17 = sphi %s887_s17, %s1107_s17   ;;  %s843_s16 = sphi %s885_s16, %s1106_s16   ;;  %s839_s15 = sphi %s883_s15, %s1105_s15  }
   0x4   : > { %p29_p0 = scmp.ge.s32.totalorder %s27_s21, 2  ;;  %s85_s22 = sadd.s32 1, %s843_s16 }
   0x5   : > { %p95_p1 = scmp.ne.s32.totalorder %s843_s16, %s839_s15  ;;  %p96_p2 = scmp.eq.s32.totalorder %s711_s20, 1 }
   0x6   : > { %s1110_s21 = smov (%p29_p0, %s27_s21), 0  ;;  %p715_p4 = scmp.ge.s32.totalorder %s855_s19, 1 }
   0x7   : > { %p912_p3 = por %p96_p2, %p95_p1  ;;  %s82_s24 = ssub.s32 %s851_s18, %s1110_s21 }
   0x8   : > { %p175_p5 = scmp.lt.s32.totalorder %s855_s19, 3  ;;  %p83_p6 = scmp.eq.s32.totalorder %s82_s24, 0 }
   0xa   : > { %p176_p7 = pnand %p715_p4, %p175_p5 }
   0xb   : > { %s921_s25 = scalar_select %p83_p6, %s843_s16, %s85_s22  }
   0xc   : > { %179 = sbr.rel (%p176_p7) target bundleno = 453 (0x1c5), region = 28  ;;  %s195_s26 = sand.u32 (!%p176_p7), 1, %s839_s15  }
   0xd   : > { %p202_p8 = scmp.lt.s32.totalorder (!%p176_p7), %s847_s17, 1  ;;  %s716_s27 = sshll.u32 (!%p176_p7), %s195_s26, 6 }
   0xe   : > { %p210_p9 = scmp.eq.s32.totalorder (!%p176_p7), %s847_s17, 0  ;;  %s929_s7 = scalar_lea.vmem (!%p176_p7), [#allocation4], %s716_s27 }
  0x13   : > { %s203_s28 = scalar_select %p202_p8, %s847_s17, 1 }
  0x14   : > { %215 = sbr.rel (!%p210_p9) target bundleno = 29 (0x1d), region = 32  ;;  %vm216_vm0 = vcmask (%p210_p9), 7168   ;;  %v857_v0 = vmov (%p210_p9), 0.0  }
  0x15   : > { %s717_s29 = sshll.u32 %s203_s28, 2  ;;  %217 = vst.msk [vmem:[#allocation2] sm:$0xff] (%p210_p9), %vm216_vm0, %v857_v0  ;;  %218 = vst.msk [vmem:[#allocation2 + $0x8] sm:$0xff] (%p210_p9), %vm216_vm0, %v857_v0 }
  0x16   : > { %s208_s6 = scalar_lea.vmem %s1099_s0, %s717_s29  ;;  %219 = vst.msk [vmem:[#allocation2 + $0x10] sm:$0xff] (%p210_p9), %vm216_vm0, %v857_v0  ;;  %220 = vst.msk [vmem:[#allocation2 + $0x18] sm:$0xff] (%p210_p9), %vm216_vm0, %v857_v0 }
  0x17   : > { %221 = vst.msk [vmem:[#allocation2 + $0x20] sm:$0xff] (%p210_p9), %vm216_vm0, %v857_v0  ;;  %222 = vst.msk [vmem:[#allocation2 + $0x28] sm:$0xff] (%p210_p9), %vm216_vm0, %v857_v0 }
  0x18   : > { %223 = vst.msk [vmem:[#allocation2 + $0x30] sm:$0xff] (%p210_p9), %vm216_vm0, %v857_v0  ;;  %224 = vst.msk [vmem:[#allocation2 + $0x38] sm:$0xff] (%p210_p9), %vm216_vm0, %v857_v0 }
  0x19   : > { %225 = vst.msk [vmem:[#allocation3] sm:$0xff] (%p210_p9), %vm216_vm0, %v857_v0  ;;  %226 = vst.msk [vmem:[#allocation3 + $0x8] sm:$0xff] (%p210_p9), %vm216_vm0, %v857_v0 }
  0x1a   : > { %227 = vst.msk [vmem:[#allocation3 + $0x10] sm:$0xff] (%p210_p9), %vm216_vm0, %v857_v0  ;;  %228 = vst.msk [vmem:[#allocation3 + $0x18] sm:$0xff] (%p210_p9), %vm216_vm0, %v857_v0 }
  0x1b   : > { %229 = vst.msk [vmem:[#allocation3 + $0x20] sm:$0xff] %vm216_vm0, %v857_v0  ;;  %230 = vst.msk [vmem:[#allocation3 + $0x28] sm:$0xff] %vm216_vm0, %v857_v0 }
  0x1c   : > { %231 = vst.msk [vmem:[#allocation3 + $0x30] sm:$0xff] %vm216_vm0, %v857_v0  ;;  %232 = vst.msk [vmem:[#allocation3 + $0x38] sm:$0xff] %vm216_vm0, %v857_v0 }
  0x1d PF: > { %v241_v1 = vld [vmem:[%s208_s6] sm:$0xf]  ;;  %vm267_vm1 = vcmask 1043456   ;;  %vm242_vm2 = vcmask 31744   ;;  %v234_v4 = vld [vmem:[%s1100_s1 + $0x8] sm:$0xff]  ;;  %v235_v6 = vld [vmem:[%s1100_s1 + $0x10] sm:$0xff] }
  0x1e   : > { %v233_v2 = vld [vmem:[%s1100_s1] sm:$0xff]  ;;  %744 = vmatprep.subr.msk.mxu0 %vm267_vm1, %v241_v1  ;;  %758 = vmatprep.subr.msk.mxu1 %vm267_vm1, %v241_v1  ;;  %v238_v5 = vld [vmem:[%s1100_s1 + $0x28] sm:$0xff]  ;;  %v239_v7 = vld [vmem:[%s1100_s1 + $0x30] sm:$0xff]  ;;  %p473_p10 = scmp.eq.s32.totalorder %s847_s17, 1  ;;  %vm416_vm3 = vcmask 7168  }
  0x1f   : > { %v237_v3 = vld [vmem:[%s1100_s1 + $0x20] sm:$0xff]  ;;  %745 = vmatpush3.msk.msra.mxu0 %vm267_vm1, %v241_v1  ;;  %759 = vmatpush3.msk.msra.mxu1 %vm267_vm1, %v241_v1  ;;  %v236_v8 = vld [vmem:[%s1100_s1 + $0x18] sm:$0xff]  ;;  %v385_v27 = vld [vmem:[#allocation2 + $0x8] sm:$0xff] }
  0x20   : > { %746 = vmatprep.mubr.msk.f32.mxu0 %vm242_vm2, %v233_v2  ;;  %752 = vmatprep.mubr.msk.f32.mxu1 %vm242_vm2, %v237_v3  ;;  %v240_v9 = vld [vmem:[%s1100_s1 + $0x38] sm:$0xff]  ;;  %v389_v26 = vld [vmem:[#allocation2 + $0x28] sm:$0xff]  ;;  %v384_v33 = vld [vmem:[#allocation2] sm:$0xff] }
  0x21   : > { %747 = vmatmul.mubr.msk.f32.vlgmr.msra.gmra.mrb[0].mxu0 %vm242_vm2, %v234_v4  ;;  %753 = vmatmul.mubr.msk.f32.vlgmr.msra.gmra.mrb[0].mxu1 %vm242_vm2, %v238_v5  ;;  %v388_v39 = vld [vmem:[#allocation2 + $0x20] sm:$0xff]  ;;  %v387_v45 = vld [vmem:[#allocation2 + $0x18] sm:$0xff]  ;;  %v390_v56 = vld [vmem:[#allocation2 + $0x30] sm:$0xff] }
  0x22   : > { %749 = vmatprep.mubr.msk.f32.mxu0 %vm242_vm2, %v235_v6  ;;  %755 = vmatprep.mubr.msk.f32.mxu1 %vm242_vm2, %v239_v7  ;;  %v426_v32 = vld [vmem:[#allocation3 + $0x8] sm:$0xff]  ;;  %v425_v44 = vld [vmem:[#allocation3] sm:$0xff]  ;;  %v391_v51 = vld [vmem:[#allocation2 + $0x38] sm:$0xff] }
  0x23   : > { %v429_v50 = vld [vmem:[#allocation3 + $0x20] sm:$0xff]  ;;  %v386_v57 = vld [vmem:[#allocation2 + $0x10] sm:$0xff]  ;;  %v428_v62 = vld [vmem:[#allocation3 + $0x18] sm:$0xff] }
  0x24   : > { %v430_v38 = vld [vmem:[#allocation3 + $0x28] sm:$0xff]  ;;  %v427_v63 = vld [vmem:[#allocation3 + $0x10] sm:$0xff]  ;;  %v432_v4 = vld [vmem:[#allocation3 + $0x38] sm:$0xff] }
  0x25   : > { %750 = vmatmul.mubr.msk.f32.gmra.mrb[2].mxu0 %vm242_vm2, %v236_v8  ;;  %756 = vmatmul.mubr.msk.f32.gmra.mrb[2].mxu1 %vm242_vm2, %v240_v9  ;;  %v431_v5 = vld [vmem:[#allocation3 + $0x30] sm:$0xff] }
  0xf4   : > { %v748_v10 = vpop.f32.mrb[0].mxu0  ;;  %v754_v11 = vpop.f32.mrb[0].mxu1 }
  0xf5   : > { %377 = vst [vmem:[%s929_s7 + $0x8] sm:$0xff] %v748_v10  ;;  %381 = vst [vmem:[%s929_s7 + $0x28] sm:$0xff] %v754_v11  ;;  %402 = vadd.xlane.f32.xlu1 %v754_v11  ;;  %v357_v12 = vpop.f32.mrb[1].mxu1  ;;  %394 = vadd.xlane.f32.xlu0 %v748_v10  ;;  %v337_v13 = vpop.f32.mrb[1].mxu0  ;;  %v434_v14 = vmul.f32 %v748_v10, %v748_v10  ;;  %v438_v19 = vmul.f32 %v754_v11, %v754_v11 }
  0xf6   : > { %380 = vst [vmem:[%s929_s7 + $0x20] sm:$0xff] %v357_v12  ;;  %376 = vst [vmem:[%s929_s7] sm:$0xff] %v337_v13  ;;  %v433_v20 = vmul.f32 %v337_v13, %v337_v13  ;;  %v437_v21 = vmul.f32 %v357_v12, %v357_v12 }
  0xf8   : > { %v751_v15 = vpop.f32.mrb[2].mxu0  ;;  %v757_v16 = vpop.f32.mrb[2].mxu1 }
  0xf9   : > { %443 = vadd.xlane.f32.xlu1 %v434_v14  ;;  %392 = vadd.xlane.f32.xlu0 %v337_v13  ;;  %379 = vst [vmem:[%s929_s7 + $0x18] sm:$0xff] %v751_v15  ;;  %v347_v17 = vpop.f32.mrb[3].mxu0  ;;  %383 = vst [vmem:[%s929_s7 + $0x38] sm:$0xff] %v757_v16  ;;  %v367_v18 = vpop.f32.mrb[3].mxu1  ;;  %v436_v22 = vmul.f32 %v751_v15, %v751_v15  ;;  %v440_v24 = vmul.f32 %v757_v16, %v757_v16 }
  0xfa   : > { %378 = vst [vmem:[%s929_s7 + $0x10] sm:$0xff] %v347_v17  ;;  %382 = vst [vmem:[%s929_s7 + $0x30] sm:$0xff] %v367_v18  ;;  %v435_v23 = vmul.f32 %v347_v17, %v347_v17  ;;  %v439_v25 = vmul.f32 %v367_v18, %v367_v18 }
  0xfd   : > { %451 = vadd.xlane.f32.xlu1 %v438_v19  ;;  %400 = vadd.xlane.f32.xlu0 %v357_v12 }
 0x101   : > { %441 = vadd.xlane.f32.xlu0 %v433_v20  ;;  %398 = vadd.xlane.f32.xlu1 %v751_v15 }
 0x105   : > { %449 = vadd.xlane.f32.xlu0 %v437_v21  ;;  %406 = vadd.xlane.f32.xlu1 %v757_v16 }
 0x109   : > { %404 = vadd.xlane.f32.xlu0 %v367_v18  ;;  %396 = vadd.xlane.f32.xlu1 %v347_v17 }
 0x10d   : > { %447 = vadd.xlane.f32.xlu1 %v436_v22  ;;  %445 = vadd.xlane.f32.xlu0 %v435_v23 }
 0x111   : > { %455 = vadd.xlane.f32.xlu1 %v440_v24  ;;  %453 = vadd.xlane.f32.xlu0 %v439_v25 }
 0x182   : > { %v403_v28 = vpop.xlane.xlu1 %402  ;;  %v395_v29 = vpop.xlane.xlu0 %394 }
 0x183   : > { %v413_v30 = vadd.f32 %v403_v28, %v389_v26  ;;  %v409_v31 = vadd.f32 %v395_v29, %v385_v27 }
 0x185   : > { %422 = vst.msk [vmem:[#allocation2 + $0x28] sm:$0xff] %vm416_vm3, %v413_v30  ;;  %418 = vst.msk [vmem:[#allocation2 + $0x8] sm:$0xff] %vm416_vm3, %v409_v31 }
 0x186   : > { %v444_v34 = vpop.xlane.xlu1 %443  ;;  %v393_v35 = vpop.xlane.xlu0 %392 }
 0x187   : > { %v458_v36 = vadd.f32 %v444_v34, %v426_v32  ;;  %v408_v37 = vadd.f32 %v393_v35, %v384_v33 }
 0x189   : > { %466 = vst.msk [vmem:[#allocation3 + $0x8] sm:$0xff] %vm416_vm3, %v458_v36  ;;  %417 = vst.msk [vmem:[#allocation2] sm:$0xff] %vm416_vm3, %v408_v37 }
 0x18a   : > { %v452_v40 = vpop.xlane.xlu1 %451  ;;  %v401_v41 = vpop.xlane.xlu0 %400 }
 0x18b   : > { %v462_v42 = vadd.f32 %v452_v40, %v430_v38  ;;  %v412_v43 = vadd.f32 %v401_v41, %v388_v39 }
 0x18c   : > { %v479_v11 = vld [vmem:[#allocation2 + $0x8] sm:$0xff] (%p473_p10) }
 0x18d   : > { %470 = vst.msk [vmem:[#allocation3 + $0x28] sm:$0xff] %vm416_vm3, %v462_v42  ;;  %421 = vst.msk [vmem:[#allocation2 + $0x20] sm:$0xff] %vm416_vm3, %v412_v43  ;;  %v487_v14 = vmul.f32 (%p473_p10), 0.00390625, %v479_v11  ;;  %v483_v18 = vld [vmem:[#allocation2 + $0x28] sm:$0xff] (%p473_p10) }
 0x18e   : > { %v442_v46 = vpop.xlane.xlu0 %441  ;;  %v399_v47 = vpop.xlane.xlu1 %398  ;;  %v491_v21 = vmul.f32 (%p473_p10), 0.00390625, %v483_v18 }
 0x18f   : > { %v457_v48 = vadd.f32 %v442_v46, %v425_v44  ;;  %v411_v49 = vadd.f32 %v399_v47, %v387_v45  ;;  %v511_v26 = vmul.f32 (%p473_p10), %v487_v14, %v487_v14  ;;  %535 = vst.msk [vmem:[%s1102_s3 + $0x8] sm:$0xff] (%p473_p10), %vm416_vm3, %v487_v14 }
 0x190   : > { %v478_v10 = vld [vmem:[#allocation2] sm:$0xff] (%p473_p10)  ;;  %v495_v29 = vld [vmem:[#allocation3 + $0x8] sm:$0xff] (%p473_p10)  ;;  %v515_v34 = vmul.f32 (%p473_p10), %v491_v21, %v491_v21  ;;  %539 = vst.msk [vmem:[%s1102_s3 + $0x28] sm:$0xff] (%p473_p10), %vm416_vm3, %v491_v21 }
 0x191   : > { %465 = vst.msk [vmem:[#allocation3] sm:$0xff] %vm416_vm3, %v457_v48  ;;  %420 = vst.msk [vmem:[#allocation2 + $0x18] sm:$0xff] %vm416_vm3, %v411_v49  ;;  %v486_v13 = vmul.f32 (%p473_p10), 0.00390625, %v478_v10  ;;  %v503_v41 = vmul.f32 (%p473_p10), 0.00390625, %v495_v29 }
 0x192   : > { %v450_v52 = vpop.xlane.xlu0 %449  ;;  %v407_v53 = vpop.xlane.xlu1 %406 }
 0x193   : > { %v461_v54 = vadd.f32 %v450_v52, %v429_v50  ;;  %v415_v55 = vadd.f32 %v407_v53, %v391_v51  ;;  %v510_v25 = vmul.f32 (%p473_p10), %v486_v13, %v486_v13  ;;  %534 = vst.msk [vmem:[%s1102_s3] sm:$0xff] (%p473_p10), %vm416_vm3, %v486_v13  ;;  %v519_v49 = vsub.f32 (%p473_p10), %v503_v41, %v511_v26 }
 0x194   : > { %v482_v17 = vld [vmem:[#allocation2 + $0x20] sm:$0xff] (%p473_p10)  ;;  %v499_v37 = vld [vmem:[#allocation3 + $0x28] sm:$0xff] (%p473_p10) }
 0x195   : > { %469 = vst.msk [vmem:[#allocation3 + $0x20] sm:$0xff] %vm416_vm3, %v461_v54  ;;  %424 = vst.msk [vmem:[#allocation2 + $0x38] sm:$0xff] %vm416_vm3, %v415_v55  ;;  %v490_v20 = vmul.f32 (%p473_p10), 0.00390625, %v482_v17  ;;  %v507_v47 = vmul.f32 (%p473_p10), 0.00390625, %v499_v37 }
 0x196   : > { %v405_v58 = vpop.xlane.xlu0 %404  ;;  %v397_v59 = vpop.xlane.xlu1 %396 }
 0x197   : > { %v414_v60 = vadd.f32 %v405_v58, %v390_v56  ;;  %v410_v61 = vadd.f32 %v397_v59, %v386_v57  ;;  %v514_v33 = vmul.f32 (%p473_p10), %v490_v20, %v490_v20  ;;  %538 = vst.msk [vmem:[%s1102_s3 + $0x20] sm:$0xff] (%p473_p10), %vm416_vm3, %v490_v20  ;;  %v523_v54 = vsub.f32 (%p473_p10), %v507_v47, %v515_v34 }
 0x198   : > { %v481_v16 = vld [vmem:[#allocation2 + $0x18] sm:$0xff] (%p473_p10)  ;;  %v494_v24 = vld [vmem:[#allocation3] sm:$0xff] (%p473_p10)  ;;  %v527_v57 = vmax.f32 (%p473_p10), %v519_v49, 0.0 }
 0x199   : > { %423 = vst.msk [vmem:[#allocation2 + $0x30] sm:$0xff] %vm416_vm3, %v414_v60  ;;  %419 = vst.msk [vmem:[#allocation2 + $0x10] sm:$0xff] %vm416_vm3, %v410_v61  ;;  %v489_v19 = vmul.f32 (%p473_p10), 0.00390625, %v481_v16  ;;  %v502_v40 = vmul.f32 (%p473_p10), 0.00390625, %v494_v24 }
 0x19a   : > { %v448_v0 = vpop.xlane.xlu1 %447  ;;  %v446_v1 = vpop.xlane.xlu0 %445 }
 0x19b   : > { %v460_v2 = vadd.f32 %v448_v0, %v428_v62  ;;  %v459_v3 = vadd.f32 %v446_v1, %v427_v63  ;;  %477 = sbr.rel (!%p473_p10) target bundleno = 446 (0x1be), region = 36  ;;  %v513_v32 = vmul.f32 (%p473_p10), %v489_v19, %v489_v19  ;;  %537 = vst.msk [vmem:[%s1102_s3 + $0x18] sm:$0xff] (%p473_p10), %vm416_vm3, %v489_v19  ;;  %v518_v48 = vsub.f32 (%p473_p10), %v502_v40, %v510_v25 }
 0x19c   : > { %v485_v23 = vld [vmem:[#allocation2 + $0x38] sm:$0xff] (%p473_p10)  ;;  %v498_v36 = vld [vmem:[#allocation3 + $0x20] sm:$0xff] (%p473_p10)  ;;  %v531_v62 = vmax.f32 (%p473_p10), %v523_v54, 0.0  ;;  %v543_v1 = vadd.f32 (%p473_p10), 1e-05, %v527_v57 }
 0x19d   : > { %468 = vst.msk [vmem:[#allocation3 + $0x18] sm:$0xff] %vm416_vm3, %v460_v2  ;;  %467 = vst.msk [vmem:[#allocation3 + $0x10] sm:$0xff] %vm416_vm3, %v459_v3  ;;  %v493_v35 = vmul.f32 (%p473_p10), 0.00390625, %v485_v23  ;;  %v506_v46 = vmul.f32 (%p473_p10), 0.00390625, %v498_v36  ;;  %v526_v56 = vmax.f32 (%p473_p10), %v518_v48, 0.0 }
 0x19e   : > { %v456_v6 = vpop.xlane.xlu1 %455  ;;  %v454_v7 = vpop.xlane.xlu0 %453 }
 0x19f   : > { %v464_v8 = vadd.f32 %v456_v6, %v432_v4  ;;  %v463_v9 = vadd.f32 %v454_v7, %v431_v5  ;;  %v517_v44 = vmul.f32 (%p473_p10), %v493_v35, %v493_v35  ;;  %541 = vst.msk [vmem:[%s1102_s3 + $0x38] sm:$0xff] (%p473_p10), %vm416_vm3, %v493_v35  ;;  %v522_v53 = vsub.f32 (%p473_p10), %v506_v46, %v514_v33 }
 0x1a0   : > { %v480_v12 = vld [vmem:[#allocation2 + $0x10] sm:$0xff] (%p473_p10)  ;;  %v542_v0 = vadd.f32 (%p473_p10), 1e-05, %v526_v56  ;;  %v547_v7 = vadd.f32 (%p473_p10), 1e-05, %v531_v62 }
 0x1a1   : > { %472 = vst.msk [vmem:[#allocation3 + $0x38] sm:$0xff] %vm416_vm3, %v464_v8  ;;  %471 = vst.msk [vmem:[#allocation3 + $0x30] sm:$0xff] %vm416_vm3, %v463_v9  ;;  %v488_v15 = vmul.f32 (%p473_p10), 0.00390625, %v480_v12  ;;  %v484_v22 = vld [vmem:[#allocation2 + $0x30] sm:$0xff] (%p473_p10)  ;;  %v530_v61 = vmax.f32 (%p473_p10), %v522_v53, 0.0 }
 0x1a2   : > { %v492_v28 = vmul.f32 0.00390625, %v484_v22  ;;  %801 = vrsqrt.f32 %v542_v0 }
 0x1a3   : > { %v512_v27 = vmul.f32 %v488_v15, %v488_v15  ;;  %536 = vst.msk [vmem:[%s1102_s3 + $0x10] sm:$0xff] %vm416_vm3, %v488_v15  ;;  %v546_v4 = vadd.f32 1e-05, %v530_v61  ;;  %803 = vrsqrt.f32 %v543_v1 }
 0x1a4   : > { %v496_v30 = vld [vmem:[#allocation3 + $0x10] sm:$0xff]  ;;  %v497_v31 = vld [vmem:[#allocation3 + $0x18] sm:$0xff]  ;;  %v516_v39 = vmul.f32 %v492_v28, %v492_v28  ;;  %540 = vst.msk [vmem:[%s1102_s3 + $0x30] sm:$0xff] %vm416_vm3, %v492_v28 }
 0x1a5   : > { %v504_v42 = vmul.f32 0.00390625, %v496_v30  ;;  %v505_v45 = vmul.f32 0.00390625, %v497_v31 }
 0x1a7   : > { %v520_v50 = vsub.f32 %v504_v42, %v512_v27  ;;  %v521_v52 = vsub.f32 %v505_v45, %v513_v32 }
 0x1a8   : > { %v500_v38 = vld [vmem:[#allocation3 + $0x30] sm:$0xff]  ;;  %v501_v43 = vld [vmem:[#allocation3 + $0x38] sm:$0xff] }
 0x1a9   : > { %v508_v51 = vmul.f32 0.00390625, %v500_v38  ;;  %v509_v55 = vmul.f32 0.00390625, %v501_v43  ;;  %v528_v58 = vmax.f32 %v520_v50, 0.0  ;;  %v529_v60 = vmax.f32 %v521_v52, 0.0 }
 0x1ab   : > { %v524_v59 = vsub.f32 %v508_v51, %v516_v39  ;;  %v525_v63 = vsub.f32 %v509_v55, %v517_v44  ;;  %v544_v2 = vadd.f32 1e-05, %v528_v58  ;;  %v545_v3 = vadd.f32 1e-05, %v529_v60 }
 0x1ac   : > { %v802_v10 = vpop.eup %801 }
 0x1ad   : > { %v532_v5 = vmax.f32 %v524_v59, 0.0  ;;  %v533_v6 = vmax.f32 %v525_v63, 0.0  ;;  %805 = vrsqrt.f32 %v544_v2  ;;  %v804_v11 = vpop.eup %803  ;;  %558 = vst.msk [vmem:[%s1103_s4] sm:$0xff] %vm416_vm3, %v802_v10 }
 0x1ae   : > { %807 = vrsqrt.f32 %v545_v3  ;;  %559 = vst.msk [vmem:[%s1103_s4 + $0x8] sm:$0xff] %vm416_vm3, %v804_v11 }
 0x1af   : > { %v548_v8 = vadd.f32 1e-05, %v532_v5  ;;  %v549_v9 = vadd.f32 1e-05, %v533_v6  ;;  %809 = vrsqrt.f32 %v546_v4 }
 0x1b0   : > { %811 = vrsqrt.f32 %v547_v7 }
 0x1b1   : > { %813 = vrsqrt.f32 %v548_v8 }
 0x1b2   : > { %815 = vrsqrt.f32 %v549_v9 }
 0x1b7   : > { %v806_v12 = vpop.eup %805 }
 0x1b8   : > { %v808_v13 = vpop.eup %807  ;;  %560 = vst.msk [vmem:[%s1103_s4 + $0x10] sm:$0xff] %vm416_vm3, %v806_v12 }
 0x1b9   : > { %v810_v14 = vpop.eup %809  ;;  %561 = vst.msk [vmem:[%s1103_s4 + $0x18] sm:$0xff] %vm416_vm3, %v808_v13 }
 0x1ba   : > { %v812_v15 = vpop.eup %811  ;;  %562 = vst.msk [vmem:[%s1103_s4 + $0x20] sm:$0xff] %vm416_vm3, %v810_v14 }
 0x1bb   : > { %v814_v16 = vpop.eup %813  ;;  %563 = vst.msk [vmem:[%s1103_s4 + $0x28] sm:$0xff] %vm416_vm3, %v812_v15 }
 0x1bc   : > { %v816_v17 = vpop.eup %815  ;;  %564 = vst.msk [vmem:[%s1103_s4 + $0x30] sm:$0xff] %vm416_vm3, %v814_v16 }
 0x1bd   : > { %565 = vst.msk [vmem:[%s1103_s4 + $0x38] sm:$0xff] %vm416_vm3, %v816_v17 }
 0x1be PF: > { %572 = sbr.rel (!%p912_p3) target bundleno = 453 (0x1c5), region = 40  ;;  %s730_s27 = sshll.u32 (%p912_p3), %s847_s17, 3  ;;  %v617_v18 = vld [vmem:[%s929_s7] sm:$0xff] (%p912_p3)  ;;  %v619_v19 = vld [vmem:[%s929_s7 + $0x8] sm:$0xff] (%p912_p3)  ;;  %v621_v20 = vld [vmem:[%s929_s7 + $0x10] sm:$0xff] (%p912_p3) }
 0x1bf   : > { %s575_s30 = scalar_lea.vmem (%p912_p3), %s1101_s2, %s730_s27  ;;  %v623_v21 = vld [vmem:[%s929_s7 + $0x18] sm:$0xff] (%p912_p3)  ;;  %v625_v22 = vld [vmem:[%s929_s7 + $0x20] sm:$0xff] (%p912_p3)  ;;  %v627_v23 = vld [vmem:[%s929_s7 + $0x28] sm:$0xff] (%p912_p3) }
 0x1c0   : > { %618 = vst [vmem:[%s575_s30] sm:$0xff] (%p912_p3), %v617_v18  ;;  %620 = vst [vmem:[%s575_s30 + $0x10] sm:$0xff] (%p912_p3), %v619_v19  ;;  %v629_v24 = vld [vmem:[%s929_s7 + $0x30] sm:$0xff] (%p912_p3)  ;;  %v631_v25 = vld [vmem:[%s929_s7 + $0x38] sm:$0xff] (%p912_p3) }
 0x1c1   : > { %622 = vst [vmem:[%s575_s30 + $0x20] sm:$0xff] (%p912_p3), %v621_v20  ;;  %624 = vst [vmem:[%s575_s30 + $0x30] sm:$0xff] (%p912_p3), %v623_v21 }
 0x1c2   : > { %626 = vst [vmem:[%s575_s30 + $0x40] sm:$0xff] (%p912_p3), %v625_v22  ;;  %628 = vst [vmem:[%s575_s30 + $0x50] sm:$0xff] (%p912_p3), %v627_v23 }
 0x1c3   : > { %630 = vst [vmem:[%s575_s30 + $0x60] sm:$0xff] (%p912_p3), %v629_v24  ;;  %632 = vst [vmem:[%s575_s30 + $0x70] sm:$0xff] (%p912_p3), %v631_v25 }
 0x1c5 PF: > { %s15_s19 = sadd.s32 1, %s855_s19   ;;  %s1105_s15 = smov %s843_s16 }
 0x1c6   : > { %p12_p11 = scmp.ge.s32.totalorder %s15_s19, 4   ;;  %s1106_s16 = smov %s921_s25 }
 0x1c7   : > { %s1107_s17 = smov %s851_s18  ;;  %s1108_s18 = smov %s1110_s21 }
 0x1c8   :  { %14 = sbr.rel (!%p12_p11) target bundleno = 3 (0x3), region = 120 }

// kernel: pointnet_cvae_forward.8
= control target key start
LH: loop header
LB: loop body
LE: loop exit
PB: predicated region body
PF: predicated region fallthrough
CT: control target
= control target key end

     0   :  { %s1462_s18 = smov 0   ;;  %s1464_s19 = smov 0   ;;  %s2634_s0 = inlined_call_operand.vmem [shape: f32[256,256], index: 0, kind: input, shape index: {}]   ;;  %s2635_s1 = inlined_call_operand.vmem [shape: f32[256,1], index: 1, kind: input, shape index: {}]   ;;  %s2636_s2 = inlined_call_operand.vmem [shape: f32[256,1], index: 2, kind: input, shape index: {}]   ;;  %s2637_s3 = inlined_call_operand.vmem [shape: f32[256,1], index: 3, kind: input, shape index: {}]   ;;  %s2638_s4 = inlined_call_operand.vmem [shape: f32[256,1], index: 4, kind: input, shape index: {}]   ;;  %s2639_s5 = inlined_call_operand.vmem [shape: f32[256,2], index: 5, kind: output, shape index: {}]  }
   0x1   :  { %s1466_s20 = smov 0   ;;  %s1468_s21 = smov 0  }
   0x2   :  { %s1470_s22 = smov 0  }
   0x3 LB: > { %s27_s23 = sadd.s32 1, %s1424_s21  ;;  %p43_p1 = scmp.ne.s32.totalorder %s1416_s19, %s1412_s18  ;;  %s1428_s22 = sphi %s1470_s22, %s15_s22   ;;  %s1424_s21 = sphi %s1468_s21, %s2645_s21   ;;  %s1420_s20 = sphi %s1466_s20, %s2644_s20   ;;  %s1416_s19 = sphi %s1464_s19, %s2643_s19   ;;  %s1412_s18 = sphi %s1462_s18, %s2642_s18  }
   0x4   : > { %p29_p0 = scmp.ge.s32.totalorder %s27_s23, 2  ;;  %p44_p2 = scmp.eq.s32.totalorder %s1428_s22, 0 }
   0x5   : > { %s36_s25 = sadd.s32 1, %s1416_s19  ;;  %p1337_p5 = scmp.ge.s32.totalorder %s1428_s22, 2 }
   0x6   : > { %s2647_s23 = smov (%p29_p0, %s27_s23), 0  ;;  %p45_p3 = por %p44_p2, %p43_p1 }
   0x7   : > { %s33_s24 = ssub.s32 %s1424_s21, %s2647_s23  ;;  %186 = sbr.rel (%p1337_p5) target bundleno = 34 (0x22), region = 32 }
   0x8   : > { %p34_p4 = scmp.eq.s32.totalorder %s33_s24, 0 }
   0xa   : > { %s1497_s26 = scalar_select %p34_p4, %s1416_s19, %s36_s25  }
   0xe   : > { %189 = sbr.rel (!%p45_p3) target bundleno = 34 (0x22), region = 36  ;;  %s191_s27 = sand.u32 (%p45_p3), 1, %s1416_s19  }
   0xf   : > { %s1339_s28 = sshll.u32 (%p45_p3), %s1424_s21, 3  ;;  %s1338_s29 = sshll.u32 (%p45_p3), %s191_s27, 8 }
  0x10   : > { %s1505_s7 = scalar_lea.vmem (%p45_p3), %s2634_s0, %s1339_s28  ;;  %s1510_s8 = scalar_lea.vmem (%p45_p3), [#allocation2], %s1338_s29 }
  0x11   : > { %v286_v0 = vld [vmem:[%s1505_s7] sm:$0xff] (%p45_p3)  ;;  %v288_v1 = vld [vmem:[%s1505_s7 + $0x10] sm:$0xff] (%p45_p3) }
  0x12   : > { %v290_v2 = vld [vmem:[%s1505_s7 + $0x20] sm:$0xff] (%p45_p3)  ;;  %287 = vst [vmem:[%s1510_s8] sm:$0xff] (%p45_p3), %v286_v0  ;;  %289 = vst [vmem:[%s1510_s8 + $0x8] sm:$0xff] (%p45_p3), %v288_v1  ;;  %v292_v3 = vld [vmem:[%s1505_s7 + $0x30] sm:$0xff] (%p45_p3) }
  0x13   : > { %291 = vst [vmem:[%s1510_s8 + $0x10] sm:$0xff] (%p45_p3), %v290_v2  ;;  %v294_v4 = vld [vmem:[%s1505_s7 + $0x40] sm:$0xff] (%p45_p3)  ;;  %v296_v5 = vld [vmem:[%s1505_s7 + $0x50] sm:$0xff] (%p45_p3)  ;;  %293 = vst [vmem:[%s1510_s8 + $0x18] sm:$0xff] (%p45_p3), %v292_v3 }
  0x14   : > { %295 = vst [vmem:[%s1510_s8 + $0x20] sm:$0xff] (%p45_p3), %v294_v4  ;;  %297 = vst [vmem:[%s1510_s8 + $0x28] sm:$0xff] (%p45_p3), %v296_v5  ;;  %v298_v6 = vld [vmem:[%s1505_s7 + $0x60] sm:$0xff] (%p45_p3)  ;;  %v300_v7 = vld [vmem:[%s1505_s7 + $0x70] sm:$0xff] (%p45_p3) }
  0x15   : > { %v302_v8 = vld [vmem:[%s1505_s7 + $0x80] sm:$0xff]  ;;  %299 = vst [vmem:[%s1510_s8 + $0x30] sm:$0xff] %v298_v6  ;;  %301 = vst [vmem:[%s1510_s8 + $0x38] sm:$0xff] %v300_v7  ;;  %v304_v9 = vld [vmem:[%s1505_s7 + $0x90] sm:$0xff] }
  0x16   : > { %303 = vst [vmem:[%s1510_s8 + $0x40] sm:$0xff] %v302_v8  ;;  %v306_v10 = vld [vmem:[%s1505_s7 + $0xa0] sm:$0xff]  ;;  %v308_v11 = vld [vmem:[%s1505_s7 + $0xb0] sm:$0xff]  ;;  %305 = vst [vmem:[%s1510_s8 + $0x48] sm:$0xff] %v304_v9 }
  0x17   : > { %307 = vst [vmem:[%s1510_s8 + $0x50] sm:$0xff] %v306_v10  ;;  %309 = vst [vmem:[%s1510_s8 + $0x58] sm:$0xff] %v308_v11  ;;  %v310_v12 = vld [vmem:[%s1505_s7 + $0xc0] sm:$0xff]  ;;  %v312_v13 = vld [vmem:[%s1505_s7 + $0xd0] sm:$0xff] }
  0x18   : > { %v314_v14 = vld [vmem:[%s1505_s7 + $0xe0] sm:$0xff]  ;;  %311 = vst [vmem:[%s1510_s8 + $0x60] sm:$0xff] %v310_v12  ;;  %313 = vst [vmem:[%s1510_s8 + $0x68] sm:$0xff] %v312_v13  ;;  %v316_v15 = vld [vmem:[%s1505_s7 + $0xf0] sm:$0xff] }
  0x19   : > { %315 = vst [vmem:[%s1510_s8 + $0x70] sm:$0xff] %v314_v14  ;;  %v318_v16 = vld [vmem:[%s1505_s7 + $0x100] sm:$0xff]  ;;  %v320_v17 = vld [vmem:[%s1505_s7 + $0x110] sm:$0xff]  ;;  %317 = vst [vmem:[%s1510_s8 + $0x78] sm:$0xff] %v316_v15 }
  0x1a   : > { %319 = vst [vmem:[%s1510_s8 + $0x80] sm:$0xff] %v318_v16  ;;  %321 = vst [vmem:[%s1510_s8 + $0x88] sm:$0xff] %v320_v17  ;;  %v322_v18 = vld [vmem:[%s1505_s7 + $0x120] sm:$0xff]  ;;  %v324_v19 = vld [vmem:[%s1505_s7 + $0x130] sm:$0xff] }
  0x1b   : > { %v326_v20 = vld [vmem:[%s1505_s7 + $0x140] sm:$0xff]  ;;  %323 = vst [vmem:[%s1510_s8 + $0x90] sm:$0xff] %v322_v18  ;;  %325 = vst [vmem:[%s1510_s8 + $0x98] sm:$0xff] %v324_v19  ;;  %v328_v21 = vld [vmem:[%s1505_s7 + $0x150] sm:$0xff] }
  0x1c   : > { %327 = vst [vmem:[%s1510_s8 + $0xa0] sm:$0xff] %v326_v20  ;;  %v330_v22 = vld [vmem:[%s1505_s7 + $0x160] sm:$0xff]  ;;  %v332_v23 = vld [vmem:[%s1505_s7 + $0x170] sm:$0xff]  ;;  %329 = vst [vmem:[%s1510_s8 + $0xa8] sm:$0xff] %v328_v21 }
  0x1d   : > { %331 = vst [vmem:[%s1510_s8 + $0xb0] sm:$0xff] %v330_v22  ;;  %333 = vst [vmem:[%s1510_s8 + $0xb8] sm:$0xff] %v332_v23  ;;  %v334_v24 = vld [vmem:[%s1505_s7 + $0x180] sm:$0xff]  ;;  %v336_v25 = vld [vmem:[%s1505_s7 + $0x190] sm:$0xff] }
  0x1e   : > { %v338_v26 = vld [vmem:[%s1505_s7 + $0x1a0] sm:$0xff]  ;;  %335 = vst [vmem:[%s1510_s8 + $0xc0] sm:$0xff] %v334_v24  ;;  %337 = vst [vmem:[%s1510_s8 + $0xc8] sm:$0xff] %v336_v25  ;;  %v340_v27 = vld [vmem:[%s1505_s7 + $0x1b0] sm:$0xff] }
  0x1f   : > { %339 = vst [vmem:[%s1510_s8 + $0xd0] sm:$0xff] %v338_v26  ;;  %v342_v28 = vld [vmem:[%s1505_s7 + $0x1c0] sm:$0xff]  ;;  %v344_v29 = vld [vmem:[%s1505_s7 + $0x1d0] sm:$0xff]  ;;  %341 = vst [vmem:[%s1510_s8 + $0xd8] sm:$0xff] %v340_v27 }
  0x20   : > { %343 = vst [vmem:[%s1510_s8 + $0xe0] sm:$0xff] %v342_v28  ;;  %345 = vst [vmem:[%s1510_s8 + $0xe8] sm:$0xff] %v344_v29  ;;  %v346_v30 = vld [vmem:[%s1505_s7 + $0x1e0] sm:$0xff]  ;;  %v348_v31 = vld [vmem:[%s1505_s7 + $0x1f0] sm:$0xff] }
  0x21   : > { %347 = vst [vmem:[%s1510_s8 + $0xf0] sm:$0xff] %v346_v30  ;;  %349 = vst [vmem:[%s1510_s8 + $0xf8] sm:$0xff] %v348_v31 }
  0x22 PF: > { %p1340_p6 = scmp.ge.s32.totalorder %s1428_s22, 1  ;;  %p354_p7 = scmp.lt.s32.totalorder %s1428_s22, 3 }
  0x24   : > { %p355_p8 = pnand %p1340_p6, %p354_p7 }
  0x25   : > { %s361_s9 = sand.u32 (!%p355_p8), 1, %s1412_s18   ;;  %p384_p9 = scmp.eq.s32.totalorder (!%p355_p8), %s1420_s20, 0 }
  0x26   : > { %358 = sbr.rel (%p355_p8) target bundleno = 472 (0x1d8), region = 74  ;;  %s1341_s10 = sshll.u32 (!%p355_p8), %s361_s9, 8 }
  0x27   : > { %s1577_s11 = scalar_lea.vmem (!%p355_p8), [#allocation2], %s1341_s10 }
  0x2d   : > { %389 = sbr.rel (!%p384_p9) target bundleno = 62 (0x3e), region = 82  ;;  %vm390_vm0 = vcmask (%p384_p9), 15360   ;;  %v1430_v32 = vmov (%p384_p9), -inf  }
  0x2e   : > { %391 = vst.msk [vmem:[%s2639_s5] sm:$0xff] (%p384_p9), %vm390_vm0, %v1430_v32  ;;  %392 = vst.msk [vmem:[%s2639_s5 + $0x8] sm:$0xff] (%p384_p9), %vm390_vm0, %v1430_v32 }
  0x2f   : > { %393 = vst.msk [vmem:[%s2639_s5 + $0x10] sm:$0xff] (%p384_p9), %vm390_vm0, %v1430_v32  ;;  %394 = vst.msk [vmem:[%s2639_s5 + $0x18] sm:$0xff] (%p384_p9), %vm390_vm0, %v1430_v32 }
  0x30   : > { %395 = vst.msk [vmem:[%s2639_s5 + $0x20] sm:$0xff] (%p384_p9), %vm390_vm0, %v1430_v32  ;;  %396 = vst.msk [vmem:[%s2639_s5 + $0x28] sm:$0xff] (%p384_p9), %vm390_vm0, %v1430_v32 }
  0x31   : > { %397 = vst.msk [vmem:[%s2639_s5 + $0x30] sm:$0xff] (%p384_p9), %vm390_vm0, %v1430_v32  ;;  %398 = vst.msk [vmem:[%s2639_s5 + $0x38] sm:$0xff] (%p384_p9), %vm390_vm0, %v1430_v32 }
  0x32   : > { %399 = vst.msk [vmem:[%s2639_s5 + $0x40] sm:$0xff] (%p384_p9), %vm390_vm0, %v1430_v32  ;;  %400 = vst.msk [vmem:[%s2639_s5 + $0x48] sm:$0xff] (%p384_p9), %vm390_vm0, %v1430_v32 }
  0x33   : > { %401 = vst.msk [vmem:[%s2639_s5 + $0x50] sm:$0xff] (%p384_p9), %vm390_vm0, %v1430_v32  ;;  %402 = vst.msk [vmem:[%s2639_s5 + $0x58] sm:$0xff] (%p384_p9), %vm390_vm0, %v1430_v32 }
  0x34   : > { %403 = vst.msk [vmem:[%s2639_s5 + $0x60] sm:$0xff] %vm390_vm0, %v1430_v32  ;;  %404 = vst.msk [vmem:[%s2639_s5 + $0x68] sm:$0xff] %vm390_vm0, %v1430_v32 }
  0x35   : > { %405 = vst.msk [vmem:[%s2639_s5 + $0x70] sm:$0xff] %vm390_vm0, %v1430_v32  ;;  %406 = vst.msk [vmem:[%s2639_s5 + $0x78] sm:$0xff] %vm390_vm0, %v1430_v32 }
  0x36   : > { %407 = vst.msk [vmem:[%s2639_s5 + $0x80] sm:$0xff] %vm390_vm0, %v1430_v32  ;;  %408 = vst.msk [vmem:[%s2639_s5 + $0x88] sm:$0xff] %vm390_vm0, %v1430_v32 }
  0x37   : > { %409 = vst.msk [vmem:[%s2639_s5 + $0x90] sm:$0xff] %vm390_vm0, %v1430_v32  ;;  %410 = vst.msk [vmem:[%s2639_s5 + $0x98] sm:$0xff] %vm390_vm0, %v1430_v32 }
  0x38   : > { %411 = vst.msk [vmem:[%s2639_s5 + $0xa0] sm:$0xff] %vm390_vm0, %v1430_v32  ;;  %412 = vst.msk [vmem:[%s2639_s5 + $0xa8] sm:$0xff] %vm390_vm0, %v1430_v32 }
  0x39   : > { %413 = vst.msk [vmem:[%s2639_s5 + $0xb0] sm:$0xff] %vm390_vm0, %v1430_v32  ;;  %414 = vst.msk [vmem:[%s2639_s5 + $0xb8] sm:$0xff] %vm390_vm0, %v1430_v32 }
  0x3a   : > { %415 = vst.msk [vmem:[%s2639_s5 + $0xc0] sm:$0xff] %vm390_vm0, %v1430_v32  ;;  %416 = vst.msk [vmem:[%s2639_s5 + $0xc8] sm:$0xff] %vm390_vm0, %v1430_v32 }
  0x3b   : > { %417 = vst.msk [vmem:[%s2639_s5 + $0xd0] sm:$0xff] %vm390_vm0, %v1430_v32  ;;  %418 = vst.msk [vmem:[%s2639_s5 + $0xd8] sm:$0xff] %vm390_vm0, %v1430_v32 }
  0x3c   : > { %419 = vst.msk [vmem:[%s2639_s5 + $0xe0] sm:$0xff] %vm390_vm0, %v1430_v32  ;;  %420 = vst.msk [vmem:[%s2639_s5 + $0xe8] sm:$0xff] %vm390_vm0, %v1430_v32 }
  0x3d   : > { %421 = vst.msk [vmem:[%s2639_s5 + $0xf0] sm:$0xff] %vm390_vm0, %v1430_v32  ;;  %422 = vst.msk [vmem:[%s2639_s5 + $0xf8] sm:$0xff] %vm390_vm0, %v1430_v32 }
  0x3e PF: > { %v425_v33 = vld [vmem:[%s2636_s2 + $0x10] sm:$0xff]  ;;  %v1431_v35 = vmov 0   ;;  %v423_v37 = vld [vmem:[%s2636_s2] sm:$0xff]  ;;  %v426_v40 = vld [vmem:[%s2636_s2 + $0x18] sm:$0xff]  ;;  %vm1259_vm2 = vcmask 15360  }
  0x3f   : > { %v457_v34 = vld [vmem:[%s2637_s3 + $0x10] sm:$0xff]  ;;  %1389 = vset.pattern.permute.xlu1 %v1431_v35  ;;  %1388 = vset.pattern.permute.xlu0 %v1431_v35  ;;  %v455_v38 = vld [vmem:[%s2637_s3] sm:$0xff]  ;;  %v458_v41 = vld [vmem:[%s2637_s3 + $0x18] sm:$0xff] }
  0x40   : > { %v1713_v36 = vmul.f32 %v457_v34, %v425_v33  ;;  %v1721_v39 = vmul.f32 %v455_v38, %v423_v37  ;;  %v424_v42 = vld [vmem:[%s2636_s2 + $0x8] sm:$0xff]  ;;  %v1733_v43 = vmul.f32 %v458_v41, %v426_v40  ;;  %v427_v48 = vld [vmem:[%s2636_s2 + $0x20] sm:$0xff]  ;;  %v430_v52 = vld [vmem:[%s2636_s2 + $0x38] sm:$0xff] }
  0x41   : > { %v456_v44 = vld [vmem:[%s2637_s3 + $0x8] sm:$0xff]  ;;  %v459_v49 = vld [vmem:[%s2637_s3 + $0x20] sm:$0xff]  ;;  %v462_v53 = vld [vmem:[%s2637_s3 + $0x38] sm:$0xff] }
  0x42   : > { %691 = vperm.xlu1 %1389, %v1713_v36   ;;  %681 = vperm.xlu0 %1388, %v1721_v39   ;;  %v1739_v45 = vmul.f32 %v456_v44, %v424_v42  ;;  %v428_v46 = vld [vmem:[%s2636_s2 + $0x28] sm:$0xff]  ;;  %v1757_v51 = vmul.f32 %v459_v49, %v427_v48  ;;  %v429_v54 = vld [vmem:[%s2636_s2 + $0x30] sm:$0xff]  ;;  %v1772_v56 = vmul.f32 %v462_v53, %v430_v52  ;;  %v431_v60 = vld [vmem:[%s2636_s2 + $0x40] sm:$0xff] }
  0x43   : > { %v460_v47 = vld [vmem:[%s2637_s3 + $0x28] sm:$0xff]  ;;  %v461_v55 = vld [vmem:[%s2637_s3 + $0x30] sm:$0xff]  ;;  %v463_v61 = vld [vmem:[%s2637_s3 + $0x40] sm:$0xff] }
  0x44   : > { %v1754_v50 = vmul.f32 %v460_v47, %v428_v46  ;;  %v1775_v57 = vmul.f32 %v461_v55, %v429_v54  ;;  %v432_v58 = vld [vmem:[%s2636_s2 + $0x48] sm:$0xff]  ;;  %v1793_v63 = vmul.f32 %v463_v61, %v431_v60  ;;  %v434_v0 = vld [vmem:[%s2636_s2 + $0x58] sm:$0xff]  ;;  %v433_v2 = vld [vmem:[%s2636_s2 + $0x50] sm:$0xff] }
  0x45   : > { %v464_v59 = vld [vmem:[%s2637_s3 + $0x48] sm:$0xff]  ;;  %v466_v1 = vld [vmem:[%s2637_s3 + $0x58] sm:$0xff]  ;;  %v465_v3 = vld [vmem:[%s2637_s3 + $0x50] sm:$0xff] }
  0x46   : > { %696 = vperm.xlu1 %1389, %v1733_v43   ;;  %686 = vperm.xlu0 %1388, %v1739_v45   ;;  %v1790_v62 = vmul.f32 %v464_v59, %v432_v58  ;;  %v1808_v4 = vmul.f32 %v466_v1, %v434_v0  ;;  %v1811_v5 = vmul.f32 %v465_v3, %v433_v2  ;;  %v436_v6 = vld [vmem:[%s2636_s2 + $0x68] sm:$0xff]  ;;  %v435_v8 = vld [vmem:[%s2636_s2 + $0x60] sm:$0xff]  ;;  %v438_v12 = vld [vmem:[%s2636_s2 + $0x78] sm:$0xff] }
  0x47   : > { %v468_v7 = vld [vmem:[%s2637_s3 + $0x68] sm:$0xff]  ;;  %v467_v9 = vld [vmem:[%s2637_s3 + $0x60] sm:$0xff]  ;;  %v470_v13 = vld [vmem:[%s2637_s3 + $0x78] sm:$0xff] }
  0x48   : > { %v1826_v10 = vmul.f32 %v468_v7, %v436_v6  ;;  %v1829_v11 = vmul.f32 %v467_v9, %v435_v8  ;;  %v437_v14 = vld [vmem:[%s2636_s2 + $0x70] sm:$0xff]  ;;  %v1844_v16 = vmul.f32 %v470_v13, %v438_v12  ;;  %v440_v18 = vld [vmem:[%s2636_s2 + $0x88] sm:$0xff]  ;;  %v439_v20 = vld [vmem:[%s2636_s2 + $0x80] sm:$0xff] }
  0x49   : > { %v469_v15 = vld [vmem:[%s2637_s3 + $0x70] sm:$0xff]  ;;  %v472_v19 = vld [vmem:[%s2637_s3 + $0x88] sm:$0xff]  ;;  %v471_v21 = vld [vmem:[%s2637_s3 + $0x80] sm:$0xff] }
  0x4a   : > { %706 = vperm.xlu1 %1389, %v1754_v50   ;;  %701 = vperm.xlu0 %1388, %v1757_v51   ;;  %v1847_v17 = vmul.f32 %v469_v15, %v437_v14  ;;  %v1862_v22 = vmul.f32 %v472_v19, %v440_v18  ;;  %v1865_v23 = vmul.f32 %v471_v21, %v439_v20  ;;  %v442_v24 = vld [vmem:[%s2636_s2 + $0x98] sm:$0xff]  ;;  %v441_v26 = vld [vmem:[%s2636_s2 + $0x90] sm:$0xff]  ;;  %v444_v30 = vld [vmem:[%s2636_s2 + $0xa8] sm:$0xff] }
  0x4b   : > { %v474_v25 = vld [vmem:[%s2637_s3 + $0x98] sm:$0xff]  ;;  %v473_v27 = vld [vmem:[%s2637_s3 + $0x90] sm:$0xff]  ;;  %v476_v31 = vld [vmem:[%s2637_s3 + $0xa8] sm:$0xff] }
  0x4c   : > { %v1880_v28 = vmul.f32 %v474_v25, %v442_v24  ;;  %v1883_v29 = vmul.f32 %v473_v27, %v441_v26  ;;  %v443_v32 = vld [vmem:[%s2636_s2 + $0xa0] sm:$0xff]  ;;  %v1898_v34 = vmul.f32 %v476_v31, %v444_v30  ;;  %v446_v37 = vld [vmem:[%s2636_s2 + $0xb8] sm:$0xff]  ;;  %v445_v40 = vld [vmem:[%s2636_s2 + $0xb0] sm:$0xff] }
  0x4d   : > { %v475_v33 = vld [vmem:[%s2637_s3 + $0xa0] sm:$0xff]  ;;  %v478_v38 = vld [vmem:[%s2637_s3 + $0xb8] sm:$0xff]  ;;  %v477_v41 = vld [vmem:[%s2637_s3 + $0xb0] sm:$0xff] }
  0x4e   : > { %716 = vperm.xlu1 %1389, %v1772_v56   ;;  %711 = vperm.xlu0 %1388, %v1775_v57   ;;  %v1901_v35 = vmul.f32 %v475_v33, %v443_v32  ;;  %v1916_v42 = vmul.f32 %v478_v38, %v446_v37  ;;  %v1919_v44 = vmul.f32 %v477_v41, %v445_v40  ;;  %v448_v46 = vld [vmem:[%s2636_s2 + $0xc8] sm:$0xff]  ;;  %v447_v48 = vld [vmem:[%s2636_s2 + $0xc0] sm:$0xff]  ;;  %v450_v54 = vld [vmem:[%s2636_s2 + $0xd8] sm:$0xff] }
  0x4f   : > { %v480_v47 = vld [vmem:[%s2637_s3 + $0xc8] sm:$0xff]  ;;  %v479_v49 = vld [vmem:[%s2637_s3 + $0xc0] sm:$0xff]  ;;  %v482_v55 = vld [vmem:[%s2637_s3 + $0xd8] sm:$0xff] }
  0x50   : > { %v1934_v52 = vmul.f32 %v480_v47, %v448_v46  ;;  %v1937_v53 = vmul.f32 %v479_v49, %v447_v48  ;;  %v449_v58 = vld [vmem:[%s2636_s2 + $0xd0] sm:$0xff]  ;;  %v1952_v60 = vmul.f32 %v482_v55, %v450_v54  ;;  %v452_v0 = vld [vmem:[%s2636_s2 + $0xe8] sm:$0xff]  ;;  %v451_v2 = vld [vmem:[%s2636_s2 + $0xe0] sm:$0xff] }
  0x51   : > { %v481_v59 = vld [vmem:[%s2637_s3 + $0xd0] sm:$0xff]  ;;  %v484_v1 = vld [vmem:[%s2637_s3 + $0xe8] sm:$0xff]  ;;  %v483_v3 = vld [vmem:[%s2637_s3 + $0xe0] sm:$0xff] }
  0x52   : > { %726 = vperm.xlu1 %1389, %v1790_v62   ;;  %721 = vperm.xlu0 %1388, %v1793_v63   ;;  %v1955_v61 = vmul.f32 %v481_v59, %v449_v58  ;;  %v1970_v6 = vmul.f32 %v484_v1, %v452_v0  ;;  %v1973_v7 = vmul.f32 %v483_v3, %v451_v2  ;;  %v454_v8 = vld [vmem:[%s2636_s2 + $0xf8] sm:$0xff]  ;;  %v552_v12 = vld [vmem:[%s2635_s1 + $0x8] sm:$0xff]  ;;  %v551_v13 = vld [vmem:[%s2635_s1] sm:$0xff] }
  0x53   : > { %v486_v9 = vld [vmem:[%s2637_s3 + $0xf8] sm:$0xff]  ;;  %v453_v14 = vld [vmem:[%s2636_s2 + $0xf0] sm:$0xff]  ;;  %v584_v19 = vmul.f32 %v552_v12, %v1739_v45  ;;  %v583_v20 = vmul.f32 %v551_v13, %v1721_v39  ;;  %v520_v24 = vld [vmem:[%s2638_s4 + $0x8] sm:$0xff] }
  0x54   : > { %v485_v15 = vld [vmem:[%s2637_s3 + $0xf0] sm:$0xff]  ;;  %v1994_v18 = vmul.f32 %v486_v9, %v454_v8  ;;  %v554_v25 = vld [vmem:[%s2635_s1 + $0x18] sm:$0xff]  ;;  %v519_v39 = vld [vmem:[%s2638_s4] sm:$0xff] }
  0x55   : > { %v1999_v21 = vmul.f32 %v485_v15, %v453_v14  ;;  %v553_v26 = vld [vmem:[%s2635_s1 + $0x10] sm:$0xff]  ;;  %v616_v45 = vsub.f32 %v520_v24, %v584_v19  ;;  %v586_v27 = vmul.f32 %v554_v25, %v1733_v43  ;;  %v615_v31 = vsub.f32 %v519_v39, %v583_v20  ;;  %v522_v32 = vld [vmem:[%s2638_s4 + $0x18] sm:$0xff]  ;;  %v556_v33 = vld [vmem:[%s2635_s1 + $0x28] sm:$0xff] }
  0x56   : > { %736 = vperm.xlu1 %1389, %v1808_v4   ;;  %731 = vperm.xlu0 %1388, %v1811_v5   ;;  %v585_v30 = vmul.f32 %v553_v26, %v1713_v36  ;;  %v521_v37 = vld [vmem:[%s2638_s4 + $0x10] sm:$0xff]  ;;  %v555_v43 = vld [vmem:[%s2635_s1 + $0x20] sm:$0xff]  ;;  %v588_v38 = vmul.f32 %v556_v33, %v1754_v50  ;;  %v524_v41 = vld [vmem:[%s2638_s4 + $0x28] sm:$0xff] }
  0x57   : > { %v618_v36 = vsub.f32 %v522_v32, %v586_v27  ;;  %v587_v46 = vmul.f32 %v555_v43, %v1757_v51  ;;  %v558_v47 = vld [vmem:[%s2635_s1 + $0x38] sm:$0xff]  ;;  %v523_v48 = vld [vmem:[%s2638_s4 + $0x20] sm:$0xff]  ;;  %v557_v50 = vld [vmem:[%s2635_s1 + $0x30] sm:$0xff] }
  0x58   : > { %v617_v40 = vsub.f32 %v521_v37, %v585_v30  ;;  %v620_v49 = vsub.f32 %v524_v41, %v588_v38  ;;  %v590_v54 = vmul.f32 %v558_v47, %v1772_v56  ;;  %v526_v51 = vld [vmem:[%s2638_s4 + $0x38] sm:$0xff]  ;;  %v589_v58 = vmul.f32 %v557_v50, %v1775_v57  ;;  %v560_v59 = vld [vmem:[%s2635_s1 + $0x48] sm:$0xff]  ;;  %v525_v0 = vld [vmem:[%s2638_s4 + $0x30] sm:$0xff] }
  0x59   : > { %v619_v55 = vsub.f32 %v523_v48, %v587_v46  ;;  %v559_v56 = vld [vmem:[%s2635_s1 + $0x40] sm:$0xff]  ;;  %v592_v2 = vmul.f32 %v560_v59, %v1790_v62  ;;  %v528_v57 = vld [vmem:[%s2638_s4 + $0x48] sm:$0xff]  ;;  %v562_v9 = vld [vmem:[%s2635_s1 + $0x58] sm:$0xff] }
  0x5a   : > { %746 = vperm.xlu1 %1389, %v1826_v10   ;;  %741 = vperm.xlu0 %1388, %v1829_v11   ;;  %v622_v1 = vsub.f32 %v526_v51, %v590_v54  ;;  %v621_v3 = vsub.f32 %v525_v0, %v589_v58  ;;  %v591_v8 = vmul.f32 %v559_v56, %v1793_v63  ;;  %v527_v12 = vld [vmem:[%s2638_s4 + $0x40] sm:$0xff]  ;;  %v561_v62 = vld [vmem:[%s2635_s1 + $0x50] sm:$0xff]  ;;  %v530_v63 = vld [vmem:[%s2638_s4 + $0x58] sm:$0xff] }
  0x5b   : > { %v624_v13 = vsub.f32 %v528_v57, %v592_v2  ;;  %v594_v14 = vmul.f32 %v562_v9, %v1808_v4  ;;  %v593_v19 = vmul.f32 %v561_v62, %v1811_v5  ;;  %v564_v20 = vld [vmem:[%s2635_s1 + $0x68] sm:$0xff]  ;;  %v529_v24 = vld [vmem:[%s2638_s4 + $0x50] sm:$0xff]  ;;  %v563_v4 = vld [vmem:[%s2635_s1 + $0x60] sm:$0xff] }
  0x5c   : > { %v623_v15 = vsub.f32 %v527_v12, %v591_v8  ;;  %v596_v26 = vmul.f32 %v564_v20, %v1826_v10  ;;  %v532_v5 = vld [vmem:[%s2638_s4 + $0x68] sm:$0xff]  ;;  %v566_v27 = vld [vmem:[%s2635_s1 + $0x78] sm:$0xff]  ;;  %v531_v30 = vld [vmem:[%s2638_s4 + $0x60] sm:$0xff] }
  0x5d   : > { %v626_v25 = vsub.f32 %v530_v63, %v594_v14  ;;  %v625_v39 = vsub.f32 %v529_v24, %v593_v19  ;;  %v565_v10 = vld [vmem:[%s2635_s1 + $0x70] sm:$0xff]  ;;  %v598_v32 = vmul.f32 %v566_v27, %v1844_v16  ;;  %v568_v43 = vld [vmem:[%s2635_s1 + $0x88] sm:$0xff]  ;;  %v570_v47 = vld [vmem:[%s2635_s1 + $0x98] sm:$0xff] }
  0x5e   : > { %756 = vperm.xlu1 %1389, %v1844_v16   ;;  %751 = vperm.xlu0 %1388, %v1847_v17   ;;  %v597_v37 = vmul.f32 %v565_v10, %v1847_v17  ;;  %v567_v16 = vld [vmem:[%s2635_s1 + $0x80] sm:$0xff]  ;;  %v536_v17 = vld [vmem:[%s2638_s4 + $0x88] sm:$0xff]  ;;  %v537_v58 = vld [vmem:[%s2638_s4 + $0x90] sm:$0xff] }
  0x5f   : > { %v599_v46 = vmul.f32 %v567_v16, %v1865_v23  ;;  %v535_v48 = vld [vmem:[%s2638_s4 + $0x80] sm:$0xff]  ;;  %v572_v51 = vld [vmem:[%s2635_s1 + $0xa8] sm:$0xff]  ;;  %v574_v2 = vld [vmem:[%s2635_s1 + $0xb8] sm:$0xff] }
  0x60   : > { %v604_v0 = vmul.f32 %v572_v51, %v1898_v34  ;;  %v606_v8 = vmul.f32 %v574_v2, %v1916_v42  ;;  %v576_v62 = vld [vmem:[%s2635_s1 + $0xc8] sm:$0xff]  ;;  %v578_v20 = vld [vmem:[%s2635_s1 + $0xd8] sm:$0xff]  ;;  %v543_v24 = vld [vmem:[%s2638_s4 + $0xc0] sm:$0xff] }
  0x61   : > { %v631_v54 = vsub.f32 %v535_v48, %v599_v46  ;;  %v549_v16 = vld [vmem:[%s2638_s4 + $0xf0] sm:$0xff] }
  0x62   : > { %766 = vperm.xlu1 %1389, %v1862_v22   ;;  %761 = vperm.xlu0 %1388, %v1865_v23   ;;  %v538_v23 = vld [vmem:[%s2638_s4 + $0x98] sm:$0xff] }
  0x66   : > { %776 = vperm.xlu1 %1389, %v1880_v28   ;;  %771 = vperm.xlu0 %1388, %v1883_v29  }
  0x6a   : > { %786 = vperm.xlu1 %1389, %v1898_v34   ;;  %781 = vperm.xlu0 %1388, %v1901_v35   ;;  %v573_v34 = vld [vmem:[%s2635_s1 + $0xb0] sm:$0xff] }
  0x6b   : > { %v605_v12 = vmul.f32 %v573_v34, %v1919_v44 }
  0x6e   : > { %796 = vperm.xlu1 %1389, %v1916_v42   ;;  %791 = vperm.xlu0 %1388, %v1919_v44   ;;  %v575_v42 = vld [vmem:[%s2635_s1 + $0xc0] sm:$0xff]  ;;  %v544_v44 = vld [vmem:[%s2638_s4 + $0xc8] sm:$0xff] }
  0x6f   : > { %v607_v19 = vmul.f32 %v575_v42, %v1937_v53 }
  0x72   : > { %806 = vperm.xlu1 %1389, %v1934_v52   ;;  %801 = vperm.xlu0 %1388, %v1937_v53   ;;  %v546_v53 = vld [vmem:[%s2638_s4 + $0xd8] sm:$0xff] }
  0x76   : > { %816 = vperm.xlu1 %1389, %v1952_v60   ;;  %811 = vperm.xlu0 %1388, %v1955_v61  }
  0x7a   : > { %826 = vperm.xlu1 %1389, %v1970_v6   ;;  %821 = vperm.xlu0 %1388, %v1973_v7  }
  0x7e   : > { %836 = vperm.xlu1 %1389, %v1994_v18   ;;  %831 = vperm.xlu0 %1388, %v1999_v21  }
  0x82   : > { %878 = vperm.xlu1 %1389, %v616_v45   ;;  %873 = vperm.xlu0 %1388, %v615_v31   ;;  %v595_v45 = vmul.f32 %v563_v4, %v1829_v11  ;;  %v628_v31 = vsub.f32 %v532_v5, %v596_v26  ;;  %v534_v11 = vld [vmem:[%s2638_s4 + $0x78] sm:$0xff]  ;;  %v639_v26 = vsub.f32 %v543_v24, %v607_v19  ;;  %v580_v5 = vld [vmem:[%s2635_s1 + $0xe8] sm:$0xff] }
  0x83   : > { %v630_v38 = vsub.f32 %v534_v11, %v598_v32  ;;  %v582_v32 = vld [vmem:[%s2635_s1 + $0xf8] sm:$0xff] }
  0x84   : > { %v627_v33 = vsub.f32 %v531_v30, %v595_v45  ;;  %v545_v45 = vld [vmem:[%s2638_s4 + $0xd0] sm:$0xff]  ;;  %v612_v30 = vmul.f32 %v580_v5, %v1970_v6 }
  0x85   : > { %v581_v6 = vld [vmem:[%s2635_s1 + $0xf0] sm:$0xff] }
  0x86   : > { %888 = vperm.xlu1 %1389, %v618_v36   ;;  %883 = vperm.xlu0 %1388, %v617_v40   ;;  %v533_v36 = vld [vmem:[%s2638_s4 + $0x70] sm:$0xff]  ;;  %v600_v40 = vmul.f32 %v568_v43, %v1862_v22 }
  0x87   : > { %v629_v41 = vsub.f32 %v533_v36, %v597_v37  ;;  %v569_v22 = vld [vmem:[%s2635_s1 + $0x90] sm:$0xff]  ;;  %v614_v37 = vmul.f32 %v582_v32, %v1994_v18  ;;  %v613_v36 = vmul.f32 %v581_v6, %v1999_v21 }
  0x88   : > { %v632_v50 = vsub.f32 %v536_v17, %v600_v40  ;;  %v653_v6 = vld [vmem:[%s1577_s11 + $0x30] sm:$0xff] }
  0x89   : > { %v645_v40 = vsub.f32 %v549_v16, %v613_v36 }
  0x8a   : > { %898 = vperm.xlu1 %1389, %v620_v49   ;;  %893 = vperm.xlu0 %1388, %v619_v55   ;;  %v602_v49 = vmul.f32 %v570_v47, %v1880_v28  ;;  %v601_v55 = vmul.f32 %v569_v22, %v1883_v29  ;;  %v571_v28 = vld [vmem:[%s2635_s1 + $0xa0] sm:$0xff]  ;;  %v540_v29 = vld [vmem:[%s2638_s4 + $0xa8] sm:$0xff] }
  0x8b   : > { %v636_v57 = vsub.f32 %v540_v29, %v604_v0 }
  0x8c   : > { %v634_v59 = vsub.f32 %v538_v23, %v602_v49  ;;  %v633_v56 = vsub.f32 %v537_v58, %v601_v55 }
  0x8e   : > { %908 = vperm.xlu1 %1389, %v622_v1   ;;  %903 = vperm.xlu0 %1388, %v621_v3   ;;  %v603_v1 = vmul.f32 %v571_v28, %v1901_v35  ;;  %v539_v3 = vld [vmem:[%s2638_s4 + $0xa0] sm:$0xff]  ;;  %v542_v35 = vld [vmem:[%s2638_s4 + $0xb8] sm:$0xff] }
  0x8f   : > { %v638_v14 = vsub.f32 %v542_v35, %v606_v8 }
  0x90   : > { %v635_v9 = vsub.f32 %v539_v3, %v603_v1 }
  0x92   : > { %918 = vperm.xlu1 %1389, %v624_v13   ;;  %913 = vperm.xlu0 %1388, %v623_v15   ;;  %v541_v13 = vld [vmem:[%s2638_s4 + $0xb0] sm:$0xff]  ;;  %v608_v15 = vmul.f32 %v576_v62, %v1934_v52 }
  0x93   : > { %v637_v63 = vsub.f32 %v541_v13, %v605_v12  ;;  %v577_v52 = vld [vmem:[%s2635_s1 + $0xd0] sm:$0xff]  ;;  %v648_v13 = vld [vmem:[%s1577_s11 + $0x8] sm:$0xff] }
  0x94   : > { %v640_v4 = vsub.f32 %v544_v44, %v608_v15 }
  0x96   : > { %928 = vperm.xlu1 %1389, %v626_v25   ;;  %923 = vperm.xlu0 %1388, %v625_v39   ;;  %v610_v25 = vmul.f32 %v578_v20, %v1952_v60  ;;  %v609_v39 = vmul.f32 %v577_v52, %v1955_v61  ;;  %v579_v60 = vld [vmem:[%s2635_s1 + $0xe0] sm:$0xff]  ;;  %v548_v61 = vld [vmem:[%s2638_s4 + $0xe8] sm:$0xff]  ;;  %v649_v20 = vld [vmem:[%s1577_s11 + $0x10] sm:$0xff] }
  0x97   : > { %v644_v11 = vsub.f32 %v548_v61, %v612_v30 }
  0x98   : > { %v642_v27 = vsub.f32 %v546_v53, %v610_v25  ;;  %v641_v10 = vsub.f32 %v545_v45, %v609_v39  ;;  %v650_v25 = vld [vmem:[%s1577_s11 + $0x18] sm:$0xff]  ;;  %v651_v45 = vld [vmem:[%s1577_s11 + $0x20] sm:$0xff] }
  0x9a   : > { %938 = vperm.xlu1 %1389, %v628_v31   ;;  %933 = vperm.xlu0 %1388, %v627_v33   ;;  %v611_v31 = vmul.f32 %v579_v60, %v1973_v7  ;;  %v547_v33 = vld [vmem:[%s2638_s4 + $0xe0] sm:$0xff]  ;;  %v550_v7 = vld [vmem:[%s2638_s4 + $0xf8] sm:$0xff] }
  0x9c   : > { %v643_v43 = vsub.f32 %v547_v33, %v611_v31 }
  0x9e   : > { %948 = vperm.xlu1 %1389, %v630_v38   ;;  %943 = vperm.xlu0 %1388, %v629_v41   ;;  %v646_v38 = vsub.f32 %v550_v7, %v614_v37  ;;  %v654_v7 = vld [vmem:[%s1577_s11 + $0x38] sm:$0xff] }
  0xa2   : > { %958 = vperm.xlu1 %1389, %v632_v50   ;;  %953 = vperm.xlu0 %1388, %v631_v54  }
  0xa6   : > { %968 = vperm.xlu1 %1389, %v634_v59   ;;  %963 = vperm.xlu0 %1388, %v633_v56  }
  0xaa   : > { %978 = vperm.xlu1 %1389, %v636_v57   ;;  %973 = vperm.xlu0 %1388, %v635_v9  }
  0xae   : > { %988 = vperm.xlu1 %1389, %v638_v14   ;;  %983 = vperm.xlu0 %1388, %v637_v63   ;;  %v647_v14 = vld [vmem:[%s1577_s11] sm:$0xff] }
  0xb2   : > { %998 = vperm.xlu1 %1389, %v640_v4   ;;  %993 = vperm.xlu0 %1388, %v639_v26  }
  0xb6   : > { %1008 = vperm.xlu1 %1389, %v642_v27   ;;  %1003 = vperm.xlu0 %1388, %v641_v10   ;;  %v652_v10 = vld [vmem:[%s1577_s11 + $0x28] sm:$0xff] }
  0xba   : > { %1018 = vperm.xlu1 %1389, %v644_v11   ;;  %1013 = vperm.xlu0 %1388, %v643_v43  }
  0xbe   : > { %1028 = vperm.xlu1 %1389, %v646_v38   ;;  %1023 = vperm.xlu0 %1388, %v645_v40  }
  0xc1   : > { %v692_v41 = vpop.permute.xlu1 %691  ;;  %v682_v18 = vpop.permute.xlu0 %681 }
  0xc2   : > { %v839_v44 = vmul.f32 %v682_v18, %v647_v14  ;;  %v841_v53 = vmul.f32 %v692_v41, %v649_v20  ;;  %v655_v18 = vld [vmem:[%s1577_s11 + $0x40] sm:$0xff] }
  0xc5   : > { %v697_v17 = vpop.permute.xlu1 %696  ;;  %v687_v46 = vpop.permute.xlu0 %686 }
  0xc6   : > { %v840_v63 = vmul.f32 %v687_v46, %v648_v13  ;;  %v842_v27 = vmul.f32 %v697_v17, %v650_v25  ;;  %v656_v13 = vld [vmem:[%s1577_s11 + $0x48] sm:$0xff] }
  0xc9   : > { %v707_v47 = vpop.permute.xlu1 %706  ;;  %v702_v48 = vpop.permute.xlu0 %701 }
  0xca   : > { %v843_v61 = vmul.f32 %v702_v48, %v651_v45  ;;  %v844_v37 = vmul.f32 %v707_v47, %v652_v10 }
  0xcd   : > { %v2219_v22 = vpop.permute.xlu1 %716  ;;  %v712_v50 = vpop.permute.xlu0 %711 }
  0xce   : > { %v845_v36 = vmul.f32 %v712_v50, %v653_v6  ;;  %v846_v46 = vmul.f32 %v2219_v22, %v654_v7  ;;  %v658_v22 = vld [vmem:[%s1577_s11 + $0x58] sm:$0xff] }
  0xd1   : > { %v2221_v21 = vpop.permute.xlu1 %726  ;;  %v2223_v49 = vpop.permute.xlu0 %721 }
  0xd2   : > { %v847_v47 = vmul.f32 %v2223_v49, %v655_v18 }
  0xd5   : > { %v2225_v54 = vpop.permute.xlu1 %736  ;;  %v2227_v23 = vpop.permute.xlu0 %731 }
  0xd6   : > { %v850_v45 = vmul.f32 %v2225_v54, %v658_v22  ;;  %v662_v54 = vld [vmem:[%s1577_s11 + $0x78] sm:$0xff] }
  0xd9   : > { %v2229_v55 = vpop.permute.xlu1 %746  ;;  %v2231_v51 = vpop.permute.xlu0 %741 }
  0xdd   : > { %v2233_v58 = vpop.permute.xlu1 %756  ;;  %v2235_v28 = vpop.permute.xlu0 %751 }
  0xe1   : > { %v2237_v59 = vpop.permute.xlu1 %766  ;;  %v2239_v0 = vpop.permute.xlu0 %761 }
  0xe5   : > { %v2241_v56 = vpop.permute.xlu1 %776  ;;  %v2243_v29 = vpop.permute.xlu0 %771 }
  0xe9   : > { %v2245_v1 = vpop.permute.xlu1 %786  ;;  %v2247_v2 = vpop.permute.xlu0 %781 }
  0xed   : > { %v2249_v3 = vpop.permute.xlu1 %796  ;;  %v2251_v34 = vpop.permute.xlu0 %791 }
  0xf1   : > { %v2253_v57 = vpop.permute.xlu1 %806  ;;  %v2255_v8 = vpop.permute.xlu0 %801 }
  0xf5   : > { %v2257_v9 = vpop.permute.xlu1 %816  ;;  %v2259_v35 = vpop.permute.xlu0 %811 }
  0xf9   : > { %v2261_v12 = vpop.permute.xlu1 %826  ;;  %v2263_v62 = vpop.permute.xlu0 %821 }
  0xfd   : > { %v2266_v42 = vpop.permute.xlu1 %836  ;;  %v2269_v15 = vpop.permute.xlu0 %831 }
 0x101   : > { %v879_v19 = vpop.permute.xlu1 %878  ;;  %v874_v52 = vpop.permute.xlu0 %873 }
 0x102   : > { %v1032_v24 = vadd.f32 %v879_v19, %v840_v63  ;;  %v1031_v4 = vadd.f32 %v874_v52, %v839_v44  ;;  %v657_v19 = vld [vmem:[%s1577_s11 + $0x50] sm:$0xff] }
 0x104   : > { %v1064_v26 = vmax.f32 %v1032_v24, 0.0  ;;  %v1063_v39 = vmax.f32 %v1031_v4, 0.0  ;;  %v848_v24 = vmul.f32 %v2221_v21, %v656_v13  ;;  %v849_v4 = vmul.f32 %v2227_v23, %v657_v19  ;;  %v660_v21 = vld [vmem:[%s1577_s11 + $0x68] sm:$0xff] }
 0x105   : > { %v889_v5 = vpop.permute.xlu1 %888  ;;  %v884_v60 = vpop.permute.xlu0 %883 }
 0x106   : > { %1097 = vmax.xlane.f32.xlu1 %v1064_v26  ;;  %v1033_v30 = vadd.f32 %v884_v60, %v841_v53  ;;  %1095 = vmax.xlane.f32.xlu0 %v1063_v39  ;;  %v1034_v31 = vadd.f32 %v889_v5, %v842_v27  ;;  %v659_v39 = vld [vmem:[%s1577_s11 + $0x60] sm:$0xff] }
 0x107   : > { %v851_v27 = vmul.f32 %v2231_v51, %v659_v39 }
 0x108   : > { %v1065_v32 = vmax.f32 %v1033_v30, 0.0  ;;  %v1066_v16 = vmax.f32 %v1034_v31, 0.0  ;;  %v661_v31 = vld [vmem:[%s1577_s11 + $0x70] sm:$0xff] }
 0x109   : > { %v899_v33 = vpop.permute.xlu1 %898  ;;  %v894_v11 = vpop.permute.xlu0 %893 }
 0x10a   : > { %v1035_v43 = vadd.f32 %v894_v11, %v843_v61  ;;  %1099 = vmax.xlane.f32.xlu0 %v1065_v32  ;;  %v1036_v38 = vadd.f32 %v899_v33, %v844_v37  ;;  %v852_v33 = vmul.f32 %v2229_v55, %v660_v21  ;;  %v853_v11 = vmul.f32 %v2235_v28, %v661_v31  ;;  %v664_v55 = vld [vmem:[%s1577_s11 + $0x88] sm:$0xff] }
 0x10c   : > { %v1067_v40 = vmax.f32 %v1035_v43, 0.0  ;;  %v1068_v14 = vmax.f32 %v1036_v38, 0.0  ;;  %v854_v38 = vmul.f32 %v2233_v58, %v662_v54  ;;  %v666_v58 = vld [vmem:[%s1577_s11 + $0x98] sm:$0xff] }
 0x10d   : > { %v909_v41 = vpop.permute.xlu1 %908  ;;  %v904_v17 = vpop.permute.xlu0 %903 }
 0x10e   : > { %v1037_v48 = vadd.f32 %v904_v17, %v845_v36  ;;  %1101 = vmax.xlane.f32.xlu0 %v1066_v16  ;;  %1103 = vmax.xlane.f32.xlu1 %v1067_v40  ;;  %v1038_v63 = vadd.f32 %v909_v41, %v846_v46  ;;  %v663_v36 = vld [vmem:[%s1577_s11 + $0x80] sm:$0xff] }
 0x10f   : > { %v855_v41 = vmul.f32 %v2239_v0, %v663_v36 }
 0x110   : > { %v1069_v50 = vmax.f32 %v1037_v48, 0.0  ;;  %v1070_v25 = vmax.f32 %v1038_v63, 0.0  ;;  %v665_v48 = vld [vmem:[%s1577_s11 + $0x90] sm:$0xff] }
 0x111   : > { %v919_v44 = vpop.permute.xlu1 %918  ;;  %v914_v20 = vpop.permute.xlu0 %913  ;;  %v857_v63 = vmul.f32 %v2243_v29, %v665_v48 }
 0x112   : > { %v1039_v52 = vadd.f32 %v914_v20, %v847_v47  ;;  %1105 = vmax.xlane.f32.xlu0 %v1068_v14  ;;  %1107 = vmax.xlane.f32.xlu1 %v1069_v50  ;;  %v1040_v26 = vadd.f32 %v919_v44, %v848_v24  ;;  %v856_v47 = vmul.f32 %v2237_v59, %v664_v55  ;;  %v667_v20 = vld [vmem:[%s1577_s11 + $0xa0] sm:$0xff]  ;;  %v668_v59 = vld [vmem:[%s1577_s11 + $0xa8] sm:$0xff] }
 0x114   : > { %v1071_v49 = vmax.f32 %v1039_v52, 0.0  ;;  %v1072_v30 = vmax.f32 %v1040_v26, 0.0  ;;  %v858_v52 = vmul.f32 %v2241_v56, %v666_v58  ;;  %v670_v56 = vld [vmem:[%s1577_s11 + $0xb8] sm:$0xff] }
 0x115   : > { %v929_v53 = vpop.permute.xlu1 %928  ;;  %v924_v5 = vpop.permute.xlu0 %923 }
 0x116   : > { %v1041_v60 = vadd.f32 %v924_v5, %v849_v4  ;;  %1109 = vmax.xlane.f32.xlu0 %v1070_v25  ;;  %1111 = vmax.xlane.f32.xlu1 %v1071_v49  ;;  %v1042_v10 = vadd.f32 %v929_v53, %v850_v45  ;;  %v859_v4 = vmul.f32 %v2247_v2, %v667_v20  ;;  %v669_v53 = vld [vmem:[%s1577_s11 + $0xb0] sm:$0xff] }
 0x117   : > { %v860_v5 = vmul.f32 %v2245_v1, %v668_v59  ;;  %v672_v1 = vld [vmem:[%s1577_s11 + $0xc8] sm:$0xff] }
 0x118   : > { %v1073_v23 = vmax.f32 %v1041_v60, 0.0  ;;  %v1074_v37 = vmax.f32 %v1042_v10, 0.0  ;;  %v861_v60 = vmul.f32 %v2251_v34, %v669_v53  ;;  %v671_v10 = vld [vmem:[%s1577_s11 + $0xc0] sm:$0xff] }
 0x119   : > { %v939_v61 = vpop.permute.xlu1 %938  ;;  %v934_v32 = vpop.permute.xlu0 %933 }
 0x11a   : > { %v1043_v6 = vadd.f32 %v934_v32, %v851_v27  ;;  %1113 = vmax.xlane.f32.xlu0 %v1072_v30  ;;  %1115 = vmax.xlane.f32.xlu1 %v1073_v23  ;;  %v1044_v43 = vadd.f32 %v939_v61, %v852_v33  ;;  %v862_v61 = vmul.f32 %v2249_v3, %v670_v56  ;;  %v674_v3 = vld [vmem:[%s1577_s11 + $0xd8] sm:$0xff]  ;;  %v1163_v56 = vld [vmem:[%s2639_s5 + $0x10] sm:$0xff] }
 0x11b   : > { %v863_v32 = vmul.f32 %v2255_v8, %v671_v10 }
 0x11c   : > { %v1075_v51 = vmax.f32 %v1043_v6, 0.0  ;;  %v1076_v18 = vmax.f32 %v1044_v43, 0.0  ;;  %v864_v43 = vmul.f32 %v2253_v57, %v672_v1  ;;  %v676_v57 = vld [vmem:[%s1577_s11 + $0xe8] sm:$0xff] }
 0x11d   : > { %v949_v7 = vpop.permute.xlu1 %948  ;;  %v944_v16 = vpop.permute.xlu0 %943 }
 0x11e   : > { %v1045_v40 = vadd.f32 %v944_v16, %v853_v11  ;;  %1117 = vmax.xlane.f32.xlu0 %v1074_v37  ;;  %1119 = vmax.xlane.f32.xlu1 %v1075_v51  ;;  %v1046_v17 = vadd.f32 %v949_v7, %v854_v38  ;;  %v673_v11 = vld [vmem:[%s1577_s11 + $0xd0] sm:$0xff] }
 0x11f   : > { %v865_v7 = vmul.f32 %v2259_v35, %v673_v11 }
 0x120   : > { %v1077_v28 = vmax.f32 %v1045_v40, 0.0  ;;  %v1078_v50 = vmax.f32 %v1046_v17, 0.0  ;;  %v675_v40 = vld [vmem:[%s1577_s11 + $0xe0] sm:$0xff] }
 0x121   : > { %v959_v46 = vpop.permute.xlu1 %958  ;;  %v954_v13 = vpop.permute.xlu0 %953  ;;  %v867_v17 = vmul.f32 %v2263_v62, %v675_v40 }
 0x122   : > { %v1047_v14 = vadd.f32 %v954_v13, %v855_v41  ;;  %1121 = vmax.xlane.f32.xlu0 %v1076_v18  ;;  %1123 = vmax.xlane.f32.xlu1 %v1077_v28  ;;  %v1048_v44 = vadd.f32 %v959_v46, %v856_v47  ;;  %v866_v41 = vmul.f32 %v2257_v9, %v674_v3  ;;  %v677_v13 = vld [vmem:[%s1577_s11 + $0xf0] sm:$0xff]  ;;  %v1168_v3 = vld [vmem:[%s2639_s5 + $0x38] sm:$0xff] }
 0x123   : > { %v869_v9 = vmul.f32 %v2269_v15, %v677_v13  ;;  %v1172_v13 = vld [vmem:[%s2639_s5 + $0x58] sm:$0xff] }
 0x124   : > { %v1079_v0 = vmax.f32 %v1047_v14, 0.0  ;;  %v1080_v25 = vmax.f32 %v1048_v44, 0.0  ;;  %v868_v14 = vmul.f32 %v2261_v12, %v676_v57 }
 0x125   : > { %v969_v19 = vpop.permute.xlu1 %968  ;;  %v964_v24 = vpop.permute.xlu0 %963 }
 0x126   : > { %v1049_v22 = vadd.f32 %v964_v24, %v857_v63  ;;  %1125 = vmax.xlane.f32.xlu0 %v1078_v50  ;;  %1127 = vmax.xlane.f32.xlu1 %v1079_v0  ;;  %v1050_v26 = vadd.f32 %v969_v19, %v858_v52  ;;  %v678_v63 = vld [vmem:[%s1577_s11 + $0xf8] sm:$0xff] }
 0x127   : > { %v870_v20 = vmul.f32 %v2266_v42, %v678_v63  ;;  %v1161_v42 = vld [vmem:[%s2639_s5] sm:$0xff] }
 0x128   : > { %v1081_v29 = vmax.f32 %v1049_v22, 0.0  ;;  %v1082_v21 = vmax.f32 %v1050_v26, 0.0  ;;  %v1162_v26 = vld [vmem:[%s2639_s5 + $0x8] sm:$0xff] }
 0x129   : > { %v979_v49 = vpop.permute.xlu1 %978  ;;  %v974_v39 = vpop.permute.xlu0 %973 }
 0x12a   : > { %v1051_v45 = vadd.f32 %v974_v39, %v859_v4  ;;  %1129 = vmax.xlane.f32.xlu0 %v1080_v25  ;;  %1131 = vmax.xlane.f32.xlu1 %v1081_v29  ;;  %v1052_v27 = vadd.f32 %v979_v49, %v860_v5  ;;  %v1159_v4 = vlaneseq  ;;  %v1193_v25 = vstv %s1420_s20 }
 0x12c   : > { %v1083_v2 = vmax.f32 %v1051_v45, 0.0  ;;  %v1084_v33 = vmax.f32 %v1052_v27, 0.0  ;;  %v1160_v15 = vand.u32 127, %v1159_v4 }
 0x12d   : > { %v989_v30 = vpop.permute.xlu1 %988  ;;  %v984_v23 = vpop.permute.xlu0 %983 }
 0x12e   : > { %v1053_v31 = vadd.f32 %v984_v23, %v861_v60  ;;  %1133 = vmax.xlane.f32.xlu0 %v1082_v21  ;;  %1135 = vmax.xlane.f32.xlu1 %v1083_v2  ;;  %v1054_v6 = vadd.f32 %v989_v30, %v862_v61  ;;  %vm2333_vm1 = vcmp.eq.s32.totalorder %v1160_v15, %v1193_v25  ;;  %v1165_v2 = vld [vmem:[%s2639_s5 + $0x20] sm:$0xff]  ;;  %v1164_v30 = vld [vmem:[%s2639_s5 + $0x18] sm:$0xff] }
 0x130   : > { %v1085_v34 = vmax.f32 %v1053_v31, 0.0  ;;  %v1086_v36 = vmax.f32 %v1054_v6, 0.0 }
 0x131   : > { %v999_v54 = vpop.permute.xlu1 %998  ;;  %v994_v37 = vpop.permute.xlu0 %993 }
 0x132   : > { %v1055_v51 = vadd.f32 %v994_v37, %v863_v32  ;;  %1137 = vmax.xlane.f32.xlu0 %v1084_v33  ;;  %1139 = vmax.xlane.f32.xlu1 %v1085_v34  ;;  %v1056_v16 = vadd.f32 %v999_v54, %v864_v43  ;;  %v1167_v32 = vld [vmem:[%s2639_s5 + $0x30] sm:$0xff]  ;;  %v1166_v33 = vld [vmem:[%s2639_s5 + $0x28] sm:$0xff] }
 0x134   : > { %v1087_v8 = vmax.f32 %v1055_v51, 0.0  ;;  %v1088_v28 = vmax.f32 %v1056_v16, 0.0  ;;  %v1169_v51 = vld [vmem:[%s2639_s5 + $0x40] sm:$0xff] }
 0x135   : > { %v1009_v38 = vpop.permute.xlu1 %1008  ;;  %v1004_v55 = vpop.permute.xlu0 %1003 }
 0x136   : > { %v1057_v18 = vadd.f32 %v1004_v55, %v865_v7  ;;  %1141 = vmax.xlane.f32.xlu0 %v1086_v36  ;;  %1143 = vmax.xlane.f32.xlu1 %v1087_v8  ;;  %v1058_v46 = vadd.f32 %v1009_v38, %v866_v41  ;;  %v1171_v55 = vld [vmem:[%s2639_s5 + $0x50] sm:$0xff]  ;;  %v1170_v41 = vld [vmem:[%s2639_s5 + $0x48] sm:$0xff] }
 0x138   : > { %v1089_v48 = vmax.f32 %v1057_v18, 0.0  ;;  %v1090_v50 = vmax.f32 %v1058_v46, 0.0 }
 0x139   : > { %v1019_v35 = vpop.permute.xlu1 %1018  ;;  %v1014_v47 = vpop.permute.xlu0 %1013 }
 0x13a   : > { %v1059_v58 = vadd.f32 %v1014_v47, %v867_v17  ;;  %1145 = vmax.xlane.f32.xlu0 %v1088_v28  ;;  %1147 = vmax.xlane.f32.xlu1 %v1089_v48  ;;  %v1060_v44 = vadd.f32 %v1019_v35, %v868_v14  ;;  %v1173_v35 = vld [vmem:[%s2639_s5 + $0x60] sm:$0xff] }
 0x13c   : > { %v1091_v0 = vmax.f32 %v1059_v58, 0.0  ;;  %v1092_v52 = vmax.f32 %v1060_v44, 0.0  ;;  %v1175_v44 = vld [vmem:[%s2639_s5 + $0x70] sm:$0xff] }
 0x13d   : > { %v1029_v19 = vpop.permute.xlu1 %1028  ;;  %v1024_v62 = vpop.permute.xlu0 %1023 }
 0x13e   : > { %v1061_v24 = vadd.f32 %v1024_v62, %v869_v9  ;;  %1149 = vmax.xlane.f32.xlu0 %v1090_v50  ;;  %1151 = vmax.xlane.f32.xlu1 %v1091_v0  ;;  %v1062_v22 = vadd.f32 %v1029_v19, %v870_v20  ;;  %v1174_v0 = vld [vmem:[%s2639_s5 + $0x68] sm:$0xff] }
 0x140   : > { %v1093_v12 = vmax.f32 %v1061_v24, 0.0  ;;  %v1094_v59 = vmax.f32 %v1062_v22, 0.0 }
 0x142   : > { %1153 = vmax.xlane.f32.xlu0 %v1092_v52  ;;  %1155 = vmax.xlane.f32.xlu1 %v1093_v12  ;;  %v1177_v12 = vld [vmem:[%s2639_s5 + $0x80] sm:$0xff] }
 0x146   : > { %1157 = vmax.xlane.f32.xlu0 %v1094_v59  ;;  %v1176_v59 = vld [vmem:[%s2639_s5 + $0x78] sm:$0xff] }
 0x193   : > { %v1098_v49 = vpop.xlane.xlu1 %1097  ;;  %v1096_v39 = vpop.xlane.xlu0 %1095 }
 0x194   : > { %v1196_v53 = vmax.f32 %v1162_v26, %v1098_v49  ;;  %v1195_v5 = vmax.f32 %v1161_v42, %v1096_v39  ;;  %v1178_v39 = vld [vmem:[%s2639_s5 + $0x88] sm:$0xff] }
 0x196   : > { %v1228_v45 = vsel %vm2333_vm1, %v1196_v53, %v1162_v26  ;;  %v1227_v60 = vsel %vm2333_vm1, %v1195_v5, %v1161_v42  ;;  %v1179_v53 = vld [vmem:[%s2639_s5 + $0x90] sm:$0xff] }
 0x197   : > { %1261 = vst.msk [vmem:[%s2639_s5 + $0x8] sm:$0xff] %vm1259_vm2, %v1228_v45  ;;  %1260 = vst.msk [vmem:[%s2639_s5] sm:$0xff] %vm1259_vm2, %v1227_v60  ;;  %v1100_v21 = vpop.xlane.xlu0 %1099 }
 0x198   : > { %v1197_v27 = vmax.f32 %v1163_v56, %v1100_v21 }
 0x19a   : > { %v1229_v10 = vsel %vm2333_vm1, %v1197_v27, %v1163_v56 }
 0x19b   : > { %1262 = vst.msk [vmem:[%s2639_s5 + $0x10] sm:$0xff] %vm1259_vm2, %v1229_v10  ;;  %v1104_v23 = vpop.xlane.xlu1 %1103  ;;  %v1102_v61 = vpop.xlane.xlu0 %1101 }
 0x19c   : > { %v1199_v31 = vmax.f32 %v1165_v2, %v1104_v23  ;;  %v1198_v1 = vmax.f32 %v1164_v30, %v1102_v61 }
 0x19e   : > { %v1231_v6 = vsel %vm2333_vm1, %v1199_v31, %v1165_v2  ;;  %v1230_v34 = vsel %vm2333_vm1, %v1198_v1, %v1164_v30  ;;  %v1181_v2 = vld [vmem:[%s2639_s5 + $0xa0] sm:$0xff]  ;;  %v1180_v30 = vld [vmem:[%s2639_s5 + $0x98] sm:$0xff] }
 0x19f   : > { %1264 = vst.msk [vmem:[%s2639_s5 + $0x20] sm:$0xff] %vm1259_vm2, %v1231_v6  ;;  %1263 = vst.msk [vmem:[%s2639_s5 + $0x18] sm:$0xff] %vm1259_vm2, %v1230_v34  ;;  %v1108_v54 = vpop.xlane.xlu1 %1107  ;;  %v1106_v11 = vpop.xlane.xlu0 %1105  ;;  %v1182_v6 = vld [vmem:[%s2639_s5 + $0xa8] sm:$0xff] }
 0x1a0   : > { %v1201_v37 = vmax.f32 %v1167_v32, %v1108_v54  ;;  %v1200_v43 = vmax.f32 %v1166_v33, %v1106_v11 }
 0x1a2   : > { %v1233_v7 = vsel %vm2333_vm1, %v1201_v37, %v1167_v32  ;;  %v1232_v36 = vsel %vm2333_vm1, %v1200_v43, %v1166_v33  ;;  %v1183_v33 = vld [vmem:[%s2639_s5 + $0xb0] sm:$0xff] }
 0x1a3   : > { %1266 = vst.msk [vmem:[%s2639_s5 + $0x30] sm:$0xff] %vm1259_vm2, %v1233_v7  ;;  %1265 = vst.msk [vmem:[%s2639_s5 + $0x28] sm:$0xff] %vm1259_vm2, %v1232_v36  ;;  %v1112_v16 = vpop.xlane.xlu1 %1111  ;;  %v1110_v8 = vpop.xlane.xlu0 %1109  ;;  %v1184_v7 = vld [vmem:[%s2639_s5 + $0xb8] sm:$0xff] }
 0x1a4   : > { %v1203_v38 = vmax.f32 %v1169_v51, %v1112_v16  ;;  %v1202_v40 = vmax.f32 %v1168_v3, %v1110_v8 }
 0x1a6   : > { %v1235_v18 = vsel %vm2333_vm1, %v1203_v38, %v1169_v51  ;;  %v1234_v57 = vsel %vm2333_vm1, %v1202_v40, %v1168_v3  ;;  %v1185_v3 = vld [vmem:[%s2639_s5 + $0xc0] sm:$0xff] }
 0x1a7   : > { %1268 = vst.msk [vmem:[%s2639_s5 + $0x40] sm:$0xff] %vm1259_vm2, %v1235_v18  ;;  %1267 = vst.msk [vmem:[%s2639_s5 + $0x38] sm:$0xff] %vm1259_vm2, %v1234_v57  ;;  %v1116_v17 = vpop.xlane.xlu1 %1115  ;;  %v1114_v28 = vpop.xlane.xlu0 %1113  ;;  %v1186_v18 = vld [vmem:[%s2639_s5 + $0xc8] sm:$0xff] }
 0x1a8   : > { %v1205_v46 = vmax.f32 %v1171_v55, %v1116_v17  ;;  %v1204_v48 = vmax.f32 %v1170_v41, %v1114_v28 }
 0x1aa   : > { %v1237_v47 = vsel %vm2333_vm1, %v1205_v46, %v1171_v55  ;;  %v1236_v14 = vsel %vm2333_vm1, %v1204_v48, %v1170_v41  ;;  %v1187_v41 = vld [vmem:[%s2639_s5 + $0xd0] sm:$0xff] }
 0x1ab   : > { %1270 = vst.msk [vmem:[%s2639_s5 + $0x50] sm:$0xff] %vm1259_vm2, %v1237_v47  ;;  %1269 = vst.msk [vmem:[%s2639_s5 + $0x48] sm:$0xff] %vm1259_vm2, %v1236_v14  ;;  %v1120_v58 = vpop.xlane.xlu1 %1119  ;;  %v1118_v63 = vpop.xlane.xlu0 %1117  ;;  %v1188_v47 = vld [vmem:[%s2639_s5 + $0xd8] sm:$0xff] }
 0x1ac   : > { %v1207_v9 = vmax.f32 %v1173_v35, %v1120_v58  ;;  %v1206_v50 = vmax.f32 %v1172_v13, %v1118_v63 }
 0x1ae   : > { %v1239_v19 = vsel %vm2333_vm1, %v1207_v9, %v1173_v35  ;;  %v1238_v62 = vsel %vm2333_vm1, %v1206_v50, %v1172_v13  ;;  %v1189_v13 = vld [vmem:[%s2639_s5 + $0xe0] sm:$0xff] }
 0x1af   : > { %1272 = vst.msk [vmem:[%s2639_s5 + $0x60] sm:$0xff] %vm1259_vm2, %v1239_v19  ;;  %1271 = vst.msk [vmem:[%s2639_s5 + $0x58] sm:$0xff] %vm1259_vm2, %v1238_v62  ;;  %v1124_v20 = vpop.xlane.xlu1 %1123  ;;  %v1122_v24 = vpop.xlane.xlu0 %1121  ;;  %v1190_v19 = vld [vmem:[%s2639_s5 + $0xe8] sm:$0xff] }
 0x1b0   : > { %v1209_v52 = vmax.f32 %v1175_v44, %v1124_v20  ;;  %v1208_v22 = vmax.f32 %v1174_v0, %v1122_v24 }
 0x1b2   : > { %v1241_v4 = vsel %vm2333_vm1, %v1209_v52, %v1175_v44  ;;  %v1240_v15 = vsel %vm2333_vm1, %v1208_v22, %v1174_v0  ;;  %v1191_v0 = vld [vmem:[%s2639_s5 + $0xf0] sm:$0xff] }
 0x1b3   : > { %1274 = vst.msk [vmem:[%s2639_s5 + $0x70] sm:$0xff] %vm1259_vm2, %v1241_v4  ;;  %1273 = vst.msk [vmem:[%s2639_s5 + $0x68] sm:$0xff] %vm1259_vm2, %v1240_v15  ;;  %v1128_v25 = vpop.xlane.xlu1 %1127  ;;  %v1126_v26 = vpop.xlane.xlu0 %1125 }
 0x1b4   : > { %v1211_v42 = vmax.f32 %v1177_v12, %v1128_v25  ;;  %v1210_v49 = vmax.f32 %v1176_v59, %v1126_v26 }
 0x1b6   : > { %v1243_v5 = vsel %vm2333_vm1, %v1211_v42, %v1177_v12  ;;  %v1242_v45 = vsel %vm2333_vm1, %v1210_v49, %v1176_v59  ;;  %v1192_v59 = vld [vmem:[%s2639_s5 + $0xf8] sm:$0xff] }
 0x1b7   : > { %1276 = vst.msk [vmem:[%s2639_s5 + $0x80] sm:$0xff] %vm1259_vm2, %v1243_v5  ;;  %1275 = vst.msk [vmem:[%s2639_s5 + $0x78] sm:$0xff] %vm1259_vm2, %v1242_v45  ;;  %v1132_v56 = vpop.xlane.xlu1 %1131  ;;  %v1130_v60 = vpop.xlane.xlu0 %1129 }
 0x1b8   : > { %v1213_v21 = vmax.f32 %v1179_v53, %v1132_v56  ;;  %v1212_v27 = vmax.f32 %v1178_v39, %v1130_v60 }
 0x1ba   : > { %v1245_v10 = vsel %vm2333_vm1, %v1213_v21, %v1179_v53  ;;  %v1244_v23 = vsel %vm2333_vm1, %v1212_v27, %v1178_v39 }
 0x1bb   : > { %1278 = vst.msk [vmem:[%s2639_s5 + $0x90] sm:$0xff] %vm1259_vm2, %v1245_v10  ;;  %1277 = vst.msk [vmem:[%s2639_s5 + $0x88] sm:$0xff] %vm1259_vm2, %v1244_v23  ;;  %v1136_v61 = vpop.xlane.xlu1 %1135  ;;  %v1134_v31 = vpop.xlane.xlu0 %1133 }
 0x1bc   : > { %v1215_v1 = vmax.f32 %v1181_v2, %v1136_v61  ;;  %v1214_v32 = vmax.f32 %v1180_v30, %v1134_v31 }
 0x1be   : > { %v1247_v34 = vsel %vm2333_vm1, %v1215_v1, %v1181_v2  ;;  %v1246_v54 = vsel %vm2333_vm1, %v1214_v32, %v1180_v30 }
 0x1bf   : > { %1280 = vst.msk [vmem:[%s2639_s5 + $0xa0] sm:$0xff] %vm1259_vm2, %v1247_v34  ;;  %1279 = vst.msk [vmem:[%s2639_s5 + $0x98] sm:$0xff] %vm1259_vm2, %v1246_v54  ;;  %v1140_v11 = vpop.xlane.xlu1 %1139  ;;  %v1138_v37 = vpop.xlane.xlu0 %1137 }
 0x1c0   : > { %v1217_v43 = vmax.f32 %v1183_v33, %v1140_v11  ;;  %v1216_v51 = vmax.f32 %v1182_v6, %v1138_v37 }
 0x1c2   : > { %v1249_v36 = vsel %vm2333_vm1, %v1217_v43, %v1183_v33  ;;  %v1248_v16 = vsel %vm2333_vm1, %v1216_v51, %v1182_v6 }
 0x1c3   : > { %1282 = vst.msk [vmem:[%s2639_s5 + $0xb0] sm:$0xff] %vm1259_vm2, %v1249_v36  ;;  %1281 = vst.msk [vmem:[%s2639_s5 + $0xa8] sm:$0xff] %vm1259_vm2, %v1248_v16  ;;  %v1144_v8 = vpop.xlane.xlu1 %1143  ;;  %v1142_v38 = vpop.xlane.xlu0 %1141 }
 0x1c4   : > { %v1219_v40 = vmax.f32 %v1185_v3, %v1144_v8  ;;  %v1218_v55 = vmax.f32 %v1184_v7, %v1142_v38 }
 0x1c6   : > { %v1251_v57 = vsel %vm2333_vm1, %v1219_v40, %v1185_v3  ;;  %v1250_v17 = vsel %vm2333_vm1, %v1218_v55, %v1184_v7 }
 0x1c7   : > { %1284 = vst.msk [vmem:[%s2639_s5 + $0xc0] sm:$0xff] %vm1259_vm2, %v1251_v57  ;;  %1283 = vst.msk [vmem:[%s2639_s5 + $0xb8] sm:$0xff] %vm1259_vm2, %v1250_v17  ;;  %v1148_v28 = vpop.xlane.xlu1 %1147  ;;  %v1146_v46 = vpop.xlane.xlu0 %1145 }
 0x1c8   : > { %v1221_v48 = vmax.f32 %v1187_v41, %v1148_v28  ;;  %v1220_v35 = vmax.f32 %v1186_v18, %v1146_v46 }
 0x1ca   : > { %v1253_v14 = vsel %vm2333_vm1, %v1221_v48, %v1187_v41  ;;  %v1252_v58 = vsel %vm2333_vm1, %v1220_v35, %v1186_v18 }
 0x1cb   : > { %1286 = vst.msk [vmem:[%s2639_s5 + $0xd0] sm:$0xff] %vm1259_vm2, %v1253_v14  ;;  %1285 = vst.msk [vmem:[%s2639_s5 + $0xc8] sm:$0xff] %vm1259_vm2, %v1252_v58  ;;  %v1152_v63 = vpop.xlane.xlu1 %1151  ;;  %v1150_v9 = vpop.xlane.xlu0 %1149 }
 0x1cc   : > { %v1223_v50 = vmax.f32 %v1189_v13, %v1152_v63  ;;  %v1222_v44 = vmax.f32 %v1188_v47, %v1150_v9 }
 0x1ce   : > { %v1255_v62 = vsel %vm2333_vm1, %v1223_v50, %v1189_v13  ;;  %v1254_v20 = vsel %vm2333_vm1, %v1222_v44, %v1188_v47 }
 0x1cf   : > { %1288 = vst.msk [vmem:[%s2639_s5 + $0xe0] sm:$0xff] %vm1259_vm2, %v1255_v62  ;;  %1287 = vst.msk [vmem:[%s2639_s5 + $0xd8] sm:$0xff] %vm1259_vm2, %v1254_v20  ;;  %v1156_v24 = vpop.xlane.xlu1 %1155  ;;  %v1154_v52 = vpop.xlane.xlu0 %1153 }
 0x1d0   : > { %v1225_v22 = vmax.f32 %v1191_v0, %v1156_v24  ;;  %v1224_v12 = vmax.f32 %v1190_v19, %v1154_v52 }
 0x1d2   : > { %v1257_v4 = vsel %vm2333_vm1, %v1225_v22, %v1191_v0  ;;  %v1256_v15 = vsel %vm2333_vm1, %v1224_v12, %v1190_v19 }
 0x1d3   : > { %1290 = vst.msk [vmem:[%s2639_s5 + $0xf0] sm:$0xff] %vm1259_vm2, %v1257_v4  ;;  %1289 = vst.msk [vmem:[%s2639_s5 + $0xe8] sm:$0xff] %vm1259_vm2, %v1256_v15  ;;  %v1158_v25 = vpop.xlane.xlu0 %1157 }
 0x1d4   : > { %v1226_v26 = vmax.f32 %v1192_v59, %v1158_v25 }
 0x1d6   : > { %v1258_v42 = vsel %vm2333_vm1, %v1226_v26, %v1192_v59 }
 0x1d7   : > { %1291 = vst.msk [vmem:[%s2639_s5 + $0xf8] sm:$0xff] %vm1259_vm2, %v1258_v42 }
 0x1d8 PF: > { %s15_s22 = sadd.s32 1, %s1428_s22   ;;  %s2642_s18 = smov %s1416_s19 }
 0x1d9   : > { %p12_p10 = scmp.ge.s32.totalorder %s15_s22, 4   ;;  %s2643_s19 = smov %s1497_s26 }
 0x1da   : > { %s2644_s20 = smov %s1424_s21  ;;  %s2645_s21 = smov %s2647_s23 }
 0x1db   :  { %14 = sbr.rel (!%p12_p10) target bundleno = 3 (0x3), region = 113 }

// kernel: pointnet_cvae_forward.6
= control target key start
LH: loop header
LB: loop body
LE: loop exit
PB: predicated region body
PF: predicated region fallthrough
CT: control target
= control target key end

     0   :  { %s1564_s27 = smov 0   ;;  %s1566_s28 = smov 0   ;;  %s2046_s0 = inlined_call_operand.vmem [shape: f32[64,256], index: 0, kind: input, shape index: {}]   ;;  %s2047_s1 = inlined_call_operand.vmem [shape: f32[64,1], index: 1, kind: input, shape index: {}]   ;;  %s2048_s2 = inlined_call_operand.vmem [shape: f32[64,1], index: 2, kind: input, shape index: {}]   ;;  %s2049_s3 = inlined_call_operand.vmem [shape: f32[64,1], index: 3, kind: input, shape index: {}]   ;;  %s2050_s4 = inlined_call_operand.vmem [shape: f32[64,1], index: 4, kind: input, shape index: {}]   ;;  %s2051_s5 = inlined_call_operand.vmem [shape: f32[128,64], index: 5, kind: input, shape index: {}]   ;;  %s2052_s6 = inlined_call_operand.vmem [shape: f32[128,256], index: 6, kind: output, shape index: {0}]   ;;  %s2053_s7 = inlined_call_operand.vmem [shape: f32[128,1], index: 7, kind: output, shape index: {1}]   ;;  %s2054_s8 = inlined_call_operand.vmem [shape: f32[128,1], index: 8, kind: output, shape index: {2}]  }
   0x1   :  { %s1568_s29 = smov 0  }
   0x2 LB: > { %s1580_s30 = sadd.s32 4294967295, %s1515_s29   ;;  %s1583_s9 = sadd.s32 1, %s1515_s29   ;;  %s1515_s29 = sphi %s1568_s29, %s2058_s29   ;;  %s1511_s28 = sphi %s1566_s28, %s2057_s28   ;;  %s1507_s27 = sphi %s1564_s27, %s2056_s27  }
   0x3   : > { %s23_s10 = ssub.s32 %s1515_s29, %s1583_s9  ;;  %s26_s11 = sadd.s32 1, %s1511_s28 }
   0x4   : > { %p24_p0 = scmp.eq.s32.totalorder %s23_s10, 0  ;;  %p33_p1 = scmp.ne.s32.totalorder %s1511_s28, %s1507_s27 }
   0x5   : > { %p34_p2 = scmp.eq.s32.totalorder %s1515_s29, 0  ;;  %p168_p3 = scmp.eq.s32.totalorder %s1580_s30, 1 }
   0x6   : > { %s1593_s12 = scalar_select %p24_p0, %s1511_s28, %s26_s11  }
   0x7   : > { %p35_p4 = por %p34_p2, %p33_p1  ;;  %p1595_p5 = por %p168_p3, %p33_p1 }
   0x8   : > { %p1317_p6 = scmp.ge.s32.totalorder %s1515_s29, 2 }
   0xa   : > { %247 = sbr.rel (%p1317_p6) target bundleno = 25 (0x19), region = 36 }
  0x11   : > { %250 = sbr.rel (!%p35_p4) target bundleno = 25 (0x19), region = 40  ;;  %s252_s14 = sand.u32 (%p35_p4), 1, %s1511_s28  }
  0x12   : > { %s1319_s15 = sshll.u32 (%p35_p4), %s1515_s29, 3  ;;  %s1318_s16 = sshll.u32 (%p35_p4), %s252_s14, 6 }
  0x13   : > { %s256_s19 = scalar_lea.vmem (%p35_p4), %s2046_s0, %s1319_s15  ;;  %s254_s20 = scalar_lea.vmem (%p35_p4), [#allocation4], %s1318_s16 }
  0x14   : > { %v298_v0 = vld [vmem:[%s256_s19] sm:$0xff] (%p35_p4)  ;;  %v300_v1 = vld [vmem:[%s256_s19 + $0x10] sm:$0xff] (%p35_p4) }
  0x15   : > { %v302_v2 = vld [vmem:[%s256_s19 + $0x20] sm:$0xff] (%p35_p4)  ;;  %299 = vst [vmem:[%s254_s20] sm:$0xff] (%p35_p4), %v298_v0  ;;  %301 = vst [vmem:[%s254_s20 + $0x8] sm:$0xff] (%p35_p4), %v300_v1  ;;  %v304_v3 = vld [vmem:[%s256_s19 + $0x30] sm:$0xff] (%p35_p4) }
  0x16   : > { %303 = vst [vmem:[%s254_s20 + $0x10] sm:$0xff] (%p35_p4), %v302_v2  ;;  %v306_v4 = vld [vmem:[%s256_s19 + $0x40] sm:$0xff] (%p35_p4)  ;;  %v308_v5 = vld [vmem:[%s256_s19 + $0x50] sm:$0xff] (%p35_p4)  ;;  %305 = vst [vmem:[%s254_s20 + $0x18] sm:$0xff] (%p35_p4), %v304_v3 }
  0x17   : > { %307 = vst [vmem:[%s254_s20 + $0x20] sm:$0xff] (%p35_p4), %v306_v4  ;;  %309 = vst [vmem:[%s254_s20 + $0x28] sm:$0xff] (%p35_p4), %v308_v5  ;;  %v310_v6 = vld [vmem:[%s256_s19 + $0x60] sm:$0xff] (%p35_p4)  ;;  %v312_v7 = vld [vmem:[%s256_s19 + $0x70] sm:$0xff] (%p35_p4) }
  0x18   : > { %311 = vst [vmem:[%s254_s20 + $0x30] sm:$0xff] %v310_v6  ;;  %313 = vst [vmem:[%s254_s20 + $0x38] sm:$0xff] %v312_v7 }
  0x19 PF: > { %p1320_p7 = scmp.ge.s32.totalorder %s1515_s29, 1  ;;  %p318_p8 = scmp.lt.s32.totalorder %s1515_s29, 3 }
  0x1b   : > { %p319_p9 = pnand %p1320_p7, %p318_p8 }
  0x1c   : > { %s325_s21 = sand.u32 (!%p319_p9), 1, %s1507_s27   ;;  %p1323_p10 = scmp.ne.s32.totalorder (!%p319_p9), %s1580_s30, 0 }
  0x1d   : > { %322 = sbr.rel (%p319_p9) target bundleno = 689 (0x2b1), region = 78  ;;  %s1321_s22 = sshll.u32 (!%p319_p9), %s325_s21, 6 }
  0x1e   : > { %s1322_s23 = sshll.u32 (!%p319_p9), %s325_s21, 7  ;;  %s1608_s24 = scalar_lea.vmem (!%p319_p9), [#allocation4], %s1321_s22 }
  0x1f   : > { %s1610_s25 = scalar_lea.vmem (!%p319_p9), [#allocation5], %s1322_s23 }
  0x24   : > { %360 = sbr.rel (%p1323_p10) target bundleno = 53 (0x35), region = 86  ;;  %vm361_vm0 = vcmask (!%p1323_p10), 7168   ;;  %v1517_v8 = vmov (!%p1323_p10), 0.0  }
  0x25   : > { %362 = vst.msk [vmem:[#allocation2] sm:$0xff] (!%p1323_p10), %vm361_vm0, %v1517_v8  ;;  %363 = vst.msk [vmem:[#allocation2 + $0x8] sm:$0xff] (!%p1323_p10), %vm361_vm0, %v1517_v8 }
  0x26   : > { %364 = vst.msk [vmem:[#allocation2 + $0x10] sm:$0xff] (!%p1323_p10), %vm361_vm0, %v1517_v8  ;;  %365 = vst.msk [vmem:[#allocation2 + $0x18] sm:$0xff] (!%p1323_p10), %vm361_vm0, %v1517_v8 }
  0x27   : > { %366 = vst.msk [vmem:[#allocation2 + $0x20] sm:$0xff] (!%p1323_p10), %vm361_vm0, %v1517_v8  ;;  %367 = vst.msk [vmem:[#allocation2 + $0x28] sm:$0xff] (!%p1323_p10), %vm361_vm0, %v1517_v8 }
  0x28   : > { %368 = vst.msk [vmem:[#allocation2 + $0x30] sm:$0xff] (!%p1323_p10), %vm361_vm0, %v1517_v8  ;;  %369 = vst.msk [vmem:[#allocation2 + $0x38] sm:$0xff] (!%p1323_p10), %vm361_vm0, %v1517_v8 }
  0x29   : > { %370 = vst.msk [vmem:[#allocation2 + $0x40] sm:$0xff] (!%p1323_p10), %vm361_vm0, %v1517_v8  ;;  %371 = vst.msk [vmem:[#allocation2 + $0x48] sm:$0xff] (!%p1323_p10), %vm361_vm0, %v1517_v8 }
  0x2a   : > { %372 = vst.msk [vmem:[#allocation2 + $0x50] sm:$0xff] (!%p1323_p10), %vm361_vm0, %v1517_v8  ;;  %373 = vst.msk [vmem:[#allocation2 + $0x58] sm:$0xff] (!%p1323_p10), %vm361_vm0, %v1517_v8 }
  0x2b   : > { %374 = vst.msk [vmem:[#allocation2 + $0x60] sm:$0xff] %vm361_vm0, %v1517_v8  ;;  %375 = vst.msk [vmem:[#allocation2 + $0x68] sm:$0xff] %vm361_vm0, %v1517_v8 }
  0x2c   : > { %376 = vst.msk [vmem:[#allocation2 + $0x70] sm:$0xff] %vm361_vm0, %v1517_v8  ;;  %377 = vst.msk [vmem:[#allocation2 + $0x78] sm:$0xff] %vm361_vm0, %v1517_v8 }
  0x2d   : > { %378 = vst.msk [vmem:[#allocation3] sm:$0xff] %vm361_vm0, %v1517_v8  ;;  %379 = vst.msk [vmem:[#allocation3 + $0x8] sm:$0xff] %vm361_vm0, %v1517_v8 }
  0x2e   : > { %380 = vst.msk [vmem:[#allocation3 + $0x10] sm:$0xff] %vm361_vm0, %v1517_v8  ;;  %381 = vst.msk [vmem:[#allocation3 + $0x18] sm:$0xff] %vm361_vm0, %v1517_v8 }
  0x2f   : > { %382 = vst.msk [vmem:[#allocation3 + $0x20] sm:$0xff] %vm361_vm0, %v1517_v8  ;;  %383 = vst.msk [vmem:[#allocation3 + $0x28] sm:$0xff] %vm361_vm0, %v1517_v8 }
  0x30   : > { %384 = vst.msk [vmem:[#allocation3 + $0x30] sm:$0xff] %vm361_vm0, %v1517_v8  ;;  %385 = vst.msk [vmem:[#allocation3 + $0x38] sm:$0xff] %vm361_vm0, %v1517_v8 }
  0x31   : > { %386 = vst.msk [vmem:[#allocation3 + $0x40] sm:$0xff] %vm361_vm0, %v1517_v8  ;;  %387 = vst.msk [vmem:[#allocation3 + $0x48] sm:$0xff] %vm361_vm0, %v1517_v8 }
  0x32   : > { %388 = vst.msk [vmem:[#allocation3 + $0x50] sm:$0xff] %vm361_vm0, %v1517_v8  ;;  %389 = vst.msk [vmem:[#allocation3 + $0x58] sm:$0xff] %vm361_vm0, %v1517_v8 }
  0x33   : > { %390 = vst.msk [vmem:[#allocation3 + $0x60] sm:$0xff] %vm361_vm0, %v1517_v8  ;;  %391 = vst.msk [vmem:[#allocation3 + $0x68] sm:$0xff] %vm361_vm0, %v1517_v8 }
  0x34   : > { %392 = vst.msk [vmem:[#allocation3 + $0x70] sm:$0xff] %vm361_vm0, %v1517_v8  ;;  %393 = vst.msk [vmem:[#allocation3 + $0x78] sm:$0xff] %vm361_vm0, %v1517_v8 }
  0x35 PF: > { %v394_v9 = vld [vmem:[%s2048_s2] sm:$0xff]  ;;  %v395_v11 = vld [vmem:[%s2048_s2 + $0x8] sm:$0xff]  ;;  %v1518_v12 = vmov 0   ;;  %v396_v18 = vld [vmem:[%s2048_s2 + $0x10] sm:$0xff]  ;;  %vm578_vm1 = vcmask 523264   ;;  %vm852_vm2 = vcmask 7168  }
  0x36   : > { %v402_v10 = vld [vmem:[%s2049_s3] sm:$0xff]  ;;  %1459 = vset.pattern.permute.xlu0 %v1518_v12  ;;  %1460 = vset.pattern.permute.xlu1 %v1518_v12  ;;  %v403_v14 = vld [vmem:[%s2049_s3 + $0x8] sm:$0xff]  ;;  %v404_v19 = vld [vmem:[%s2049_s3 + $0x10] sm:$0xff]  ;;  %p1340_p11 = scmp.ne.s32.totalorder %s1580_s30, 1 }
  0x37   : > { %v410_v13 = vmul.f32 %v402_v10, %v394_v9  ;;  %v426_v15 = vld [vmem:[%s2047_s1] sm:$0xff]  ;;  %v411_v16 = vmul.f32 %v403_v14, %v395_v11  ;;  %v412_v21 = vmul.f32 %v404_v19, %v396_v18  ;;  %v419_v22 = vld [vmem:[%s2050_s4 + $0x8] sm:$0xff]  ;;  %v428_v25 = vld [vmem:[%s2047_s1 + $0x10] sm:$0xff] }
  0x38   : > { %v418_v17 = vld [vmem:[%s2050_s4] sm:$0xff]  ;;  %v427_v23 = vld [vmem:[%s2047_s1 + $0x8] sm:$0xff]  ;;  %v397_v26 = vld [vmem:[%s2048_s2 + $0x18] sm:$0xff] }
  0x39   : > { %460 = vperm.xlu0 %1459, %v410_v13   ;;  %v434_v20 = vmul.f32 %v426_v15, %v410_v13  ;;  %v435_v24 = vmul.f32 %v427_v23, %v411_v16  ;;  %v405_v27 = vld [vmem:[%s2049_s3 + $0x18] sm:$0xff]  ;;  %v420_v30 = vld [vmem:[%s2050_s4 + $0x10] sm:$0xff]  ;;  %v436_v31 = vmul.f32 %v428_v25, %v412_v21  ;;  %v398_v33 = vld [vmem:[%s2048_s2 + $0x20] sm:$0xff] }
  0x3a   : > { %v413_v32 = vmul.f32 %v405_v27, %v397_v26  ;;  %v406_v34 = vld [vmem:[%s2049_s3 + $0x20] sm:$0xff]  ;;  %v429_v35 = vld [vmem:[%s2047_s1 + $0x18] sm:$0xff]  ;;  %v399_v41 = vld [vmem:[%s2048_s2 + $0x28] sm:$0xff] }
  0x3b   : > { %v442_v28 = vsub.f32 %v418_v17, %v434_v20  ;;  %v443_v29 = vsub.f32 %v419_v22, %v435_v24  ;;  %v444_v36 = vsub.f32 %v420_v30, %v436_v31  ;;  %v414_v37 = vmul.f32 %v406_v34, %v398_v33  ;;  %v421_v38 = vld [vmem:[%s2050_s4 + $0x18] sm:$0xff]  ;;  %v430_v40 = vld [vmem:[%s2047_s1 + $0x20] sm:$0xff]  ;;  %v407_v42 = vld [vmem:[%s2049_s3 + $0x28] sm:$0xff] }
  0x3c   : > { %v437_v39 = vmul.f32 %v429_v35, %v413_v32  ;;  %v422_v44 = vld [vmem:[%s2050_s4 + $0x20] sm:$0xff]  ;;  %v415_v46 = vmul.f32 %v407_v42, %v399_v41  ;;  %v400_v47 = vld [vmem:[%s2048_s2 + $0x30] sm:$0xff]  ;;  %v431_v49 = vld [vmem:[%s2047_s1 + $0x28] sm:$0xff] }
  0x3d   : > { %465 = vperm.xlu0 %1459, %v411_v16   ;;  %508 = vperm.xlu1 %1460, %v442_v28   ;;  %v438_v45 = vmul.f32 %v430_v40, %v414_v37  ;;  %v408_v48 = vld [vmem:[%s2049_s3 + $0x30] sm:$0xff]  ;;  %v423_v52 = vld [vmem:[%s2050_s4 + $0x28] sm:$0xff]  ;;  %v401_v55 = vld [vmem:[%s2048_s2 + $0x38] sm:$0xff] }
  0x3e   : > { %v445_v43 = vsub.f32 %v421_v38, %v437_v39  ;;  %v416_v51 = vmul.f32 %v408_v48, %v400_v47  ;;  %v439_v53 = vmul.f32 %v431_v49, %v415_v46  ;;  %v432_v54 = vld [vmem:[%s2047_s1 + $0x30] sm:$0xff]  ;;  %v409_v56 = vld [vmem:[%s2049_s3 + $0x38] sm:$0xff]  ;;  %v562_v2 = vld [vmem:[%s2051_s5] sm:$0xff] }
  0x3f   : > { %v446_v50 = vsub.f32 %v422_v44, %v438_v45  ;;  %v417_v59 = vmul.f32 %v409_v56, %v401_v55  ;;  %v424_v60 = vld [vmem:[%s2050_s4 + $0x30] sm:$0xff]  ;;  %v433_v61 = vld [vmem:[%s2047_s1 + $0x38] sm:$0xff]  ;;  %v570_v3 = vld [vmem:[%s2051_s5 + $0x40] sm:$0xff]  ;;  %1385 = vmatprep.mubr.msk.f32.mxu0 %vm578_vm1, %v562_v2 }
  0x40   : > { %v447_v57 = vsub.f32 %v423_v52, %v439_v53  ;;  %v440_v58 = vmul.f32 %v432_v54, %v416_v51  ;;  %v425_v0 = vld [vmem:[%s2050_s4 + $0x38] sm:$0xff]  ;;  %1397 = vmatprep.mubr.msk.f32.mxu1 %vm578_vm1, %v570_v3  ;;  %v450_v4 = vld [vmem:[%s1608_s24] sm:$0xff]  ;;  %v451_v7 = vld [vmem:[%s1608_s24 + $0x8] sm:$0xff] }
  0x41   : > { %470 = vperm.xlu0 %1459, %v412_v21   ;;  %513 = vperm.xlu1 %1460, %v443_v29   ;;  %v441_v63 = vmul.f32 %v433_v61, %v417_v59  ;;  %v452_v15 = vld [vmem:[%s1608_s24 + $0x10] sm:$0xff]  ;;  %v453_v19 = vld [vmem:[%s1608_s24 + $0x18] sm:$0xff]  ;;  %v454_v28 = vld [vmem:[%s1608_s24 + $0x20] sm:$0xff] }
  0x42   : > { %v448_v62 = vsub.f32 %v424_v60, %v440_v58  ;;  %v456_v41 = vld [vmem:[%s1608_s24 + $0x30] sm:$0xff]  ;;  %v457_v45 = vld [vmem:[%s1608_s24 + $0x38] sm:$0xff]  ;;  %v563_v56 = vld [vmem:[%s2051_s5 + $0x8] sm:$0xff] }
  0x43   : > { %v449_v1 = vsub.f32 %v425_v0, %v441_v63  ;;  %v564_v58 = vld [vmem:[%s2051_s5 + $0x10] sm:$0xff]  ;;  %v565_v60 = vld [vmem:[%s2051_s5 + $0x18] sm:$0xff]  ;;  %v574_v63 = vld [vmem:[%s2051_s5 + $0x60] sm:$0xff] }
  0x44   : > { %v573_v61 = vld [vmem:[%s2051_s5 + $0x58] sm:$0xff]  ;;  %v567_v0 = vld [vmem:[%s2051_s5 + $0x28] sm:$0xff]  ;;  %v568_v2 = vld [vmem:[%s2051_s5 + $0x30] sm:$0xff] }
  0x45   : > { %518 = vperm.xlu0 %1459, %v444_v36   ;;  %475 = vperm.xlu1 %1460, %v413_v32   ;;  %v455_v32 = vld [vmem:[%s1608_s24 + $0x28] sm:$0xff]  ;;  %v576_v3 = vld [vmem:[%s2051_s5 + $0x70] sm:$0xff] }
  0x49   : > { %480 = vperm.xlu0 %1459, %v414_v37   ;;  %523 = vperm.xlu1 %1460, %v445_v43  }
  0x4d   : > { %528 = vperm.xlu0 %1459, %v446_v50   ;;  %485 = vperm.xlu1 %1460, %v415_v46  }
  0x51   : > { %490 = vperm.xlu0 %1459, %v416_v51   ;;  %533 = vperm.xlu1 %1460, %v447_v57   ;;  %v571_v57 = vld [vmem:[%s2051_s5 + $0x48] sm:$0xff] }
  0x55   : > { %538 = vperm.xlu0 %1459, %v448_v62   ;;  %495 = vperm.xlu1 %1460, %v417_v59   ;;  %v572_v59 = vld [vmem:[%s2051_s5 + $0x50] sm:$0xff]  ;;  %v566_v62 = vld [vmem:[%s2051_s5 + $0x20] sm:$0xff] }
  0x59   : > { %543 = vperm.xlu1 %1460, %v449_v1   ;;  %v575_v1 = vld [vmem:[%s2051_s5 + $0x68] sm:$0xff] }
  0xb8   : > { %v461_v5 = vpop.permute.xlu0 %460 }
  0xb9   : > { %v498_v6 = vmul.f32 %v461_v5, %v450_v4  ;;  %v569_v4 = vld [vmem:[%s2051_s5 + $0x38] sm:$0xff] }
  0xba   : > { %v577_v5 = vld [vmem:[%s2051_s5 + $0x78] sm:$0xff] }
  0xbc   : > { %v466_v8 = vpop.permute.xlu0 %465  ;;  %v509_v9 = vpop.permute.xlu1 %508 }
  0xbd   : > { %v499_v10 = vmul.f32 %v466_v8, %v451_v7  ;;  %v546_v11 = vadd.f32 %v509_v9, %v498_v6 }
  0xbf   : > { %v554_v16 = vmax.f32 %v546_v11, 0.0 }
  0xc0   : > { %v471_v12 = vpop.permute.xlu0 %470  ;;  %v514_v13 = vpop.permute.xlu1 %513 }
  0xc1   : > { %v547_v14 = vadd.f32 %v514_v13, %v499_v10  ;;  %v500_v21 = vmul.f32 %v471_v12, %v452_v15 }
  0xc3   : > { %v555_v17 = vmax.f32 %v547_v14, 0.0 }
  0xc4   : > { %v519_v18 = vpop.permute.xlu0 %518  ;;  %v476_v20 = vpop.permute.xlu1 %475 }
  0xc5   : > { %v1409_v22 = vpack.c.bf16 %v555_v17, %v554_v16  ;;  %v548_v23 = vadd.f32 %v519_v18, %v500_v21  ;;  %v501_v24 = vmul.f32 %v476_v20, %v453_v19 }
  0xc7   : > { %1410 = vmatprep.subr.bf16.mxu0 %v1409_v22  ;;  %1425 = vmatprep.subr.bf16.mxu1 %v1409_v22  ;;  %v556_v29 = vmax.f32 %v548_v23, 0.0 }
  0xc8   : > { %v481_v25 = vpop.permute.xlu0 %480  ;;  %1412 = vmatpush3.bf16.msra.mxu0 %v1409_v22  ;;  %1429 = vmatpush3.bf16.msra.mxu1 %v1409_v22  ;;  %v524_v26 = vpop.permute.xlu1 %523 }
  0xc9   : > { %v549_v27 = vadd.f32 %v524_v26, %v501_v24  ;;  %v502_v34 = vmul.f32 %v481_v25, %v454_v28 }
  0xcb   : > { %v557_v30 = vmax.f32 %v549_v27, 0.0 }
  0xcc   : > { %v529_v31 = vpop.permute.xlu0 %528  ;;  %v486_v33 = vpop.permute.xlu1 %485 }
  0xcd   : > { %v1413_v35 = vpack.c.bf16 %v557_v30, %v556_v29  ;;  %v550_v36 = vadd.f32 %v529_v31, %v502_v34  ;;  %v503_v37 = vmul.f32 %v486_v33, %v455_v32 }
  0xcf   : > { %1414 = vmatprep.subr.bf16.mxu0 %v1413_v35  ;;  %1426 = vmatprep.subr.bf16.mxu1 %v1413_v35  ;;  %v558_v42 = vmax.f32 %v550_v36, 0.0 }
  0xd0   : > { %v491_v38 = vpop.permute.xlu0 %490  ;;  %1416 = vmatpush3.bf16.msra.mxu0 %v1413_v35  ;;  %1430 = vmatpush3.bf16.msra.mxu1 %v1413_v35  ;;  %v534_v39 = vpop.permute.xlu1 %533 }
  0xd1   : > { %v551_v40 = vadd.f32 %v534_v39, %v503_v37  ;;  %v504_v47 = vmul.f32 %v491_v38, %v456_v41  ;;  %v797_v38 = vld [vmem:[#allocation2 + $0x48] sm:$0xff] }
  0xd2   : > { %v789_v39 = vld [vmem:[#allocation2 + $0x8] sm:$0xff] }
  0xd3   : > { %v559_v43 = vmax.f32 %v551_v40, 0.0 }
  0xd4   : > { %v539_v44 = vpop.permute.xlu0 %538  ;;  %v496_v46 = vpop.permute.xlu1 %495 }
  0xd5   : > { %v1417_v48 = vpack.c.bf16 %v559_v43, %v558_v42  ;;  %v552_v49 = vadd.f32 %v539_v44, %v504_v47  ;;  %v505_v50 = vmul.f32 %v496_v46, %v457_v45  ;;  %v796_v44 = vld [vmem:[#allocation2 + $0x40] sm:$0xff] }
  0xd6   : > { %v788_v45 = vld [vmem:[#allocation2] sm:$0xff] }
  0xd7   : > { %1418 = vmatprep.subr.bf16.mxu0 %v1417_v48  ;;  %1427 = vmatprep.subr.bf16.mxu1 %v1417_v48  ;;  %v560_v53 = vmax.f32 %v552_v49, 0.0 }
  0xd8   : > { %1420 = vmatpush3.bf16.msra.mxu0 %v1417_v48  ;;  %1431 = vmatpush3.bf16.msra.mxu1 %v1417_v48  ;;  %v544_v51 = vpop.permute.xlu1 %543 }
  0xd9   : > { %v553_v52 = vadd.f32 %v544_v51, %v505_v50  ;;  %v870_v50 = vld [vmem:[#allocation3 + $0x8] sm:$0xff]  ;;  %v869_v51 = vld [vmem:[#allocation3] sm:$0xff] }
  0xdb   : > { %v561_v54 = vmax.f32 %v553_v52, 0.0 }
  0xdd   : > { %v1421_v55 = vpack.c.bf16 %v561_v54, %v560_v53 }
  0xdf   : > { %1422 = vmatprep.subr.bf16.mxu0 %v1421_v55  ;;  %1428 = vmatprep.subr.bf16.mxu1 %v1421_v55 }
  0xe0   : > { %1424 = vmatpush3.bf16.msra.mxu0 %v1421_v55  ;;  %1432 = vmatpush3.bf16.msra.mxu1 %v1421_v55 }
  0xe3   : > { %1386 = vmatmul.mubr.msk.f32.vlgmr.msra.gmra.mrb[0].mxu0 %vm578_vm1, %v563_v56  ;;  %1398 = vmatmul.mubr.msk.f32.vlgmr.msra.gmra.mrb[0].mxu1 %vm578_vm1, %v571_v57  ;;  %v878_v56 = vld [vmem:[#allocation3 + $0x48] sm:$0xff]  ;;  %v877_v57 = vld [vmem:[#allocation3 + $0x40] sm:$0xff] }
  0xe4   : > { %1388 = vmatprep.mubr.msk.f32.mxu0 %vm578_vm1, %v564_v58  ;;  %1400 = vmatprep.mubr.msk.f32.mxu1 %vm578_vm1, %v572_v59 }
  0xe7   : > { %1389 = vmatmul.mubr.msk.f32.gmra.mrb[2].mxu0 %vm578_vm1, %v565_v60  ;;  %1401 = vmatmul.mubr.msk.f32.gmra.mrb[2].mxu1 %vm578_vm1, %v573_v61 }
  0xe8   : > { %1391 = vmatprep.mubr.msk.f32.mxu0 %vm578_vm1, %v566_v62  ;;  %1403 = vmatprep.mubr.msk.f32.mxu1 %vm578_vm1, %v574_v63  ;;  %v798_v62 = vld [vmem:[#allocation2 + $0x50] sm:$0xff]  ;;  %v791_v63 = vld [vmem:[#allocation2 + $0x18] sm:$0xff] }
  0xeb   : > { %1392 = vmatmul.mubr.msk.f32.gmra.mrb[4].mxu0 %vm578_vm1, %v567_v0  ;;  %1404 = vmatmul.mubr.msk.f32.gmra.mrb[4].mxu1 %vm578_vm1, %v575_v1 }
  0xec   : > { %1394 = vmatprep.mubr.msk.f32.mxu0 %vm578_vm1, %v568_v2  ;;  %1406 = vmatprep.mubr.msk.f32.mxu1 %vm578_vm1, %v576_v3 }
  0xef   : > { %1395 = vmatmul.mubr.msk.f32.gmra.mrb[6].mxu0 %vm578_vm1, %v569_v4  ;;  %1407 = vmatmul.mubr.msk.f32.gmra.mrb[6].mxu1 %vm578_vm1, %v577_v5  ;;  %v799_v4 = vld [vmem:[#allocation2 + $0x58] sm:$0xff]  ;;  %v871_v5 = vld [vmem:[#allocation3 + $0x10] sm:$0xff] }
 0x1b6   : > { %v1387_v6 = vpop.f32.mrb[0].mxu0  ;;  %v1399_v7 = vpop.f32.mrb[0].mxu1 }
 0x1b7   : > { %773 = vst [vmem:[%s1610_s25 + $0x8] sm:$0xff] %v1387_v6  ;;  %781 = vst [vmem:[%s1610_s25 + $0x48] sm:$0xff] %v1399_v7  ;;  %822 = vadd.xlane.f32.xlu0 %v1399_v7  ;;  %v733_v8 = vpop.f32.mrb[1].mxu1  ;;  %806 = vadd.xlane.f32.xlu1 %v1387_v6  ;;  %v693_v9 = vpop.f32.mrb[1].mxu0  ;;  %v886_v14 = vmul.f32 %v1387_v6, %v1387_v6  ;;  %v894_v20 = vmul.f32 %v1399_v7, %v1399_v7 }
 0x1b8   : > { %780 = vst [vmem:[%s1610_s25 + $0x40] sm:$0xff] %v733_v8  ;;  %772 = vst [vmem:[%s1610_s25] sm:$0xff] %v693_v9  ;;  %v885_v15 = vmul.f32 %v693_v9, %v693_v9  ;;  %v893_v21 = vmul.f32 %v733_v8, %v733_v8 }
 0x1ba   : > { %v1390_v10 = vpop.f32.mrb[2].mxu0  ;;  %v1402_v11 = vpop.f32.mrb[2].mxu1 }
 0x1bb   : > { %820 = vadd.xlane.f32.xlu1 %v733_v8  ;;  %804 = vadd.xlane.f32.xlu0 %v693_v9  ;;  %775 = vst [vmem:[%s1610_s25 + $0x18] sm:$0xff] %v1390_v10  ;;  %783 = vst [vmem:[%s1610_s25 + $0x58] sm:$0xff] %v1402_v11  ;;  %v703_v12 = vpop.f32.mrb[3].mxu0  ;;  %v743_v13 = vpop.f32.mrb[3].mxu1  ;;  %v888_v28 = vmul.f32 %v1390_v10, %v1390_v10  ;;  %v896_v29 = vmul.f32 %v1402_v11, %v1402_v11 }
 0x1bc   : > { %774 = vst [vmem:[%s1610_s25 + $0x10] sm:$0xff] %v703_v12  ;;  %782 = vst [vmem:[%s1610_s25 + $0x50] sm:$0xff] %v743_v13  ;;  %v887_v26 = vmul.f32 %v703_v12, %v703_v12  ;;  %v895_v27 = vmul.f32 %v743_v13, %v743_v13 }
 0x1be   : > { %v1393_v16 = vpop.f32.mrb[4].mxu0  ;;  %v1405_v17 = vpop.f32.mrb[4].mxu1 }
 0x1bf   : > { %903 = vadd.xlane.f32.xlu0 %v886_v14  ;;  %901 = vadd.xlane.f32.xlu1 %v885_v15  ;;  %777 = vst [vmem:[%s1610_s25 + $0x28] sm:$0xff] %v1393_v16  ;;  %v713_v18 = vpop.f32.mrb[5].mxu0  ;;  %785 = vst [vmem:[%s1610_s25 + $0x68] sm:$0xff] %v1405_v17  ;;  %v753_v19 = vpop.f32.mrb[5].mxu1  ;;  %v890_v32 = vmul.f32 %v1393_v16, %v1393_v16  ;;  %v898_v33 = vmul.f32 %v1405_v17, %v1405_v17 }
 0x1c0   : > { %776 = vst [vmem:[%s1610_s25 + $0x20] sm:$0xff] %v713_v18  ;;  %784 = vst [vmem:[%s1610_s25 + $0x60] sm:$0xff] %v753_v19  ;;  %v889_v30 = vmul.f32 %v713_v18, %v713_v18  ;;  %v897_v31 = vmul.f32 %v753_v19, %v753_v19 }
 0x1c2   : > { %v1396_v22 = vpop.f32.mrb[6].mxu0  ;;  %v1408_v23 = vpop.f32.mrb[6].mxu1 }
 0x1c3   : > { %919 = vadd.xlane.f32.xlu0 %v894_v20  ;;  %917 = vadd.xlane.f32.xlu1 %v893_v21  ;;  %779 = vst [vmem:[%s1610_s25 + $0x38] sm:$0xff] %v1396_v22  ;;  %v723_v24 = vpop.f32.mrb[7].mxu0  ;;  %787 = vst [vmem:[%s1610_s25 + $0x78] sm:$0xff] %v1408_v23  ;;  %v763_v25 = vpop.f32.mrb[7].mxu1  ;;  %v892_v36 = vmul.f32 %v1396_v22, %v1396_v22  ;;  %v900_v37 = vmul.f32 %v1408_v23, %v1408_v23 }
 0x1c4   : > { %778 = vst [vmem:[%s1610_s25 + $0x30] sm:$0xff] %v723_v24  ;;  %786 = vst [vmem:[%s1610_s25 + $0x70] sm:$0xff] %v763_v25  ;;  %v891_v34 = vmul.f32 %v723_v24, %v723_v24  ;;  %v899_v35 = vmul.f32 %v763_v25, %v763_v25 }
 0x1c7   : > { %824 = vadd.xlane.f32.xlu1 %v743_v13  ;;  %810 = vadd.xlane.f32.xlu0 %v1390_v10  ;;  %v790_v10 = vld [vmem:[#allocation2 + $0x10] sm:$0xff] }
 0x1cb   : > { %826 = vadd.xlane.f32.xlu0 %v1402_v11  ;;  %905 = vadd.xlane.f32.xlu1 %v887_v26  ;;  %v879_v11 = vld [vmem:[#allocation3 + $0x50] sm:$0xff] }
 0x1cf   : > { %808 = vadd.xlane.f32.xlu0 %v703_v12  ;;  %921 = vadd.xlane.f32.xlu1 %v895_v27 }
 0x1d3   : > { %907 = vadd.xlane.f32.xlu0 %v888_v28  ;;  %812 = vadd.xlane.f32.xlu1 %v713_v18  ;;  %v793_v28 = vld [vmem:[#allocation2 + $0x28] sm:$0xff] }
 0x1d7   : > { %923 = vadd.xlane.f32.xlu0 %v896_v29  ;;  %828 = vadd.xlane.f32.xlu1 %v753_v19  ;;  %v873_v29 = vld [vmem:[#allocation3 + $0x20] sm:$0xff] }
 0x1db   : > { %814 = vadd.xlane.f32.xlu0 %v1393_v16  ;;  %909 = vadd.xlane.f32.xlu1 %v889_v30  ;;  %v872_v16 = vld [vmem:[#allocation3 + $0x18] sm:$0xff] }
 0x1df   : > { %830 = vadd.xlane.f32.xlu0 %v1405_v17  ;;  %925 = vadd.xlane.f32.xlu1 %v897_v31  ;;  %v792_v17 = vld [vmem:[#allocation2 + $0x20] sm:$0xff] }
 0x1e3   : > { %911 = vadd.xlane.f32.xlu0 %v890_v32  ;;  %816 = vadd.xlane.f32.xlu1 %v723_v24 }
 0x1e7   : > { %927 = vadd.xlane.f32.xlu0 %v898_v33  ;;  %832 = vadd.xlane.f32.xlu1 %v763_v25 }
 0x1eb   : > { %818 = vadd.xlane.f32.xlu0 %v1396_v22  ;;  %913 = vadd.xlane.f32.xlu1 %v891_v34  ;;  %v880_v22 = vld [vmem:[#allocation3 + $0x58] sm:$0xff]  ;;  %v801_v34 = vld [vmem:[#allocation2 + $0x68] sm:$0xff] }
 0x1ef   : > { %834 = vadd.xlane.f32.xlu0 %v1408_v23  ;;  %929 = vadd.xlane.f32.xlu1 %v899_v35  ;;  %v800_v23 = vld [vmem:[#allocation2 + $0x60] sm:$0xff] }
 0x1f0   : > { %v881_v35 = vld [vmem:[#allocation3 + $0x60] sm:$0xff] }
 0x1f3   : > { %915 = vadd.xlane.f32.xlu0 %v892_v36 }
 0x1f7   : > { %931 = vadd.xlane.f32.xlu0 %v900_v37 }
 0x244   : > { %v823_v40 = vpop.xlane.xlu0 %822  ;;  %v807_v41 = vpop.xlane.xlu1 %806 }
 0x245   : > { %v845_v42 = vadd.f32 %v823_v40, %v797_v38  ;;  %v837_v43 = vadd.f32 %v807_v41, %v789_v39  ;;  %v874_v40 = vld [vmem:[#allocation3 + $0x28] sm:$0xff]  ;;  %v794_v41 = vld [vmem:[#allocation2 + $0x30] sm:$0xff] }
 0x247   : > { %862 = vst.msk [vmem:[#allocation2 + $0x48] sm:$0xff] %vm852_vm2, %v845_v42  ;;  %854 = vst.msk [vmem:[#allocation2 + $0x8] sm:$0xff] %vm852_vm2, %v837_v43 }
 0x248   : > { %v821_v46 = vpop.xlane.xlu1 %820  ;;  %v805_v47 = vpop.xlane.xlu0 %804 }
 0x249   : > { %v844_v48 = vadd.f32 %v821_v46, %v796_v44  ;;  %v836_v49 = vadd.f32 %v805_v47, %v788_v45  ;;  %v882_v46 = vld [vmem:[#allocation3 + $0x68] sm:$0xff]  ;;  %v802_v47 = vld [vmem:[#allocation2 + $0x70] sm:$0xff] }
 0x24b   : > { %861 = vst.msk [vmem:[#allocation2 + $0x40] sm:$0xff] %vm852_vm2, %v844_v48  ;;  %853 = vst.msk [vmem:[#allocation2] sm:$0xff] %vm852_vm2, %v836_v49 }
 0x24c   : > { %v904_v52 = vpop.xlane.xlu0 %903  ;;  %v902_v53 = vpop.xlane.xlu1 %901 }
 0x24d   : > { %v934_v54 = vadd.f32 %v904_v52, %v870_v50  ;;  %v933_v55 = vadd.f32 %v902_v53, %v869_v51  ;;  %v795_v52 = vld [vmem:[#allocation2 + $0x38] sm:$0xff]  ;;  %v875_v53 = vld [vmem:[#allocation3 + $0x30] sm:$0xff] }
 0x24f   : > { %950 = vst.msk [vmem:[#allocation3 + $0x8] sm:$0xff] %vm852_vm2, %v934_v54  ;;  %949 = vst.msk [vmem:[#allocation3] sm:$0xff] %vm852_vm2, %v933_v55 }
 0x250   : > { %v920_v58 = vpop.xlane.xlu0 %919  ;;  %v918_v59 = vpop.xlane.xlu1 %917 }
 0x251   : > { %v942_v60 = vadd.f32 %v920_v58, %v878_v56  ;;  %v941_v61 = vadd.f32 %v918_v59, %v877_v57  ;;  %v803_v58 = vld [vmem:[#allocation2 + $0x78] sm:$0xff]  ;;  %v883_v59 = vld [vmem:[#allocation3 + $0x70] sm:$0xff] }
 0x253   : > { %958 = vst.msk [vmem:[#allocation3 + $0x48] sm:$0xff] %vm852_vm2, %v942_v60  ;;  %957 = vst.msk [vmem:[#allocation3 + $0x40] sm:$0xff] %vm852_vm2, %v941_v61 }
 0x254   : > { %v825_v0 = vpop.xlane.xlu1 %824  ;;  %v811_v1 = vpop.xlane.xlu0 %810 }
 0x255   : > { %v846_v2 = vadd.f32 %v825_v0, %v798_v62  ;;  %v839_v3 = vadd.f32 %v811_v1, %v791_v63  ;;  %v876_v0 = vld [vmem:[#allocation3 + $0x38] sm:$0xff] }
 0x257   : > { %863 = vst.msk [vmem:[#allocation2 + $0x50] sm:$0xff] %vm852_vm2, %v846_v2  ;;  %856 = vst.msk [vmem:[#allocation2 + $0x18] sm:$0xff] %vm852_vm2, %v839_v3  ;;  %v884_v3 = vld [vmem:[#allocation3 + $0x78] sm:$0xff] }
 0x258   : > { %v827_v6 = vpop.xlane.xlu0 %826  ;;  %v906_v7 = vpop.xlane.xlu1 %905 }
 0x259   : > { %v847_v8 = vadd.f32 %v827_v6, %v799_v4  ;;  %v935_v9 = vadd.f32 %v906_v7, %v871_v5  ;;  %v969_v6 = vld [vmem:[#allocation2] sm:$0xff] (!%p1340_p11)  ;;  %v970_v7 = vld [vmem:[#allocation2 + $0x8] sm:$0xff] (!%p1340_p11) }
 0x25b   : > { %864 = vst.msk [vmem:[#allocation2 + $0x58] sm:$0xff] %vm852_vm2, %v847_v8  ;;  %951 = vst.msk [vmem:[#allocation3 + $0x10] sm:$0xff] %vm852_vm2, %v935_v9  ;;  %v985_v9 = vmul.f32 (!%p1340_p11), 0.00390625, %v969_v6 }
 0x25c   : > { %v809_v12 = vpop.xlane.xlu0 %808  ;;  %v922_v13 = vpop.xlane.xlu1 %921 }
 0x25d   : > { %v838_v14 = vadd.f32 %v809_v12, %v790_v10  ;;  %v943_v15 = vadd.f32 %v922_v13, %v879_v11  ;;  %v986_v10 = vmul.f32 (!%p1340_p11), 0.00390625, %v970_v7  ;;  %1081 = vst.msk [vmem:[%s2053_s7] sm:$0xff] (!%p1340_p11), %vm852_vm2, %v985_v9 }
 0x25e   : > { %v972_v12 = vld [vmem:[#allocation2 + $0x18] sm:$0xff] (!%p1340_p11) }
 0x25f   : > { %855 = vst.msk [vmem:[#allocation2 + $0x10] sm:$0xff] %vm852_vm2, %v838_v14  ;;  %959 = vst.msk [vmem:[#allocation3 + $0x50] sm:$0xff] %vm852_vm2, %v943_v15  ;;  %v988_v15 = vmul.f32 (!%p1340_p11), 0.00390625, %v972_v12 }
 0x260   : > { %v908_v18 = vpop.xlane.xlu0 %907  ;;  %v813_v19 = vpop.xlane.xlu1 %812  ;;  %1082 = vst.msk [vmem:[%s2053_s7 + $0x8] sm:$0xff] (!%p1340_p11), %vm852_vm2, %v986_v10 }
 0x261   : > { %v936_v20 = vadd.f32 %v908_v18, %v872_v16  ;;  %v840_v21 = vadd.f32 %v813_v19, %v792_v17  ;;  %1084 = vst.msk [vmem:[%s2053_s7 + $0x18] sm:$0xff] (!%p1340_p11), %vm852_vm2, %v988_v15 }
 0x263   : > { %952 = vst.msk [vmem:[#allocation3 + $0x18] sm:$0xff] %vm852_vm2, %v936_v20  ;;  %857 = vst.msk [vmem:[#allocation2 + $0x20] sm:$0xff] %vm852_vm2, %v840_v21  ;;  %v977_v20 = vld [vmem:[#allocation2 + $0x40] sm:$0xff] (!%p1340_p11)  ;;  %v1862_v21 = vmul.f32 (!%p1340_p11), %v985_v9, %v985_v9 }
 0x264   : > { %v924_v24 = vpop.xlane.xlu0 %923  ;;  %v829_v25 = vpop.xlane.xlu1 %828 }
 0x265   : > { %v944_v26 = vadd.f32 %v924_v24, %v880_v22  ;;  %v848_v27 = vadd.f32 %v829_v25, %v800_v23  ;;  %v978_v23 = vld [vmem:[#allocation2 + $0x48] sm:$0xff] (!%p1340_p11)  ;;  %v979_v24 = vld [vmem:[#allocation2 + $0x50] sm:$0xff] (!%p1340_p11)  ;;  %v980_v25 = vld [vmem:[#allocation2 + $0x58] sm:$0xff] (!%p1340_p11) }
 0x266   : > { %v971_v8 = vld [vmem:[#allocation2 + $0x10] sm:$0xff] (!%p1340_p11) }
 0x267   : > { %960 = vst.msk [vmem:[#allocation3 + $0x58] sm:$0xff] %vm852_vm2, %v944_v26  ;;  %865 = vst.msk [vmem:[#allocation2 + $0x60] sm:$0xff] %vm852_vm2, %v848_v27  ;;  %v987_v11 = vmul.f32 (!%p1340_p11), 0.00390625, %v971_v8  ;;  %v1034_v26 = vmul.f32 (!%p1340_p11), %v986_v10, %v986_v10 }
 0x268   : > { %v815_v30 = vpop.xlane.xlu0 %814  ;;  %v910_v31 = vpop.xlane.xlu1 %909 }
 0x269   : > { %v841_v32 = vadd.f32 %v815_v30, %v793_v28  ;;  %v937_v33 = vadd.f32 %v910_v31, %v873_v29  ;;  %1083 = vst.msk [vmem:[%s2053_s7 + $0x10] sm:$0xff] (!%p1340_p11), %vm852_vm2, %v987_v11  ;;  %v1035_v27 = vmul.f32 (!%p1340_p11), %v987_v11, %v987_v11  ;;  %v1876_v28 = vmul.f32 (!%p1340_p11), %v988_v15, %v988_v15 }
 0x26a   : > { %v973_v13 = vld [vmem:[#allocation2 + $0x20] sm:$0xff] (!%p1340_p11) }
 0x26b   : > { %858 = vst.msk [vmem:[#allocation2 + $0x28] sm:$0xff] %vm852_vm2, %v841_v32  ;;  %953 = vst.msk [vmem:[#allocation3 + $0x20] sm:$0xff] %vm852_vm2, %v937_v33  ;;  %v989_v16 = vmul.f32 (!%p1340_p11), 0.00390625, %v973_v13 }
 0x26c   : > { %v831_v36 = vpop.xlane.xlu0 %830  ;;  %v926_v37 = vpop.xlane.xlu1 %925 }
 0x26d   : > { %v849_v38 = vadd.f32 %v831_v36, %v801_v34  ;;  %v945_v39 = vadd.f32 %v926_v37, %v881_v35  ;;  %1085 = vst.msk [vmem:[%s2053_s7 + $0x20] sm:$0xff] (!%p1340_p11), %vm852_vm2, %v989_v16  ;;  %v1037_v33 = vmul.f32 (!%p1340_p11), %v989_v16, %v989_v16  ;;  %v993_v34 = vmul.f32 (!%p1340_p11), 0.00390625, %v977_v20  ;;  %v1011_v20 = vld [vmem:[#allocation3 + $0x50] sm:$0xff] (!%p1340_p11) }
 0x26e   : > { %v981_v30 = vld [vmem:[#allocation2 + $0x60] sm:$0xff] (!%p1340_p11)  ;;  %v994_v35 = vmul.f32 (!%p1340_p11), 0.00390625, %v978_v23  ;;  %v995_v36 = vmul.f32 (!%p1340_p11), 0.00390625, %v979_v24 }
 0x26f   : > { %866 = vst.msk [vmem:[#allocation2 + $0x68] sm:$0xff] %vm852_vm2, %v849_v38  ;;  %961 = vst.msk [vmem:[#allocation3 + $0x60] sm:$0xff] %vm852_vm2, %v945_v39  ;;  %v996_v39 = vmul.f32 (!%p1340_p11), 0.00390625, %v980_v25 }
 0x270   : > { %v912_v42 = vpop.xlane.xlu0 %911  ;;  %v817_v43 = vpop.xlane.xlu1 %816  ;;  %1089 = vst.msk [vmem:[%s2053_s7 + $0x40] sm:$0xff] (!%p1340_p11), %vm852_vm2, %v993_v34  ;;  %1090 = vst.msk [vmem:[%s2053_s7 + $0x48] sm:$0xff] (!%p1340_p11), %vm852_vm2, %v994_v35 }
 0x271   : > { %v938_v44 = vadd.f32 %v912_v42, %v874_v40  ;;  %v842_v45 = vadd.f32 %v817_v43, %v794_v41  ;;  %v997_v40 = vmul.f32 (!%p1340_p11), 0.00390625, %v981_v30  ;;  %v1001_v42 = vld [vmem:[#allocation3] sm:$0xff] (!%p1340_p11)  ;;  %v1002_v43 = vld [vmem:[#allocation3 + $0x8] sm:$0xff] (!%p1340_p11)  ;;  %1091 = vst.msk [vmem:[%s2053_s7 + $0x50] sm:$0xff] (!%p1340_p11), %vm852_vm2, %v995_v36  ;;  %1092 = vst.msk [vmem:[%s2053_s7 + $0x58] sm:$0xff] (!%p1340_p11), %vm852_vm2, %v996_v39 }
 0x272   : > { %v974_v14 = vld [vmem:[#allocation2 + $0x28] sm:$0xff] (!%p1340_p11) }
 0x273   : > { %954 = vst.msk [vmem:[#allocation3 + $0x28] sm:$0xff] %vm852_vm2, %v938_v44  ;;  %859 = vst.msk [vmem:[#allocation2 + $0x30] sm:$0xff] %vm852_vm2, %v842_v45  ;;  %v990_v17 = vmul.f32 (!%p1340_p11), 0.00390625, %v974_v14  ;;  %v1003_v44 = vld [vmem:[#allocation3 + $0x10] sm:$0xff] (!%p1340_p11)  ;;  %v1009_v14 = vld [vmem:[#allocation3 + $0x40] sm:$0xff] (!%p1340_p11) }
 0x274   : > { %v928_v48 = vpop.xlane.xlu0 %927  ;;  %v833_v49 = vpop.xlane.xlu1 %832  ;;  %1093 = vst.msk [vmem:[%s2053_s7 + $0x60] sm:$0xff] (!%p1340_p11), %vm852_vm2, %v997_v40 }
 0x275   : > { %v946_v50 = vadd.f32 %v928_v48, %v882_v46  ;;  %v850_v51 = vadd.f32 %v833_v49, %v802_v47  ;;  %1086 = vst.msk [vmem:[%s2053_s7 + $0x28] sm:$0xff] (!%p1340_p11), %vm852_vm2, %v990_v17  ;;  %v1038_v38 = vmul.f32 (!%p1340_p11), %v990_v17, %v990_v17  ;;  %v1898_v47 = vmul.f32 (!%p1340_p11), %v993_v34, %v993_v34  ;;  %v1004_v49 = vld [vmem:[#allocation3 + $0x18] sm:$0xff] (!%p1340_p11) }
 0x276   : > { %v982_v31 = vld [vmem:[#allocation2 + $0x68] sm:$0xff] (!%p1340_p11)  ;;  %v1027_v34 = vmul.f32 (!%p1340_p11), 0.00390625, %v1011_v20 }
 0x277   : > { %962 = vst.msk [vmem:[#allocation3 + $0x68] sm:$0xff] %vm852_vm2, %v946_v50  ;;  %867 = vst.msk [vmem:[#allocation2 + $0x70] sm:$0xff] %vm852_vm2, %v850_v51  ;;  %v998_v41 = vmul.f32 (!%p1340_p11), 0.00390625, %v982_v31  ;;  %v1005_v50 = vld [vmem:[#allocation3 + $0x20] sm:$0xff] (!%p1340_p11) }
 0x278   : > { %v819_v54 = vpop.xlane.xlu0 %818  ;;  %v914_v55 = vpop.xlane.xlu1 %913 }
 0x279   : > { %v843_v56 = vadd.f32 %v819_v54, %v795_v52  ;;  %v939_v57 = vadd.f32 %v914_v55, %v875_v53  ;;  %v1912_v52 = vmul.f32 (!%p1340_p11), %v994_v35, %v994_v35  ;;  %v1914_v53 = vmul.f32 (!%p1340_p11), %v995_v36, %v995_v36  ;;  %1094 = vst.msk [vmem:[%s2053_s7 + $0x68] sm:$0xff] (!%p1340_p11), %vm852_vm2, %v998_v41  ;;  %v1013_v36 = vld [vmem:[#allocation3 + $0x60] sm:$0xff] (!%p1340_p11) }
 0x27a   : > { %v975_v18 = vld [vmem:[#allocation2 + $0x30] sm:$0xff] (!%p1340_p11)  ;;  %v1006_v51 = vld [vmem:[#allocation3 + $0x28] sm:$0xff] (!%p1340_p11)  ;;  %v1916_v54 = vmul.f32 (!%p1340_p11), %v996_v39, %v996_v39 }
 0x27b   : > { %860 = vst.msk [vmem:[#allocation2 + $0x38] sm:$0xff] %vm852_vm2, %v843_v56  ;;  %955 = vst.msk [vmem:[#allocation3 + $0x30] sm:$0xff] %vm852_vm2, %v939_v57  ;;  %v991_v22 = vmul.f32 (!%p1340_p11), 0.00390625, %v975_v18  ;;  %v1930_v57 = vmul.f32 (!%p1340_p11), %v997_v40, %v997_v40 }
 0x27c   : > { %v835_v60 = vpop.xlane.xlu0 %834  ;;  %v930_v61 = vpop.xlane.xlu1 %929 }
 0x27d   : > { %v851_v62 = vadd.f32 %v835_v60, %v803_v58  ;;  %v947_v63 = vadd.f32 %v930_v61, %v883_v59  ;;  %1087 = vst.msk [vmem:[%s2053_s7 + $0x30] sm:$0xff] (!%p1340_p11), %vm852_vm2, %v991_v22  ;;  %v1039_v45 = vmul.f32 (!%p1340_p11), %v991_v22, %v991_v22  ;;  %v1017_v58 = vmul.f32 (!%p1340_p11), 0.00390625, %v1001_v42 }
 0x27e   : > { %v983_v32 = vld [vmem:[#allocation2 + $0x70] sm:$0xff] (!%p1340_p11)  ;;  %v1018_v59 = vmul.f32 (!%p1340_p11), 0.00390625, %v1002_v43  ;;  %v1019_v60 = vmul.f32 (!%p1340_p11), 0.00390625, %v1003_v44  ;;  %v1059_v42 = vsub.f32 (!%p1340_p11), %v1027_v34, %v1914_v53 }
 0x27f   : > { %868 = vst.msk [vmem:[#allocation2 + $0x78] sm:$0xff] %vm852_vm2, %v851_v62  ;;  %963 = vst.msk [vmem:[#allocation3 + $0x70] sm:$0xff] %vm852_vm2, %v947_v63  ;;  %v999_v48 = vmul.f32 (!%p1340_p11), 0.00390625, %v983_v32  ;;  %v1936_v62 = vmul.f32 (!%p1340_p11), %v998_v41, %v998_v41  ;;  %v1020_v63 = vmul.f32 (!%p1340_p11), 0.00390625, %v1004_v49  ;;  %v1025_v32 = vmul.f32 (!%p1340_p11), 0.00390625, %v1009_v14 }
 0x280   : > { %v916_v1 = vpop.xlane.xlu0 %915  ;;  %v1075_v49 = vmax.f32 (!%p1340_p11), %v1059_v42, 0.0 }
 0x281   : > { %v940_v2 = vadd.f32 %v916_v1, %v876_v0  ;;  %968 = sbr.rel (%p1340_p11) target bundleno = 679 (0x2a7), region = 90  ;;  %1095 = vst.msk [vmem:[%s2053_s7 + $0x70] sm:$0xff] (!%p1340_p11), %vm852_vm2, %v999_v48  ;;  %v1021_v0 = vmul.f32 (!%p1340_p11), 0.00390625, %v1005_v50  ;;  %v1022_v1 = vmul.f32 (!%p1340_p11), 0.00390625, %v1006_v51  ;;  %v1052_v6 = vsub.f32 (!%p1340_p11), %v1020_v63, %v1876_v28 }
 0x282   : > { %v976_v19 = vld [vmem:[#allocation2 + $0x38] sm:$0xff] (!%p1340_p11)  ;;  %v1007_v56 = vld [vmem:[#allocation3 + $0x30] sm:$0xff] (!%p1340_p11)  ;;  %v1047_v22 = vmul.f32 (!%p1340_p11), %v999_v48, %v999_v48  ;;  %v1057_v40 = vsub.f32 (!%p1340_p11), %v1025_v32, %v1898_v47 }
 0x283   : > { %956 = vst.msk [vmem:[#allocation3 + $0x38] sm:$0xff] %vm852_vm2, %v940_v2  ;;  %v992_v29 = vmul.f32 (!%p1340_p11), 0.00390625, %v976_v19  ;;  %v1049_v2 = vsub.f32 (!%p1340_p11), %v1017_v58, %v1862_v21  ;;  %v1053_v7 = vsub.f32 (!%p1340_p11), %v1021_v0, %v1037_v33  ;;  %v1054_v8 = vsub.f32 (!%p1340_p11), %v1022_v1, %v1038_v38  ;;  %v1010_v19 = vld [vmem:[#allocation3 + $0x48] sm:$0xff] (!%p1340_p11)  ;;  %v1012_v21 = vld [vmem:[#allocation3 + $0x58] sm:$0xff] (!%p1340_p11) }
 0x284   : > { %v932_v4 = vpop.xlane.xlu0 %931  ;;  %v1068_v15 = vmax.f32 (!%p1340_p11), %v1052_v6, 0.0  ;;  %v1026_v33 = vmul.f32 (!%p1340_p11), 0.00390625, %v1010_v19  ;;  %v1028_v35 = vmul.f32 (!%p1340_p11), 0.00390625, %v1012_v21  ;;  %v1073_v44 = vmax.f32 (!%p1340_p11), %v1057_v40, 0.0 }
 0x285   : > { %v948_v5 = vadd.f32 %v932_v4, %v884_v3  ;;  %1088 = vst.msk [vmem:[%s2053_s7 + $0x38] sm:$0xff] (!%p1340_p11), %vm852_vm2, %v992_v29  ;;  %v1040_v46 = vmul.f32 (!%p1340_p11), %v992_v29, %v992_v29  ;;  %v1050_v3 = vsub.f32 (!%p1340_p11), %v1018_v59, %v1034_v26  ;;  %v1051_v4 = vsub.f32 (!%p1340_p11), %v1019_v60, %v1035_v27 }
 0x286   : > { %v984_v37 = vld [vmem:[#allocation2 + $0x78] sm:$0xff] (!%p1340_p11)  ;;  %v1065_v10 = vmax.f32 (!%p1340_p11), %v1049_v2, 0.0  ;;  %v1069_v16 = vmax.f32 (!%p1340_p11), %v1053_v7, 0.0  ;;  %v1070_v17 = vmax.f32 (!%p1340_p11), %v1054_v8, 0.0  ;;  %v1100_v27 = vadd.f32 (!%p1340_p11), 1e-05, %v1068_v15 }
 0x287   : > { %964 = vst.msk [vmem:[#allocation3 + $0x78] sm:$0xff] %vm852_vm2, %v948_v5  ;;  %v1000_v55 = vmul.f32 (!%p1340_p11), 0.00390625, %v984_v37  ;;  %v1023_v5 = vmul.f32 (!%p1340_p11), 0.00390625, %v1007_v56  ;;  %v1066_v11 = vmax.f32 (!%p1340_p11), %v1050_v3, 0.0  ;;  %v1067_v12 = vmax.f32 (!%p1340_p11), %v1051_v4, 0.0  ;;  %v1014_v37 = vld [vmem:[#allocation3 + $0x68] sm:$0xff] (!%p1340_p11) }
 0x288   : > { %v1097_v23 = vadd.f32 1e-05, %v1065_v10  ;;  %v1101_v28 = vadd.f32 1e-05, %v1069_v16  ;;  %v1102_v29 = vadd.f32 1e-05, %v1070_v17  ;;  %v1058_v41 = vsub.f32 %v1026_v33, %v1912_v52 }
 0x289   : > { %1096 = vst.msk [vmem:[%s2053_s7 + $0x78] sm:$0xff] %vm852_vm2, %v1000_v55  ;;  %v1055_v13 = vsub.f32 %v1023_v5, %v1039_v45  ;;  %v1098_v24 = vadd.f32 1e-05, %v1066_v11  ;;  %v1099_v25 = vadd.f32 1e-05, %v1067_v12  ;;  %v1048_v26 = vmul.f32 %v1000_v55, %v1000_v55  ;;  %v1015_v51 = vld [vmem:[#allocation3 + $0x70] sm:$0xff] }
 0x28a   : > { %v1008_v61 = vld [vmem:[#allocation3 + $0x38] sm:$0xff]  ;;  %1461 = vrsqrt.f32 %v1097_v23  ;;  %v1060_v43 = vsub.f32 %v1028_v35, %v1916_v54  ;;  %v1029_v45 = vmul.f32 0.00390625, %v1013_v36  ;;  %v1074_v48 = vmax.f32 %v1058_v41, 0.0 }
 0x28b   : > { %v1024_v9 = vmul.f32 0.00390625, %v1008_v61  ;;  %v1071_v30 = vmax.f32 %v1055_v13, 0.0  ;;  %1463 = vrsqrt.f32 %v1098_v24  ;;  %v1105_v55 = vadd.f32 1e-05, %v1073_v44 }
 0x28c   : > { %1465 = vrsqrt.f32 %v1099_v25  ;;  %v1076_v50 = vmax.f32 %v1060_v43, 0.0  ;;  %v1061_v47 = vsub.f32 %v1029_v45, %v1930_v57  ;;  %v1106_v53 = vadd.f32 1e-05, %v1074_v48 }
 0x28d   : > { %v1056_v18 = vsub.f32 %v1024_v9, %v1040_v46  ;;  %v1103_v38 = vadd.f32 1e-05, %v1071_v30  ;;  %1467 = vrsqrt.f32 %v1100_v27  ;;  %v1030_v46 = vmul.f32 0.00390625, %v1014_v37 }
 0x28e   : > { %1469 = vrsqrt.f32 %v1101_v28  ;;  %v1016_v52 = vld [vmem:[#allocation3 + $0x78] sm:$0xff]  ;;  %v1107_v58 = vadd.f32 1e-05, %v1075_v49  ;;  %v1108_v54 = vadd.f32 1e-05, %v1076_v50  ;;  %v1077_v59 = vmax.f32 %v1061_v47, 0.0 }
 0x28f   : > { %v1072_v31 = vmax.f32 %v1056_v18, 0.0  ;;  %1471 = vrsqrt.f32 %v1102_v29  ;;  %v1062_v56 = vsub.f32 %v1030_v46, %v1936_v62  ;;  %v1031_v61 = vmul.f32 0.00390625, %v1015_v51 }
 0x290   : > { %1473 = vrsqrt.f32 %v1103_v38  ;;  %v1032_v63 = vmul.f32 0.00390625, %v1016_v52  ;;  %v1109_v1 = vadd.f32 1e-05, %v1077_v59 }
 0x291   : > { %v1104_v39 = vadd.f32 1e-05, %v1072_v31  ;;  %v1078_v60 = vmax.f32 %v1062_v56, 0.0  ;;  %v1063_v3 = vsub.f32 %v1031_v61, %v1047_v22 }
 0x292   : > { %v1064_v57 = vsub.f32 %v1032_v63, %v1048_v26 }
 0x293   : > { %1475 = vrsqrt.f32 %v1104_v39  ;;  %v1110_v2 = vadd.f32 1e-05, %v1078_v60  ;;  %v1079_v5 = vmax.f32 %v1063_v3, 0.0 }
 0x294   : > { %1477 = vrsqrt.f32 %v1105_v55  ;;  %v1462_v0 = vpop.eup %1461  ;;  %v1080_v7 = vmax.f32 %v1064_v57, 0.0 }
 0x295   : > { %1479 = vrsqrt.f32 %v1106_v53  ;;  %v1464_v4 = vpop.eup %1463  ;;  %1129 = vst.msk [vmem:[%s2054_s8] sm:$0xff] %vm852_vm2, %v1462_v0  ;;  %v1111_v9 = vadd.f32 1e-05, %v1079_v5 }
 0x296   : > { %1481 = vrsqrt.f32 %v1107_v58  ;;  %v1466_v62 = vpop.eup %1465  ;;  %1130 = vst.msk [vmem:[%s2054_s8 + $0x8] sm:$0xff] %vm852_vm2, %v1464_v4  ;;  %v1112_v11 = vadd.f32 1e-05, %v1080_v7 }
 0x297   : > { %1483 = vrsqrt.f32 %v1108_v54  ;;  %v1468_v6 = vpop.eup %1467  ;;  %1131 = vst.msk [vmem:[%s2054_s8 + $0x10] sm:$0xff] %vm852_vm2, %v1466_v62 }
 0x298   : > { %1485 = vrsqrt.f32 %v1109_v1  ;;  %v1470_v8 = vpop.eup %1469  ;;  %1132 = vst.msk [vmem:[%s2054_s8 + $0x18] sm:$0xff] %vm852_vm2, %v1468_v6 }
 0x299   : > { %1487 = vrsqrt.f32 %v1110_v2  ;;  %v1472_v10 = vpop.eup %1471  ;;  %1133 = vst.msk [vmem:[%s2054_s8 + $0x20] sm:$0xff] %vm852_vm2, %v1470_v8 }
 0x29a   : > { %v1474_v12 = vpop.eup %1473  ;;  %1134 = vst.msk [vmem:[%s2054_s8 + $0x28] sm:$0xff] %vm852_vm2, %v1472_v10  ;;  %1489 = vrsqrt.f32 %v1111_v9 }
 0x29b   : > { %1135 = vst.msk [vmem:[%s2054_s8 + $0x30] sm:$0xff] %vm852_vm2, %v1474_v12  ;;  %1491 = vrsqrt.f32 %v1112_v11 }
 0x29d   : > { %v1476_v13 = vpop.eup %1475 }
 0x29e   : > { %v1478_v14 = vpop.eup %1477  ;;  %1136 = vst.msk [vmem:[%s2054_s8 + $0x38] sm:$0xff] %vm852_vm2, %v1476_v13 }
 0x29f   : > { %v1480_v15 = vpop.eup %1479  ;;  %1137 = vst.msk [vmem:[%s2054_s8 + $0x40] sm:$0xff] %vm852_vm2, %v1478_v14 }
 0x2a0   : > { %v1482_v16 = vpop.eup %1481  ;;  %1138 = vst.msk [vmem:[%s2054_s8 + $0x48] sm:$0xff] %vm852_vm2, %v1480_v15 }
 0x2a1   : > { %v1484_v17 = vpop.eup %1483  ;;  %1139 = vst.msk [vmem:[%s2054_s8 + $0x50] sm:$0xff] %vm852_vm2, %v1482_v16 }
 0x2a2   : > { %v1486_v18 = vpop.eup %1485  ;;  %1140 = vst.msk [vmem:[%s2054_s8 + $0x58] sm:$0xff] %vm852_vm2, %v1484_v17 }
 0x2a3   : > { %v1488_v19 = vpop.eup %1487  ;;  %1141 = vst.msk [vmem:[%s2054_s8 + $0x60] sm:$0xff] %vm852_vm2, %v1486_v18 }
 0x2a4   : > { %1142 = vst.msk [vmem:[%s2054_s8 + $0x68] sm:$0xff] %vm852_vm2, %v1488_v19  ;;  %v1490_v20 = vpop.eup %1489 }
 0x2a5   : > { %v1492_v21 = vpop.eup %1491  ;;  %1143 = vst.msk [vmem:[%s2054_s8 + $0x70] sm:$0xff] %vm852_vm2, %v1490_v20 }
 0x2a6   : > { %1144 = vst.msk [vmem:[%s2054_s8 + $0x78] sm:$0xff] %vm852_vm2, %v1492_v21 }
 0x2a7 PF: > { %1151 = sbr.rel (!%p1595_p5) target bundleno = 689 (0x2b1), region = 94  ;;  %s1342_s11 = sshll.u32 (%p1595_p5), %s1580_s30, 3  ;;  %v1211_v22 = vld [vmem:[%s1610_s25] sm:$0xff] (%p1595_p5)  ;;  %v1213_v23 = vld [vmem:[%s1610_s25 + $0x8] sm:$0xff] (%p1595_p5)  ;;  %v1215_v24 = vld [vmem:[%s1610_s25 + $0x10] sm:$0xff] (%p1595_p5) }
 0x2a8   : > { %s1153_s16 = scalar_lea.vmem (%p1595_p5), %s2052_s6, %s1342_s11  ;;  %v1217_v25 = vld [vmem:[%s1610_s25 + $0x18] sm:$0xff] (%p1595_p5)  ;;  %v1219_v26 = vld [vmem:[%s1610_s25 + $0x20] sm:$0xff] (%p1595_p5)  ;;  %v1221_v27 = vld [vmem:[%s1610_s25 + $0x28] sm:$0xff] (%p1595_p5) }
 0x2a9   : > { %1212 = vst [vmem:[%s1153_s16] sm:$0xff] (%p1595_p5), %v1211_v22  ;;  %1214 = vst [vmem:[%s1153_s16 + $0x10] sm:$0xff] (%p1595_p5), %v1213_v23  ;;  %v1223_v28 = vld [vmem:[%s1610_s25 + $0x30] sm:$0xff] (%p1595_p5)  ;;  %v1225_v29 = vld [vmem:[%s1610_s25 + $0x38] sm:$0xff] (%p1595_p5) }
 0x2aa   : > { %1216 = vst [vmem:[%s1153_s16 + $0x20] sm:$0xff] (%p1595_p5), %v1215_v24  ;;  %1218 = vst [vmem:[%s1153_s16 + $0x30] sm:$0xff] (%p1595_p5), %v1217_v25  ;;  %v1227_v30 = vld [vmem:[%s1610_s25 + $0x40] sm:$0xff] (%p1595_p5)  ;;  %v1229_v31 = vld [vmem:[%s1610_s25 + $0x48] sm:$0xff] (%p1595_p5) }
 0x2ab   : > { %1220 = vst [vmem:[%s1153_s16 + $0x40] sm:$0xff] (%p1595_p5), %v1219_v26  ;;  %1222 = vst [vmem:[%s1153_s16 + $0x50] sm:$0xff] (%p1595_p5), %v1221_v27  ;;  %v1231_v32 = vld [vmem:[%s1610_s25 + $0x50] sm:$0xff] (%p1595_p5)  ;;  %v1233_v33 = vld [vmem:[%s1610_s25 + $0x58] sm:$0xff] (%p1595_p5) }
 0x2ac   : > { %1224 = vst [vmem:[%s1153_s16 + $0x60] sm:$0xff] (%p1595_p5), %v1223_v28  ;;  %1226 = vst [vmem:[%s1153_s16 + $0x70] sm:$0xff] (%p1595_p5), %v1225_v29  ;;  %v1235_v34 = vld [vmem:[%s1610_s25 + $0x60] sm:$0xff] (%p1595_p5)  ;;  %v1237_v35 = vld [vmem:[%s1610_s25 + $0x68] sm:$0xff] (%p1595_p5) }
 0x2ad   : > { %1228 = vst [vmem:[%s1153_s16 + $0x80] sm:$0xff] (%p1595_p5), %v1227_v30  ;;  %1230 = vst [vmem:[%s1153_s16 + $0x90] sm:$0xff] (%p1595_p5), %v1229_v31  ;;  %v1239_v36 = vld [vmem:[%s1610_s25 + $0x70] sm:$0xff] (%p1595_p5)  ;;  %v1241_v37 = vld [vmem:[%s1610_s25 + $0x78] sm:$0xff] (%p1595_p5) }
 0x2ae   : > { %1232 = vst [vmem:[%s1153_s16 + $0xa0] sm:$0xff] %v1231_v32  ;;  %1234 = vst [vmem:[%s1153_s16 + $0xb0] sm:$0xff] %v1233_v33 }
 0x2af   : > { %1236 = vst [vmem:[%s1153_s16 + $0xc0] sm:$0xff] %v1235_v34  ;;  %1238 = vst [vmem:[%s1153_s16 + $0xd0] sm:$0xff] %v1237_v35 }
 0x2b0   : > { %1240 = vst [vmem:[%s1153_s16 + $0xe0] sm:$0xff] %v1239_v36  ;;  %1242 = vst [vmem:[%s1153_s16 + $0xf0] sm:$0xff] %v1241_v37 }
 0x2b1 PF: > { %p16_p12 = scmp.ge.s32.totalorder %s1583_s9, 4   ;;  %s2056_s27 = smov %s1511_s28 }
 0x2b2   : > { %s2057_s28 = smov %s1593_s12  ;;  %s2058_s29 = smov %s1583_s9 }
 0x2b3   :  { %18 = sbr.rel (!%p16_p12) target bundleno = 2 (0x2), region = 179 }

// kernel: pointnet_cvae_forward.7
= control target key start
LH: loop header
LB: loop body
LE: loop exit
PB: predicated region body
PF: predicated region fallthrough
CT: control target
= control target key end

     0   :  { %s2379_s27 = smov 0   ;;  %s2381_s28 = smov 0   ;;  %s3560_s0 = inlined_call_operand.vmem [shape: f32[128,256], index: 0, kind: input, shape index: {}]   ;;  %s3561_s1 = inlined_call_operand.vmem [shape: f32[128,1], index: 1, kind: input, shape index: {}]   ;;  %s3562_s2 = inlined_call_operand.vmem [shape: f32[128,1], index: 2, kind: input, shape index: {}]   ;;  %s3563_s3 = inlined_call_operand.vmem [shape: f32[128,1], index: 3, kind: input, shape index: {}]   ;;  %s3564_s4 = inlined_call_operand.vmem [shape: f32[128,1], index: 4, kind: input, shape index: {}]   ;;  %s3565_s5 = inlined_call_operand.vmem [shape: f32[256,128], index: 5, kind: input, shape index: {}]   ;;  %s3566_s6 = inlined_call_operand.vmem [shape: f32[256,256], index: 6, kind: output, shape index: {0}]   ;;  %s3567_s7 = inlined_call_operand.vmem [shape: f32[256,1], index: 7, kind: output, shape index: {1}]   ;;  %s3568_s8 = inlined_call_operand.vmem [shape: f32[256,1], index: 8, kind: output, shape index: {2}]  }
   0x1   :  { %s2383_s29 = smov 0  }
   0x2 LB: > { %s2395_s30 = sadd.s32 4294967295, %s2330_s29   ;;  %s2398_s9 = sadd.s32 1, %s2330_s29   ;;  %s2330_s29 = sphi %s2383_s29, %s3572_s29   ;;  %s2326_s28 = sphi %s2381_s28, %s3571_s28   ;;  %s2322_s27 = sphi %s2379_s27, %s3570_s27  }
   0x3   : > { %s23_s10 = ssub.s32 %s2330_s29, %s2398_s9  ;;  %s26_s11 = sadd.s32 1, %s2326_s28 }
   0x4   : > { %p24_p0 = scmp.eq.s32.totalorder %s23_s10, 0  ;;  %p33_p1 = scmp.ne.s32.totalorder %s2326_s28, %s2322_s27 }
   0x5   : > { %p34_p2 = scmp.eq.s32.totalorder %s2330_s29, 0  ;;  %p168_p3 = scmp.eq.s32.totalorder %s2395_s30, 1 }
   0x6   : > { %s2408_s12 = scalar_select %p24_p0, %s2326_s28, %s26_s11  }
   0x7   : > { %p35_p4 = por %p34_p2, %p33_p1  ;;  %p2410_p5 = por %p168_p3, %p33_p1 }
   0x8   : > { %p2028_p6 = scmp.ge.s32.totalorder %s2330_s29, 2 }
   0xa   : > { %247 = sbr.rel (%p2028_p6) target bundleno = 29 (0x1d), region = 36 }
  0x11   : > { %250 = sbr.rel (!%p35_p4) target bundleno = 29 (0x1d), region = 40  ;;  %s252_s14 = sand.u32 (%p35_p4), 1, %s2326_s28  }
  0x12   : > { %s2030_s15 = sshll.u32 (%p35_p4), %s2330_s29, 3  ;;  %s2029_s16 = sshll.u32 (%p35_p4), %s252_s14, 7 }
  0x13   : > { %s2420_s19 = scalar_lea.vmem (%p35_p4), %s3560_s0, %s2030_s15  ;;  %s254_s20 = scalar_lea.vmem (%p35_p4), [#allocation4], %s2029_s16 }
  0x14   : > { %v314_v0 = vld [vmem:[%s2420_s19] sm:$0xff] (%p35_p4)  ;;  %v316_v1 = vld [vmem:[%s2420_s19 + $0x10] sm:$0xff] (%p35_p4) }
  0x15   : > { %v318_v2 = vld [vmem:[%s2420_s19 + $0x20] sm:$0xff] (%p35_p4)  ;;  %315 = vst [vmem:[%s254_s20] sm:$0xff] (%p35_p4), %v314_v0  ;;  %317 = vst [vmem:[%s254_s20 + $0x8] sm:$0xff] (%p35_p4), %v316_v1  ;;  %v320_v3 = vld [vmem:[%s2420_s19 + $0x30] sm:$0xff] (%p35_p4) }
  0x16   : > { %319 = vst [vmem:[%s254_s20 + $0x10] sm:$0xff] (%p35_p4), %v318_v2  ;;  %v322_v4 = vld [vmem:[%s2420_s19 + $0x40] sm:$0xff] (%p35_p4)  ;;  %v324_v5 = vld [vmem:[%s2420_s19 + $0x50] sm:$0xff] (%p35_p4)  ;;  %321 = vst [vmem:[%s254_s20 + $0x18] sm:$0xff] (%p35_p4), %v320_v3 }
  0x17   : > { %323 = vst [vmem:[%s254_s20 + $0x20] sm:$0xff] (%p35_p4), %v322_v4  ;;  %325 = vst [vmem:[%s254_s20 + $0x28] sm:$0xff] (%p35_p4), %v324_v5  ;;  %v326_v6 = vld [vmem:[%s2420_s19 + $0x60] sm:$0xff] (%p35_p4)  ;;  %v328_v7 = vld [vmem:[%s2420_s19 + $0x70] sm:$0xff] (%p35_p4) }
  0x18   : > { %v330_v8 = vld [vmem:[%s2420_s19 + $0x80] sm:$0xff]  ;;  %327 = vst [vmem:[%s254_s20 + $0x30] sm:$0xff] %v326_v6  ;;  %329 = vst [vmem:[%s254_s20 + $0x38] sm:$0xff] %v328_v7  ;;  %v332_v9 = vld [vmem:[%s2420_s19 + $0x90] sm:$0xff] }
  0x19   : > { %331 = vst [vmem:[%s254_s20 + $0x40] sm:$0xff] %v330_v8  ;;  %v334_v10 = vld [vmem:[%s2420_s19 + $0xa0] sm:$0xff]  ;;  %v336_v11 = vld [vmem:[%s2420_s19 + $0xb0] sm:$0xff]  ;;  %333 = vst [vmem:[%s254_s20 + $0x48] sm:$0xff] %v332_v9 }
  0x1a   : > { %335 = vst [vmem:[%s254_s20 + $0x50] sm:$0xff] %v334_v10  ;;  %337 = vst [vmem:[%s254_s20 + $0x58] sm:$0xff] %v336_v11  ;;  %v338_v12 = vld [vmem:[%s2420_s19 + $0xc0] sm:$0xff]  ;;  %v340_v13 = vld [vmem:[%s2420_s19 + $0xd0] sm:$0xff] }
  0x1b   : > { %v342_v14 = vld [vmem:[%s2420_s19 + $0xe0] sm:$0xff]  ;;  %339 = vst [vmem:[%s254_s20 + $0x60] sm:$0xff] %v338_v12  ;;  %341 = vst [vmem:[%s254_s20 + $0x68] sm:$0xff] %v340_v13  ;;  %v344_v15 = vld [vmem:[%s2420_s19 + $0xf0] sm:$0xff] }
  0x1c   : > { %343 = vst [vmem:[%s254_s20 + $0x70] sm:$0xff] %v342_v14  ;;  %345 = vst [vmem:[%s254_s20 + $0x78] sm:$0xff] %v344_v15 }
  0x1d PF: > { %p2031_p7 = scmp.ge.s32.totalorder %s2330_s29, 1  ;;  %p350_p8 = scmp.lt.s32.totalorder %s2330_s29, 3 }
  0x1f   : > { %p351_p9 = pnand %p2031_p7, %p350_p8 }
  0x20   : > { %s357_s21 = sand.u32 (!%p351_p9), 1, %s2322_s27   ;;  %p2034_p10 = scmp.ne.s32.totalorder (!%p351_p9), %s2395_s30, 0 }
  0x21   : > { %354 = sbr.rel (%p351_p9) target bundleno = 835 (0x343), region = 78  ;;  %s2032_s22 = sshll.u32 (!%p351_p9), %s357_s21, 7 }
  0x22   : > { %s2033_s23 = sshll.u32 (!%p351_p9), %s357_s21, 8  ;;  %s2441_s24 = scalar_lea.vmem (!%p351_p9), [#allocation4], %s2032_s22 }
  0x23   : > { %s2443_s25 = scalar_lea.vmem (!%p351_p9), [#allocation5], %s2033_s23 }
  0x28   : > { %392 = sbr.rel (%p2034_p10) target bundleno = 73 (0x49), region = 86  ;;  %vm393_vm0 = vcmask (!%p2034_p10), 7168   ;;  %v2332_v16 = vmov (!%p2034_p10), 0.0  }
  0x29   : > { %394 = vst.msk [vmem:[#allocation2] sm:$0xff] (!%p2034_p10), %vm393_vm0, %v2332_v16  ;;  %395 = vst.msk [vmem:[#allocation2 + $0x8] sm:$0xff] (!%p2034_p10), %vm393_vm0, %v2332_v16 }
  0x2a   : > { %396 = vst.msk [vmem:[#allocation2 + $0x10] sm:$0xff] (!%p2034_p10), %vm393_vm0, %v2332_v16  ;;  %397 = vst.msk [vmem:[#allocation2 + $0x18] sm:$0xff] (!%p2034_p10), %vm393_vm0, %v2332_v16 }
  0x2b   : > { %398 = vst.msk [vmem:[#allocation2 + $0x20] sm:$0xff] (!%p2034_p10), %vm393_vm0, %v2332_v16  ;;  %399 = vst.msk [vmem:[#allocation2 + $0x28] sm:$0xff] (!%p2034_p10), %vm393_vm0, %v2332_v16 }
  0x2c   : > { %400 = vst.msk [vmem:[#allocation2 + $0x30] sm:$0xff] (!%p2034_p10), %vm393_vm0, %v2332_v16  ;;  %401 = vst.msk [vmem:[#allocation2 + $0x38] sm:$0xff] (!%p2034_p10), %vm393_vm0, %v2332_v16 }
  0x2d   : > { %402 = vst.msk [vmem:[#allocation2 + $0x40] sm:$0xff] (!%p2034_p10), %vm393_vm0, %v2332_v16  ;;  %403 = vst.msk [vmem:[#allocation2 + $0x48] sm:$0xff] (!%p2034_p10), %vm393_vm0, %v2332_v16 }
  0x2e   : > { %404 = vst.msk [vmem:[#allocation2 + $0x50] sm:$0xff] (!%p2034_p10), %vm393_vm0, %v2332_v16  ;;  %405 = vst.msk [vmem:[#allocation2 + $0x58] sm:$0xff] (!%p2034_p10), %vm393_vm0, %v2332_v16 }
  0x2f   : > { %406 = vst.msk [vmem:[#allocation2 + $0x60] sm:$0xff] %vm393_vm0, %v2332_v16  ;;  %407 = vst.msk [vmem:[#allocation2 + $0x68] sm:$0xff] %vm393_vm0, %v2332_v16 }
  0x30   : > { %408 = vst.msk [vmem:[#allocation2 + $0x70] sm:$0xff] %vm393_vm0, %v2332_v16  ;;  %409 = vst.msk [vmem:[#allocation2 + $0x78] sm:$0xff] %vm393_vm0, %v2332_v16 }
  0x31   : > { %410 = vst.msk [vmem:[#allocation2 + $0x80] sm:$0xff] %vm393_vm0, %v2332_v16  ;;  %411 = vst.msk [vmem:[#allocation2 + $0x88] sm:$0xff] %vm393_vm0, %v2332_v16 }
  0x32   : > { %412 = vst.msk [vmem:[#allocation2 + $0x90] sm:$0xff] %vm393_vm0, %v2332_v16  ;;  %413 = vst.msk [vmem:[#allocation2 + $0x98] sm:$0xff] %vm393_vm0, %v2332_v16 }
  0x33   : > { %414 = vst.msk [vmem:[#allocation2 + $0xa0] sm:$0xff] %vm393_vm0, %v2332_v16  ;;  %415 = vst.msk [vmem:[#allocation2 + $0xa8] sm:$0xff] %vm393_vm0, %v2332_v16 }
  0x34   : > { %416 = vst.msk [vmem:[#allocation2 + $0xb0] sm:$0xff] %vm393_vm0, %v2332_v16  ;;  %417 = vst.msk [vmem:[#allocation2 + $0xb8] sm:$0xff] %vm393_vm0, %v2332_v16 }
  0x35   : > { %418 = vst.msk [vmem:[#allocation2 + $0xc0] sm:$0xff] %vm393_vm0, %v2332_v16  ;;  %419 = vst.msk [vmem:[#allocation2 + $0xc8] sm:$0xff] %vm393_vm0, %v2332_v16 }
  0x36   : > { %420 = vst.msk [vmem:[#allocation2 + $0xd0] sm:$0xff] %vm393_vm0, %v2332_v16  ;;  %421 = vst.msk [vmem:[#allocation2 + $0xd8] sm:$0xff] %vm393_vm0, %v2332_v16 }
  0x37   : > { %422 = vst.msk [vmem:[#allocation2 + $0xe0] sm:$0xff] %vm393_vm0, %v2332_v16  ;;  %423 = vst.msk [vmem:[#allocation2 + $0xe8] sm:$0xff] %vm393_vm0, %v2332_v16 }
  0x38   : > { %424 = vst.msk [vmem:[#allocation2 + $0xf0] sm:$0xff] %vm393_vm0, %v2332_v16  ;;  %425 = vst.msk [vmem:[#allocation2 + $0xf8] sm:$0xff] %vm393_vm0, %v2332_v16 }
  0x39   : > { %426 = vst.msk [vmem:[#allocation3] sm:$0xff] %vm393_vm0, %v2332_v16  ;;  %427 = vst.msk [vmem:[#allocation3 + $0x8] sm:$0xff] %vm393_vm0, %v2332_v16 }
  0x3a   : > { %428 = vst.msk [vmem:[#allocation3 + $0x10] sm:$0xff] %vm393_vm0, %v2332_v16  ;;  %429 = vst.msk [vmem:[#allocation3 + $0x18] sm:$0xff] %vm393_vm0, %v2332_v16 }
  0x3b   : > { %430 = vst.msk [vmem:[#allocation3 + $0x20] sm:$0xff] %vm393_vm0, %v2332_v16  ;;  %431 = vst.msk [vmem:[#allocation3 + $0x28] sm:$0xff] %vm393_vm0, %v2332_v16 }
  0x3c   : > { %432 = vst.msk [vmem:[#allocation3 + $0x30] sm:$0xff] %vm393_vm0, %v2332_v16  ;;  %433 = vst.msk [vmem:[#allocation3 + $0x38] sm:$0xff] %vm393_vm0, %v2332_v16 }
  0x3d   : > { %434 = vst.msk [vmem:[#allocation3 + $0x40] sm:$0xff] %vm393_vm0, %v2332_v16  ;;  %435 = vst.msk [vmem:[#allocation3 + $0x48] sm:$0xff] %vm393_vm0, %v2332_v16 }
  0x3e   : > { %436 = vst.msk [vmem:[#allocation3 + $0x50] sm:$0xff] %vm393_vm0, %v2332_v16  ;;  %437 = vst.msk [vmem:[#allocation3 + $0x58] sm:$0xff] %vm393_vm0, %v2332_v16 }
  0x3f   : > { %438 = vst.msk [vmem:[#allocation3 + $0x60] sm:$0xff] %vm393_vm0, %v2332_v16  ;;  %439 = vst.msk [vmem:[#allocation3 + $0x68] sm:$0xff] %vm393_vm0, %v2332_v16 }
  0x40   : > { %440 = vst.msk [vmem:[#allocation3 + $0x70] sm:$0xff] %vm393_vm0, %v2332_v16  ;;  %441 = vst.msk [vmem:[#allocation3 + $0x78] sm:$0xff] %vm393_vm0, %v2332_v16 }
  0x41   : > { %442 = vst.msk [vmem:[#allocation3 + $0x80] sm:$0xff] %vm393_vm0, %v2332_v16  ;;  %443 = vst.msk [vmem:[#allocation3 + $0x88] sm:$0xff] %vm393_vm0, %v2332_v16 }
  0x42   : > { %444 = vst.msk [vmem:[#allocation3 + $0x90] sm:$0xff] %vm393_vm0, %v2332_v16  ;;  %445 = vst.msk [vmem:[#allocation3 + $0x98] sm:$0xff] %vm393_vm0, %v2332_v16 }
  0x43   : > { %446 = vst.msk [vmem:[#allocation3 + $0xa0] sm:$0xff] %vm393_vm0, %v2332_v16  ;;  %447 = vst.msk [vmem:[#allocation3 + $0xa8] sm:$0xff] %vm393_vm0, %v2332_v16 }
  0x44   : > { %448 = vst.msk [vmem:[#allocation3 + $0xb0] sm:$0xff] %vm393_vm0, %v2332_v16  ;;  %449 = vst.msk [vmem:[#allocation3 + $0xb8] sm:$0xff] %vm393_vm0, %v2332_v16 }
  0x45   : > { %450 = vst.msk [vmem:[#allocation3 + $0xc0] sm:$0xff] %vm393_vm0, %v2332_v16  ;;  %451 = vst.msk [vmem:[#allocation3 + $0xc8] sm:$0xff] %vm393_vm0, %v2332_v16 }
  0x46   : > { %452 = vst.msk [vmem:[#allocation3 + $0xd0] sm:$0xff] %vm393_vm0, %v2332_v16  ;;  %453 = vst.msk [vmem:[#allocation3 + $0xd8] sm:$0xff] %vm393_vm0, %v2332_v16 }
  0x47   : > { %454 = vst.msk [vmem:[#allocation3 + $0xe0] sm:$0xff] %vm393_vm0, %v2332_v16  ;;  %455 = vst.msk [vmem:[#allocation3 + $0xe8] sm:$0xff] %vm393_vm0, %v2332_v16 }
  0x48   : > { %456 = vst.msk [vmem:[#allocation3 + $0xf0] sm:$0xff] %vm393_vm0, %v2332_v16  ;;  %457 = vst.msk [vmem:[#allocation3 + $0xf8] sm:$0xff] %vm393_vm0, %v2332_v16 }
  0x49 PF: > { %v458_v17 = vld [vmem:[%s3562_s2] sm:$0xff]  ;;  %v459_v19 = vld [vmem:[%s3562_s2 + $0x8] sm:$0xff]  ;;  %v2333_v20 = vmov 0   ;;  %v460_v26 = vld [vmem:[%s3562_s2 + $0x10] sm:$0xff]  ;;  %vm1211_vm1 = vcmask 7168   ;;  %p2035_p11 = scmp.ne.s32.totalorder %s2395_s30, 1 }
  0x4a   : > { %v474_v18 = vld [vmem:[%s3563_s3] sm:$0xff]  ;;  %2242 = vset.pattern.permute.xlu0 %v2333_v20  ;;  %2243 = vset.pattern.permute.xlu1 %v2333_v20  ;;  %v475_v22 = vld [vmem:[%s3563_s3 + $0x8] sm:$0xff]  ;;  %v476_v27 = vld [vmem:[%s3563_s3 + $0x10] sm:$0xff] }
  0x4b   : > { %v490_v21 = vmul.f32 %v474_v18, %v458_v17  ;;  %v522_v23 = vld [vmem:[%s3561_s1] sm:$0xff]  ;;  %v491_v24 = vmul.f32 %v475_v22, %v459_v19  ;;  %v492_v29 = vmul.f32 %v476_v27, %v460_v26  ;;  %v507_v30 = vld [vmem:[%s3564_s4 + $0x8] sm:$0xff]  ;;  %v524_v33 = vld [vmem:[%s3561_s1 + $0x10] sm:$0xff] }
  0x4c   : > { %v506_v25 = vld [vmem:[%s3564_s4] sm:$0xff]  ;;  %v523_v31 = vld [vmem:[%s3561_s1 + $0x8] sm:$0xff]  ;;  %v461_v34 = vld [vmem:[%s3562_s2 + $0x18] sm:$0xff] }
  0x4d   : > { %588 = vperm.xlu0 %2242, %v490_v21   ;;  %v538_v28 = vmul.f32 %v522_v23, %v490_v21  ;;  %v539_v32 = vmul.f32 %v523_v31, %v491_v24  ;;  %v477_v35 = vld [vmem:[%s3563_s3 + $0x18] sm:$0xff]  ;;  %v508_v38 = vld [vmem:[%s3564_s4 + $0x10] sm:$0xff]  ;;  %v540_v39 = vmul.f32 %v524_v33, %v492_v29  ;;  %v462_v41 = vld [vmem:[%s3562_s2 + $0x20] sm:$0xff] }
  0x4e   : > { %v493_v40 = vmul.f32 %v477_v35, %v461_v34  ;;  %v478_v42 = vld [vmem:[%s3563_s3 + $0x20] sm:$0xff]  ;;  %v525_v43 = vld [vmem:[%s3561_s1 + $0x18] sm:$0xff]  ;;  %v463_v49 = vld [vmem:[%s3562_s2 + $0x28] sm:$0xff] }
  0x4f   : > { %v554_v36 = vsub.f32 %v506_v25, %v538_v28  ;;  %v555_v37 = vsub.f32 %v507_v30, %v539_v32  ;;  %v556_v44 = vsub.f32 %v508_v38, %v540_v39  ;;  %v494_v45 = vmul.f32 %v478_v42, %v462_v41  ;;  %v509_v46 = vld [vmem:[%s3564_s4 + $0x18] sm:$0xff]  ;;  %v526_v48 = vld [vmem:[%s3561_s1 + $0x20] sm:$0xff]  ;;  %v479_v50 = vld [vmem:[%s3563_s3 + $0x28] sm:$0xff] }
  0x50   : > { %v541_v47 = vmul.f32 %v525_v43, %v493_v40  ;;  %v510_v52 = vld [vmem:[%s3564_s4 + $0x20] sm:$0xff]  ;;  %v495_v54 = vmul.f32 %v479_v50, %v463_v49  ;;  %v464_v55 = vld [vmem:[%s3562_s2 + $0x30] sm:$0xff]  ;;  %v527_v57 = vld [vmem:[%s3561_s1 + $0x28] sm:$0xff] }
  0x51   : > { %593 = vperm.xlu0 %2242, %v491_v24   ;;  %684 = vperm.xlu1 %2243, %v554_v36   ;;  %v542_v53 = vmul.f32 %v526_v48, %v494_v45  ;;  %v480_v56 = vld [vmem:[%s3563_s3 + $0x30] sm:$0xff]  ;;  %v511_v60 = vld [vmem:[%s3564_s4 + $0x28] sm:$0xff]  ;;  %v465_v63 = vld [vmem:[%s3562_s2 + $0x38] sm:$0xff] }
  0x52   : > { %v557_v51 = vsub.f32 %v509_v46, %v541_v47  ;;  %v496_v59 = vmul.f32 %v480_v56, %v464_v55  ;;  %v543_v61 = vmul.f32 %v527_v57, %v495_v54  ;;  %v528_v62 = vld [vmem:[%s3561_s1 + $0x30] sm:$0xff]  ;;  %v481_v0 = vld [vmem:[%s3563_s3 + $0x38] sm:$0xff]  ;;  %v466_v5 = vld [vmem:[%s3562_s2 + $0x40] sm:$0xff] }
  0x53   : > { %v558_v58 = vsub.f32 %v510_v52, %v542_v53  ;;  %v512_v2 = vld [vmem:[%s3564_s4 + $0x30] sm:$0xff]  ;;  %v497_v4 = vmul.f32 %v481_v0, %v465_v63  ;;  %v482_v6 = vld [vmem:[%s3563_s3 + $0x40] sm:$0xff]  ;;  %v529_v7 = vld [vmem:[%s3561_s1 + $0x38] sm:$0xff] }
  0x54   : > { %v559_v1 = vsub.f32 %v511_v60, %v543_v61  ;;  %v544_v3 = vmul.f32 %v528_v62, %v496_v59  ;;  %v498_v9 = vmul.f32 %v482_v6, %v466_v5  ;;  %v513_v10 = vld [vmem:[%s3564_s4 + $0x38] sm:$0xff]  ;;  %v530_v12 = vld [vmem:[%s3561_s1 + $0x40] sm:$0xff]  ;;  %v467_v13 = vld [vmem:[%s3562_s2 + $0x48] sm:$0xff] }
  0x55   : > { %598 = vperm.xlu0 %2242, %v492_v29   ;;  %689 = vperm.xlu1 %2243, %v555_v37   ;;  %v545_v11 = vmul.f32 %v529_v7, %v497_v4  ;;  %v483_v14 = vld [vmem:[%s3563_s3 + $0x48] sm:$0xff]  ;;  %v514_v16 = vld [vmem:[%s3564_s4 + $0x40] sm:$0xff]  ;;  %v468_v19 = vld [vmem:[%s3562_s2 + $0x50] sm:$0xff] }
  0x56   : > { %v560_v8 = vsub.f32 %v512_v2, %v544_v3  ;;  %v546_v17 = vmul.f32 %v530_v12, %v498_v9  ;;  %v499_v18 = vmul.f32 %v483_v14, %v467_v13  ;;  %v484_v20 = vld [vmem:[%s3563_s3 + $0x50] sm:$0xff]  ;;  %v531_v21 = vld [vmem:[%s3561_s1 + $0x48] sm:$0xff]  ;;  %v469_v27 = vld [vmem:[%s3562_s2 + $0x58] sm:$0xff] }
  0x57   : > { %v561_v15 = vsub.f32 %v513_v10, %v545_v11  ;;  %v500_v23 = vmul.f32 %v484_v20, %v468_v19  ;;  %v515_v24 = vld [vmem:[%s3564_s4 + $0x48] sm:$0xff]  ;;  %v532_v26 = vld [vmem:[%s3561_s1 + $0x50] sm:$0xff]  ;;  %v485_v28 = vld [vmem:[%s3563_s3 + $0x58] sm:$0xff] }
  0x58   : > { %v562_v22 = vsub.f32 %v514_v16, %v546_v17  ;;  %v547_v25 = vmul.f32 %v531_v21, %v499_v18  ;;  %v516_v30 = vld [vmem:[%s3564_s4 + $0x50] sm:$0xff]  ;;  %v501_v32 = vmul.f32 %v485_v28, %v469_v27  ;;  %v470_v33 = vld [vmem:[%s3562_s2 + $0x60] sm:$0xff]  ;;  %v533_v35 = vld [vmem:[%s3561_s1 + $0x58] sm:$0xff] }
  0x59   : > { %694 = vperm.xlu0 %2242, %v556_v44   ;;  %603 = vperm.xlu1 %2243, %v493_v40   ;;  %v548_v31 = vmul.f32 %v532_v26, %v500_v23  ;;  %v486_v34 = vld [vmem:[%s3563_s3 + $0x60] sm:$0xff]  ;;  %v517_v38 = vld [vmem:[%s3564_s4 + $0x58] sm:$0xff]  ;;  %v471_v41 = vld [vmem:[%s3562_s2 + $0x68] sm:$0xff] }
  0x5a   : > { %v563_v29 = vsub.f32 %v515_v24, %v547_v25  ;;  %v502_v37 = vmul.f32 %v486_v34, %v470_v33  ;;  %v549_v39 = vmul.f32 %v533_v35, %v501_v32  ;;  %v534_v40 = vld [vmem:[%s3561_s1 + $0x60] sm:$0xff]  ;;  %v487_v42 = vld [vmem:[%s3563_s3 + $0x68] sm:$0xff]  ;;  %v472_v47 = vld [vmem:[%s3562_s2 + $0x70] sm:$0xff] }
  0x5b   : > { %v564_v36 = vsub.f32 %v516_v30, %v548_v31  ;;  %v518_v44 = vld [vmem:[%s3564_s4 + $0x60] sm:$0xff]  ;;  %v503_v46 = vmul.f32 %v487_v42, %v471_v41  ;;  %v488_v48 = vld [vmem:[%s3563_s3 + $0x70] sm:$0xff]  ;;  %v535_v49 = vld [vmem:[%s3561_s1 + $0x68] sm:$0xff] }
  0x5c   : > { %v565_v43 = vsub.f32 %v517_v38, %v549_v39  ;;  %v519_v52 = vld [vmem:[%s3564_s4 + $0x68] sm:$0xff]  ;;  %v473_v55 = vld [vmem:[%s3562_s2 + $0x78] sm:$0xff]  ;;  %v520_v60 = vld [vmem:[%s3564_s4 + $0x70] sm:$0xff] }
  0x5d   : > { %608 = vperm.xlu0 %2242, %v494_v45   ;;  %699 = vperm.xlu1 %2243, %v557_v51   ;;  %v550_v45 = vmul.f32 %v534_v40, %v502_v37  ;;  %v504_v51 = vmul.f32 %v488_v48, %v472_v47  ;;  %v551_v53 = vmul.f32 %v535_v49, %v503_v46  ;;  %v489_v56 = vld [vmem:[%s3563_s3 + $0x78] sm:$0xff]  ;;  %v794_v2 = vld [vmem:[%s3565_s5] sm:$0xff]  ;;  %v571_v7 = vld [vmem:[%s2441_s24 + $0x8] sm:$0xff] }
  0x5e   : > { %v537_v61 = vld [vmem:[%s3561_s1 + $0x78] sm:$0xff]  ;;  %v810_v3 = vld [vmem:[%s3565_s5 + $0x80] sm:$0xff]  ;;  %2120 = vmatprep.mubr.f32.mxu0 %v794_v2  ;;  %v576_v41 = vld [vmem:[%s2441_s24 + $0x30] sm:$0xff] }
  0x5f   : > { %v566_v50 = vsub.f32 %v518_v44, %v550_v45  ;;  %v567_v57 = vsub.f32 %v519_v52, %v551_v53  ;;  %v521_v0 = vld [vmem:[%s3564_s4 + $0x78] sm:$0xff]  ;;  %2144 = vmatprep.mubr.f32.mxu1 %v810_v3  ;;  %v574_v28 = vld [vmem:[%s2441_s24 + $0x20] sm:$0xff]  ;;  %v580_v3 = vld [vmem:[%s2441_s24 + $0x50] sm:$0xff] }
  0x60   : > { %v573_v19 = vld [vmem:[%s2441_s24 + $0x18] sm:$0xff] }
  0x61   : > { %704 = vperm.xlu0 %2242, %v558_v58   ;;  %613 = vperm.xlu1 %2243, %v495_v54   ;;  %v536_v54 = vld [vmem:[%s3561_s1 + $0x70] sm:$0xff]  ;;  %v577_v45 = vld [vmem:[%s2441_s24 + $0x38] sm:$0xff] }
  0x62   : > { %v552_v58 = vmul.f32 %v536_v54, %v504_v51  ;;  %v578_v54 = vld [vmem:[%s2441_s24 + $0x40] sm:$0xff] }
  0x64   : > { %v568_v62 = vsub.f32 %v520_v60, %v552_v58  ;;  %v579_v58 = vld [vmem:[%s2441_s24 + $0x48] sm:$0xff] }
  0x65   : > { %618 = vperm.xlu0 %2242, %v496_v59   ;;  %709 = vperm.xlu1 %2243, %v559_v1   ;;  %v505_v59 = vmul.f32 %v489_v56, %v473_v55 }
  0x67   : > { %v553_v63 = vmul.f32 %v537_v61, %v505_v59 }
  0x69   : > { %714 = vperm.xlu0 %2242, %v560_v8   ;;  %623 = vperm.xlu1 %2243, %v497_v4   ;;  %v569_v1 = vsub.f32 %v521_v0, %v553_v63  ;;  %v570_v4 = vld [vmem:[%s2441_s24] sm:$0xff] }
  0x6d   : > { %628 = vperm.xlu0 %2242, %v498_v9   ;;  %719 = vperm.xlu1 %2243, %v561_v15   ;;  %v572_v15 = vld [vmem:[%s2441_s24 + $0x10] sm:$0xff] }
  0x71   : > { %724 = vperm.xlu0 %2242, %v562_v22   ;;  %633 = vperm.xlu1 %2243, %v499_v18  }
  0x75   : > { %638 = vperm.xlu0 %2242, %v500_v23   ;;  %729 = vperm.xlu1 %2243, %v563_v29  }
  0x79   : > { %734 = vperm.xlu0 %2242, %v564_v36   ;;  %643 = vperm.xlu1 %2243, %v501_v32   ;;  %v575_v32 = vld [vmem:[%s2441_s24 + $0x28] sm:$0xff] }
  0x7d   : > { %648 = vperm.xlu0 %2242, %v502_v37   ;;  %739 = vperm.xlu1 %2243, %v565_v43  }
  0x81   : > { %744 = vperm.xlu0 %2242, %v566_v50   ;;  %653 = vperm.xlu1 %2243, %v503_v46  }
  0x85   : > { %658 = vperm.xlu0 %2242, %v504_v51   ;;  %749 = vperm.xlu1 %2243, %v567_v57  }
  0x89   : > { %754 = vperm.xlu0 %2242, %v568_v62   ;;  %663 = vperm.xlu1 %2243, %v505_v59  }
  0x8d   : > { %759 = vperm.xlu1 %2243, %v569_v1  }
  0xcc   : > { %v589_v5 = vpop.permute.xlu0 %588 }
  0xcd   : > { %v666_v6 = vmul.f32 %v589_v5, %v570_v4 }
  0xd0   : > { %v594_v8 = vpop.permute.xlu0 %593  ;;  %v685_v9 = vpop.permute.xlu1 %684 }
  0xd1   : > { %v667_v10 = vmul.f32 %v594_v8, %v571_v7  ;;  %v762_v11 = vadd.f32 %v685_v9, %v666_v6  ;;  %v581_v7 = vld [vmem:[%s2441_s24 + $0x58] sm:$0xff] }
  0xd3   : > { %v778_v16 = vmax.f32 %v762_v11, 0.0 }
  0xd4   : > { %v599_v12 = vpop.permute.xlu0 %598  ;;  %v690_v13 = vpop.permute.xlu1 %689 }
  0xd5   : > { %v763_v14 = vadd.f32 %v690_v13, %v667_v10  ;;  %v668_v21 = vmul.f32 %v599_v12, %v572_v15 }
  0xd7   : > { %v779_v17 = vmax.f32 %v763_v14, 0.0 }
  0xd8   : > { %v695_v18 = vpop.permute.xlu0 %694  ;;  %v604_v20 = vpop.permute.xlu1 %603 }
  0xd9   : > { %v2168_v22 = vpack.c.bf16 %v779_v17, %v778_v16  ;;  %v764_v23 = vadd.f32 %v695_v18, %v668_v21  ;;  %v669_v24 = vmul.f32 %v604_v20, %v573_v19  ;;  %v582_v16 = vld [vmem:[%s2441_s24 + $0x60] sm:$0xff]  ;;  %v583_v20 = vld [vmem:[%s2441_s24 + $0x68] sm:$0xff] }
  0xdb   : > { %2169 = vmatprep.subr.bf16.mxu0 %v2168_v22  ;;  %2200 = vmatprep.subr.bf16.mxu1 %v2168_v22  ;;  %v780_v29 = vmax.f32 %v764_v23, 0.0 }
  0xdc   : > { %v609_v25 = vpop.permute.xlu0 %608  ;;  %2171 = vmatpush3.bf16.msra.mxu0 %v2168_v22  ;;  %2208 = vmatpush3.bf16.msra.mxu1 %v2168_v22  ;;  %v700_v26 = vpop.permute.xlu1 %699 }
  0xdd   : > { %v765_v27 = vadd.f32 %v700_v26, %v669_v24  ;;  %v670_v34 = vmul.f32 %v609_v25, %v574_v28 }
  0xdf   : > { %v781_v30 = vmax.f32 %v765_v27, 0.0 }
  0xe0   : > { %v705_v31 = vpop.permute.xlu0 %704  ;;  %v614_v33 = vpop.permute.xlu1 %613 }
  0xe1   : > { %v2172_v35 = vpack.c.bf16 %v781_v30, %v780_v29  ;;  %v766_v36 = vadd.f32 %v705_v31, %v670_v34  ;;  %v671_v37 = vmul.f32 %v614_v33, %v575_v32  ;;  %v584_v29 = vld [vmem:[%s2441_s24 + $0x70] sm:$0xff]  ;;  %v585_v33 = vld [vmem:[%s2441_s24 + $0x78] sm:$0xff] }
  0xe3   : > { %2173 = vmatprep.subr.bf16.mxu0 %v2172_v35  ;;  %2201 = vmatprep.subr.bf16.mxu1 %v2172_v35  ;;  %v782_v42 = vmax.f32 %v766_v36, 0.0 }
  0xe4   : > { %v619_v38 = vpop.permute.xlu0 %618  ;;  %2175 = vmatpush3.bf16.msra.mxu0 %v2172_v35  ;;  %2209 = vmatpush3.bf16.msra.mxu1 %v2172_v35  ;;  %v710_v39 = vpop.permute.xlu1 %709 }
  0xe5   : > { %v767_v40 = vadd.f32 %v710_v39, %v671_v37  ;;  %v672_v47 = vmul.f32 %v619_v38, %v576_v41 }
  0xe7   : > { %v783_v43 = vmax.f32 %v767_v40, 0.0 }
  0xe8   : > { %v715_v44 = vpop.permute.xlu0 %714  ;;  %v624_v46 = vpop.permute.xlu1 %623 }
  0xe9   : > { %v2176_v48 = vpack.c.bf16 %v783_v43, %v782_v42  ;;  %v768_v49 = vadd.f32 %v715_v44, %v672_v47  ;;  %v673_v50 = vmul.f32 %v624_v46, %v577_v45  ;;  %v795_v44 = vld [vmem:[%s3565_s5 + $0x8] sm:$0xff]  ;;  %v796_v46 = vld [vmem:[%s3565_s5 + $0x10] sm:$0xff] }
  0xea   : > { %v811_v45 = vld [vmem:[%s3565_s5 + $0x88] sm:$0xff]  ;;  %v812_v47 = vld [vmem:[%s3565_s5 + $0x90] sm:$0xff] }
  0xeb   : > { %2177 = vmatprep.subr.bf16.mxu0 %v2176_v48  ;;  %2202 = vmatprep.subr.bf16.mxu1 %v2176_v48  ;;  %v784_v55 = vmax.f32 %v768_v49, 0.0  ;;  %v813_v49 = vld [vmem:[%s3565_s5 + $0x98] sm:$0xff] }
  0xec   : > { %v629_v51 = vpop.permute.xlu0 %628  ;;  %2179 = vmatpush3.bf16.msra.mxu0 %v2176_v48  ;;  %2210 = vmatpush3.bf16.msra.mxu1 %v2176_v48  ;;  %v720_v52 = vpop.permute.xlu1 %719  ;;  %v797_v48 = vld [vmem:[%s3565_s5 + $0x18] sm:$0xff] }
  0xed   : > { %v769_v53 = vadd.f32 %v720_v52, %v673_v50  ;;  %v674_v60 = vmul.f32 %v629_v51, %v578_v54  ;;  %v798_v50 = vld [vmem:[%s3565_s5 + $0x20] sm:$0xff]  ;;  %v799_v52 = vld [vmem:[%s3565_s5 + $0x28] sm:$0xff]  ;;  %v800_v54 = vld [vmem:[%s3565_s5 + $0x30] sm:$0xff] }
  0xee   : > { %v814_v51 = vld [vmem:[%s3565_s5 + $0xa0] sm:$0xff] }
  0xef   : > { %v785_v56 = vmax.f32 %v769_v53, 0.0  ;;  %v815_v53 = vld [vmem:[%s3565_s5 + $0xa8] sm:$0xff] }
  0xf0   : > { %v725_v57 = vpop.permute.xlu0 %724  ;;  %v634_v59 = vpop.permute.xlu1 %633 }
  0xf1   : > { %v2180_v61 = vpack.c.bf16 %v785_v56, %v784_v55  ;;  %v770_v62 = vadd.f32 %v725_v57, %v674_v60  ;;  %v675_v63 = vmul.f32 %v634_v59, %v579_v58  ;;  %v816_v55 = vld [vmem:[%s3565_s5 + $0xb0] sm:$0xff]  ;;  %v801_v56 = vld [vmem:[%s3565_s5 + $0x38] sm:$0xff]  ;;  %v802_v58 = vld [vmem:[%s3565_s5 + $0x40] sm:$0xff] }
  0xf2   : > { %v817_v57 = vld [vmem:[%s3565_s5 + $0xb8] sm:$0xff]  ;;  %v818_v59 = vld [vmem:[%s3565_s5 + $0xc0] sm:$0xff]  ;;  %v803_v60 = vld [vmem:[%s3565_s5 + $0x48] sm:$0xff] }
  0xf3   : > { %2181 = vmatprep.subr.bf16.mxu0 %v2180_v61  ;;  %2203 = vmatprep.subr.bf16.mxu1 %v2180_v61  ;;  %v786_v4 = vmax.f32 %v770_v62, 0.0  ;;  %v804_v62 = vld [vmem:[%s3565_s5 + $0x50] sm:$0xff] }
  0xf4   : > { %v639_v0 = vpop.permute.xlu0 %638  ;;  %2183 = vmatpush3.bf16.msra.mxu0 %v2180_v61  ;;  %2211 = vmatpush3.bf16.msra.mxu1 %v2180_v61  ;;  %v730_v1 = vpop.permute.xlu1 %729  ;;  %v819_v61 = vld [vmem:[%s3565_s5 + $0xc8] sm:$0xff] }
  0xf5   : > { %v771_v2 = vadd.f32 %v730_v1, %v675_v63  ;;  %v676_v9 = vmul.f32 %v639_v0, %v580_v3  ;;  %v820_v63 = vld [vmem:[%s3565_s5 + $0xd0] sm:$0xff]  ;;  %v805_v0 = vld [vmem:[%s3565_s5 + $0x58] sm:$0xff]  ;;  %v822_v3 = vld [vmem:[%s3565_s5 + $0xe0] sm:$0xff] }
  0xf6   : > { %v821_v1 = vld [vmem:[%s3565_s5 + $0xd8] sm:$0xff] }
  0xf7   : > { %v787_v5 = vmax.f32 %v771_v2, 0.0  ;;  %v806_v2 = vld [vmem:[%s3565_s5 + $0x60] sm:$0xff] }
  0xf8   : > { %v735_v6 = vpop.permute.xlu0 %734  ;;  %v644_v8 = vpop.permute.xlu1 %643 }
  0xf9   : > { %v2184_v10 = vpack.c.bf16 %v787_v5, %v786_v4  ;;  %v772_v11 = vadd.f32 %v735_v6, %v676_v9  ;;  %v677_v12 = vmul.f32 %v644_v8, %v581_v7  ;;  %v807_v4 = vld [vmem:[%s3565_s5 + $0x68] sm:$0xff]  ;;  %v808_v6 = vld [vmem:[%s3565_s5 + $0x70] sm:$0xff]  ;;  %v809_v8 = vld [vmem:[%s3565_s5 + $0x78] sm:$0xff] }
  0xfa   : > { %v823_v5 = vld [vmem:[%s3565_s5 + $0xe8] sm:$0xff]  ;;  %v824_v7 = vld [vmem:[%s3565_s5 + $0xf0] sm:$0xff]  ;;  %v825_v9 = vld [vmem:[%s3565_s5 + $0xf8] sm:$0xff] }
  0xfb   : > { %2185 = vmatprep.subr.bf16.mxu0 %v2184_v10  ;;  %2204 = vmatprep.subr.bf16.mxu1 %v2184_v10  ;;  %v788_v17 = vmax.f32 %v772_v11, 0.0 }
  0xfc   : > { %v649_v13 = vpop.permute.xlu0 %648  ;;  %2187 = vmatpush3.bf16.msra.mxu0 %v2184_v10  ;;  %2212 = vmatpush3.bf16.msra.mxu1 %v2184_v10  ;;  %v740_v14 = vpop.permute.xlu1 %739 }
  0xfd   : > { %v773_v15 = vadd.f32 %v740_v14, %v677_v12  ;;  %v678_v22 = vmul.f32 %v649_v13, %v582_v16 }
  0xff   : > { %v789_v18 = vmax.f32 %v773_v15, 0.0 }
 0x100   : > { %v745_v19 = vpop.permute.xlu0 %744  ;;  %v654_v21 = vpop.permute.xlu1 %653 }
 0x101   : > { %v2188_v23 = vpack.c.bf16 %v789_v18, %v788_v17  ;;  %v774_v24 = vadd.f32 %v745_v19, %v678_v22  ;;  %v679_v25 = vmul.f32 %v654_v21, %v583_v20 }
 0x103   : > { %2189 = vmatprep.subr.bf16.mxu0 %v2188_v23  ;;  %2205 = vmatprep.subr.bf16.mxu1 %v2188_v23  ;;  %v790_v30 = vmax.f32 %v774_v24, 0.0 }
 0x104   : > { %v659_v26 = vpop.permute.xlu0 %658  ;;  %2191 = vmatpush3.bf16.msra.mxu0 %v2188_v23  ;;  %2213 = vmatpush3.bf16.msra.mxu1 %v2188_v23  ;;  %v750_v27 = vpop.permute.xlu1 %749 }
 0x105   : > { %v775_v28 = vadd.f32 %v750_v27, %v679_v25  ;;  %v680_v35 = vmul.f32 %v659_v26, %v584_v29 }
 0x107   : > { %v791_v31 = vmax.f32 %v775_v28, 0.0 }
 0x108   : > { %v755_v32 = vpop.permute.xlu0 %754  ;;  %v664_v34 = vpop.permute.xlu1 %663 }
 0x109   : > { %v2192_v36 = vpack.c.bf16 %v791_v31, %v790_v30  ;;  %v776_v37 = vadd.f32 %v755_v32, %v680_v35  ;;  %v681_v38 = vmul.f32 %v664_v34, %v585_v33 }
 0x10b   : > { %2193 = vmatprep.subr.bf16.mxu0 %v2192_v36  ;;  %2206 = vmatprep.subr.bf16.mxu1 %v2192_v36  ;;  %v792_v41 = vmax.f32 %v776_v37, 0.0 }
 0x10c   : > { %2195 = vmatpush3.bf16.msra.mxu0 %v2192_v36  ;;  %2214 = vmatpush3.bf16.msra.mxu1 %v2192_v36  ;;  %v760_v39 = vpop.permute.xlu1 %759 }
 0x10d   : > { %v777_v40 = vadd.f32 %v760_v39, %v681_v38 }
 0x10f   : > { %v793_v42 = vmax.f32 %v777_v40, 0.0 }
 0x111   : > { %v2196_v43 = vpack.c.bf16 %v793_v42, %v792_v41 }
 0x113   : > { %2197 = vmatprep.subr.bf16.mxu0 %v2196_v43  ;;  %2207 = vmatprep.subr.bf16.mxu1 %v2196_v43 }
 0x114   : > { %2199 = vmatpush3.bf16.msra.mxu0 %v2196_v43  ;;  %2215 = vmatpush3.bf16.msra.mxu1 %v2196_v43 }
 0x117   : > { %2121 = vmatmul.mubr.f32.vlgmr.msra.gmra.mrb[0].mxu0 %v795_v44  ;;  %2145 = vmatmul.mubr.f32.vlgmr.msra.gmra.mrb[0].mxu1 %v811_v45 }
 0x118   : > { %2123 = vmatprep.mubr.f32.mxu0 %v796_v46  ;;  %2147 = vmatprep.mubr.f32.mxu1 %v812_v47 }
 0x11b   : > { %2124 = vmatmul.mubr.f32.gmra.mrb[2].mxu0 %v797_v48  ;;  %2148 = vmatmul.mubr.f32.gmra.mrb[2].mxu1 %v813_v49 }
 0x11c   : > { %2126 = vmatprep.mubr.f32.mxu0 %v798_v50  ;;  %2150 = vmatprep.mubr.f32.mxu1 %v814_v51 }
 0x11f   : > { %2127 = vmatmul.mubr.f32.gmra.mrb[4].mxu0 %v799_v52  ;;  %2151 = vmatmul.mubr.f32.gmra.mrb[4].mxu1 %v815_v53 }
 0x120   : > { %2129 = vmatprep.mubr.f32.mxu0 %v800_v54  ;;  %2153 = vmatprep.mubr.f32.mxu1 %v816_v55 }
 0x123   : > { %2130 = vmatmul.mubr.f32.gmra.mrb[6].mxu0 %v801_v56  ;;  %2154 = vmatmul.mubr.f32.gmra.mrb[6].mxu1 %v817_v57 }
 0x124   : > { %2132 = vmatprep.mubr.f32.mxu0 %v802_v58  ;;  %2156 = vmatprep.mubr.f32.mxu1 %v818_v59 }
 0x127   : > { %2133 = vmatmul.mubr.f32.gmra.mrb[8].mxu0 %v803_v60  ;;  %2157 = vmatmul.mubr.f32.gmra.mrb[8].mxu1 %v819_v61 }
 0x128   : > { %2135 = vmatprep.mubr.f32.mxu0 %v804_v62  ;;  %2159 = vmatprep.mubr.f32.mxu1 %v820_v63 }
 0x12b   : > { %2136 = vmatmul.mubr.f32.gmra.mrb[10].mxu0 %v805_v0  ;;  %2160 = vmatmul.mubr.f32.gmra.mrb[10].mxu1 %v821_v1 }
 0x12c   : > { %2138 = vmatprep.mubr.f32.mxu0 %v806_v2  ;;  %2162 = vmatprep.mubr.f32.mxu1 %v822_v3 }
 0x12f   : > { %2139 = vmatmul.mubr.f32.gmra.mrb[12].mxu0 %v807_v4  ;;  %2163 = vmatmul.mubr.f32.gmra.mrb[12].mxu1 %v823_v5 }
 0x130   : > { %2141 = vmatprep.mubr.f32.mxu0 %v808_v6  ;;  %2165 = vmatprep.mubr.f32.mxu1 %v824_v7 }
 0x133   : > { %2142 = vmatmul.mubr.f32.gmra.mrb[14].mxu0 %v809_v8  ;;  %2166 = vmatmul.mubr.f32.gmra.mrb[14].mxu1 %v825_v9 }
 0x1ea   : > { %v2122_v10 = vpop.f32.mrb[0].mxu0  ;;  %v2146_v11 = vpop.f32.mrb[0].mxu1 }
 0x1eb   : > { %1052 = vst [vmem:[%s2443_s25 + $0x8] sm:$0xff] %v2122_v10  ;;  %1068 = vst [vmem:[%s2443_s25 + $0x88] sm:$0xff] %v2146_v11  ;;  %1149 = vadd.xlane.f32.xlu0 %v2146_v11  ;;  %v972_v12 = vpop.f32.mrb[1].mxu1  ;;  %1117 = vadd.xlane.f32.xlu1 %v2122_v10  ;;  %v892_v13 = vpop.f32.mrb[1].mxu0  ;;  %v1277_v18 = vmul.f32 %v2122_v10, %v2122_v10  ;;  %v1293_v24 = vmul.f32 %v2146_v11, %v2146_v11  ;;  %v1100_v10 = vld [vmem:[#allocation2 + $0x88] sm:$0xff] }
 0x1ec   : > { %1067 = vst [vmem:[%s2443_s25 + $0x80] sm:$0xff] %v972_v12  ;;  %1051 = vst [vmem:[%s2443_s25] sm:$0xff] %v892_v13  ;;  %v1276_v19 = vmul.f32 %v892_v13, %v892_v13  ;;  %v1292_v25 = vmul.f32 %v972_v12, %v972_v12  ;;  %v1084_v11 = vld [vmem:[#allocation2 + $0x8] sm:$0xff] }
 0x1ee   : > { %v2882_v14 = vpop.f32.mrb[2].mxu0  ;;  %v2884_v15 = vpop.f32.mrb[2].mxu1 }
 0x1ef   : > { %1147 = vadd.xlane.f32.xlu1 %v972_v12  ;;  %1115 = vadd.xlane.f32.xlu0 %v892_v13  ;;  %1054 = vst [vmem:[%s2443_s25 + $0x18] sm:$0xff] %v2882_v14  ;;  %1070 = vst [vmem:[%s2443_s25 + $0x98] sm:$0xff] %v2884_v15  ;;  %v902_v16 = vpop.f32.mrb[3].mxu0  ;;  %v982_v17 = vpop.f32.mrb[3].mxu1  ;;  %v1279_v44 = vmul.f32 %v2882_v14, %v2882_v14  ;;  %v1295_v49 = vmul.f32 %v2884_v15, %v2884_v15 }
 0x1f0   : > { %1053 = vst [vmem:[%s2443_s25 + $0x10] sm:$0xff] %v902_v16  ;;  %1069 = vst [vmem:[%s2443_s25 + $0x90] sm:$0xff] %v982_v17  ;;  %v1278_v34 = vmul.f32 %v902_v16, %v902_v16  ;;  %v1294_v39 = vmul.f32 %v982_v17, %v982_v17 }
 0x1f2   : > { %v2892_v20 = vpop.f32.mrb[4].mxu0  ;;  %v2894_v21 = vpop.f32.mrb[4].mxu1 }
 0x1f3   : > { %1310 = vadd.xlane.f32.xlu0 %v1277_v18  ;;  %1308 = vadd.xlane.f32.xlu1 %v1276_v19  ;;  %1056 = vst [vmem:[%s2443_s25 + $0x28] sm:$0xff] %v2892_v20  ;;  %v912_v22 = vpop.f32.mrb[5].mxu0  ;;  %1072 = vst [vmem:[%s2443_s25 + $0xa8] sm:$0xff] %v2894_v21  ;;  %v2900_v23 = vpop.f32.mrb[5].mxu1  ;;  %v1281_v52 = vmul.f32 %v2892_v20, %v2892_v20  ;;  %v1297_v53 = vmul.f32 %v2894_v21, %v2894_v21 }
 0x1f4   : > { %1055 = vst [vmem:[%s2443_s25 + $0x20] sm:$0xff] %v912_v22  ;;  %1071 = vst [vmem:[%s2443_s25 + $0xa0] sm:$0xff] %v2900_v23  ;;  %v1280_v50 = vmul.f32 %v912_v22, %v912_v22  ;;  %v1296_v51 = vmul.f32 %v2900_v23, %v2900_v23 }
 0x1f6   : > { %v2905_v26 = vpop.f32.mrb[6].mxu0  ;;  %v2907_v27 = vpop.f32.mrb[6].mxu1 }
 0x1f7   : > { %1342 = vadd.xlane.f32.xlu0 %v1293_v24  ;;  %1340 = vadd.xlane.f32.xlu1 %v1292_v25  ;;  %1058 = vst [vmem:[%s2443_s25 + $0x38] sm:$0xff] %v2905_v26  ;;  %v922_v28 = vpop.f32.mrb[7].mxu0  ;;  %1074 = vst [vmem:[%s2443_s25 + $0xb8] sm:$0xff] %v2907_v27  ;;  %v2913_v29 = vpop.f32.mrb[7].mxu1  ;;  %v1283_v56 = vmul.f32 %v2905_v26, %v2905_v26  ;;  %v1299_v57 = vmul.f32 %v2907_v27, %v2907_v27 }
 0x1f8   : > { %1057 = vst [vmem:[%s2443_s25 + $0x30] sm:$0xff] %v922_v28  ;;  %1073 = vst [vmem:[%s2443_s25 + $0xb0] sm:$0xff] %v2913_v29  ;;  %v1282_v54 = vmul.f32 %v922_v28, %v922_v28  ;;  %v1298_v55 = vmul.f32 %v2913_v29, %v2913_v29 }
 0x1fa   : > { %v2918_v30 = vpop.f32.mrb[8].mxu0  ;;  %v2920_v31 = vpop.f32.mrb[8].mxu1 }
 0x1fb   : > { %1151 = vadd.xlane.f32.xlu1 %v982_v17  ;;  %1121 = vadd.xlane.f32.xlu0 %v2882_v14  ;;  %1060 = vst [vmem:[%s2443_s25 + $0x48] sm:$0xff] %v2918_v30  ;;  %v2925_v32 = vpop.f32.mrb[9].mxu0  ;;  %1076 = vst [vmem:[%s2443_s25 + $0xc8] sm:$0xff] %v2920_v31  ;;  %v2929_v33 = vpop.f32.mrb[9].mxu1  ;;  %v1285_v60 = vmul.f32 %v2918_v30, %v2918_v30  ;;  %v1301_v61 = vmul.f32 %v2920_v31, %v2920_v31  ;;  %v1083_v17 = vld [vmem:[#allocation2] sm:$0xff] }
 0x1fc   : > { %1059 = vst [vmem:[%s2443_s25 + $0x40] sm:$0xff] %v2925_v32  ;;  %1075 = vst [vmem:[%s2443_s25 + $0xc0] sm:$0xff] %v2929_v33  ;;  %v1284_v58 = vmul.f32 %v2925_v32, %v2925_v32  ;;  %v1300_v59 = vmul.f32 %v2929_v33, %v2929_v33 }
 0x1fe   : > { %v2935_v35 = vpop.f32.mrb[10].mxu0  ;;  %v2937_v36 = vpop.f32.mrb[10].mxu1 }
 0x1ff   : > { %1153 = vadd.xlane.f32.xlu0 %v2884_v15  ;;  %1312 = vadd.xlane.f32.xlu1 %v1278_v34  ;;  %1062 = vst [vmem:[%s2443_s25 + $0x58] sm:$0xff] %v2935_v35  ;;  %v2942_v37 = vpop.f32.mrb[11].mxu0  ;;  %1078 = vst [vmem:[%s2443_s25 + $0xd8] sm:$0xff] %v2937_v36  ;;  %v2946_v38 = vpop.f32.mrb[11].mxu1  ;;  %v1287_v0 = vmul.f32 %v2935_v35, %v2935_v35  ;;  %v1303_v1 = vmul.f32 %v2937_v36, %v2937_v36  ;;  %v1101_v34 = vld [vmem:[#allocation2 + $0x90] sm:$0xff] }
 0x200   : > { %1061 = vst [vmem:[%s2443_s25 + $0x50] sm:$0xff] %v2942_v37  ;;  %1077 = vst [vmem:[%s2443_s25 + $0xd0] sm:$0xff] %v2946_v38  ;;  %v1286_v62 = vmul.f32 %v2942_v37, %v2942_v37  ;;  %v1302_v63 = vmul.f32 %v2946_v38, %v2946_v38 }
 0x202   : > { %v2952_v40 = vpop.f32.mrb[12].mxu0  ;;  %v2954_v41 = vpop.f32.mrb[12].mxu1 }
 0x203   : > { %1119 = vadd.xlane.f32.xlu0 %v902_v16  ;;  %1344 = vadd.xlane.f32.xlu1 %v1294_v39  ;;  %1064 = vst [vmem:[%s2443_s25 + $0x68] sm:$0xff] %v2952_v40  ;;  %v2958_v42 = vpop.f32.mrb[13].mxu0  ;;  %1080 = vst [vmem:[%s2443_s25 + $0xe8] sm:$0xff] %v2954_v41  ;;  %v2962_v43 = vpop.f32.mrb[13].mxu1  ;;  %v1289_v4 = vmul.f32 %v2952_v40, %v2952_v40  ;;  %v1305_v5 = vmul.f32 %v2954_v41, %v2954_v41  ;;  %v1099_v16 = vld [vmem:[#allocation2 + $0x80] sm:$0xff] }
 0x204   : > { %1063 = vst [vmem:[%s2443_s25 + $0x60] sm:$0xff] %v2958_v42  ;;  %1079 = vst [vmem:[%s2443_s25 + $0xe0] sm:$0xff] %v2962_v43  ;;  %v1288_v2 = vmul.f32 %v2958_v42, %v2958_v42  ;;  %v1304_v3 = vmul.f32 %v2962_v43, %v2962_v43 }
 0x206   : > { %v2970_v45 = vpop.f32.mrb[14].mxu0  ;;  %v2972_v46 = vpop.f32.mrb[14].mxu1 }
 0x207   : > { %1314 = vadd.xlane.f32.xlu0 %v1279_v44  ;;  %1123 = vadd.xlane.f32.xlu1 %v912_v22  ;;  %1066 = vst [vmem:[%s2443_s25 + $0x78] sm:$0xff] %v2970_v45  ;;  %v2976_v47 = vpop.f32.mrb[15].mxu0  ;;  %1082 = vst [vmem:[%s2443_s25 + $0xf8] sm:$0xff] %v2972_v46  ;;  %v2980_v48 = vpop.f32.mrb[15].mxu1  ;;  %v1291_v8 = vmul.f32 %v2970_v45, %v2970_v45  ;;  %v1307_v9 = vmul.f32 %v2972_v46, %v2972_v46  ;;  %v1245_v22 = vld [vmem:[#allocation3 + $0x8] sm:$0xff] }
 0x208   : > { %1065 = vst [vmem:[%s2443_s25 + $0x70] sm:$0xff] %v2976_v47  ;;  %1081 = vst [vmem:[%s2443_s25 + $0xf0] sm:$0xff] %v2980_v48  ;;  %v1290_v6 = vmul.f32 %v2976_v47, %v2976_v47  ;;  %v1306_v7 = vmul.f32 %v2980_v48, %v2980_v48 }
 0x20b   : > { %1346 = vadd.xlane.f32.xlu0 %v1295_v49  ;;  %1155 = vadd.xlane.f32.xlu1 %v2900_v23  ;;  %v1244_v23 = vld [vmem:[#allocation3] sm:$0xff] }
 0x20f   : > { %1125 = vadd.xlane.f32.xlu0 %v2892_v20  ;;  %1316 = vadd.xlane.f32.xlu1 %v1280_v50 }
 0x213   : > { %1157 = vadd.xlane.f32.xlu0 %v2894_v21  ;;  %1348 = vadd.xlane.f32.xlu1 %v1296_v51 }
 0x217   : > { %1318 = vadd.xlane.f32.xlu0 %v1281_v52  ;;  %1127 = vadd.xlane.f32.xlu1 %v922_v28  ;;  %v1261_v28 = vld [vmem:[#allocation3 + $0x88] sm:$0xff]  ;;  %v1247_v52 = vld [vmem:[#allocation3 + $0x18] sm:$0xff] }
 0x21b   : > { %1350 = vadd.xlane.f32.xlu0 %v1297_v53  ;;  %1159 = vadd.xlane.f32.xlu1 %v2913_v29  ;;  %v1260_v29 = vld [vmem:[#allocation3 + $0x80] sm:$0xff] }
 0x21c   : > { %v1087_v53 = vld [vmem:[#allocation2 + $0x20] sm:$0xff] }
 0x21f   : > { %1129 = vadd.xlane.f32.xlu0 %v2905_v26  ;;  %1320 = vadd.xlane.f32.xlu1 %v1282_v54 }
 0x223   : > { %1161 = vadd.xlane.f32.xlu0 %v2907_v27  ;;  %1352 = vadd.xlane.f32.xlu1 %v1298_v55 }
 0x227   : > { %1322 = vadd.xlane.f32.xlu0 %v1283_v56  ;;  %1131 = vadd.xlane.f32.xlu1 %v2925_v32 }
 0x22b   : > { %1354 = vadd.xlane.f32.xlu0 %v1299_v57  ;;  %1163 = vadd.xlane.f32.xlu1 %v2929_v33 }
 0x22f   : > { %1133 = vadd.xlane.f32.xlu0 %v2918_v30  ;;  %1324 = vadd.xlane.f32.xlu1 %v1284_v58  ;;  %v1263_v58 = vld [vmem:[#allocation3 + $0x98] sm:$0xff] }
 0x233   : > { %1165 = vadd.xlane.f32.xlu0 %v2920_v31  ;;  %1356 = vadd.xlane.f32.xlu1 %v1300_v59  ;;  %v1103_v59 = vld [vmem:[#allocation2 + $0xa0] sm:$0xff] }
 0x237   : > { %1326 = vadd.xlane.f32.xlu0 %v1285_v60  ;;  %1135 = vadd.xlane.f32.xlu1 %v2942_v37 }
 0x23b   : > { %1358 = vadd.xlane.f32.xlu0 %v1301_v61  ;;  %1167 = vadd.xlane.f32.xlu1 %v2946_v38 }
 0x23f   : > { %1137 = vadd.xlane.f32.xlu0 %v2935_v35  ;;  %1328 = vadd.xlane.f32.xlu1 %v1286_v62  ;;  %v1086_v35 = vld [vmem:[#allocation2 + $0x18] sm:$0xff] }
 0x243   : > { %1169 = vadd.xlane.f32.xlu0 %v2937_v36  ;;  %1360 = vadd.xlane.f32.xlu1 %v1302_v63 }
 0x247   : > { %1330 = vadd.xlane.f32.xlu0 %v1287_v0  ;;  %1139 = vadd.xlane.f32.xlu1 %v2958_v42  ;;  %v1088_v0 = vld [vmem:[#allocation2 + $0x28] sm:$0xff] }
 0x24b   : > { %1362 = vadd.xlane.f32.xlu0 %v1303_v1  ;;  %1171 = vadd.xlane.f32.xlu1 %v2962_v43  ;;  %v1248_v1 = vld [vmem:[#allocation3 + $0x20] sm:$0xff] }
 0x24f   : > { %1141 = vadd.xlane.f32.xlu0 %v2952_v40  ;;  %1332 = vadd.xlane.f32.xlu1 %v1288_v2  ;;  %v1102_v40 = vld [vmem:[#allocation2 + $0x98] sm:$0xff] }
 0x253   : > { %1173 = vadd.xlane.f32.xlu0 %v2954_v41  ;;  %1364 = vadd.xlane.f32.xlu1 %v1304_v3  ;;  %v1246_v41 = vld [vmem:[#allocation3 + $0x10] sm:$0xff] }
 0x257   : > { %1334 = vadd.xlane.f32.xlu0 %v1289_v4  ;;  %1143 = vadd.xlane.f32.xlu1 %v2976_v47  ;;  %v1262_v47 = vld [vmem:[#allocation3 + $0x90] sm:$0xff] }
 0x25b   : > { %1366 = vadd.xlane.f32.xlu0 %v1305_v5  ;;  %1175 = vadd.xlane.f32.xlu1 %v2980_v48 }
 0x25f   : > { %1145 = vadd.xlane.f32.xlu0 %v2970_v45  ;;  %1336 = vadd.xlane.f32.xlu1 %v1290_v6  ;;  %v1104_v6 = vld [vmem:[#allocation2 + $0xa8] sm:$0xff] }
 0x263   : > { %1177 = vadd.xlane.f32.xlu0 %v2972_v46  ;;  %1368 = vadd.xlane.f32.xlu1 %v1306_v7  ;;  %v1085_v46 = vld [vmem:[#allocation2 + $0x10] sm:$0xff]  ;;  %v1264_v7 = vld [vmem:[#allocation3 + $0xa0] sm:$0xff] }
 0x267   : > { %1338 = vadd.xlane.f32.xlu0 %v1291_v8 }
 0x26b   : > { %1370 = vadd.xlane.f32.xlu0 %v1307_v9 }
 0x278   : > { %v1150_v12 = vpop.xlane.xlu0 %1149  ;;  %v1118_v13 = vpop.xlane.xlu1 %1117 }
 0x279   : > { %v1196_v14 = vadd.f32 %v1150_v12, %v1100_v10  ;;  %v1180_v15 = vadd.f32 %v1118_v13, %v1084_v11  ;;  %v1249_v12 = vld [vmem:[#allocation3 + $0x28] sm:$0xff]  ;;  %v1089_v13 = vld [vmem:[#allocation2 + $0x30] sm:$0xff] }
 0x27b   : > { %1229 = vst.msk [vmem:[#allocation2 + $0x88] sm:$0xff] %vm1211_vm1, %v1196_v14  ;;  %1213 = vst.msk [vmem:[#allocation2 + $0x8] sm:$0xff] %vm1211_vm1, %v1180_v15 }
 0x27c   : > { %v1148_v18 = vpop.xlane.xlu1 %1147  ;;  %v1116_v19 = vpop.xlane.xlu0 %1115 }
 0x27d   : > { %v1195_v20 = vadd.f32 %v1148_v18, %v1099_v16  ;;  %v1179_v21 = vadd.f32 %v1116_v19, %v1083_v17  ;;  %v1265_v18 = vld [vmem:[#allocation3 + $0xa8] sm:$0xff]  ;;  %v1105_v19 = vld [vmem:[#allocation2 + $0xb0] sm:$0xff] }
 0x27f   : > { %1228 = vst.msk [vmem:[#allocation2 + $0x80] sm:$0xff] %vm1211_vm1, %v1195_v20  ;;  %1212 = vst.msk [vmem:[#allocation2] sm:$0xff] %vm1211_vm1, %v1179_v21 }
 0x280   : > { %v1311_v24 = vpop.xlane.xlu0 %1310  ;;  %v1309_v25 = vpop.xlane.xlu1 %1308 }
 0x281   : > { %v1373_v26 = vadd.f32 %v1311_v24, %v1245_v22  ;;  %v1372_v27 = vadd.f32 %v1309_v25, %v1244_v23  ;;  %v1090_v24 = vld [vmem:[#allocation2 + $0x38] sm:$0xff]  ;;  %v1250_v25 = vld [vmem:[#allocation3 + $0x30] sm:$0xff] }
 0x283   : > { %1405 = vst.msk [vmem:[#allocation3 + $0x8] sm:$0xff] %vm1211_vm1, %v1373_v26  ;;  %1404 = vst.msk [vmem:[#allocation3] sm:$0xff] %vm1211_vm1, %v1372_v27 }
 0x284   : > { %v1343_v30 = vpop.xlane.xlu0 %1342  ;;  %v1341_v31 = vpop.xlane.xlu1 %1340 }
 0x285   : > { %v1389_v32 = vadd.f32 %v1343_v30, %v1261_v28  ;;  %v1388_v33 = vadd.f32 %v1341_v31, %v1260_v29  ;;  %v1106_v30 = vld [vmem:[#allocation2 + $0xb8] sm:$0xff]  ;;  %v1266_v31 = vld [vmem:[#allocation3 + $0xb0] sm:$0xff] }
 0x287   : > { %1421 = vst.msk [vmem:[#allocation3 + $0x88] sm:$0xff] %vm1211_vm1, %v1389_v32  ;;  %1420 = vst.msk [vmem:[#allocation3 + $0x80] sm:$0xff] %vm1211_vm1, %v1388_v33 }
 0x288   : > { %v1152_v36 = vpop.xlane.xlu1 %1151  ;;  %v1122_v37 = vpop.xlane.xlu0 %1121 }
 0x289   : > { %v1197_v38 = vadd.f32 %v1152_v36, %v1101_v34  ;;  %v1182_v39 = vadd.f32 %v1122_v37, %v1086_v35  ;;  %v1251_v36 = vld [vmem:[#allocation3 + $0x38] sm:$0xff]  ;;  %v1091_v37 = vld [vmem:[#allocation2 + $0x40] sm:$0xff] }
 0x28b   : > { %1230 = vst.msk [vmem:[#allocation2 + $0x90] sm:$0xff] %vm1211_vm1, %v1197_v38  ;;  %1215 = vst.msk [vmem:[#allocation2 + $0x18] sm:$0xff] %vm1211_vm1, %v1182_v39 }
 0x28c   : > { %v1154_v42 = vpop.xlane.xlu0 %1153  ;;  %v1313_v43 = vpop.xlane.xlu1 %1312 }
 0x28d   : > { %v1198_v44 = vadd.f32 %v1154_v42, %v1102_v40  ;;  %v1374_v45 = vadd.f32 %v1313_v43, %v1246_v41  ;;  %v1267_v42 = vld [vmem:[#allocation3 + $0xb8] sm:$0xff]  ;;  %v1107_v43 = vld [vmem:[#allocation2 + $0xc0] sm:$0xff] }
 0x28f   : > { %1231 = vst.msk [vmem:[#allocation2 + $0x98] sm:$0xff] %vm1211_vm1, %v1198_v44  ;;  %1406 = vst.msk [vmem:[#allocation3 + $0x10] sm:$0xff] %vm1211_vm1, %v1374_v45 }
 0x290   : > { %v1120_v48 = vpop.xlane.xlu0 %1119  ;;  %v1345_v49 = vpop.xlane.xlu1 %1344 }
 0x291   : > { %v1181_v50 = vadd.f32 %v1120_v48, %v1085_v46  ;;  %v1390_v51 = vadd.f32 %v1345_v49, %v1262_v47  ;;  %v1092_v48 = vld [vmem:[#allocation2 + $0x48] sm:$0xff]  ;;  %v1252_v49 = vld [vmem:[#allocation3 + $0x40] sm:$0xff] }
 0x293   : > { %1214 = vst.msk [vmem:[#allocation2 + $0x10] sm:$0xff] %vm1211_vm1, %v1181_v50  ;;  %1422 = vst.msk [vmem:[#allocation3 + $0x90] sm:$0xff] %vm1211_vm1, %v1390_v51 }
 0x294   : > { %v1315_v54 = vpop.xlane.xlu0 %1314  ;;  %v1124_v55 = vpop.xlane.xlu1 %1123 }
 0x295   : > { %v1375_v56 = vadd.f32 %v1315_v54, %v1247_v52  ;;  %v1183_v57 = vadd.f32 %v1124_v55, %v1087_v53  ;;  %v1108_v54 = vld [vmem:[#allocation2 + $0xc8] sm:$0xff]  ;;  %v1268_v55 = vld [vmem:[#allocation3 + $0xc0] sm:$0xff] }
 0x297   : > { %1407 = vst.msk [vmem:[#allocation3 + $0x18] sm:$0xff] %vm1211_vm1, %v1375_v56  ;;  %1216 = vst.msk [vmem:[#allocation2 + $0x20] sm:$0xff] %vm1211_vm1, %v1183_v57 }
 0x298   : > { %v1347_v60 = vpop.xlane.xlu0 %1346  ;;  %v1156_v61 = vpop.xlane.xlu1 %1155 }
 0x299   : > { %v1391_v62 = vadd.f32 %v1347_v60, %v1263_v58  ;;  %v1199_v63 = vadd.f32 %v1156_v61, %v1103_v59  ;;  %v1253_v60 = vld [vmem:[#allocation3 + $0x48] sm:$0xff]  ;;  %v1093_v61 = vld [vmem:[#allocation2 + $0x50] sm:$0xff] }
 0x29b   : > { %1423 = vst.msk [vmem:[#allocation3 + $0x98] sm:$0xff] %vm1211_vm1, %v1391_v62  ;;  %1232 = vst.msk [vmem:[#allocation2 + $0xa0] sm:$0xff] %vm1211_vm1, %v1199_v63 }
 0x29c   : > { %v1126_v2 = vpop.xlane.xlu0 %1125  ;;  %v1317_v3 = vpop.xlane.xlu1 %1316 }
 0x29d   : > { %v1184_v4 = vadd.f32 %v1126_v2, %v1088_v0  ;;  %v1376_v5 = vadd.f32 %v1317_v3, %v1248_v1  ;;  %v1269_v2 = vld [vmem:[#allocation3 + $0xc8] sm:$0xff]  ;;  %v1109_v3 = vld [vmem:[#allocation2 + $0xd0] sm:$0xff] }
 0x29f   : > { %1217 = vst.msk [vmem:[#allocation2 + $0x28] sm:$0xff] %vm1211_vm1, %v1184_v4  ;;  %1408 = vst.msk [vmem:[#allocation3 + $0x20] sm:$0xff] %vm1211_vm1, %v1376_v5 }
 0x2a0   : > { %v1158_v8 = vpop.xlane.xlu0 %1157  ;;  %v1349_v9 = vpop.xlane.xlu1 %1348 }
 0x2a1   : > { %v1200_v10 = vadd.f32 %v1158_v8, %v1104_v6  ;;  %v1392_v11 = vadd.f32 %v1349_v9, %v1264_v7  ;;  %v1094_v8 = vld [vmem:[#allocation2 + $0x58] sm:$0xff]  ;;  %v1254_v9 = vld [vmem:[#allocation3 + $0x50] sm:$0xff] }
 0x2a3   : > { %1233 = vst.msk [vmem:[#allocation2 + $0xa8] sm:$0xff] %vm1211_vm1, %v1200_v10  ;;  %1424 = vst.msk [vmem:[#allocation3 + $0xa0] sm:$0xff] %vm1211_vm1, %v1392_v11 }
 0x2a4   : > { %v1319_v14 = vpop.xlane.xlu0 %1318  ;;  %v1128_v15 = vpop.xlane.xlu1 %1127 }
 0x2a5   : > { %v1377_v16 = vadd.f32 %v1319_v14, %v1249_v12  ;;  %v1185_v17 = vadd.f32 %v1128_v15, %v1089_v13  ;;  %v1110_v14 = vld [vmem:[#allocation2 + $0xd8] sm:$0xff]  ;;  %v1270_v15 = vld [vmem:[#allocation3 + $0xd0] sm:$0xff] }
 0x2a7   : > { %1409 = vst.msk [vmem:[#allocation3 + $0x28] sm:$0xff] %vm1211_vm1, %v1377_v16  ;;  %1218 = vst.msk [vmem:[#allocation2 + $0x30] sm:$0xff] %vm1211_vm1, %v1185_v17 }
 0x2a8   : > { %v1351_v20 = vpop.xlane.xlu0 %1350  ;;  %v1160_v21 = vpop.xlane.xlu1 %1159 }
 0x2a9   : > { %v1393_v22 = vadd.f32 %v1351_v20, %v1265_v18  ;;  %v1201_v23 = vadd.f32 %v1160_v21, %v1105_v19  ;;  %v1255_v20 = vld [vmem:[#allocation3 + $0x58] sm:$0xff]  ;;  %v1095_v21 = vld [vmem:[#allocation2 + $0x60] sm:$0xff] }
 0x2ab   : > { %1425 = vst.msk [vmem:[#allocation3 + $0xa8] sm:$0xff] %vm1211_vm1, %v1393_v22  ;;  %1234 = vst.msk [vmem:[#allocation2 + $0xb0] sm:$0xff] %vm1211_vm1, %v1201_v23 }
 0x2ac   : > { %v1130_v26 = vpop.xlane.xlu0 %1129  ;;  %v1321_v27 = vpop.xlane.xlu1 %1320 }
 0x2ad   : > { %v1186_v28 = vadd.f32 %v1130_v26, %v1090_v24  ;;  %v1378_v29 = vadd.f32 %v1321_v27, %v1250_v25  ;;  %v1271_v26 = vld [vmem:[#allocation3 + $0xd8] sm:$0xff]  ;;  %v1111_v27 = vld [vmem:[#allocation2 + $0xe0] sm:$0xff] }
 0x2af   : > { %1219 = vst.msk [vmem:[#allocation2 + $0x38] sm:$0xff] %vm1211_vm1, %v1186_v28  ;;  %1410 = vst.msk [vmem:[#allocation3 + $0x30] sm:$0xff] %vm1211_vm1, %v1378_v29 }
 0x2b0   : > { %v1162_v32 = vpop.xlane.xlu0 %1161  ;;  %v1353_v33 = vpop.xlane.xlu1 %1352 }
 0x2b1   : > { %v1202_v34 = vadd.f32 %v1162_v32, %v1106_v30  ;;  %v1394_v35 = vadd.f32 %v1353_v33, %v1266_v31  ;;  %v1096_v32 = vld [vmem:[#allocation2 + $0x68] sm:$0xff]  ;;  %v1256_v33 = vld [vmem:[#allocation3 + $0x60] sm:$0xff] }
 0x2b3   : > { %1235 = vst.msk [vmem:[#allocation2 + $0xb8] sm:$0xff] %vm1211_vm1, %v1202_v34  ;;  %1426 = vst.msk [vmem:[#allocation3 + $0xb0] sm:$0xff] %vm1211_vm1, %v1394_v35 }
 0x2b4   : > { %v1323_v38 = vpop.xlane.xlu0 %1322  ;;  %v1132_v39 = vpop.xlane.xlu1 %1131 }
 0x2b5   : > { %v1379_v40 = vadd.f32 %v1323_v38, %v1251_v36  ;;  %v1187_v41 = vadd.f32 %v1132_v39, %v1091_v37  ;;  %v1112_v38 = vld [vmem:[#allocation2 + $0xe8] sm:$0xff]  ;;  %v1272_v39 = vld [vmem:[#allocation3 + $0xe0] sm:$0xff] }
 0x2b7   : > { %1411 = vst.msk [vmem:[#allocation3 + $0x38] sm:$0xff] %vm1211_vm1, %v1379_v40  ;;  %1220 = vst.msk [vmem:[#allocation2 + $0x40] sm:$0xff] %vm1211_vm1, %v1187_v41 }
 0x2b8   : > { %v1355_v44 = vpop.xlane.xlu0 %1354  ;;  %v1164_v45 = vpop.xlane.xlu1 %1163 }
 0x2b9   : > { %v1395_v46 = vadd.f32 %v1355_v44, %v1267_v42  ;;  %v1203_v47 = vadd.f32 %v1164_v45, %v1107_v43  ;;  %v1257_v44 = vld [vmem:[#allocation3 + $0x68] sm:$0xff]  ;;  %v1097_v45 = vld [vmem:[#allocation2 + $0x70] sm:$0xff] }
 0x2bb   : > { %1427 = vst.msk [vmem:[#allocation3 + $0xb8] sm:$0xff] %vm1211_vm1, %v1395_v46  ;;  %1236 = vst.msk [vmem:[#allocation2 + $0xc0] sm:$0xff] %vm1211_vm1, %v1203_v47 }
 0x2bc   : > { %v1134_v50 = vpop.xlane.xlu0 %1133  ;;  %v1325_v51 = vpop.xlane.xlu1 %1324 }
 0x2bd   : > { %v1188_v52 = vadd.f32 %v1134_v50, %v1092_v48  ;;  %v1380_v53 = vadd.f32 %v1325_v51, %v1252_v49  ;;  %v1273_v50 = vld [vmem:[#allocation3 + $0xe8] sm:$0xff]  ;;  %v1113_v51 = vld [vmem:[#allocation2 + $0xf0] sm:$0xff] }
 0x2bf   : > { %1221 = vst.msk [vmem:[#allocation2 + $0x48] sm:$0xff] %vm1211_vm1, %v1188_v52  ;;  %1412 = vst.msk [vmem:[#allocation3 + $0x40] sm:$0xff] %vm1211_vm1, %v1380_v53 }
 0x2c0   : > { %v1166_v56 = vpop.xlane.xlu0 %1165  ;;  %v1357_v57 = vpop.xlane.xlu1 %1356 }
 0x2c1   : > { %v1204_v58 = vadd.f32 %v1166_v56, %v1108_v54  ;;  %v1396_v59 = vadd.f32 %v1357_v57, %v1268_v55  ;;  %v1098_v56 = vld [vmem:[#allocation2 + $0x78] sm:$0xff]  ;;  %v1258_v57 = vld [vmem:[#allocation3 + $0x70] sm:$0xff] }
 0x2c3   : > { %1237 = vst.msk [vmem:[#allocation2 + $0xc8] sm:$0xff] %vm1211_vm1, %v1204_v58  ;;  %1428 = vst.msk [vmem:[#allocation3 + $0xc0] sm:$0xff] %vm1211_vm1, %v1396_v59 }
 0x2c4   : > { %v1327_v62 = vpop.xlane.xlu0 %1326  ;;  %v1136_v63 = vpop.xlane.xlu1 %1135 }
 0x2c5   : > { %v1381_v0 = vadd.f32 %v1327_v62, %v1253_v60  ;;  %v1189_v1 = vadd.f32 %v1136_v63, %v1093_v61  ;;  %v1114_v62 = vld [vmem:[#allocation2 + $0xf8] sm:$0xff]  ;;  %v1274_v63 = vld [vmem:[#allocation3 + $0xf0] sm:$0xff] }
 0x2c7   : > { %1413 = vst.msk [vmem:[#allocation3 + $0x48] sm:$0xff] %vm1211_vm1, %v1381_v0  ;;  %1222 = vst.msk [vmem:[#allocation2 + $0x50] sm:$0xff] %vm1211_vm1, %v1189_v1 }
 0x2c8   : > { %v1359_v4 = vpop.xlane.xlu0 %1358  ;;  %v1168_v5 = vpop.xlane.xlu1 %1167 }
 0x2c9   : > { %v1397_v6 = vadd.f32 %v1359_v4, %v1269_v2  ;;  %v1205_v7 = vadd.f32 %v1168_v5, %v1109_v3  ;;  %v1259_v4 = vld [vmem:[#allocation3 + $0x78] sm:$0xff] }
 0x2cb   : > { %1429 = vst.msk [vmem:[#allocation3 + $0xc8] sm:$0xff] %vm1211_vm1, %v1397_v6  ;;  %1238 = vst.msk [vmem:[#allocation2 + $0xd0] sm:$0xff] %vm1211_vm1, %v1205_v7  ;;  %v1275_v7 = vld [vmem:[#allocation3 + $0xf8] sm:$0xff] }
 0x2cc   : > { %v1138_v10 = vpop.xlane.xlu0 %1137  ;;  %v1329_v11 = vpop.xlane.xlu1 %1328 }
 0x2cd   : > { %v1190_v12 = vadd.f32 %v1138_v10, %v1094_v8  ;;  %v1382_v13 = vadd.f32 %v1329_v11, %v1254_v9  ;;  %v1440_v10 = vld [vmem:[#allocation2] sm:$0xff] (!%p2035_p11)  ;;  %v1441_v11 = vld [vmem:[#allocation2 + $0x8] sm:$0xff] (!%p2035_p11) }
 0x2cf   : > { %1223 = vst.msk [vmem:[#allocation2 + $0x58] sm:$0xff] %vm1211_vm1, %v1190_v12  ;;  %1414 = vst.msk [vmem:[#allocation3 + $0x50] sm:$0xff] %vm1211_vm1, %v1382_v13  ;;  %v1442_v12 = vld [vmem:[#allocation2 + $0x10] sm:$0xff] (!%p2035_p11)  ;;  %v1472_v13 = vmul.f32 (!%p2035_p11), 0.00390625, %v1440_v10 }
 0x2d0   : > { %v1170_v16 = vpop.xlane.xlu0 %1169  ;;  %v1361_v17 = vpop.xlane.xlu1 %1360 }
 0x2d1   : > { %v1206_v18 = vadd.f32 %v1170_v16, %v1110_v14  ;;  %v1398_v19 = vadd.f32 %v1361_v17, %v1270_v15  ;;  %v1473_v14 = vmul.f32 (!%p2035_p11), 0.00390625, %v1441_v11  ;;  %v1474_v15 = vmul.f32 (!%p2035_p11), 0.00390625, %v1442_v12  ;;  %v1443_v16 = vld [vmem:[#allocation2 + $0x18] sm:$0xff] (!%p2035_p11)  ;;  %v1444_v17 = vld [vmem:[#allocation2 + $0x20] sm:$0xff] (!%p2035_p11)  ;;  %1664 = vst.msk [vmem:[%s3567_s7] sm:$0xff] (!%p2035_p11), %vm1211_vm1, %v1472_v13 }
 0x2d3   : > { %1239 = vst.msk [vmem:[#allocation2 + $0xd8] sm:$0xff] %vm1211_vm1, %v1206_v18  ;;  %1430 = vst.msk [vmem:[#allocation3 + $0xd0] sm:$0xff] %vm1211_vm1, %v1398_v19  ;;  %v1445_v18 = vld [vmem:[#allocation2 + $0x28] sm:$0xff] (!%p2035_p11)  ;;  %v1475_v19 = vmul.f32 (!%p2035_p11), 0.00390625, %v1443_v16 }
 0x2d4   : > { %v1331_v22 = vpop.xlane.xlu0 %1330  ;;  %v1140_v23 = vpop.xlane.xlu1 %1139  ;;  %1665 = vst.msk [vmem:[%s3567_s7 + $0x8] sm:$0xff] (!%p2035_p11), %vm1211_vm1, %v1473_v14  ;;  %1666 = vst.msk [vmem:[%s3567_s7 + $0x10] sm:$0xff] (!%p2035_p11), %vm1211_vm1, %v1474_v15 }
 0x2d5   : > { %v1383_v24 = vadd.f32 %v1331_v22, %v1255_v20  ;;  %v1191_v25 = vadd.f32 %v1140_v23, %v1095_v21  ;;  %v1476_v20 = vmul.f32 (!%p2035_p11), 0.00390625, %v1444_v17  ;;  %v1477_v21 = vmul.f32 (!%p2035_p11), 0.00390625, %v1445_v18  ;;  %v1446_v22 = vld [vmem:[#allocation2 + $0x30] sm:$0xff] (!%p2035_p11)  ;;  %v1447_v23 = vld [vmem:[#allocation2 + $0x38] sm:$0xff] (!%p2035_p11)  ;;  %1667 = vst.msk [vmem:[%s3567_s7 + $0x18] sm:$0xff] (!%p2035_p11), %vm1211_vm1, %v1475_v19 }
 0x2d7   : > { %1415 = vst.msk [vmem:[#allocation3 + $0x58] sm:$0xff] %vm1211_vm1, %v1383_v24  ;;  %1224 = vst.msk [vmem:[#allocation2 + $0x60] sm:$0xff] %vm1211_vm1, %v1191_v25  ;;  %v1448_v24 = vld [vmem:[#allocation2 + $0x40] sm:$0xff] (!%p2035_p11)  ;;  %v1478_v25 = vmul.f32 (!%p2035_p11), 0.00390625, %v1446_v22 }
 0x2d8   : > { %v1363_v28 = vpop.xlane.xlu0 %1362  ;;  %v1172_v29 = vpop.xlane.xlu1 %1171  ;;  %1668 = vst.msk [vmem:[%s3567_s7 + $0x20] sm:$0xff] (!%p2035_p11), %vm1211_vm1, %v1476_v20  ;;  %1669 = vst.msk [vmem:[%s3567_s7 + $0x28] sm:$0xff] (!%p2035_p11), %vm1211_vm1, %v1477_v21 }
 0x2d9   : > { %v1399_v30 = vadd.f32 %v1363_v28, %v1271_v26  ;;  %v1207_v31 = vadd.f32 %v1172_v29, %v1111_v27  ;;  %v1449_v26 = vld [vmem:[#allocation2 + $0x48] sm:$0xff] (!%p2035_p11)  ;;  %v1450_v27 = vld [vmem:[#allocation2 + $0x50] sm:$0xff] (!%p2035_p11)  ;;  %v1451_v28 = vld [vmem:[#allocation2 + $0x58] sm:$0xff] (!%p2035_p11)  ;;  %v3131_v29 = vmul.f32 (!%p2035_p11), %v1472_v13, %v1472_v13  ;;  %1670 = vst.msk [vmem:[%s3567_s7 + $0x30] sm:$0xff] (!%p2035_p11), %vm1211_vm1, %v1478_v25 }
 0x2da   : > { %v1467_v11 = vld [vmem:[#allocation2 + $0xd8] sm:$0xff] (!%p2035_p11) }
 0x2db   : > { %1431 = vst.msk [vmem:[#allocation3 + $0xd8] sm:$0xff] %vm1211_vm1, %v1399_v30  ;;  %1240 = vst.msk [vmem:[#allocation2 + $0xe0] sm:$0xff] %vm1211_vm1, %v1207_v31  ;;  %v3133_v30 = vmul.f32 (!%p2035_p11), %v1473_v14, %v1473_v14  ;;  %v1479_v31 = vmul.f32 (!%p2035_p11), 0.00390625, %v1447_v23 }
 0x2dc   : > { %v1142_v34 = vpop.xlane.xlu0 %1141  ;;  %v1333_v35 = vpop.xlane.xlu1 %1332 }
 0x2dd   : > { %v1192_v36 = vadd.f32 %v1142_v34, %v1096_v32  ;;  %v1384_v37 = vadd.f32 %v1333_v35, %v1256_v33  ;;  %v3147_v35 = vmul.f32 (!%p2035_p11), %v1474_v15, %v1474_v15  ;;  %1671 = vst.msk [vmem:[%s3567_s7 + $0x38] sm:$0xff] (!%p2035_p11), %vm1211_vm1, %v1479_v31 }
 0x2de   : > { %v1452_v32 = vld [vmem:[#allocation2 + $0x60] sm:$0xff] (!%p2035_p11) }
 0x2df   : > { %1225 = vst.msk [vmem:[#allocation2 + $0x68] sm:$0xff] %vm1211_vm1, %v1192_v36  ;;  %1416 = vst.msk [vmem:[#allocation3 + $0x60] sm:$0xff] %vm1211_vm1, %v1384_v37  ;;  %v1480_v36 = vmul.f32 (!%p2035_p11), 0.00390625, %v1448_v24  ;;  %v1481_v37 = vmul.f32 (!%p2035_p11), 0.00390625, %v1449_v26 }
 0x2e0   : > { %v1174_v40 = vpop.xlane.xlu0 %1173  ;;  %v1365_v41 = vpop.xlane.xlu1 %1364 }
 0x2e1   : > { %v1208_v42 = vadd.f32 %v1174_v40, %v1112_v38  ;;  %v1400_v43 = vadd.f32 %v1365_v41, %v1272_v39  ;;  %v1482_v38 = vmul.f32 (!%p2035_p11), 0.00390625, %v1450_v27  ;;  %v3153_v40 = vmul.f32 (!%p2035_p11), %v1475_v19, %v1475_v19  ;;  %1672 = vst.msk [vmem:[%s3567_s7 + $0x40] sm:$0xff] (!%p2035_p11), %vm1211_vm1, %v1480_v36  ;;  %1673 = vst.msk [vmem:[%s3567_s7 + $0x48] sm:$0xff] (!%p2035_p11), %vm1211_vm1, %v1481_v37 }
 0x2e2   : > { %v1483_v41 = vmul.f32 (!%p2035_p11), 0.00390625, %v1451_v28  ;;  %v1468_v12 = vld [vmem:[#allocation2 + $0xe0] sm:$0xff] (!%p2035_p11) }
 0x2e3   : > { %1241 = vst.msk [vmem:[#allocation2 + $0xe8] sm:$0xff] %vm1211_vm1, %v1208_v42  ;;  %1432 = vst.msk [vmem:[#allocation3 + $0xe0] sm:$0xff] %vm1211_vm1, %v1400_v43  ;;  %v1484_v42 = vmul.f32 (!%p2035_p11), 0.00390625, %v1452_v32  ;;  %v1500_v26 = vmul.f32 (!%p2035_p11), 0.00390625, %v1468_v12  ;;  %v1504_v28 = vld [vmem:[#allocation3] sm:$0xff] (!%p2035_p11)  ;;  %v1506_v32 = vld [vmem:[#allocation3 + $0x10] sm:$0xff] (!%p2035_p11) }
 0x2e4   : > { %v1335_v46 = vpop.xlane.xlu0 %1334  ;;  %v1144_v47 = vpop.xlane.xlu1 %1143  ;;  %1674 = vst.msk [vmem:[%s3567_s7 + $0x50] sm:$0xff] (!%p2035_p11), %vm1211_vm1, %v1482_v38  ;;  %1675 = vst.msk [vmem:[%s3567_s7 + $0x58] sm:$0xff] (!%p2035_p11), %vm1211_vm1, %v1483_v41 }
 0x2e5   : > { %v1385_v48 = vadd.f32 %v1335_v46, %v1257_v44  ;;  %v1193_v49 = vadd.f32 %v1144_v47, %v1097_v45  ;;  %v1456_v44 = vld [vmem:[#allocation2 + $0x80] sm:$0xff] (!%p2035_p11)  ;;  %v1457_v45 = vld [vmem:[#allocation2 + $0x88] sm:$0xff] (!%p2035_p11)  ;;  %v1458_v46 = vld [vmem:[#allocation2 + $0x90] sm:$0xff] (!%p2035_p11)  ;;  %v3159_v47 = vmul.f32 (!%p2035_p11), %v1476_v20, %v1476_v20  ;;  %1676 = vst.msk [vmem:[%s3567_s7 + $0x60] sm:$0xff] (!%p2035_p11), %vm1211_vm1, %v1484_v42 }
 0x2e6   : > { %v1453_v33 = vld [vmem:[#allocation2 + $0x68] sm:$0xff] (!%p2035_p11)  ;;  %1692 = vst.msk [vmem:[%s3567_s7 + $0xe0] sm:$0xff] (!%p2035_p11), %vm1211_vm1, %v1500_v26 }
 0x2e7   : > { %1417 = vst.msk [vmem:[#allocation3 + $0x68] sm:$0xff] %vm1211_vm1, %v1385_v48  ;;  %1226 = vst.msk [vmem:[#allocation2 + $0x70] sm:$0xff] %vm1211_vm1, %v1193_v49  ;;  %v1485_v43 = vmul.f32 (!%p2035_p11), 0.00390625, %v1453_v33  ;;  %v3161_v48 = vmul.f32 (!%p2035_p11), %v1477_v21, %v1477_v21  ;;  %v3163_v49 = vmul.f32 (!%p2035_p11), %v1478_v25, %v1478_v25  ;;  %v1499_v25 = vmul.f32 (!%p2035_p11), 0.00390625, %v1467_v11 }
 0x2e8   : > { %v1367_v52 = vpop.xlane.xlu0 %1366  ;;  %v1176_v53 = vpop.xlane.xlu1 %1175 }
 0x2e9   : > { %v1401_v54 = vadd.f32 %v1367_v52, %v1273_v50  ;;  %v1209_v55 = vadd.f32 %v1176_v53, %v1113_v51  ;;  %v1459_v51 = vld [vmem:[#allocation2 + $0x98] sm:$0xff] (!%p2035_p11)  ;;  %v1460_v52 = vld [vmem:[#allocation2 + $0xa0] sm:$0xff] (!%p2035_p11)  ;;  %v1461_v53 = vld [vmem:[#allocation2 + $0xa8] sm:$0xff] (!%p2035_p11)  ;;  %1677 = vst.msk [vmem:[%s3567_s7 + $0x68] sm:$0xff] (!%p2035_p11), %vm1211_vm1, %v1485_v43 }
 0x2ea   : > { %v1469_v13 = vld [vmem:[#allocation2 + $0xe8] sm:$0xff] (!%p2035_p11)  ;;  %1691 = vst.msk [vmem:[%s3567_s7 + $0xd8] sm:$0xff] (!%p2035_p11), %vm1211_vm1, %v1499_v25 }
 0x2eb   : > { %1433 = vst.msk [vmem:[#allocation3 + $0xe8] sm:$0xff] %vm1211_vm1, %v1401_v54  ;;  %1242 = vst.msk [vmem:[#allocation2 + $0xf0] sm:$0xff] %vm1211_vm1, %v1209_v55  ;;  %v3177_v54 = vmul.f32 (!%p2035_p11), %v1479_v31, %v1479_v31  ;;  %v3179_v55 = vmul.f32 (!%p2035_p11), %v1480_v36, %v1480_v36  ;;  %v1501_v27 = vmul.f32 (!%p2035_p11), 0.00390625, %v1469_v13  ;;  %v1505_v31 = vld [vmem:[#allocation3 + $0x8] sm:$0xff] (!%p2035_p11) }
 0x2ec   : > { %v1146_v58 = vpop.xlane.xlu0 %1145  ;;  %v1337_v59 = vpop.xlane.xlu1 %1336 }
 0x2ed   : > { %v1194_v60 = vadd.f32 %v1146_v58, %v1098_v56  ;;  %v1386_v61 = vadd.f32 %v1337_v59, %v1258_v57  ;;  %v3181_v56 = vmul.f32 (!%p2035_p11), %v1481_v37, %v1481_v37  ;;  %v1462_v58 = vld [vmem:[#allocation2 + $0xb0] sm:$0xff] (!%p2035_p11)  ;;  %v3195_v59 = vmul.f32 (!%p2035_p11), %v1482_v38, %v1482_v38  ;;  %v1507_v38 = vld [vmem:[#allocation3 + $0x18] sm:$0xff] (!%p2035_p11)  ;;  %1693 = vst.msk [vmem:[%s3567_s7 + $0xe8] sm:$0xff] (!%p2035_p11), %vm1211_vm1, %v1501_v27 }
 0x2ee   : > { %v1454_v34 = vld [vmem:[#allocation2 + $0x70] sm:$0xff] (!%p2035_p11)  ;;  %v1494_v10 = vmul.f32 (!%p2035_p11), 0.00390625, %v1462_v58  ;;  %v3302_v58 = vmul.f32 (!%p2035_p11), %v1499_v25, %v1499_v25 }
 0x2ef   : > { %1227 = vst.msk [vmem:[#allocation2 + $0x78] sm:$0xff] %vm1211_vm1, %v1194_v60  ;;  %1418 = vst.msk [vmem:[#allocation3 + $0x70] sm:$0xff] %vm1211_vm1, %v1386_v61  ;;  %v1486_v50 = vmul.f32 (!%p2035_p11), 0.00390625, %v1454_v34  ;;  %v1488_v60 = vmul.f32 (!%p2035_p11), 0.00390625, %v1456_v44  ;;  %v1489_v61 = vmul.f32 (!%p2035_p11), 0.00390625, %v1457_v45 }
 0x2f0   : > { %v1178_v0 = vpop.xlane.xlu0 %1177  ;;  %v1369_v1 = vpop.xlane.xlu1 %1368  ;;  %1686 = vst.msk [vmem:[%s3567_s7 + $0xb0] sm:$0xff] (!%p2035_p11), %vm1211_vm1, %v1494_v10  ;;  %v3259_v36 = vmul.f32 (!%p2035_p11), %v1494_v10, %v1494_v10 }
 0x2f1   : > { %v1210_v2 = vadd.f32 %v1178_v0, %v1114_v62  ;;  %v1402_v3 = vadd.f32 %v1369_v1, %v1274_v63  ;;  %1678 = vst.msk [vmem:[%s3567_s7 + $0x70] sm:$0xff] (!%p2035_p11), %vm1211_vm1, %v1486_v50  ;;  %v1490_v62 = vmul.f32 (!%p2035_p11), 0.00390625, %v1458_v46  ;;  %v1463_v63 = vld [vmem:[#allocation2 + $0xb8] sm:$0xff] (!%p2035_p11)  ;;  %v3201_v0 = vmul.f32 (!%p2035_p11), %v1483_v41, %v1483_v41  ;;  %1680 = vst.msk [vmem:[%s3567_s7 + $0x80] sm:$0xff] (!%p2035_p11), %vm1211_vm1, %v1488_v60  ;;  %v1509_v41 = vld [vmem:[#allocation3 + $0x28] sm:$0xff] (!%p2035_p11) }
 0x2f2   : > { %v1491_v1 = vmul.f32 (!%p2035_p11), 0.00390625, %v1459_v51  ;;  %1681 = vst.msk [vmem:[%s3567_s7 + $0x88] sm:$0xff] (!%p2035_p11), %vm1211_vm1, %v1489_v61  ;;  %v3227_v15 = vmul.f32 (!%p2035_p11), %v1488_v60, %v1488_v60  ;;  %v3229_v16 = vmul.f32 (!%p2035_p11), %v1489_v61, %v1489_v61  ;;  %v1495_v17 = vmul.f32 (!%p2035_p11), 0.00390625, %v1463_v63  ;;  %v1470_v18 = vld [vmem:[#allocation2 + $0xf0] sm:$0xff] (!%p2035_p11) }
 0x2f3   : > { %1243 = vst.msk [vmem:[#allocation2 + $0xf8] sm:$0xff] %vm1211_vm1, %v1210_v2  ;;  %1434 = vst.msk [vmem:[#allocation3 + $0xf0] sm:$0xff] %vm1211_vm1, %v1402_v3  ;;  %v1492_v2 = vmul.f32 (!%p2035_p11), 0.00390625, %v1460_v52  ;;  %v1493_v3 = vmul.f32 (!%p2035_p11), 0.00390625, %v1461_v53  ;;  %v3243_v19 = vmul.f32 (!%p2035_p11), %v1490_v62, %v1490_v62  ;;  %v3273_v37 = vmul.f32 (!%p2035_p11), 0.00390625, %v1470_v18  ;;  %v1510_v46 = vld [vmem:[#allocation3 + $0x30] sm:$0xff] (!%p2035_p11) }
 0x2f4   : > { %v1339_v5 = vpop.xlane.xlu0 %1338  ;;  %1682 = vst.msk [vmem:[%s3567_s7 + $0x90] sm:$0xff] (!%p2035_p11), %vm1211_vm1, %v1490_v62  ;;  %1683 = vst.msk [vmem:[%s3567_s7 + $0x98] sm:$0xff] (!%p2035_p11), %vm1211_vm1, %v1491_v1  ;;  %v3249_v24 = vmul.f32 (!%p2035_p11), %v1491_v1, %v1491_v1  ;;  %v1536_v51 = vmul.f32 (!%p2035_p11), 0.00390625, %v1504_v28  ;;  %v1537_v52 = vmul.f32 (!%p2035_p11), 0.00390625, %v1505_v31  ;;  %v1538_v53 = vmul.f32 (!%p2035_p11), 0.00390625, %v1506_v32  ;;  %v1512_v18 = vld [vmem:[#allocation3 + $0x40] sm:$0xff] (!%p2035_p11) }
 0x2f5   : > { %v1387_v6 = vadd.f32 %v1339_v5, %v1259_v4  ;;  %1439 = sbr.rel (%p2035_p11) target bundleno = 817 (0x331), region = 90  ;;  %v1464_v4 = vld [vmem:[#allocation2 + $0xc0] sm:$0xff] (!%p2035_p11)  ;;  %v1465_v5 = vld [vmem:[#allocation2 + $0xc8] sm:$0xff] (!%p2035_p11)  ;;  %1684 = vst.msk [vmem:[%s3567_s7 + $0xa0] sm:$0xff] (!%p2035_p11), %vm1211_vm1, %v1492_v2  ;;  %1685 = vst.msk [vmem:[%s3567_s7 + $0xa8] sm:$0xff] (!%p2035_p11), %vm1211_vm1, %v1493_v3  ;;  %v3255_v33 = vmul.f32 (!%p2035_p11), %v1492_v2, %v1492_v2  ;;  %v3257_v34 = vmul.f32 (!%p2035_p11), %v1493_v3, %v1493_v3  ;;  %v1539_v60 = vmul.f32 (!%p2035_p11), 0.00390625, %v1507_v38 }
 0x2f6   : > { %v1455_v39 = vld [vmem:[#allocation2 + $0x78] sm:$0xff] (!%p2035_p11)  ;;  %v1496_v20 = vmul.f32 (!%p2035_p11), 0.00390625, %v1464_v4  ;;  %v1497_v21 = vmul.f32 (!%p2035_p11), 0.00390625, %v1465_v5  ;;  %1687 = vst.msk [vmem:[%s3567_s7 + $0xb8] sm:$0xff] (!%p2035_p11), %vm1211_vm1, %v1495_v17  ;;  %1694 = vst.msk [vmem:[%s3567_s7 + $0xf0] sm:$0xff] (!%p2035_p11), %vm1211_vm1, %v3273_v37  ;;  %v1541_v62 = vmul.f32 (!%p2035_p11), 0.00390625, %v1509_v41  ;;  %v1600_v63 = vsub.f32 (!%p2035_p11), %v1536_v51, %v3131_v29 }
 0x2f7   : > { %1419 = vst.msk [vmem:[#allocation3 + $0x78] sm:$0xff] %vm1211_vm1, %v1387_v6  ;;  %v1487_v57 = vmul.f32 (!%p2035_p11), 0.00390625, %v1455_v39  ;;  %v1466_v6 = vld [vmem:[#allocation2 + $0xd0] sm:$0xff] (!%p2035_p11)  ;;  %v1508_v39 = vld [vmem:[#allocation3 + $0x20] sm:$0xff] (!%p2035_p11)  ;;  %v1601_v1 = vsub.f32 (!%p2035_p11), %v1537_v52, %v3133_v30  ;;  %v1602_v2 = vsub.f32 (!%p2035_p11), %v1538_v53, %v3147_v35  ;;  %v1542_v3 = vmul.f32 (!%p2035_p11), 0.00390625, %v1510_v46  ;;  %v1513_v35 = vld [vmem:[#allocation3 + $0x48] sm:$0xff] (!%p2035_p11) }
 0x2f8   : > { %v1371_v8 = vpop.xlane.xlu0 %1370  ;;  %v1498_v22 = vmul.f32 (!%p2035_p11), 0.00390625, %v1466_v6  ;;  %1688 = vst.msk [vmem:[%s3567_s7 + $0xc0] sm:$0xff] (!%p2035_p11), %vm1211_vm1, %v1496_v20  ;;  %1689 = vst.msk [vmem:[%s3567_s7 + $0xc8] sm:$0xff] (!%p2035_p11), %vm1211_vm1, %v1497_v21  ;;  %v3279_v44 = vmul.f32 (!%p2035_p11), %v1497_v21, %v1497_v21  ;;  %v1540_v61 = vmul.f32 (!%p2035_p11), 0.00390625, %v1508_v39  ;;  %v1603_v4 = vsub.f32 (!%p2035_p11), %v1539_v60, %v3153_v40  ;;  %v1516_v52 = vld [vmem:[#allocation3 + $0x60] sm:$0xff] (!%p2035_p11)  ;;  %v1517_v53 = vld [vmem:[#allocation3 + $0x68] sm:$0xff] (!%p2035_p11) }
 0x2f9   : > { %v1403_v9 = vadd.f32 %v1371_v8, %v1275_v7  ;;  %1679 = vst.msk [vmem:[%s3567_s7 + $0x78] sm:$0xff] (!%p2035_p11), %vm1211_vm1, %v1487_v57  ;;  %v3207_v7 = vmul.f32 (!%p2035_p11), %v1484_v42, %v1484_v42  ;;  %v3209_v8 = vmul.f32 (!%p2035_p11), %v1485_v43, %v1485_v43  ;;  %v3225_v14 = vmul.f32 (!%p2035_p11), %v1487_v57, %v1487_v57  ;;  %v1511_v57 = vld [vmem:[#allocation3 + $0x38] sm:$0xff] (!%p2035_p11) }
 0x2fa   : > { %v1471_v23 = vld [vmem:[#allocation2 + $0xf8] sm:$0xff] (!%p2035_p11)  ;;  %1690 = vst.msk [vmem:[%s3567_s7 + $0xd0] sm:$0xff] (!%p2035_p11), %vm1211_vm1, %v1498_v22  ;;  %v3275_v42 = vmul.f32 (!%p2035_p11), %v1495_v17, %v1495_v17  ;;  %v3277_v43 = vmul.f32 (!%p2035_p11), %v1496_v20, %v1496_v20  ;;  %v1604_v5 = vsub.f32 (!%p2035_p11), %v1540_v61, %v3159_v47  ;;  %v1605_v6 = vsub.f32 (!%p2035_p11), %v1541_v62, %v3161_v48 }
 0x2fb   : > { %1435 = vst.msk [vmem:[#allocation3 + $0xf8] sm:$0xff] %vm1211_vm1, %v1403_v9  ;;  %v3211_v9 = vmul.f32 (!%p2035_p11), %v1486_v50, %v1486_v50  ;;  %v3293_v45 = vmul.f32 (!%p2035_p11), 0.00390625, %v1471_v23  ;;  %v3295_v50 = vmul.f32 (!%p2035_p11), %v1498_v22, %v1498_v22  ;;  %v1543_v10 = vmul.f32 (!%p2035_p11), 0.00390625, %v1511_v57  ;;  %v1514_v22 = vld [vmem:[#allocation3 + $0x50] sm:$0xff] (!%p2035_p11)  ;;  %v1515_v23 = vld [vmem:[#allocation3 + $0x58] sm:$0xff] (!%p2035_p11) }
 0x2fc   : > { %v1632_v11 = vmax.f32 %v1600_v63, 0.0  ;;  %v1633_v12 = vmax.f32 %v1601_v1, 0.0  ;;  %v1634_v13 = vmax.f32 %v1602_v2, 0.0  ;;  %v1606_v17 = vsub.f32 %v1542_v3, %v3163_v49 }
 0x2fd   : > { %1695 = vst.msk [vmem:[%s3567_s7 + $0xf8] sm:$0xff] %vm1211_vm1, %v3293_v45  ;;  %v1635_v20 = vmax.f32 %v1603_v4, 0.0  ;;  %v1636_v29 = vmax.f32 %v1604_v5, 0.0  ;;  %v1637_v21 = vmax.f32 %v1605_v6, 0.0  ;;  %v1607_v30 = vsub.f32 %v1543_v10, %v3177_v54  ;;  %v1518_v6 = vld [vmem:[#allocation3 + $0x70] sm:$0xff] }
 0x2fe   : > { %v3317_v40 = vmul.f32 %v1500_v26, %v1500_v26  ;;  %v1696_v47 = vadd.f32 1e-05, %v1632_v11  ;;  %v1697_v25 = vadd.f32 1e-05, %v1633_v12  ;;  %v1698_v48 = vadd.f32 1e-05, %v1634_v13 }
 0x2ff   : > { %v3319_v28 = vmul.f32 %v1501_v27, %v1501_v27  ;;  %v1699_v31 = vadd.f32 1e-05, %v1635_v20  ;;  %v1700_v32 = vadd.f32 1e-05, %v1636_v29  ;;  %v1701_v38 = vadd.f32 1e-05, %v1637_v21 }
 0x300   : > { %2244 = vrsqrt.f32 %v1696_v47  ;;  %v1638_v49 = vmax.f32 %v1606_v17, 0.0  ;;  %v1639_v39 = vmax.f32 %v1607_v30, 0.0  ;;  %v1544_v41 = vmul.f32 0.00390625, %v1512_v18  ;;  %v1520_v12 = vld [vmem:[#allocation3 + $0x80] sm:$0xff] }
 0x301   : > { %2246 = vrsqrt.f32 %v1697_v25  ;;  %v1545_v46 = vmul.f32 0.00390625, %v1513_v35  ;;  %v1546_v54 = vmul.f32 0.00390625, %v1514_v22  ;;  %v1547_v51 = vmul.f32 0.00390625, %v1515_v23  ;;  %v1522_v22 = vld [vmem:[#allocation3 + $0x90] sm:$0xff]  ;;  %v1523_v23 = vld [vmem:[#allocation3 + $0x98] sm:$0xff] }
 0x302   : > { %2248 = vrsqrt.f32 %v1698_v48  ;;  %v1702_v26 = vadd.f32 1e-05, %v1638_v49  ;;  %v1703_v57 = vadd.f32 1e-05, %v1639_v39  ;;  %v1608_v60 = vsub.f32 %v1544_v41, %v3179_v55  ;;  %v1524_v49 = vld [vmem:[#allocation3 + $0xa0] sm:$0xff] }
 0x303   : > { %2250 = vrsqrt.f32 %v1699_v31  ;;  %v1609_v27 = vsub.f32 %v1545_v46, %v3181_v56  ;;  %v1610_v61 = vsub.f32 %v1546_v54, %v3195_v59  ;;  %v1611_v62 = vsub.f32 %v1547_v51, %v3201_v0  ;;  %v1519_v56 = vld [vmem:[#allocation3 + $0x78] sm:$0xff]  ;;  %v1521_v59 = vld [vmem:[#allocation3 + $0x88] sm:$0xff] }
 0x304   : > { %2252 = vrsqrt.f32 %v1700_v32  ;;  %v1640_v63 = vmax.f32 %v1608_v60, 0.0  ;;  %v1548_v1 = vmul.f32 0.00390625, %v1516_v52  ;;  %v1549_v2 = vmul.f32 0.00390625, %v1517_v53  ;;  %v1525_v60 = vld [vmem:[#allocation3 + $0xa8] sm:$0xff] }
 0x305   : > { %2254 = vrsqrt.f32 %v1701_v38  ;;  %v1641_v3 = vmax.f32 %v1609_v27, 0.0  ;;  %v1642_v4 = vmax.f32 %v1610_v61, 0.0  ;;  %v1643_v5 = vmax.f32 %v1611_v62, 0.0  ;;  %v1526_v27 = vld [vmem:[#allocation3 + $0xb0] sm:$0xff]  ;;  %v1527_v61 = vld [vmem:[#allocation3 + $0xb8] sm:$0xff] }
 0x306   : > { %2256 = vrsqrt.f32 %v1702_v26  ;;  %v1704_v10 = vadd.f32 1e-05, %v1640_v63  ;;  %v1612_v55 = vsub.f32 %v1548_v1, %v3207_v7  ;;  %v1613_v11 = vsub.f32 %v1549_v2, %v3209_v8 }
 0x307   : > { %2258 = vrsqrt.f32 %v1703_v57  ;;  %v1705_v0 = vadd.f32 1e-05, %v1641_v3  ;;  %v1706_v13 = vadd.f32 1e-05, %v1642_v4  ;;  %v1707_v17 = vadd.f32 1e-05, %v1643_v5 }
 0x308   : > { %2260 = vrsqrt.f32 %v1704_v10  ;;  %v1644_v18 = vmax.f32 %v1612_v55, 0.0  ;;  %v1645_v20 = vmax.f32 %v1613_v11, 0.0  ;;  %v1550_v29 = vmul.f32 0.00390625, %v1518_v6  ;;  %v1528_v11 = vld [vmem:[#allocation3 + $0xc0] sm:$0xff] }
 0x309   : > { %2262 = vrsqrt.f32 %v1705_v0  ;;  %v1551_v21 = vmul.f32 0.00390625, %v1519_v56  ;;  %v1552_v30 = vmul.f32 0.00390625, %v1520_v12  ;;  %v1553_v35 = vmul.f32 0.00390625, %v1521_v59  ;;  %v1529_v56 = vld [vmem:[#allocation3 + $0xc8] sm:$0xff] }
 0x30a   : > { %v2245_v7 = vpop.eup %2244  ;;  %2264 = vrsqrt.f32 %v1706_v13  ;;  %v1708_v8 = vadd.f32 1e-05, %v1644_v18  ;;  %v1709_v47 = vadd.f32 1e-05, %v1645_v20  ;;  %v1614_v25 = vsub.f32 %v1550_v29, %v3211_v9  ;;  %v1530_v29 = vld [vmem:[#allocation3 + $0xd0] sm:$0xff] }
 0x30b   : > { %v2247_v48 = vpop.eup %2246  ;;  %1760 = vst.msk [vmem:[%s3568_s8] sm:$0xff] %vm1211_vm1, %v2245_v7  ;;  %2266 = vrsqrt.f32 %v1707_v17  ;;  %v1615_v31 = vsub.f32 %v1551_v21, %v3225_v14  ;;  %v1616_v32 = vsub.f32 %v1552_v30, %v3227_v15  ;;  %v1617_v38 = vsub.f32 %v1553_v35, %v3229_v16  ;;  %v1531_v7 = vld [vmem:[#allocation3 + $0xd8] sm:$0xff] }
 0x30c   : > { %v2249_v39 = vpop.eup %2248  ;;  %1761 = vst.msk [vmem:[%s3568_s8 + $0x8] sm:$0xff] %vm1211_vm1, %v2247_v48  ;;  %2268 = vrsqrt.f32 %v1708_v8  ;;  %v1646_v9 = vmax.f32 %v1614_v25, 0.0  ;;  %v1554_v41 = vmul.f32 0.00390625, %v1522_v22  ;;  %v1555_v46 = vmul.f32 0.00390625, %v1523_v23 }
 0x30d   : > { %v2251_v54 = vpop.eup %2250  ;;  %1762 = vst.msk [vmem:[%s3568_s8 + $0x10] sm:$0xff] %vm1211_vm1, %v2249_v39  ;;  %2270 = vrsqrt.f32 %v1709_v47  ;;  %v1647_v14 = vmax.f32 %v1615_v31, 0.0  ;;  %v1648_v15 = vmax.f32 %v1616_v32, 0.0  ;;  %v1649_v16 = vmax.f32 %v1617_v38, 0.0  ;;  %v1532_v31 = vld [vmem:[#allocation3 + $0xe0] sm:$0xff]  ;;  %v1533_v32 = vld [vmem:[#allocation3 + $0xe8] sm:$0xff] }
 0x30e   : > { %v2253_v51 = vpop.eup %2252  ;;  %1763 = vst.msk [vmem:[%s3568_s8 + $0x18] sm:$0xff] %vm1211_vm1, %v2251_v54  ;;  %v1710_v52 = vadd.f32 1e-05, %v1646_v9  ;;  %v1618_v53 = vsub.f32 %v1554_v41, %v3243_v19  ;;  %v1619_v26 = vsub.f32 %v1555_v46, %v3249_v24  ;;  %v1556_v57 = vmul.f32 0.00390625, %v1524_v49  ;;  %v1534_v38 = vld [vmem:[#allocation3 + $0xf0] sm:$0xff] }
 0x30f   : > { %v2255_v62 = vpop.eup %2254  ;;  %v3351_v63 = vmul.f32 %v3273_v37, %v3273_v37  ;;  %1764 = vst.msk [vmem:[%s3568_s8 + $0x20] sm:$0xff] %vm1211_vm1, %v2253_v51  ;;  %v1711_v1 = vadd.f32 1e-05, %v1647_v14  ;;  %v1712_v2 = vadd.f32 1e-05, %v1648_v15  ;;  %v1557_v6 = vmul.f32 0.00390625, %v1525_v60 }
 0x310   : > { %v1713_v3 = vadd.f32 1e-05, %v1649_v16  ;;  %v2257_v19 = vpop.eup %2256  ;;  %1765 = vst.msk [vmem:[%s3568_s8 + $0x28] sm:$0xff] %vm1211_vm1, %v2255_v62  ;;  %2272 = vrsqrt.f32 %v1710_v52  ;;  %v1650_v24 = vmax.f32 %v1618_v53, 0.0  ;;  %v1651_v4 = vmax.f32 %v1619_v26, 0.0  ;;  %v1535_v51 = vld [vmem:[#allocation3 + $0xf8] sm:$0xff] }
 0x311   : > { %v1620_v37 = vsub.f32 %v1556_v57, %v3255_v33  ;;  %v2259_v5 = vpop.eup %2258  ;;  %1766 = vst.msk [vmem:[%s3568_s8 + $0x30] sm:$0xff] %vm1211_vm1, %v2257_v19  ;;  %2274 = vrsqrt.f32 %v1711_v1  ;;  %v1558_v10 = vmul.f32 0.00390625, %v1526_v27  ;;  %v1559_v55 = vmul.f32 0.00390625, %v1527_v61 }
 0x312   : > { %v2261_v12 = vpop.eup %2260  ;;  %1767 = vst.msk [vmem:[%s3568_s8 + $0x38] sm:$0xff] %vm1211_vm1, %v2259_v5  ;;  %2276 = vrsqrt.f32 %v1712_v2  ;;  %v1714_v33 = vadd.f32 1e-05, %v1650_v24  ;;  %v1715_v59 = vadd.f32 1e-05, %v1651_v4  ;;  %v1621_v17 = vsub.f32 %v1557_v6, %v3257_v34 }
 0x313   : > { %v1652_v0 = vmax.f32 %v1620_v37, 0.0  ;;  %v2263_v13 = vpop.eup %2262  ;;  %1768 = vst.msk [vmem:[%s3568_s8 + $0x40] sm:$0xff] %vm1211_vm1, %v2261_v12  ;;  %2278 = vrsqrt.f32 %v1713_v3  ;;  %v1622_v18 = vsub.f32 %v1558_v10, %v3259_v36  ;;  %v1623_v20 = vsub.f32 %v1559_v55, %v3275_v42 }
 0x314   : > { %v2265_v21 = vpop.eup %2264  ;;  %1769 = vst.msk [vmem:[%s3568_s8 + $0x48] sm:$0xff] %vm1211_vm1, %v2263_v13  ;;  %2280 = vrsqrt.f32 %v1714_v33  ;;  %v1560_v35 = vmul.f32 0.00390625, %v1528_v11  ;;  %v1561_v22 = vmul.f32 0.00390625, %v1529_v56  ;;  %v1653_v34 = vmax.f32 %v1621_v17, 0.0 }
 0x315   : > { %v1716_v30 = vadd.f32 1e-05, %v1652_v0  ;;  %v2267_v23 = vpop.eup %2266  ;;  %1770 = vst.msk [vmem:[%s3568_s8 + $0x50] sm:$0xff] %vm1211_vm1, %v2265_v21  ;;  %2282 = vrsqrt.f32 %v1715_v59  ;;  %v1654_v36 = vmax.f32 %v1622_v18, 0.0  ;;  %v1655_v42 = vmax.f32 %v1623_v20, 0.0 }
 0x316   : > { %v2269_v8 = vpop.eup %2268  ;;  %1771 = vst.msk [vmem:[%s3568_s8 + $0x58] sm:$0xff] %vm1211_vm1, %v2267_v23  ;;  %v1624_v47 = vsub.f32 %v1560_v35, %v3277_v43  ;;  %v1625_v25 = vsub.f32 %v1561_v22, %v3279_v44  ;;  %v1562_v48 = vmul.f32 0.00390625, %v1530_v29  ;;  %v1599_v39 = vmul.f32 %v3293_v45, %v3293_v45 }
 0x317   : > { %2284 = vrsqrt.f32 %v1716_v30  ;;  %v2271_v49 = vpop.eup %2270  ;;  %1772 = vst.msk [vmem:[%s3568_s8 + $0x60] sm:$0xff] %vm1211_vm1, %v2269_v8  ;;  %v1717_v9 = vadd.f32 1e-05, %v1653_v34  ;;  %v1718_v41 = vadd.f32 1e-05, %v1654_v36  ;;  %v1563_v14 = vmul.f32 0.00390625, %v1531_v7 }
 0x318   : > { %v1719_v46 = vadd.f32 1e-05, %v1655_v42  ;;  %1773 = vst.msk [vmem:[%s3568_s8 + $0x68] sm:$0xff] %vm1211_vm1, %v2271_v49  ;;  %v1656_v43 = vmax.f32 %v1624_v47, 0.0  ;;  %v1657_v44 = vmax.f32 %v1625_v25, 0.0  ;;  %v1626_v54 = vsub.f32 %v1562_v48, %v3295_v50 }
 0x319   : > { %2286 = vrsqrt.f32 %v1717_v9  ;;  %v1564_v45 = vmul.f32 0.00390625, %v1532_v31  ;;  %v1565_v15 = vmul.f32 0.00390625, %v1533_v32  ;;  %v1566_v16 = vmul.f32 0.00390625, %v1534_v38 }
 0x31a   : > { %v2273_v52 = vpop.eup %2272  ;;  %2288 = vrsqrt.f32 %v1718_v41  ;;  %v1720_v53 = vadd.f32 1e-05, %v1656_v43  ;;  %v1721_v26 = vadd.f32 1e-05, %v1657_v44  ;;  %v1658_v57 = vmax.f32 %v1626_v54, 0.0 }
 0x31b   : > { %v2275_v60 = vpop.eup %2274  ;;  %1774 = vst.msk [vmem:[%s3568_s8 + $0x70] sm:$0xff] %vm1211_vm1, %v2273_v52  ;;  %2290 = vrsqrt.f32 %v1719_v46  ;;  %v1627_v50 = vsub.f32 %v1563_v14, %v3302_v58  ;;  %v1628_v27 = vsub.f32 %v1564_v45, %v3317_v40  ;;  %v1629_v61 = vsub.f32 %v1565_v15, %v3319_v28 }
 0x31c   : > { %v2277_v62 = vpop.eup %2276  ;;  %1775 = vst.msk [vmem:[%s3568_s8 + $0x78] sm:$0xff] %vm1211_vm1, %v2275_v60  ;;  %2292 = vrsqrt.f32 %v1720_v53  ;;  %v1722_v1 = vadd.f32 1e-05, %v1658_v57  ;;  %v1630_v2 = vsub.f32 %v1566_v16, %v3351_v63  ;;  %v1567_v3 = vmul.f32 0.00390625, %v1535_v51 }
 0x31d   : > { %v2279_v19 = vpop.eup %2278  ;;  %1776 = vst.msk [vmem:[%s3568_s8 + $0x80] sm:$0xff] %vm1211_vm1, %v2277_v62  ;;  %2294 = vrsqrt.f32 %v1721_v26  ;;  %v1659_v58 = vmax.f32 %v1627_v50, 0.0  ;;  %v1660_v40 = vmax.f32 %v1628_v27, 0.0  ;;  %v1661_v28 = vmax.f32 %v1629_v61, 0.0 }
 0x31e   : > { %v2281_v24 = vpop.eup %2280  ;;  %1777 = vst.msk [vmem:[%s3568_s8 + $0x88] sm:$0xff] %vm1211_vm1, %v2279_v19  ;;  %2296 = vrsqrt.f32 %v1722_v1  ;;  %v1662_v4 = vmax.f32 %v1630_v2, 0.0  ;;  %v1631_v63 = vsub.f32 %v1567_v3, %v1599_v39 }
 0x31f   : > { %v2283_v37 = vpop.eup %2282  ;;  %1778 = vst.msk [vmem:[%s3568_s8 + $0x90] sm:$0xff] %vm1211_vm1, %v2281_v24  ;;  %v1723_v5 = vadd.f32 1e-05, %v1659_v58  ;;  %v1724_v6 = vadd.f32 1e-05, %v1660_v40 }
 0x320   : > { %v1725_v10 = vadd.f32 1e-05, %v1661_v28  ;;  %1779 = vst.msk [vmem:[%s3568_s8 + $0x98] sm:$0xff] %vm1211_vm1, %v2283_v37  ;;  %v1726_v11 = vadd.f32 1e-05, %v1662_v4  ;;  %v1663_v56 = vmax.f32 %v1631_v63, 0.0 }
 0x321   : > { %v2285_v55 = vpop.eup %2284  ;;  %2298 = vrsqrt.f32 %v1723_v5 }
 0x322   : > { %1780 = vst.msk [vmem:[%s3568_s8 + $0xa0] sm:$0xff] %vm1211_vm1, %v2285_v55  ;;  %2300 = vrsqrt.f32 %v1724_v6  ;;  %v1727_v12 = vadd.f32 1e-05, %v1663_v56 }
 0x323   : > { %v2287_v33 = vpop.eup %2286  ;;  %2302 = vrsqrt.f32 %v1725_v10 }
 0x324   : > { %v2289_v59 = vpop.eup %2288  ;;  %1781 = vst.msk [vmem:[%s3568_s8 + $0xa8] sm:$0xff] %vm1211_vm1, %v2287_v33  ;;  %2304 = vrsqrt.f32 %v1726_v11 }
 0x325   : > { %v2291_v0 = vpop.eup %2290  ;;  %1782 = vst.msk [vmem:[%s3568_s8 + $0xb0] sm:$0xff] %vm1211_vm1, %v2289_v59  ;;  %2306 = vrsqrt.f32 %v1727_v12 }
 0x326   : > { %v2293_v13 = vpop.eup %2292  ;;  %1783 = vst.msk [vmem:[%s3568_s8 + $0xb8] sm:$0xff] %vm1211_vm1, %v2291_v0 }
 0x327   : > { %v2295_v17 = vpop.eup %2294  ;;  %1784 = vst.msk [vmem:[%s3568_s8 + $0xc0] sm:$0xff] %vm1211_vm1, %v2293_v13 }
 0x328   : > { %v2297_v18 = vpop.eup %2296  ;;  %1785 = vst.msk [vmem:[%s3568_s8 + $0xc8] sm:$0xff] %vm1211_vm1, %v2295_v17 }
 0x329   : > { %1786 = vst.msk [vmem:[%s3568_s8 + $0xd0] sm:$0xff] %vm1211_vm1, %v2297_v18 }
 0x32b   : > { %v2299_v20 = vpop.eup %2298 }
 0x32c   : > { %v2301_v29 = vpop.eup %2300  ;;  %1787 = vst.msk [vmem:[%s3568_s8 + $0xd8] sm:$0xff] %vm1211_vm1, %v2299_v20 }
 0x32d   : > { %v2303_v21 = vpop.eup %2302  ;;  %1788 = vst.msk [vmem:[%s3568_s8 + $0xe0] sm:$0xff] %vm1211_vm1, %v2301_v29 }
 0x32e   : > { %v2305_v30 = vpop.eup %2304  ;;  %1789 = vst.msk [vmem:[%s3568_s8 + $0xe8] sm:$0xff] %vm1211_vm1, %v2303_v21 }
 0x32f   : > { %v2307_v35 = vpop.eup %2306  ;;  %1790 = vst.msk [vmem:[%s3568_s8 + $0xf0] sm:$0xff] %vm1211_vm1, %v2305_v30 }
 0x330   : > { %1791 = vst.msk [vmem:[%s3568_s8 + $0xf8] sm:$0xff] %vm1211_vm1, %v2307_v35 }
 0x331 PF: > { %1798 = sbr.rel (!%p2410_p5) target bundleno = 835 (0x343), region = 94  ;;  %s2037_s17 = sshll.u32 (%p2410_p5), %s2395_s30, 3  ;;  %v1890_v22 = vld [vmem:[%s2443_s25] sm:$0xff] (%p2410_p5)  ;;  %v1892_v23 = vld [vmem:[%s2443_s25 + $0x8] sm:$0xff] (%p2410_p5)  ;;  %v1894_v34 = vld [vmem:[%s2443_s25 + $0x10] sm:$0xff] (%p2410_p5) }
 0x332   : > { %s3487_s20 = scalar_lea.vmem (%p2410_p5), %s3566_s6, %s2037_s17  ;;  %v1896_v36 = vld [vmem:[%s2443_s25 + $0x18] sm:$0xff] (%p2410_p5)  ;;  %v1898_v42 = vld [vmem:[%s2443_s25 + $0x20] sm:$0xff] (%p2410_p5)  ;;  %v1900_v7 = vld [vmem:[%s2443_s25 + $0x28] sm:$0xff] (%p2410_p5) }
 0x333   : > { %1891 = vst [vmem:[%s3487_s20] sm:$0xff] (%p2410_p5), %v1890_v22  ;;  %1893 = vst [vmem:[%s3487_s20 + $0x10] sm:$0xff] (%p2410_p5), %v1892_v23  ;;  %v1902_v8 = vld [vmem:[%s2443_s25 + $0x30] sm:$0xff] (%p2410_p5)  ;;  %v1904_v47 = vld [vmem:[%s2443_s25 + $0x38] sm:$0xff] (%p2410_p5) }
 0x334   : > { %1895 = vst [vmem:[%s3487_s20 + $0x20] sm:$0xff] (%p2410_p5), %v1894_v34  ;;  %1897 = vst [vmem:[%s3487_s20 + $0x30] sm:$0xff] (%p2410_p5), %v1896_v36  ;;  %v1906_v25 = vld [vmem:[%s2443_s25 + $0x40] sm:$0xff] (%p2410_p5)  ;;  %v1908_v48 = vld [vmem:[%s2443_s25 + $0x48] sm:$0xff] (%p2410_p5) }
 0x335   : > { %1899 = vst [vmem:[%s3487_s20 + $0x40] sm:$0xff] (%p2410_p5), %v1898_v42  ;;  %1901 = vst [vmem:[%s3487_s20 + $0x50] sm:$0xff] (%p2410_p5), %v1900_v7  ;;  %v1910_v31 = vld [vmem:[%s2443_s25 + $0x50] sm:$0xff] (%p2410_p5)  ;;  %v1912_v32 = vld [vmem:[%s2443_s25 + $0x58] sm:$0xff] (%p2410_p5) }
 0x336   : > { %1903 = vst [vmem:[%s3487_s20 + $0x60] sm:$0xff] (%p2410_p5), %v1902_v8  ;;  %1905 = vst [vmem:[%s3487_s20 + $0x70] sm:$0xff] (%p2410_p5), %v1904_v47  ;;  %v1914_v38 = vld [vmem:[%s2443_s25 + $0x60] sm:$0xff] (%p2410_p5)  ;;  %v1916_v49 = vld [vmem:[%s2443_s25 + $0x68] sm:$0xff] (%p2410_p5) }
 0x337   : > { %1907 = vst [vmem:[%s3487_s20 + $0x80] sm:$0xff] (%p2410_p5), %v1906_v25  ;;  %1909 = vst [vmem:[%s3487_s20 + $0x90] sm:$0xff] (%p2410_p5), %v1908_v48  ;;  %v1918_v39 = vld [vmem:[%s2443_s25 + $0x70] sm:$0xff] (%p2410_p5)  ;;  %v1920_v9 = vld [vmem:[%s2443_s25 + $0x78] sm:$0xff] (%p2410_p5) }
 0x338   : > { %1911 = vst [vmem:[%s3487_s20 + $0xa0] sm:$0xff] %v1910_v31  ;;  %1913 = vst [vmem:[%s3487_s20 + $0xb0] sm:$0xff] %v1912_v32  ;;  %v1922_v41 = vld [vmem:[%s2443_s25 + $0x80] sm:$0xff]  ;;  %v1924_v46 = vld [vmem:[%s2443_s25 + $0x88] sm:$0xff] }
 0x339   : > { %1915 = vst [vmem:[%s3487_s20 + $0xc0] sm:$0xff] %v1914_v38  ;;  %1917 = vst [vmem:[%s3487_s20 + $0xd0] sm:$0xff] %v1916_v49  ;;  %v1926_v43 = vld [vmem:[%s2443_s25 + $0x90] sm:$0xff]  ;;  %v1928_v44 = vld [vmem:[%s2443_s25 + $0x98] sm:$0xff] }
 0x33a   : > { %1919 = vst [vmem:[%s3487_s20 + $0xe0] sm:$0xff] %v1918_v39  ;;  %1921 = vst [vmem:[%s3487_s20 + $0xf0] sm:$0xff] %v1920_v9  ;;  %v1930_v54 = vld [vmem:[%s2443_s25 + $0xa0] sm:$0xff]  ;;  %v1932_v14 = vld [vmem:[%s2443_s25 + $0xa8] sm:$0xff] }
 0x33b   : > { %1923 = vst [vmem:[%s3487_s20 + $0x100] sm:$0xff] %v1922_v41  ;;  %1925 = vst [vmem:[%s3487_s20 + $0x110] sm:$0xff] %v1924_v46  ;;  %v1934_v45 = vld [vmem:[%s2443_s25 + $0xb0] sm:$0xff]  ;;  %v1936_v15 = vld [vmem:[%s2443_s25 + $0xb8] sm:$0xff] }
 0x33c   : > { %1927 = vst [vmem:[%s3487_s20 + $0x120] sm:$0xff] %v1926_v43  ;;  %1929 = vst [vmem:[%s3487_s20 + $0x130] sm:$0xff] %v1928_v44  ;;  %v1938_v16 = vld [vmem:[%s2443_s25 + $0xc0] sm:$0xff]  ;;  %v1940_v51 = vld [vmem:[%s2443_s25 + $0xc8] sm:$0xff] }
 0x33d   : > { %1931 = vst [vmem:[%s3487_s20 + $0x140] sm:$0xff] %v1930_v54  ;;  %1933 = vst [vmem:[%s3487_s20 + $0x150] sm:$0xff] %v1932_v14  ;;  %v1942_v52 = vld [vmem:[%s2443_s25 + $0xd0] sm:$0xff]  ;;  %v1944_v53 = vld [vmem:[%s2443_s25 + $0xd8] sm:$0xff] }
 0x33e   : > { %1935 = vst [vmem:[%s3487_s20 + $0x160] sm:$0xff] %v1934_v45  ;;  %1937 = vst [vmem:[%s3487_s20 + $0x170] sm:$0xff] %v1936_v15  ;;  %v1946_v26 = vld [vmem:[%s2443_s25 + $0xe0] sm:$0xff]  ;;  %v1948_v57 = vld [vmem:[%s2443_s25 + $0xe8] sm:$0xff] }
 0x33f   : > { %1939 = vst [vmem:[%s3487_s20 + $0x180] sm:$0xff] %v1938_v16  ;;  %1941 = vst [vmem:[%s3487_s20 + $0x190] sm:$0xff] %v1940_v51  ;;  %v1950_v60 = vld [vmem:[%s2443_s25 + $0xf0] sm:$0xff]  ;;  %v1952_v50 = vld [vmem:[%s2443_s25 + $0xf8] sm:$0xff] }
 0x340   : > { %1943 = vst [vmem:[%s3487_s20 + $0x1a0] sm:$0xff] %v1942_v52  ;;  %1945 = vst [vmem:[%s3487_s20 + $0x1b0] sm:$0xff] %v1944_v53 }
 0x341   : > { %1947 = vst [vmem:[%s3487_s20 + $0x1c0] sm:$0xff] %v1946_v26  ;;  %1949 = vst [vmem:[%s3487_s20 + $0x1d0] sm:$0xff] %v1948_v57 }
 0x342   : > { %1951 = vst [vmem:[%s3487_s20 + $0x1e0] sm:$0xff] %v1950_v60  ;;  %1953 = vst [vmem:[%s3487_s20 + $0x1f0] sm:$0xff] %v1952_v50 }
 0x343 PF: > { %p16_p12 = scmp.ge.s32.totalorder %s2398_s9, 4   ;;  %s3570_s27 = smov %s2326_s28 }
 0x344   : > { %s3571_s28 = smov %s2408_s12  ;;  %s3572_s29 = smov %s2398_s9 }
 0x345   :  { %18 = sbr.rel (!%p16_p12) target bundleno = 2 (0x2), region = 179 }

// kernel: pointnet_cvae_forward.9
= control target key start
LH: loop header
LB: loop body
LE: loop exit
PB: predicated region body
PF: predicated region fallthrough
CT: control target
= control target key end

     0   :  { %v2151_v3 = vmov 0.0   ;;  %vm2152_vm0 = vmmov 0   ;;  %vm93_vm1 = vcmask 64512   ;;  %v2153_v41 = vmov 0.0|0.0   ;;  %s2154_s21 = smov 16   ;;  %s3721_s3 = inlined_call_operand.vmem [shape: f32[256,128], index: 3, kind: input, shape index: {}]   ;;  %s3722_s0 = inlined_call_operand.vmem [shape: f32[2,256], index: 0, kind: input, shape index: {}]   ;;  %s3723_s4 = inlined_call_operand.vmem [shape: f32[8,128], index: 4, kind: input, shape index: {}]   ;;  %s3724_s1 = inlined_call_operand.vmem [shape: f32[2,8], index: 1, kind: input, shape index: {}]   ;;  %s3725_s6 = inlined_call_operand.vmem [shape: f32[128,16], index: 6, kind: input, shape index: {}]   ;;  %s3726_s8 = inlined_call_operand.vmem [shape: f32[128,16], index: 8, kind: input, shape index: {}]   ;;  %s3727_s5 = inlined_call_operand.vmem [shape: f32[1,128], index: 5, kind: input, shape index: {}]   ;;  %s3728_s11 = inlined_call_operand.vmem [shape: f32[8,256], index: 11, kind: input, shape index: {}]   ;;  %s3729_s10 = inlined_call_operand.vmem [shape: f32[16,256], index: 10, kind: input, shape index: {}]   ;;  %s3730_s13 = inlined_call_operand.vmem [shape: f32[256,512], index: 13, kind: input, shape index: {}]   ;;  %s3731_s9 = inlined_call_operand.vmem [shape: f32[1,16], index: 9, kind: input, shape index: {}]   ;;  %s3732_s7 = inlined_call_operand.vmem [shape: f32[1,16], index: 7, kind: input, shape index: {}]   ;;  %s3733_s2 = inlined_call_operand.vmem [shape: f32[2,16], index: 2, kind: input, shape index: {}]   ;;  %s3734_s15 = inlined_call_operand.vmem [shape: f32[512,512], index: 15, kind: input, shape index: {}]   ;;  %s3735_s18 = inlined_call_operand.vmem [shape: f32[2,32], index: 18, kind: output, shape index: {1}]   ;;  %s3736_s12 = inlined_call_operand.vmem [shape: f32[1,256], index: 12, kind: input, shape index: {}]   ;;  %s3737_s14 = inlined_call_operand.vmem [shape: f32[1,512], index: 14, kind: input, shape index: {}]   ;;  %s3738_s16 = inlined_call_operand.vmem [shape: f32[1,512], index: 16, kind: input, shape index: {}]   ;;  %s3739_s17 = inlined_call_operand.vmem [shape: f32[2,512], index: 17, kind: output, shape index: {0}]  }
   0x1   :  { %3741 = sst [smem:[#allocation2_spill]] %s3721_s3  ;;  %1591 = vmatprep.subr.mxu0 %v2151_v3  ;;  %1593 = vmatprep.mubr.msk.f32.mxu0 %vm2152_vm0, %v2151_v3  ;;  %v2321_v29 = vld [vmem:[%s3724_s1] sm:$0x3]  ;;  %v258_v33 = vld [vmem:[%s3725_s6 + $0x8] sm:$0xff]  ;;  %v259_v37 = vld [vmem:[%s3725_s6 + $0x10] sm:$0xff]  ;;  %vm526_vm2 = vcmask 130048  }
   0x2   :  { %3742 = sst [smem:[#allocation3_spill]] %s3722_s0  ;;  %s3744_s29 = sld [smem:[#allocation2_spill]]  ;;  %v257_v30 = vld [vmem:[%s3725_s6] sm:$0xff]  ;;  %v260_v38 = vld [vmem:[%s3725_s6 + $0x18] sm:$0xff]  ;;  %v262_v45 = vld [vmem:[%s3725_s6 + $0x28] sm:$0xff]  ;;  %vm1503_vm3 = vcmask 254976  }
   0x3   :  { %3743 = sst [smem:[#allocation4_spill]] %s3723_s4  ;;  %s3745_s23 = sld [smem:[#allocation3_spill]]  ;;  %v1699_v36 = vpack.c.bf16 %v258_v33, %v257_v30  ;;  %v1702_v42 = vpack.c.bf16 %v260_v38, %v259_v37  ;;  %v261_v44 = vld [vmem:[%s3725_s6 + $0x20] sm:$0xff]  ;;  %v263_v53 = vld [vmem:[%s3725_s6 + $0x30] sm:$0xff]  ;;  %v264_v54 = vld [vmem:[%s3725_s6 + $0x38] sm:$0xff] }
   0x4   :  { %s3746_s26 = sld [smem:[#allocation4_spill]]  ;;  %v1705_v51 = vpack.c.bf16 %v262_v45, %v261_v44  ;;  %v1708_v60 = vpack.c.bf16 %v264_v54, %v263_v53  ;;  %v265_v62 = vld [vmem:[%s3725_s6 + $0x40] sm:$0xff]  ;;  %v266_v63 = vld [vmem:[%s3725_s6 + $0x48] sm:$0xff]  ;;  %v364_v37 = vld [vmem:[%s3726_s8 + $0x70] sm:$0xff] }
   0x5   :  { %v362_v30 = vld [vmem:[%s3726_s8 + $0x60] sm:$0xff]  ;;  %v365_v38 = vld [vmem:[%s3726_s8 + $0x78] sm:$0xff]  ;;  %v451_v54 = vld [vmem:[%s3729_s10 + $0x10] sm:$0xff] }
   0x6   :  { %v449_v53 = vld [vmem:[%s3729_s10] sm:$0xff] }
   0x8   :  { %v76_v0 = vld [vmem:[%s3744_s29 + $0x80] sm:$0xff]  ;;  %v77_v1 = vld [vmem:[%s3744_s29 + $0x88] sm:$0xff]  ;;  %v78_v6 = vld [vmem:[%s3744_s29 + $0x90] sm:$0xff] }
   0x9   :  { %v60_v2 = vld [vmem:[%s3744_s29] sm:$0xff]  ;;  %v1666_v4 = vpack.c.bf16 %v77_v1, %v76_v0  ;;  %v61_v5 = vld [vmem:[%s3744_s29 + $0x8] sm:$0xff]  ;;  %v79_v7 = vld [vmem:[%s3744_s29 + $0x98] sm:$0xff] }
   0xa   :  { %v1668_v8 = vpack.c.bf16 %v61_v5, %v60_v2  ;;  %v1670_v9 = vpack.c.bf16 %v79_v7, %v78_v6  ;;  %v62_v10 = vld [vmem:[%s3744_s29 + $0x10] sm:$0xff]  ;;  %v63_v11 = vld [vmem:[%s3744_s29 + $0x18] sm:$0xff]  ;;  %v80_v12 = vld [vmem:[%s3744_s29 + $0xa0] sm:$0xff] }
   0xb   :  { %1667 = vmatprep.subr.bf16.mxu1 %v1666_v4  ;;  %v81_v13 = vld [vmem:[%s3744_s29 + $0xa8] sm:$0xff]  ;;  %v1672_v14 = vpack.c.bf16 %v63_v11, %v62_v10  ;;  %v64_v16 = vld [vmem:[%s3744_s29 + $0x20] sm:$0xff]  ;;  %v82_v18 = vld [vmem:[%s3744_s29 + $0xb0] sm:$0xff]  ;;  %v1711_v4 = vpack.c.bf16 %v266_v63, %v265_v62 }
   0xc   :  { %1669 = vmatpush3.bf16.msra.mxu1 %v1668_v8  ;;  %v1674_v15 = vpack.c.bf16 %v81_v13, %v80_v12  ;;  %v65_v17 = vld [vmem:[%s3744_s29 + $0x28] sm:$0xff]  ;;  %v83_v19 = vld [vmem:[%s3744_s29 + $0xb8] sm:$0xff]  ;;  %v66_v22 = vld [vmem:[%s3744_s29 + $0x30] sm:$0xff] }
   0xd   :  { %1671 = vmatprep.subr.bf16.mxu1 %v1670_v9  ;;  %v1676_v20 = vpack.c.bf16 %v65_v17, %v64_v16  ;;  %v1678_v21 = vpack.c.bf16 %v83_v19, %v82_v18  ;;  %v67_v23 = vld [vmem:[%s3744_s29 + $0x38] sm:$0xff]  ;;  %v84_v24 = vld [vmem:[%s3744_s29 + $0xc0] sm:$0xff]  ;;  %v85_v25 = vld [vmem:[%s3744_s29 + $0xc8] sm:$0xff] }
   0xe   :  { %v2311_v26 = vld.sshfl [vmem:[%s3745_s23] sm:$0x33 pattern:$0x76325410]  ;;  %v1680_v31 = vpack.c.bf16 %v67_v23, %v66_v22  ;;  %v1682_v34 = vpack.c.bf16 %v85_v25, %v84_v24  ;;  %v69_v35 = vld [vmem:[%s3744_s29 + $0x48] sm:$0xff]  ;;  %v86_v39 = vld [vmem:[%s3744_s29 + $0xd0] sm:$0xff] }
   0xf   :  { %v175_v27 = vcombine.high %v2311_v26, %v2311_v26  ;;  %v92_v28 = vld [vmem:[%s3746_s26] sm:$0xff]  ;;  %v87_v40 = vld [vmem:[%s3744_s29 + $0xd8] sm:$0xff]  ;;  %v70_v47 = vld [vmem:[%s3744_s29 + $0x50] sm:$0xff] }
  0x10   :  { %1673 = vmatpush3.bf16.msra.mxu1 %v1672_v14  ;;  %v68_v32 = vld [vmem:[%s3744_s29 + $0x40] sm:$0xff]  ;;  %1592 = vmatpush3.msra.mxu0 %v92_v28  ;;  %v1686_v46 = vpack.c.bf16 %v87_v40, %v86_v39  ;;  %v71_v48 = vld [vmem:[%s3744_s29 + $0x58] sm:$0xff]  ;;  %v89_v50 = vld [vmem:[%s3744_s29 + $0xe8] sm:$0xff]  ;;  %v1744_v39 = vpack.c.bf16 %v365_v38, %v364_v37 }
  0x11   :  { %1675 = vmatprep.subr.bf16.mxu1 %v1674_v15  ;;  %242 = vmatprep.mubr.f32.mxu1 %v175_v27  ;;  %v1684_v43 = vpack.c.bf16 %v69_v35, %v68_v32  ;;  %v88_v49 = vld [vmem:[%s3744_s29 + $0xe0] sm:$0xff]  ;;  %v1688_v52 = vpack.c.bf16 %v71_v48, %v70_v47  ;;  %v73_v57 = vld [vmem:[%s3744_s29 + $0x68] sm:$0xff]  ;;  %v90_v58 = vld [vmem:[%s3744_s29 + $0xf0] sm:$0xff] }
  0x12   :  { %1594 = vmatmul.mubr.msk.f32.vlgmr.msra.gmra.mrb[0].mxu0 %vm93_vm1, %v2321_v29  ;;  %1698 = vmatprep.subr.bf16.mxu0 %v2153_v41  ;;  %v1690_v55 = vpack.c.bf16 %v89_v50, %v88_v49  ;;  %v72_v56 = vld [vmem:[%s3744_s29 + $0x60] sm:$0xff]  ;;  %v91_v59 = vld [vmem:[%s3744_s29 + $0xf8] sm:$0xff]  ;;  %v74_v1 = vld [vmem:[%s3744_s29 + $0x70] sm:$0xff] }
  0x13   :  { %1700 = vmatpush3.bf16.msra.mxu0 %v1699_v36  ;;  %1628 = vmatprep.mubr.msk.f32.mxu0 %vm2152_vm0, %v2151_v3  ;;  %v1692_v61 = vpack.c.bf16 %v73_v57, %v72_v56  ;;  %v1694_v0 = vpack.c.bf16 %v91_v59, %v90_v58  ;;  %v75_v2 = vld [vmem:[%s3744_s29 + $0x78] sm:$0xff]  ;;  %v267_v6 = vld [vmem:[%s3725_s6 + $0x50] sm:$0xff]  ;;  %v350_v8 = vld [vmem:[%s3726_s8] sm:$0xff]  ;;  %v1748_v56 = vpack.c.bf16 %v451_v54, %v449_v53 }
  0x14   :  { %1677 = vmatpush3.bf16.msra.mxu1 %v1676_v20  ;;  %1701 = vmatprep.subr.bf16.mxu0 %v2153_v41  ;;  %v1696_v5 = vpack.c.bf16 %v75_v2, %v74_v1  ;;  %v268_v7 = vld [vmem:[%s3725_s6 + $0x58] sm:$0xff]  ;;  %v351_v9 = vld [vmem:[%s3726_s8 + $0x8] sm:$0xff]  ;;  %v352_v12 = vld [vmem:[%s3726_s8 + $0x10] sm:$0xff] }
  0x15   :  { %1679 = vmatprep.subr.bf16.mxu1 %v1678_v21  ;;  %v1714_v10 = vpack.c.bf16 %v268_v7, %v267_v6  ;;  %v1723_v11 = vpack.c.bf16 %v351_v9, %v350_v8  ;;  %v353_v13 = vld [vmem:[%s3726_s8 + $0x18] sm:$0xff]  ;;  %v354_v15 = vld [vmem:[%s3726_s8 + $0x20] sm:$0xff]  ;;  %v355_v16 = vld [vmem:[%s3726_s8 + $0x28] sm:$0xff] }
  0x16   :  { %v1726_v14 = vpack.c.bf16 %v353_v13, %v352_v12  ;;  %v1729_v17 = vpack.c.bf16 %v355_v16, %v354_v15  ;;  %v356_v18 = vld [vmem:[%s3726_s8 + $0x30] sm:$0xff]  ;;  %v357_v19 = vld [vmem:[%s3726_s8 + $0x38] sm:$0xff]  ;;  %v358_v21 = vld [vmem:[%s3726_s8 + $0x40] sm:$0xff] }
  0x17   :  { %1703 = vmatpush3.bf16.msra.mxu0 %v1702_v42  ;;  %v1732_v20 = vpack.c.bf16 %v357_v19, %v356_v18  ;;  %v359_v22 = vld [vmem:[%s3726_s8 + $0x48] sm:$0xff]  ;;  %v360_v24 = vld [vmem:[%s3726_s8 + $0x50] sm:$0xff]  ;;  %v361_v25 = vld [vmem:[%s3726_s8 + $0x58] sm:$0xff] }
  0x18   :  { %1681 = vmatpush3.bf16.msra.mxu1 %v1680_v31  ;;  %1704 = vmatprep.subr.bf16.mxu0 %v2153_v41  ;;  %v1735_v23 = vpack.c.bf16 %v359_v22, %v358_v21  ;;  %v269_v27 = vld [vmem:[%s3725_s6 + $0x60] sm:$0xff]  ;;  %v270_v28 = vld [vmem:[%s3725_s6 + $0x68] sm:$0xff]  ;;  %v272_v35 = vld [vmem:[%s3725_s6 + $0x78] sm:$0xff] }
  0x19   :  { %1683 = vmatprep.subr.bf16.mxu1 %v1682_v34  ;;  %v1717_v31 = vpack.c.bf16 %v270_v28, %v269_v27  ;;  %v363_v32 = vld [vmem:[%s3726_s8 + $0x68] sm:$0xff]  ;;  %v271_v34 = vld [vmem:[%s3725_s6 + $0x70] sm:$0xff]  ;;  %v453_v50 = vld [vmem:[%s3728_s11] sm:$0xff] }
  0x1a   :  { %v1741_v33 = vpack.c.bf16 %v363_v32, %v362_v30  ;;  %v1720_v36 = vpack.c.bf16 %v272_v35, %v271_v34  ;;  %v454_v49 = vld [vmem:[%s3728_s11 + $0x8] sm:$0xff]  ;;  %v620_v59 = vld [vmem:[%s3730_s13 + $0x18] sm:$0xff]  ;;  %v623_v62 = vld [vmem:[%s3730_s13 + $0x30] sm:$0xff] }
  0x1b   :  { %1706 = vmatpush3.bf16.msra.mxu0 %v1705_v51  ;;  %v450_v51 = vld [vmem:[%s3729_s10 + $0x8] sm:$0xff]  ;;  %v632_v1 = vld [vmem:[%s3730_s13 + $0x78] sm:$0xff]  ;;  %v1517_v6 = vld [vmem:[%s3731_s9] ss:$0 sm:$0xff] }
  0x1c   :  { %1685 = vmatpush3.bf16.msra.mxu1 %v1684_v43  ;;  %1707 = vmatprep.subr.bf16.mxu0 %v2153_v41  ;;  %v618_v57 = vld [vmem:[%s3730_s13 + $0x8] sm:$0xff]  ;;  %v636_v8 = vld [vmem:[%s3730_s13 + $0x98] sm:$0xff]  ;;  %v639_v12 = vld [vmem:[%s3730_s13 + $0xb0] sm:$0xff] }
  0x1d   :  { %1687 = vmatprep.subr.bf16.mxu1 %v1686_v46  ;;  %v622_v58 = vld [vmem:[%s3730_s13 + $0x28] sm:$0xff]  ;;  %v640_v9 = vld [vmem:[%s3730_s13 + $0xb8] sm:$0xff]  ;;  %v643_v22 = vld [vmem:[%s3730_s13 + $0xd0] sm:$0xff] }
  0x1e   :  { %v644_v15 = vld [vmem:[%s3730_s13 + $0xd8] sm:$0xff]  ;;  %v655_v32 = vld [vmem:[%s3730_s13 + $0x130] sm:$0xff]  ;;  %v630_v53 = vld [vmem:[%s3730_s13 + $0x68] sm:$0xff] }
  0x1f   :  { %1709 = vmatpush3.bf16.msra.mxu0 %v1708_v60  ;;  %v1750_v60 = vpack.c.bf16 %v622_v58, %v618_v57  ;;  %v664_v34 = vld [vmem:[%s3730_s13 + $0x178] sm:$0xff]  ;;  %v659_v37 = vld [vmem:[%s3730_s13 + $0x150] sm:$0xff] }
  0x20   :  { %1689 = vmatpush3.bf16.msra.mxu1 %v1688_v52  ;;  %1710 = vmatprep.subr.bf16.mxu0 %v2153_v41  ;;  %v452_v52 = vld [vmem:[%s3729_s10 + $0x18] sm:$0xff]  ;;  %v663_v38 = vld [vmem:[%s3730_s13 + $0x170] sm:$0xff] }
  0x21   :  { %1691 = vmatprep.subr.bf16.mxu1 %v1690_v55  ;;  %v1746_v55 = vpack.c.bf16 %v452_v52, %v450_v51  ;;  %v626_v52 = vld [vmem:[%s3730_s13 + $0x48] sm:$0xff]  ;;  %v675_v58 = vld [vmem:[%s3730_s13 + $0x1d0] sm:$0xff] }
  0x23   :  { %1712 = vmatpush3.bf16.msra.mxu0 %v1711_v4  ;;  %v627_v4 = vld [vmem:[%s3730_s13 + $0x50] sm:$0xff] }
  0x24   :  { %1693 = vmatpush3.bf16.msra.mxu1 %v1692_v61  ;;  %1713 = vmatprep.subr.bf16.mxu0 %v2153_v41 }
  0x25   :  { %1695 = vmatprep.subr.bf16.mxu1 %v1694_v0  ;;  %v628_v0 = vld [vmem:[%s3730_s13 + $0x58] sm:$0xff] }
  0x26   :  { %v1818_v2 = vpack.c.bf16 %v632_v1, %v628_v0  ;;  %v629_v0 = vld [vmem:[%s3730_s13 + $0x60] sm:$0xff]  ;;  %v634_v1 = vld [vmem:[%s3730_s13 + $0x88] sm:$0xff] }
  0x27   :  { %1715 = vmatpush3.bf16.msra.mxu0 %v1714_v10  ;;  %v1822_v10 = vpack.c.bf16 %v640_v9, %v636_v8  ;;  %v692_v9 = vld [vmem:[%s3730_s13 + $0x258] sm:$0xff] }
  0x28   :  { %1697 = vmatpush3.bf16.msra.mxu1 %v1696_v5  ;;  %1716 = vmatprep.subr.bf16.mxu0 %v2153_v41  ;;  %v631_v5 = vld [vmem:[%s3730_s13 + $0x70] sm:$0xff] }
  0x29   :  { %1722 = vmatprep.subr.bf16.mxu1 %v2153_v41  ;;  %v1820_v7 = vpack.c.bf16 %v631_v5, %v627_v4 }
  0x2b   :  { %243 = vmatmul.mubr.f32.vlgmr.msra.gmra.mrb[0].mxu1 %v2311_v26  ;;  %v1738_v26 = vpack.c.bf16 %v361_v25, %v360_v24  ;;  %1718 = vmatpush3.bf16.msra.mxu0 %v1717_v31  ;;  %v652_v25 = vld [vmem:[%s3730_s13 + $0x118] sm:$0xff]  ;;  %v651_v31 = vld [vmem:[%s3730_s13 + $0x110] sm:$0xff] }
  0x2c   :  { %1724 = vmatpush3.bf16.msra.mxu1 %v1723_v11  ;;  %1663 = vmatprep.mubr.msk.f32.mxu1 %vm2152_vm0, %v2151_v3  ;;  %v635_v11 = vld [vmem:[%s3730_s13 + $0x90] sm:$0xff]  ;;  %v1832_v35 = vpack.c.bf16 %v655_v32, %v651_v31 }
  0x2d   :  { %1725 = vmatprep.subr.bf16.mxu1 %v2153_v41  ;;  %1719 = vmatprep.subr.bf16.mxu0 %v2153_v41  ;;  %v1824_v19 = vpack.c.bf16 %v639_v12, %v635_v11  ;;  %v633_v12 = vld [vmem:[%s3730_s13 + $0x80] sm:$0xff]  ;;  %v699_v31 = vld [vmem:[%s3730_s13 + $0x290] sm:$0xff] }
  0x2e   :  { %v703_v32 = vld [vmem:[%s3730_s13 + $0x2b0] sm:$0xff] }
  0x2f   :  { %1721 = vmatpush3.bf16.msra.mxu0 %v1720_v36 }
  0x30   :  { %1727 = vmatpush3.bf16.msra.mxu1 %v1726_v14  ;;  %455 = vmatprep.subr.mxu0 %v454_v49  ;;  %v617_v49 = vld [vmem:[%s3730_s13] sm:$0xff] }
  0x31   :  { %1728 = vmatprep.subr.bf16.mxu1 %v2153_v41 }
  0x34   :  { %1730 = vmatpush3.bf16.msra.mxu1 %v1729_v17 }
  0x35   :  { %1731 = vmatprep.subr.bf16.mxu1 %v2153_v41 }
  0x38   :  { %1733 = vmatpush3.bf16.msra.mxu1 %v1732_v20  ;;  %v648_v20 = vld [vmem:[%s3730_s13 + $0xf8] sm:$0xff] }
  0x39   :  { %1734 = vmatprep.subr.bf16.mxu1 %v2153_v41  ;;  %v1826_v21 = vpack.c.bf16 %v648_v20, %v644_v15  ;;  %v646_v15 = vld [vmem:[%s3730_s13 + $0xe8] sm:$0xff] }
  0x3c   :  { %1736 = vmatpush3.bf16.msra.mxu1 %v1735_v23  ;;  %v647_v23 = vld [vmem:[%s3730_s13 + $0xf0] sm:$0xff] }
  0x3d   :  { %1737 = vmatprep.subr.bf16.mxu1 %v2153_v41  ;;  %v1828_v28 = vpack.c.bf16 %v647_v23, %v643_v22  ;;  %v704_v22 = vld [vmem:[%s3730_s13 + $0x2b8] sm:$0xff] }
  0x40   :  { %1739 = vmatpush3.bf16.msra.mxu1 %v1738_v26  ;;  %v656_v26 = vld [vmem:[%s3730_s13 + $0x138] sm:$0xff] }
  0x41   :  { %1740 = vmatprep.subr.bf16.mxu1 %v2153_v41  ;;  %v1830_v30 = vpack.c.bf16 %v656_v26, %v652_v25  ;;  %v645_v25 = vld [vmem:[%s3730_s13 + $0xe0] sm:$0xff]  ;;  %v650_v26 = vld [vmem:[%s3730_s13 + $0x108] sm:$0xff] }
  0x44   :  { %1742 = vmatpush3.bf16.msra.mxu1 %v1741_v33  ;;  %v660_v33 = vld [vmem:[%s3730_s13 + $0x158] sm:$0xff] }
  0x45   :  { %1743 = vmatprep.subr.bf16.mxu1 %v2153_v41  ;;  %v1515_v41 = vld [vmem:[%s3727_s5] ss:$0 sm:$0xff]  ;;  %v1834_v36 = vpack.c.bf16 %v664_v34, %v660_v33  ;;  %v708_v34 = vld [vmem:[%s3730_s13 + $0x2d8] sm:$0xff] }
  0x48   :  { %1745 = vmatpush3.bf16.msra.mxu1 %v1744_v39  ;;  %v668_v39 = vld [vmem:[%s3730_s13 + $0x198] sm:$0xff] }
  0xe5   :  { %v163_v40 = vpop.f32.mrb[0].mxu0 }
  0xe6   :  { %v1595_v42 = vpop.f32.mrb[1].mxu0 }
  0xe7   :  { %v1836_v42 = vpack.c.bf16 %v663_v38, %v659_v37  ;;  %v649_v37 = vld [vmem:[%s3730_s13 + $0x100] sm:$0xff] }
  0xe8   :  { %v653_v38 = vld [vmem:[%s3730_s13 + $0x120] sm:$0xff] }
  0xfe   :  { %v1554_v43 = vpop.f32.mrb[0].mxu1 }
  0xff   :  { %v1555_v44 = vpop.f32.mrb[1].mxu1 }
 0x100   :  { %v1556_v45 = vadd.f32 %v1555_v44, %v1554_v43  ;;  %v1516_v43 = vld [vmem:[%s3732_s7] ss:$0 sm:$0xff] }
 0x102   :  { %v245_v46 = vadd.f32 %v1556_v45, %v163_v40  ;;  %v672_v40 = vld [vmem:[%s3730_s13 + $0x1b8] sm:$0xff]  ;;  %v667_v45 = vld [vmem:[%s3730_s13 + $0x190] sm:$0xff] }
 0x103   :  { %v1838_v44 = vpack.c.bf16 %v672_v40, %v668_v39  ;;  %v658_v39 = vld [vmem:[%s3730_s13 + $0x148] sm:$0xff] }
 0x104   :  { %v255_v47 = vadd.f32 %v1515_v41, %v245_v46  ;;  %v671_v41 = vld [vmem:[%s3730_s13 + $0x1b0] sm:$0xff]  ;;  %v443_v46 = vld [vmem:[%s3733_s2] sm:$0x3]  ;;  %v662_v40 = vld [vmem:[%s3730_s13 + $0x168] sm:$0xff] }
 0x105   :  { %v1840_v54 = vpack.c.bf16 %v671_v41, %v667_v45  ;;  %v711_v45 = vld [vmem:[%s3730_s13 + $0x2f0] sm:$0xff]  ;;  %v1768_v41 = vpack.c.bf16 %v653_v38, %v649_v37  ;;  %v709_v37 = vld [vmem:[%s3730_s13 + $0x2e0] sm:$0xff]  ;;  %v714_v38 = vld [vmem:[%s3730_s13 + $0x308] sm:$0xff] }
 0x106   :  { %v256_v48 = vmax.f32 %v255_v47, 0.0  ;;  %v676_v47 = vld [vmem:[%s3730_s13 + $0x1d8] sm:$0xff] }
 0x108   :  { %1629 = vmatmul.mubr.f32.vlgmr.msra.gmra.mrb[2].mxu0 %v256_v48  ;;  %1664 = vmatmul.mubr.f32.vlgmr.msra.gmra.mrb[2].mxu1 %v256_v48  ;;  %v680_v48 = vld [vmem:[%s3730_s13 + $0x1f8] sm:$0xff] }
 0x109   :  { %519 = vmatprep.mubr.f32.mxu0 %v2151_v3  ;;  %456 = vmatpush1.msra.mxu0 %v453_v50  ;;  %v621_v50 = vld [vmem:[%s3730_s13 + $0x20] sm:$0xff]  ;;  %v1842_v57 = vpack.c.bf16 %v680_v48, %v676_v47  ;;  %v720_v47 = vld [vmem:[%s3730_s13 + $0x338] sm:$0xff]  ;;  %v1770_v48 = vpack.c.bf16 %v662_v40, %v658_v39  ;;  %v718_v39 = vld [vmem:[%s3730_s13 + $0x328] sm:$0xff] }
 0x10a   :  { %1747 = vmatprep.subr.bf16.mxu0 %v1746_v55 }
 0x10c   :  { %1518 = vmatmul.mubr.msk.f32.vlgmr.msra.gmra.mrb[4].mxu0 %vm93_vm1, %v2321_v29  ;;  %v624_v29 = vld [vmem:[%s3730_s13 + $0x38] sm:$0xff] }
 0x10d   :  { %594 = vmatprep.mubr.f32.mxu0 %v2151_v3  ;;  %1749 = vmatpush1.bf16.msra.mxu0 %v1748_v56  ;;  %v1814_v61 = vpack.c.bf16 %v624_v29, %v620_v59  ;;  %v619_v3 = vld [vmem:[%s3730_s13 + $0x10] sm:$0xff]  ;;  %v684_v29 = vld [vmem:[%s3730_s13 + $0x218] sm:$0xff] }
 0x10e   :  { %1751 = vmatprep.subr.bf16.mxu0 %v1750_v60  ;;  %v1816_v63 = vpack.c.bf16 %v623_v62, %v619_v3  ;;  %v679_v59 = vld [vmem:[%s3730_s13 + $0x1f0] sm:$0xff]  ;;  %v1752_v60 = vpack.c.bf16 %v621_v50, %v617_v49  ;;  %v1754_v62 = vpack.c.bf16 %v630_v53, %v626_v52  ;;  %v657_v49 = vld [vmem:[%s3730_s13 + $0x140] sm:$0xff]  ;;  %v670_v52 = vld [vmem:[%s3730_s13 + $0x1a8] sm:$0xff] }
 0x10f   :  { %1815 = vmatprep.subr.bf16.mxu1 %v1814_v61  ;;  %v688_v61 = vld [vmem:[%s3730_s13 + $0x238] sm:$0xff]  ;;  %v1844_v4 = vpack.c.bf16 %v679_v59, %v675_v58  ;;  %v661_v50 = vld [vmem:[%s3730_s13 + $0x160] sm:$0xff] }
 0x110   :  { %1817 = vmatpush1.bf16.msra.mxu1 %v1816_v63  ;;  %v625_v63 = vld [vmem:[%s3730_s13 + $0x40] sm:$0xff]  ;;  %v1846_v5 = vpack.c.bf16 %v688_v61, %v684_v29  ;;  %v1772_v58 = vpack.c.bf16 %v661_v50, %v657_v49  ;;  %v724_v59 = vld [vmem:[%s3730_s13 + $0x358] sm:$0xff]  ;;  %v730_v50 = vld [vmem:[%s3730_s13 + $0x388] sm:$0xff] }
 0x111   :  { %1819 = vmatprep.subr.bf16.mxu1 %v1818_v2  ;;  %v638_v2 = vld [vmem:[%s3730_s13 + $0xa8] sm:$0xff]  ;;  %v1756_v8 = vpack.c.bf16 %v629_v0, %v625_v63  ;;  %v665_v61 = vld [vmem:[%s3730_s13 + $0x180] sm:$0xff] }
 0x112   :  { %v1758_v11 = vpack.c.bf16 %v638_v2, %v634_v1  ;;  %v678_v63 = vld [vmem:[%s3730_s13 + $0x1e8] sm:$0xff]  ;;  %v723_v2 = vld [vmem:[%s3730_s13 + $0x350] sm:$0xff]  ;;  %v725_v49 = vld [vmem:[%s3730_s13 + $0x360] sm:$0xff] }
 0x114   :  { %1821 = vmatpush1.bf16.msra.mxu1 %v1820_v7  ;;  %v687_v7 = vld [vmem:[%s3730_s13 + $0x230] sm:$0xff] }
 0x115   :  { %1823 = vmatprep.subr.bf16.mxu1 %v1822_v10  ;;  %v696_v10 = vld [vmem:[%s3730_s13 + $0x278] sm:$0xff] }
 0x118   :  { %1825 = vmatpush1.bf16.msra.mxu1 %v1824_v19  ;;  %v695_v19 = vld [vmem:[%s3730_s13 + $0x270] sm:$0xff] }
 0x119   :  { %1827 = vmatprep.subr.bf16.mxu1 %v1826_v21  ;;  %v700_v21 = vld [vmem:[%s3730_s13 + $0x298] sm:$0xff] }
 0x11c   :  { %1829 = vmatpush1.bf16.msra.mxu1 %v1828_v28 }
 0x11d   :  { %1831 = vmatprep.subr.bf16.mxu1 %v1830_v30  ;;  %v1854_v30 = vpack.c.bf16 %v704_v22, %v700_v21 }
 0x120   :  { %1833 = vmatpush1.bf16.msra.mxu1 %v1832_v35  ;;  %v712_v35 = vld [vmem:[%s3730_s13 + $0x2f8] sm:$0xff] }
 0x121   :  { %1835 = vmatprep.subr.bf16.mxu1 %v1834_v36 }
 0x124   :  { %1837 = vmatpush1.bf16.msra.mxu1 %v1836_v42  ;;  %v1856_v42 = vpack.c.bf16 %v703_v32, %v699_v31  ;;  %v701_v31 = vld [vmem:[%s3730_s13 + $0x2a0] sm:$0xff]  ;;  %v706_v32 = vld [vmem:[%s3730_s13 + $0x2c8] sm:$0xff] }
 0x125   :  { %1839 = vmatprep.subr.bf16.mxu1 %v1838_v44  ;;  %v707_v44 = vld [vmem:[%s3730_s13 + $0x2d0] sm:$0xff] }
 0x126   :  { %v1860_v53 = vpack.c.bf16 %v711_v45, %v707_v44  ;;  %v717_v44 = vld [vmem:[%s3730_s13 + $0x320] sm:$0xff]  ;;  %v722_v45 = vld [vmem:[%s3730_s13 + $0x348] sm:$0xff] }
 0x128   :  { %1841 = vmatpush1.bf16.msra.mxu1 %v1840_v54 }
 0x129   :  { %1843 = vmatprep.subr.bf16.mxu1 %v1842_v57  ;;  %v719_v57 = vld [vmem:[%s3730_s13 + $0x330] sm:$0xff] }
 0x12c   :  { %1845 = vmatpush1.bf16.msra.mxu1 %v1844_v4  ;;  %v727_v4 = vld [vmem:[%s3730_s13 + $0x370] sm:$0xff] }
 0x12d   :  { %1847 = vmatprep.subr.bf16.mxu1 %v1846_v5 }
 0x1db   :  { %v346_v13 = vpop.f32.mrb[2].mxu0  ;;  %v439_v14 = vpop.f32.mrb[2].mxu1 }
 0x1dc   :  { %v440_v16 = vadd.f32 %v1517_v6, %v439_v14  ;;  %v1630_v17 = vpop.f32.mrb[3].mxu0  ;;  %v1665_v18 = vpop.f32.mrb[3].mxu1  ;;  %v2626_v55 = vadd.f32 %v1516_v43, %v346_v13  ;;  %v683_v6 = vld [vmem:[%s3730_s13 + $0x210] sm:$0xff]  ;;  %v637_v13 = vld [vmem:[%s3730_s13 + $0xa0] sm:$0xff]  ;;  %v642_v14 = vld [vmem:[%s3730_s13 + $0xc8] sm:$0xff]  ;;  %v1858_v43 = vpack.c.bf16 %v712_v35, %v708_v34 }
 0x1dd   :  { %v1850_v17 = vpack.c.bf16 %v696_v10, %v692_v9  ;;  %v691_v18 = vld [vmem:[%s3730_s13 + $0x250] sm:$0xff]  ;;  %v1760_v20 = vpack.c.bf16 %v637_v13, %v633_v12  ;;  %v1762_v23 = vpack.c.bf16 %v646_v15, %v642_v14  ;;  %v673_v9 = vld [vmem:[%s3730_s13 + $0x1c0] sm:$0xff]  ;;  %v686_v12 = vld [vmem:[%s3730_s13 + $0x228] sm:$0xff]  ;;  %v1868_v13 = vpack.c.bf16 %v727_v4, %v723_v2 }
 0x1de   :  { %v444_v24 = vmul.f32 0.5, %v440_v16  ;;  %1499 = vrot.lane.b32.xlu0 %v440_v16, %s2154_s21  ;;  %v1848_v16 = vpack.c.bf16 %v687_v7, %v683_v6  ;;  %v1852_v28 = vpack.c.bf16 %v695_v19, %v691_v18  ;;  %v732_v6 = vld [vmem:[%s3730_s13 + $0x398] sm:$0xff]  ;;  %v677_v10 = vld [vmem:[%s3730_s13 + $0x1e0] sm:$0xff]  ;;  %v690_v19 = vld [vmem:[%s3730_s13 + $0x248] sm:$0xff] }
 0x1df   :  { %v736_v7 = vld [vmem:[%s3730_s13 + $0x3b8] sm:$0xff]  ;;  %v1780_v15 = vpack.c.bf16 %v677_v10, %v673_v9  ;;  %v685_v18 = vld [vmem:[%s3730_s13 + $0x220] sm:$0xff]  ;;  %v918_v9 = vld [vmem:[%s3734_s15 + $0x28] sm:$0xff] }
 0x1e0   :  { %v445_v27 = vmul.f32 1.442695, %v444_v24  ;;  %v641_v24 = vld [vmem:[%s3730_s13 + $0xc0] sm:$0xff]  ;;  %1849 = vmatpush1.bf16.msra.mxu1 %v1848_v16  ;;  %v1870_v14 = vpack.c.bf16 %v736_v7, %v732_v6  ;;  %v743_v6 = vld [vmem:[%s3730_s13 + $0x3f0] sm:$0xff]  ;;  %v916_v10 = vld [vmem:[%s3734_s15 + $0x18] sm:$0xff] }
 0x1e1   :  { %1851 = vmatprep.subr.bf16.mxu1 %v1850_v17  ;;  %v1764_v33 = vpack.c.bf16 %v645_v25, %v641_v24  ;;  %v681_v17 = vld [vmem:[%s3730_s13 + $0x200] sm:$0xff]  ;;  %v698_v25 = vld [vmem:[%s3730_s13 + $0x288] sm:$0xff] }
 0x1e2   :  { %2149 = vpow2.f32 %v445_v27  ;;  %v654_v27 = vld [vmem:[%s3730_s13 + $0x128] sm:$0xff]  ;;  %v1784_v21 = vpack.c.bf16 %v685_v18, %v681_v17  ;;  %v693_v24 = vld [vmem:[%s3730_s13 + $0x260] sm:$0xff] }
 0x1e3   :  { %v1766_v36 = vpack.c.bf16 %v654_v27, %v650_v26  ;;  %v702_v26 = vld [vmem:[%s3730_s13 + $0x2a8] sm:$0xff] }
 0x1e4   :  { %1853 = vmatpush1.bf16.msra.mxu1 %v1852_v28  ;;  %v1790_v28 = vpack.c.bf16 %v702_v26, %v698_v25 }
 0x1e5   :  { %1855 = vmatprep.subr.bf16.mxu1 %v1854_v30  ;;  %v697_v30 = vld [vmem:[%s3730_s13 + $0x280] sm:$0xff] }
 0x1e6   :  { %v1792_v34 = vpack.c.bf16 %v701_v31, %v697_v30  ;;  %v922_v30 = vld [vmem:[%s3734_s15 + $0x48] sm:$0xff] }
 0x1e8   :  { %1857 = vmatpush1.bf16.msra.mxu1 %v1856_v42  ;;  %v1798_v42 = vpack.c.bf16 %v718_v39, %v714_v38  ;;  %v921_v38 = vld [vmem:[%s3734_s15 + $0x40] sm:$0xff] }
 0x1e9   :  { %1859 = vmatprep.subr.bf16.mxu1 %v1858_v43  ;;  %v713_v43 = vld [vmem:[%s3730_s13 + $0x300] sm:$0xff] }
 0x1ea   :  { %v925_v39 = vld [vmem:[%s3734_s15 + $0x60] sm:$0xff] }
 0x1ec   :  { %v2150_v51 = vpop.eup %2149  ;;  %1861 = vmatpush1.bf16.msra.mxu1 %v1860_v53 }
 0x1ed   :  { %v447_v56 = vmul.f32 %v2150_v51, %v443_v46  ;;  %v716_v46 = vld [vmem:[%s3730_s13 + $0x318] sm:$0xff]  ;;  %v666_v51 = vld [vmem:[%s3730_s13 + $0x188] sm:$0xff] }
 0x1ee   :  { %v1862_v54 = vpack.c.bf16 %v720_v47, %v716_v46  ;;  %v1774_v29 = vpack.c.bf16 %v670_v52, %v666_v51  ;;  %v1800_v46 = vpack.c.bf16 %v717_v44, %v713_v43  ;;  %v734_v51 = vld [vmem:[%s3730_s13 + $0x3a8] sm:$0xff]  ;;  %v923_v44 = vld [vmem:[%s3734_s15 + $0x50] sm:$0xff] }
 0x1ef   :  { %v448_v3 = vadd.f32 %v447_v56, %v2626_v55  ;;  %v715_v56 = vld [vmem:[%s3730_s13 + $0x310] sm:$0xff]  ;;  %v1806_v53 = vpack.c.bf16 %v734_v51, %v730_v50  ;;  %v929_v51 = vld [vmem:[%s3734_s15 + $0x80] sm:$0xff] }
 0x1f0   :  { %v1864_v0 = vpack.c.bf16 %v719_v57, %v715_v56  ;;  %1863 = vmatprep.subr.bf16.mxu1 %v1862_v54  ;;  %v729_v54 = vld [vmem:[%s3730_s13 + $0x380] sm:$0xff]  ;;  %v731_v57 = vld [vmem:[%s3730_s13 + $0x390] sm:$0xff] }
 0x1f1   :  { %1519 = vmatmul.mubr.msk.f32.vlgmr.msra.gmra.mrb[4].mxu0 %vm526_vm2, %v448_v3  ;;  %v669_v3 = vld [vmem:[%s3730_s13 + $0x1a0] sm:$0xff] }
 0x1f2   :  { %1753 = vmatpush1.bf16.msra.mxu0 %v1752_v60  ;;  %v728_v60 = vld [vmem:[%s3730_s13 + $0x378] sm:$0xff]  ;;  %v1776_v5 = vpack.c.bf16 %v669_v3, %v665_v61  ;;  %1865 = vmatpush1.bf16.msra.mxu1 %v1864_v0  ;;  %v733_v56 = vld [vmem:[%s3730_s13 + $0x3a0] sm:$0xff]  ;;  %v742_v61 = vld [vmem:[%s3730_s13 + $0x3e8] sm:$0xff] }
 0x1f3   :  { %1755 = vmatprep.subr.bf16.mxu0 %v1754_v62  ;;  %v674_v62 = vld [vmem:[%s3730_s13 + $0x1c8] sm:$0xff]  ;;  %v1866_v1 = vpack.c.bf16 %v728_v60, %v724_v59  ;;  %v735_v59 = vld [vmem:[%s3730_s13 + $0x3b0] sm:$0xff]  ;;  %v740_v3 = vld [vmem:[%s3730_s13 + $0x3d8] sm:$0xff] }
 0x1f4   :  { %v1872_v60 = vpack.c.bf16 %v735_v59, %v731_v57  ;;  %v737_v0 = vld [vmem:[%s3730_s13 + $0x3c0] sm:$0xff]  ;;  %v935_v57 = vld [vmem:[%s3734_s15 + $0xb0] sm:$0xff]  ;;  %v942_v59 = vld [vmem:[%s3734_s15 + $0xe8] sm:$0xff] }
 0x1f5   :  { %1867 = vmatprep.subr.bf16.mxu1 %v1866_v1  ;;  %v741_v1 = vld [vmem:[%s3730_s13 + $0x3e0] sm:$0xff] }
 0x1f6   :  { %1757 = vmatpush1.bf16.msra.mxu0 %v1756_v8  ;;  %v1778_v8 = vpack.c.bf16 %v678_v63, %v674_v62  ;;  %1869 = vmatpush1.bf16.msra.mxu1 %v1868_v13  ;;  %v744_v63 = vld [vmem:[%s3730_s13 + $0x3f8] sm:$0xff]  ;;  %v1812_v4 = vpack.c.bf16 %v741_v1, %v737_v0 }
 0x1f7   :  { %1759 = vmatprep.subr.bf16.mxu0 %v1758_v11  ;;  %v682_v11 = vld [vmem:[%s3730_s13 + $0x208] sm:$0xff]  ;;  %1871 = vmatprep.subr.bf16.mxu1 %v1870_v14  ;;  %v1874_v2 = vpack.c.bf16 %v744_v63, %v740_v3  ;;  %v941_v63 = vld [vmem:[%s3734_s15 + $0xe0] sm:$0xff] }
 0x1f8   :  { %v1782_v16 = vpack.c.bf16 %v686_v12, %v682_v11  ;;  %v920_v12 = vld [vmem:[%s3734_s15 + $0x38] sm:$0xff] }
 0x1f9   :  { %v2006_v13 = vpack.c.bf16 %v920_v12, %v916_v10  ;;  %v949_v12 = vld [vmem:[%s3734_s15 + $0x120] sm:$0xff] }
 0x1fa   :  { %1761 = vmatpush1.bf16.msra.mxu0 %v1760_v20  ;;  %v694_v20 = vld [vmem:[%s3730_s13 + $0x268] sm:$0xff]  ;;  %1873 = vmatpush1.bf16.msra.mxu1 %v1872_v60  ;;  %v940_v60 = vld [vmem:[%s3734_s15 + $0xd8] sm:$0xff] }
 0x1fb   :  { %1763 = vmatprep.subr.bf16.mxu0 %v1762_v23  ;;  %v1786_v22 = vpack.c.bf16 %v694_v20, %v690_v19  ;;  %v689_v23 = vld [vmem:[%s3730_s13 + $0x240] sm:$0xff]  ;;  %1875 = vmatprep.subr.bf16.mxu1 %v1874_v2  ;;  %v939_v2 = vld [vmem:[%s3734_s15 + $0xd0] sm:$0xff] }
 0x1fc   :  { %v1788_v27 = vpack.c.bf16 %v693_v24, %v689_v23  ;;  %v601_v19 = vld [vmem:[%s3736_s12] sm:$0x3] }
 0x1fd   :  { %v913_v23 = vld [vmem:[%s3734_s15] sm:$0xff] }
 0x1fe   :  { %1765 = vmatpush1.bf16.msra.mxu0 %v1764_v33  ;;  %v710_v33 = vld [vmem:[%s3730_s13 + $0x2e8] sm:$0xff]  ;;  %v917_v24 = vld [vmem:[%s3734_s15 + $0x20] sm:$0xff] }
 0x1ff   :  { %1767 = vmatprep.subr.bf16.mxu0 %v1766_v36  ;;  %v1794_v35 = vpack.c.bf16 %v710_v33, %v706_v32  ;;  %v705_v36 = vld [vmem:[%s3730_s13 + $0x2c0] sm:$0xff]  ;;  %v926_v32 = vld [vmem:[%s3734_s15 + $0x68] sm:$0xff]  ;;  %v924_v33 = vld [vmem:[%s3734_s15 + $0x58] sm:$0xff] }
 0x200   :  { %v1796_v40 = vpack.c.bf16 %v709_v37, %v705_v36  ;;  %v1880_v36 = vpack.c.bf16 %v917_v24, %v913_v23 }
 0x202   :  { %1769 = vmatpush1.bf16.msra.mxu0 %v1768_v41  ;;  %v726_v41 = vld [vmem:[%s3730_s13 + $0x368] sm:$0xff] }
 0x203   :  { %1771 = vmatprep.subr.bf16.mxu0 %v1770_v48  ;;  %v1802_v47 = vpack.c.bf16 %v726_v41, %v722_v45  ;;  %v721_v48 = vld [vmem:[%s3730_s13 + $0x340] sm:$0xff]  ;;  %v927_v45 = vld [vmem:[%s3734_s15 + $0x70] sm:$0xff]  ;;  %v930_v41 = vld [vmem:[%s3734_s15 + $0x88] sm:$0xff] }
 0x204   :  { %v1804_v52 = vpack.c.bf16 %v725_v49, %v721_v48  ;;  %v936_v48 = vld [vmem:[%s3734_s15 + $0xb8] sm:$0xff]  ;;  %v1884_v49 = vpack.c.bf16 %v925_v39, %v921_v38  ;;  %v2012_v50 = vpack.c.bf16 %v927_v45, %v923_v44  ;;  %v961_v38 = vld [vmem:[%s3734_s15 + $0x180] sm:$0xff]  ;;  %v967_v44 = vld [vmem:[%s3734_s15 + $0x1b0] sm:$0xff] }
 0x205   :  { %v965_v39 = vld [vmem:[%s3734_s15 + $0x1a0] sm:$0xff]  ;;  %v970_v45 = vld [vmem:[%s3734_s15 + $0x1c8] sm:$0xff] }
 0x206   :  { %1773 = vmatpush1.bf16.msra.mxu0 %v1772_v58  ;;  %v1808_v58 = vpack.c.bf16 %v733_v56, %v729_v54  ;;  %v931_v56 = vld [vmem:[%s3734_s15 + $0x90] sm:$0xff] }
 0x207   :  { %1775 = vmatprep.subr.bf16.mxu0 %v1774_v29  ;;  %v738_v29 = vld [vmem:[%s3730_s13 + $0x3c8] sm:$0xff]  ;;  %v2016_v3 = vpack.c.bf16 %v935_v57, %v931_v56  ;;  %v975_v56 = vld [vmem:[%s3734_s15 + $0x1f0] sm:$0xff] }
 0x208   :  { %v1810_v62 = vpack.c.bf16 %v742_v61, %v738_v29  ;;  %v944_v29 = vld [vmem:[%s3734_s15 + $0xf8] sm:$0xff]  ;;  %v978_v57 = vld [vmem:[%s3734_s15 + $0x208] sm:$0xff] }
 0x209   :  { %v2018_v1 = vpack.c.bf16 %v944_v29, %v940_v60  ;;  %v984_v60 = vld [vmem:[%s3734_s15 + $0x238] sm:$0xff] }
 0x20a   :  { %1777 = vmatpush1.bf16.msra.mxu0 %v1776_v5  ;;  %v739_v5 = vld [vmem:[%s3730_s13 + $0x3d0] sm:$0xff] }
 0x20b   :  { %1779 = vmatprep.subr.bf16.mxu0 %v1778_v8  ;;  %v1876_v7 = vpack.c.bf16 %v743_v6, %v739_v5  ;;  %v914_v8 = vld [vmem:[%s3734_s15 + $0x8] sm:$0xff] }
 0x20c   :  { %v1878_v11 = vpack.c.bf16 %v918_v9, %v914_v8  ;;  %v946_v5 = vld [vmem:[%s3734_s15 + $0x108] sm:$0xff]  ;;  %v952_v8 = vld [vmem:[%s3734_s15 + $0x138] sm:$0xff] }
 0x20d   :  { %1877 = vmatpush1.bf16.msra.mxu1 %v1876_v7  ;;  %v950_v6 = vld [vmem:[%s3734_s15 + $0x128] sm:$0xff]  ;;  %v948_v7 = vld [vmem:[%s3734_s15 + $0x118] sm:$0xff] }
 0x20e   :  { %1781 = vmatpush1.bf16.msra.mxu0 %v1780_v15  ;;  %2007 = vmatprep.subr.bf16.mxu1 %v2006_v13  ;;  %v1894_v13 = vpack.c.bf16 %v950_v6, %v946_v5  ;;  %v990_v5 = vld [vmem:[%s3734_s15 + $0x268] sm:$0xff]  ;;  %v988_v6 = vld [vmem:[%s3734_s15 + $0x258] sm:$0xff] }
 0x20f   :  { %1783 = vmatprep.subr.bf16.mxu0 %v1782_v16  ;;  %v603_v16 = vlaneseq }
 0x211   :  { %v2923_v17 = vshrl.u32 %v603_v16, 7  ;;  %v951_v16 = vld [vmem:[%s3734_s15 + $0x130] sm:$0xff] }
 0x212   :  { %1785 = vmatpush1.bf16.msra.mxu0 %v1784_v21 }
 0x213   :  { %1787 = vmatprep.subr.bf16.mxu0 %v1786_v22  ;;  %v2926_v18 = vsub.s32 0, %v2923_v17  ;;  %v2932_v20 = vsub.s32 1, %v2923_v17 }
 0x215   :  { %v606_v21 = vrot.slane %v601_v19, %v2926_v18 }
 0x216   :  { %1789 = vmatpush1.bf16.msra.mxu0 %v1788_v27  ;;  %v915_v27 = vld [vmem:[%s3734_s15 + $0x10] sm:$0xff] }
 0x217   :  { %1791 = vmatprep.subr.bf16.mxu0 %v1790_v28  ;;  %v919_v28 = vld [vmem:[%s3734_s15 + $0x30] sm:$0xff] }
 0x218   :  { %v2008_v37 = vpack.c.bf16 %v919_v28, %v915_v27 }
 0x21a   :  { %1793 = vmatpush1.bf16.msra.mxu0 %v1792_v34  ;;  %v928_v34 = vld [vmem:[%s3734_s15 + $0x78] sm:$0xff] }
 0x21b   :  { %1795 = vmatprep.subr.bf16.mxu0 %v1794_v35  ;;  %v2010_v43 = vpack.c.bf16 %v928_v34, %v924_v33  ;;  %v966_v33 = vld [vmem:[%s3734_s15 + $0x1a8] sm:$0xff]  ;;  %v964_v34 = vld [vmem:[%s3734_s15 + $0x198] sm:$0xff] }
 0x21e   :  { %1797 = vmatpush1.bf16.msra.mxu0 %v1796_v40 }
 0x21f   :  { %1799 = vmatprep.subr.bf16.mxu0 %v1798_v42  ;;  %v1882_v42 = vpack.c.bf16 %v926_v32, %v922_v30  ;;  %v955_v30 = vld [vmem:[%s3734_s15 + $0x150] sm:$0xff]  ;;  %v962_v32 = vld [vmem:[%s3734_s15 + $0x188] sm:$0xff] }
 0x222   :  { %1801 = vmatpush1.bf16.msra.mxu0 %v1800_v46  ;;  %v934_v46 = vld [vmem:[%s3734_s15 + $0xa8] sm:$0xff] }
 0x223   :  { %1803 = vmatprep.subr.bf16.mxu0 %v1802_v47  ;;  %v932_v47 = vld [vmem:[%s3734_s15 + $0x98] sm:$0xff] }
 0x224   :  { %v2014_v54 = vpack.c.bf16 %v936_v48, %v932_v47  ;;  %v976_v47 = vld [vmem:[%s3734_s15 + $0x1f8] sm:$0xff]  ;;  %v1904_v48 = vpack.c.bf16 %v965_v39, %v961_v38  ;;  %v1005_v38 = vld [vmem:[%s3734_s15 + $0x2e0] sm:$0xff] }
 0x226   :  { %1805 = vmatpush1.bf16.msra.mxu0 %v1804_v52  ;;  %v933_v52 = vld [vmem:[%s3734_s15 + $0xa0] sm:$0xff] }
 0x227   :  { %1807 = vmatprep.subr.bf16.mxu0 %v1806_v53  ;;  %v1886_v53 = vpack.c.bf16 %v934_v46, %v930_v41  ;;  %v1888_v61 = vpack.c.bf16 %v933_v52, %v929_v51  ;;  %v974_v41 = vld [vmem:[%s3734_s15 + $0x1e8] sm:$0xff]  ;;  %v972_v46 = vld [vmem:[%s3734_s15 + $0x1d8] sm:$0xff]  ;;  %v973_v51 = vld [vmem:[%s3734_s15 + $0x1e0] sm:$0xff] }
 0x228   :  { %v1906_v52 = vpack.c.bf16 %v974_v41, %v970_v45  ;;  %v1014_v45 = vld [vmem:[%s3734_s15 + $0x328] sm:$0xff]  ;;  %v1012_v41 = vld [vmem:[%s3734_s15 + $0x318] sm:$0xff] }
 0x22a   :  { %1809 = vmatpush1.bf16.msra.mxu0 %v1808_v58  ;;  %v938_v58 = vld [vmem:[%s3734_s15 + $0xc8] sm:$0xff] }
 0x22b   :  { %1811 = vmatprep.subr.bf16.mxu0 %v1810_v62  ;;  %v937_v62 = vld [vmem:[%s3734_s15 + $0xc0] sm:$0xff]  ;;  %v1890_v0 = vpack.c.bf16 %v942_v59, %v938_v58  ;;  %v982_v58 = vld [vmem:[%s3734_s15 + $0x228] sm:$0xff]  ;;  %v980_v59 = vld [vmem:[%s3734_s15 + $0x218] sm:$0xff] }
 0x22c   :  { %v1892_v9 = vpack.c.bf16 %v941_v63, %v937_v62  ;;  %v981_v62 = vld [vmem:[%s3734_s15 + $0x220] sm:$0xff]  ;;  %v1910_v63 = vpack.c.bf16 %v982_v58, %v978_v57  ;;  %v1022_v57 = vld [vmem:[%s3734_s15 + $0x368] sm:$0xff]  ;;  %v1020_v58 = vld [vmem:[%s3734_s15 + $0x358] sm:$0xff] }
 0x22e   :  { %1813 = vmatpush1.bf16.msra.mxu0 %v1812_v4  ;;  %v943_v4 = vld [vmem:[%s3734_s15 + $0xf0] sm:$0xff] }
 0x22f   :  { %1879 = vmatprep.subr.bf16.mxu0 %v1878_v11  ;;  %v2020_v10 = vpack.c.bf16 %v943_v4, %v939_v2  ;;  %v945_v11 = vld [vmem:[%s3734_s15 + $0x100] sm:$0xff]  ;;  %v983_v2 = vld [vmem:[%s3734_s15 + $0x230] sm:$0xff]  ;;  %v986_v4 = vld [vmem:[%s3734_s15 + $0x248] sm:$0xff] }
 0x230   :  { %v1896_v23 = vpack.c.bf16 %v949_v12, %v945_v11  ;;  %v989_v11 = vld [vmem:[%s3734_s15 + $0x260] sm:$0xff]  ;;  %v1914_v12 = vpack.c.bf16 %v990_v5, %v986_v4  ;;  %v1030_v4 = vld [vmem:[%s3734_s15 + $0x3a8] sm:$0xff]  ;;  %v1028_v5 = vld [vmem:[%s3734_s15 + $0x398] sm:$0xff] }
 0x250   :  { %v1500_v14 = vpop.permute.xlu0 %1499 }
 0x251   :  { %v1502_v15 = vsel %vm526_vm2, %v2626_v55, %v1500_v14  ;;  %v610_v55 = vrot.slane %v601_v19, %v2932_v20  ;;  %v2022_v14 = vpack.c.bf16 %v952_v8, %v948_v7  ;;  %v954_v19 = vld [vmem:[%s3734_s15 + $0x148] sm:$0xff]  ;;  %v992_v7 = vld [vmem:[%s3734_s15 + $0x278] sm:$0xff] }
 0x252   :  { %1504 = vst.msk [vmem:[%s3735_s18] sm:$0x3] %vm1503_vm3, %v1502_v15  ;;  %v947_v15 = vld [vmem:[%s3734_s15 + $0x110] sm:$0xff] }
 0x253   :  { %v2024_v24 = vpack.c.bf16 %v951_v16, %v947_v15  ;;  %v991_v15 = vld [vmem:[%s3734_s15 + $0x270] sm:$0xff]  ;;  %v994_v16 = vld [vmem:[%s3734_s15 + $0x288] sm:$0xff] }
 0x2c4   :  { %v596_v22 = vpop.f32.mrb[4].mxu0 }
 0x2c5   :  { %v613_v25 = vadd.f32 %v606_v21, %v596_v22  ;;  %v598_v26 = vpop.f32.mrb[5].mxu0  ;;  %v958_v21 = vld [vmem:[%s3734_s15 + $0x168] sm:$0xff]  ;;  %v960_v22 = vld [vmem:[%s3734_s15 + $0x178] sm:$0xff] }
 0x2c6   :  { %v614_v31 = vadd.f32 %v610_v55, %v598_v26  ;;  %v956_v55 = vld [vmem:[%s3734_s15 + $0x158] sm:$0xff]  ;;  %v957_v26 = vld [vmem:[%s3734_s15 + $0x160] sm:$0xff]  ;;  %v1898_v27 = vpack.c.bf16 %v958_v21, %v954_v19  ;;  %v998_v19 = vld [vmem:[%s3734_s15 + $0x2a8] sm:$0xff] }
 0x2c7   :  { %v615_v40 = vmax.f32 %v613_v25, 0.0  ;;  %v953_v25 = vld [vmem:[%s3734_s15 + $0x140] sm:$0xff]  ;;  %v2026_v28 = vpack.c.bf16 %v960_v22, %v956_v55  ;;  %v996_v21 = vld [vmem:[%s3734_s15 + $0x298] sm:$0xff] }
 0x2c8   :  { %v616_v35 = vmax.f32 %v614_v31, 0.0  ;;  %v959_v31 = vld [vmem:[%s3734_s15 + $0x170] sm:$0xff]  ;;  %v1000_v55 = vld [vmem:[%s3734_s15 + $0x2b8] sm:$0xff] }
 0x2ca   :  { %831 = vmatprep.mubr.f32.mxu0 %v616_v35  ;;  %902 = vmatprep.mubr.f32.mxu1 %v616_v35  ;;  %v968_v35 = vld [vmem:[%s3734_s15 + $0x1b8] sm:$0xff] }
 0x2cb   :  { %832 = vmatmul.mubr.f32.vlgmr.msra.gmra.mrb[6].mxu0 %v615_v40  ;;  %903 = vmatmul.mubr.f32.vlgmr.msra.gmra.mrb[4].mxu1 %v615_v40  ;;  %v1902_v40 = vpack.c.bf16 %v966_v33, %v962_v32  ;;  %v1006_v32 = vld [vmem:[%s3734_s15 + $0x2e8] sm:$0xff]  ;;  %v1004_v33 = vld [vmem:[%s3734_s15 + $0x2d8] sm:$0xff] }
 0x2cc   :  { %1881 = vmatpush1.bf16.msra.mxu0 %v1880_v36  ;;  %2009 = vmatpush1.bf16.msra.mxu1 %v2008_v37  ;;  %v1900_v36 = vpack.c.bf16 %v957_v26, %v953_v25  ;;  %v2028_v37 = vpack.c.bf16 %v959_v31, %v955_v30  ;;  %v997_v25 = vld [vmem:[%s3734_s15 + $0x2a0] sm:$0xff]  ;;  %v1918_v26 = vpack.c.bf16 %v998_v19, %v994_v16  ;;  %v999_v30 = vld [vmem:[%s3734_s15 + $0x2b0] sm:$0xff]  ;;  %v1002_v31 = vld [vmem:[%s3734_s15 + $0x2c8] sm:$0xff] }
 0x2cd   :  { %1883 = vmatprep.subr.bf16.mxu0 %v1882_v42  ;;  %2011 = vmatprep.subr.bf16.mxu1 %v2010_v43  ;;  %v2030_v42 = vpack.c.bf16 %v968_v35, %v964_v34  ;;  %v963_v43 = vld [vmem:[%s3734_s15 + $0x190] sm:$0xff]  ;;  %v1008_v34 = vld [vmem:[%s3734_s15 + $0x2f8] sm:$0xff]  ;;  %v1922_v39 = vpack.c.bf16 %v1006_v32, %v1002_v31  ;;  %v1034_v19 = vld [vmem:[%s3734_s15 + $0x3c8] sm:$0xff] }
 0x2ce   :  { %v1042_v32 = vld [vmem:[%s3734_s15 + $0x408] sm:$0xff] }
 0x2d0   :  { %1885 = vmatpush1.bf16.msra.mxu0 %v1884_v49  ;;  %2013 = vmatpush1.bf16.msra.mxu1 %v2012_v50  ;;  %v2032_v49 = vpack.c.bf16 %v967_v44, %v963_v43  ;;  %v969_v50 = vld [vmem:[%s3734_s15 + $0x1c0] sm:$0xff]  ;;  %v1007_v43 = vld [vmem:[%s3734_s15 + $0x2f0] sm:$0xff]  ;;  %v1010_v44 = vld [vmem:[%s3734_s15 + $0x308] sm:$0xff] }
 0x2d1   :  { %1887 = vmatprep.subr.bf16.mxu0 %v1886_v53  ;;  %2015 = vmatprep.subr.bf16.mxu1 %v2014_v54  ;;  %v2034_v53 = vpack.c.bf16 %v976_v47, %v972_v46  ;;  %v971_v54 = vld [vmem:[%s3734_s15 + $0x1d0] sm:$0xff]  ;;  %v1908_v29 = vpack.c.bf16 %v973_v51, %v969_v50  ;;  %v1016_v46 = vld [vmem:[%s3734_s15 + $0x338] sm:$0xff]  ;;  %v1013_v50 = vld [vmem:[%s3734_s15 + $0x320] sm:$0xff]  ;;  %v1926_v51 = vpack.c.bf16 %v1014_v45, %v1010_v44 }
 0x2d4   :  { %1889 = vmatpush1.bf16.msra.mxu0 %v1888_v61  ;;  %2017 = vmatpush1.bf16.msra.mxu1 %v2016_v3  ;;  %v2036_v61 = vpack.c.bf16 %v975_v56, %v971_v54  ;;  %v977_v3 = vld [vmem:[%s3734_s15 + $0x200] sm:$0xff]  ;;  %v1015_v54 = vld [vmem:[%s3734_s15 + $0x330] sm:$0xff]  ;;  %v1018_v56 = vld [vmem:[%s3734_s15 + $0x348] sm:$0xff] }
 0x2d5   :  { %1891 = vmatprep.subr.bf16.mxu0 %v1890_v0  ;;  %2019 = vmatprep.subr.bf16.mxu1 %v2018_v1  ;;  %v2038_v0 = vpack.c.bf16 %v984_v60, %v980_v59  ;;  %v979_v1 = vld [vmem:[%s3734_s15 + $0x210] sm:$0xff]  ;;  %v1912_v8 = vpack.c.bf16 %v981_v62, %v977_v3  ;;  %v1024_v59 = vld [vmem:[%s3734_s15 + $0x378] sm:$0xff]  ;;  %v1021_v3 = vld [vmem:[%s3734_s15 + $0x360] sm:$0xff]  ;;  %v1930_v62 = vpack.c.bf16 %v1022_v57, %v1018_v56 }
 0x2d6   :  { %v1054_v56 = vld [vmem:[%s3734_s15 + $0x468] sm:$0xff]  ;;  %v1052_v57 = vld [vmem:[%s3734_s15 + $0x458] sm:$0xff] }
 0x2d8   :  { %1893 = vmatpush1.bf16.msra.mxu0 %v1892_v9  ;;  %2021 = vmatpush1.bf16.msra.mxu1 %v2020_v10  ;;  %v2040_v9 = vpack.c.bf16 %v983_v2, %v979_v1  ;;  %v985_v10 = vld [vmem:[%s3734_s15 + $0x240] sm:$0xff]  ;;  %v1023_v1 = vld [vmem:[%s3734_s15 + $0x370] sm:$0xff]  ;;  %v1026_v2 = vld [vmem:[%s3734_s15 + $0x388] sm:$0xff] }
 0x2d9   :  { %1895 = vmatprep.subr.bf16.mxu0 %v1894_v13  ;;  %2023 = vmatprep.subr.bf16.mxu1 %v2022_v14  ;;  %v2042_v13 = vpack.c.bf16 %v992_v7, %v988_v6  ;;  %v987_v14 = vld [vmem:[%s3734_s15 + $0x250] sm:$0xff]  ;;  %v1916_v22 = vpack.c.bf16 %v989_v11, %v985_v10  ;;  %v1032_v6 = vld [vmem:[%s3734_s15 + $0x3b8] sm:$0xff]  ;;  %v1934_v10 = vpack.c.bf16 %v1030_v4, %v1026_v2 }
 0x2da   :  { %v2062_v11 = vpack.c.bf16 %v1032_v6, %v1028_v5  ;;  %v1062_v5 = vld [vmem:[%s3734_s15 + $0x4a8] sm:$0xff]  ;;  %v1060_v6 = vld [vmem:[%s3734_s15 + $0x498] sm:$0xff] }
 0x2dc   :  { %1897 = vmatpush1.bf16.msra.mxu0 %v1896_v23  ;;  %2025 = vmatpush1.bf16.msra.mxu1 %v2024_v24  ;;  %v2044_v23 = vpack.c.bf16 %v991_v15, %v987_v14  ;;  %v993_v24 = vld [vmem:[%s3734_s15 + $0x280] sm:$0xff]  ;;  %v1031_v14 = vld [vmem:[%s3734_s15 + $0x3b0] sm:$0xff] }
 0x2dd   :  { %1899 = vmatprep.subr.bf16.mxu0 %v1898_v27  ;;  %2027 = vmatprep.subr.bf16.mxu1 %v2026_v28  ;;  %v2046_v27 = vpack.c.bf16 %v1000_v55, %v996_v21  ;;  %v995_v28 = vld [vmem:[%s3734_s15 + $0x290] sm:$0xff]  ;;  %v1920_v35 = vpack.c.bf16 %v997_v25, %v993_v24  ;;  %v1038_v21 = vld [vmem:[%s3734_s15 + $0x3e8] sm:$0xff]  ;;  %v1036_v55 = vld [vmem:[%s3734_s15 + $0x3d8] sm:$0xff] }
 0x2de   :  { %v1033_v24 = vld [vmem:[%s3734_s15 + $0x3c0] sm:$0xff] }
 0x2df   :  { %v1037_v25 = vld [vmem:[%s3734_s15 + $0x3e0] sm:$0xff] }
 0x2e0   :  { %1901 = vmatpush1.bf16.msra.mxu0 %v1900_v36  ;;  %2029 = vmatpush1.bf16.msra.mxu1 %v2028_v37  ;;  %v2048_v36 = vpack.c.bf16 %v999_v30, %v995_v28  ;;  %v1001_v37 = vld [vmem:[%s3734_s15 + $0x2c0] sm:$0xff]  ;;  %v1035_v28 = vld [vmem:[%s3734_s15 + $0x3d0] sm:$0xff] }
 0x2e1   :  { %1903 = vmatprep.subr.bf16.mxu0 %v1902_v40  ;;  %2031 = vmatprep.subr.bf16.mxu1 %v2030_v42  ;;  %v2050_v40 = vpack.c.bf16 %v1008_v34, %v1004_v33  ;;  %v1003_v42 = vld [vmem:[%s3734_s15 + $0x2d0] sm:$0xff]  ;;  %v1924_v47 = vpack.c.bf16 %v1005_v38, %v1001_v37  ;;  %v1046_v33 = vld [vmem:[%s3734_s15 + $0x428] sm:$0xff]  ;;  %v1044_v34 = vld [vmem:[%s3734_s15 + $0x418] sm:$0xff] }
 0x2e2   :  { %v1039_v30 = vld [vmem:[%s3734_s15 + $0x3f0] sm:$0xff]  ;;  %v3323_v38 = vld [vmem:[%s3737_s14] sm:$0xf] }
 0x2e3   :  { %v2068_v31 = vpack.c.bf16 %v1039_v30, %v1035_v28  ;;  %v1067_v30 = vld [vmem:[%s3734_s15 + $0x4d0] sm:$0xff] }
 0x2e4   :  { %1905 = vmatpush1.bf16.msra.mxu0 %v1904_v48  ;;  %2033 = vmatpush1.bf16.msra.mxu1 %v2032_v49  ;;  %v2052_v48 = vpack.c.bf16 %v1007_v43, %v1003_v42  ;;  %v1009_v49 = vld [vmem:[%s3734_s15 + $0x300] sm:$0xff]  ;;  %v754_v42 = vrot.slane %v3323_v38, %v2932_v20 }
 0x2e5   :  { %1907 = vmatprep.subr.bf16.mxu0 %v1906_v52  ;;  %2035 = vmatprep.subr.bf16.mxu1 %v2034_v53  ;;  %v2054_v52 = vpack.c.bf16 %v1016_v46, %v1012_v41  ;;  %v1011_v53 = vld [vmem:[%s3734_s15 + $0x310] sm:$0xff]  ;;  %v1928_v60 = vpack.c.bf16 %v1013_v50, %v1009_v49  ;;  %v1041_v41 = vld [vmem:[%s3734_s15 + $0x400] sm:$0xff] }
 0x2e6   :  { %v1045_v49 = vld [vmem:[%s3734_s15 + $0x420] sm:$0xff]  ;;  %v1043_v50 = vld [vmem:[%s3734_s15 + $0x410] sm:$0xff] }
 0x2e8   :  { %1909 = vmatpush1.bf16.msra.mxu0 %v1908_v29  ;;  %2037 = vmatpush1.bf16.msra.mxu1 %v2036_v61  ;;  %v2056_v29 = vpack.c.bf16 %v1015_v54, %v1011_v53  ;;  %v1017_v61 = vld [vmem:[%s3734_s15 + $0x340] sm:$0xff]  ;;  %v1050_v53 = vld [vmem:[%s3734_s15 + $0x448] sm:$0xff] }
 0x2e9   :  { %1911 = vmatprep.subr.bf16.mxu0 %v1910_v63  ;;  %2039 = vmatprep.subr.bf16.mxu1 %v2038_v0  ;;  %v2058_v63 = vpack.c.bf16 %v1024_v59, %v1020_v58  ;;  %v1019_v0 = vld [vmem:[%s3734_s15 + $0x350] sm:$0xff]  ;;  %v1932_v7 = vpack.c.bf16 %v1021_v3, %v1017_v61  ;;  %v1056_v58 = vld [vmem:[%s3734_s15 + $0x478] sm:$0xff]  ;;  %v1049_v61 = vld [vmem:[%s3734_s15 + $0x440] sm:$0xff]  ;;  %v1946_v2 = vpack.c.bf16 %v1054_v56, %v1050_v53 }
 0x2ea   :  { %v1053_v3 = vld [vmem:[%s3734_s15 + $0x460] sm:$0xff]  ;;  %v2074_v4 = vpack.c.bf16 %v1056_v58, %v1052_v57  ;;  %v1083_v58 = vld [vmem:[%s3734_s15 + $0x550] sm:$0xff] }
 0x2eb   :  { %v1081_v53 = vld [vmem:[%s3734_s15 + $0x540] sm:$0xff] }
 0x2ec   :  { %1913 = vmatpush1.bf16.msra.mxu0 %v1912_v8  ;;  %2041 = vmatpush1.bf16.msra.mxu1 %v2040_v9  ;;  %v2060_v8 = vpack.c.bf16 %v1023_v1, %v1019_v0  ;;  %v1025_v9 = vld [vmem:[%s3734_s15 + $0x380] sm:$0xff]  ;;  %v1055_v0 = vld [vmem:[%s3734_s15 + $0x470] sm:$0xff]  ;;  %v1058_v1 = vld [vmem:[%s3734_s15 + $0x488] sm:$0xff] }
 0x2ed   :  { %1915 = vmatprep.subr.bf16.mxu0 %v1914_v12  ;;  %2043 = vmatprep.subr.bf16.mxu1 %v2042_v13  ;;  %v1029_v12 = vld [vmem:[%s3734_s15 + $0x3a0] sm:$0xff]  ;;  %v1027_v13 = vld [vmem:[%s3734_s15 + $0x390] sm:$0xff] }
 0x2ee   :  { %v1936_v15 = vpack.c.bf16 %v1029_v12, %v1025_v9  ;;  %v2064_v16 = vpack.c.bf16 %v1031_v14, %v1027_v13  ;;  %v1948_v9 = vpack.c.bf16 %v1053_v3, %v1049_v61  ;;  %v1061_v12 = vld [vmem:[%s3734_s15 + $0x4a0] sm:$0xff]  ;;  %v1950_v13 = vpack.c.bf16 %v1062_v5, %v1058_v1  ;;  %v1092_v61 = vld [vmem:[%s3734_s15 + $0x598] sm:$0xff]  ;;  %v1091_v5 = vld [vmem:[%s3734_s15 + $0x590] sm:$0xff] }
 0x2ef   :  { %v1096_v3 = vld [vmem:[%s3734_s15 + $0x5b8] sm:$0xff]  ;;  %v1093_v1 = vld [vmem:[%s3734_s15 + $0x5a0] sm:$0xff] }
 0x2f0   :  { %1917 = vmatpush1.bf16.msra.mxu0 %v1916_v22  ;;  %2045 = vmatpush1.bf16.msra.mxu1 %v2044_v23  ;;  %v1938_v22 = vpack.c.bf16 %v1038_v21, %v1034_v19  ;;  %v1040_v23 = vld [vmem:[%s3734_s15 + $0x3f8] sm:$0xff]  ;;  %v1066_v19 = vld [vmem:[%s3734_s15 + $0x4c8] sm:$0xff] }
 0x2f1   :  { %1919 = vmatprep.subr.bf16.mxu0 %v1918_v26  ;;  %2047 = vmatprep.subr.bf16.mxu1 %v2046_v27  ;;  %v2066_v26 = vpack.c.bf16 %v1040_v23, %v1036_v55  ;;  %v1940_v27 = vpack.c.bf16 %v1037_v25, %v1033_v24  ;;  %v1070_v21 = vld [vmem:[%s3734_s15 + $0x4e8] sm:$0xff]  ;;  %v1068_v55 = vld [vmem:[%s3734_s15 + $0x4d8] sm:$0xff]  ;;  %v1065_v25 = vld [vmem:[%s3734_s15 + $0x4c0] sm:$0xff] }
 0x2f4   :  { %1921 = vmatpush1.bf16.msra.mxu0 %v1920_v35  ;;  %2049 = vmatpush1.bf16.msra.mxu1 %v2048_v36  ;;  %v1942_v35 = vpack.c.bf16 %v1046_v33, %v1042_v32  ;;  %v1048_v36 = vld [vmem:[%s3734_s15 + $0x438] sm:$0xff]  ;;  %v1074_v32 = vld [vmem:[%s3734_s15 + $0x508] sm:$0xff] }
 0x2f5   :  { %1923 = vmatprep.subr.bf16.mxu0 %v1922_v39  ;;  %2051 = vmatprep.subr.bf16.mxu1 %v2050_v40  ;;  %v2070_v37 = vpack.c.bf16 %v1048_v36, %v1044_v34  ;;  %v761_v39 = vsub.s32 3, %v2923_v17  ;;  %v750_v40 = vrot.slane %v3323_v38, %v2926_v18  ;;  %v1078_v33 = vld [vmem:[%s3734_s15 + $0x528] sm:$0xff]  ;;  %v1076_v34 = vld [vmem:[%s3734_s15 + $0x518] sm:$0xff] }
 0x2f7   :  { %v762_v43 = vrot.slane %v3323_v38, %v761_v39 }
 0x2f8   :  { %1925 = vmatpush1.bf16.msra.mxu0 %v1924_v47  ;;  %2053 = vmatpush1.bf16.msra.mxu1 %v2052_v48 }
 0x2f9   :  { %1927 = vmatprep.subr.bf16.mxu0 %v1926_v51  ;;  %2055 = vmatprep.subr.bf16.mxu1 %v2054_v52  ;;  %v1047_v51 = vld [vmem:[%s3734_s15 + $0x430] sm:$0xff] }
 0x2fc   :  { %1929 = vmatpush1.bf16.msra.mxu0 %v1928_v60  ;;  %2057 = vmatpush1.bf16.msra.mxu1 %v2056_v29  ;;  %v1944_v60 = vpack.c.bf16 %v1045_v49, %v1041_v41  ;;  %v2072_v29 = vpack.c.bf16 %v1047_v51, %v1043_v50  ;;  %v1075_v41 = vld [vmem:[%s3734_s15 + $0x510] sm:$0xff]  ;;  %v1084_v49 = vld [vmem:[%s3734_s15 + $0x558] sm:$0xff] }
 0x2fd   :  { %1931 = vmatprep.subr.bf16.mxu0 %v1930_v62  ;;  %2059 = vmatprep.subr.bf16.mxu1 %v2058_v63  ;;  %v1051_v63 = vld [vmem:[%s3734_s15 + $0x450] sm:$0xff]  ;;  %v1088_v50 = vld [vmem:[%s3734_s15 + $0x578] sm:$0xff] }
 0x2fe   :  { %v2090_v57 = vpack.c.bf16 %v1088_v50, %v1084_v49  ;;  %v1122_v49 = vld [vmem:[%s3734_s15 + $0x688] sm:$0xff] }
 0x2ff   :  { %v1126_v50 = vld [vmem:[%s3734_s15 + $0x6a8] sm:$0xff] }
 0x300   :  { %1933 = vmatpush1.bf16.msra.mxu0 %v1932_v7  ;;  %2061 = vmatpush1.bf16.msra.mxu1 %v2060_v8  ;;  %v1064_v7 = vld [vmem:[%s3734_s15 + $0x4b8] sm:$0xff] }
 0x301   :  { %1935 = vmatprep.subr.bf16.mxu0 %v1934_v10  ;;  %2063 = vmatprep.subr.bf16.mxu1 %v2062_v11  ;;  %v2076_v10 = vpack.c.bf16 %v1055_v0, %v1051_v63  ;;  %v1057_v11 = vld [vmem:[%s3734_s15 + $0x480] sm:$0xff]  ;;  %v2078_v14 = vpack.c.bf16 %v1064_v7, %v1060_v6  ;;  %v1095_v6 = vld [vmem:[%s3734_s15 + $0x5b0] sm:$0xff]  ;;  %v1098_v7 = vld [vmem:[%s3734_s15 + $0x5c8] sm:$0xff] }
 0x302   :  { %v1952_v23 = vpack.c.bf16 %v1061_v12, %v1057_v11  ;;  %v1089_v0 = vld [vmem:[%s3734_s15 + $0x580] sm:$0xff]  ;;  %v2096_v12 = vpack.c.bf16 %v1095_v6, %v1091_v5 }
 0x303   :  { %v1968_v11 = vpack.c.bf16 %v1093_v1, %v1089_v0 }
 0x304   :  { %1937 = vmatpush1.bf16.msra.mxu0 %v1936_v15  ;;  %2065 = vmatpush1.bf16.msra.mxu1 %v2064_v16  ;;  %v1059_v15 = vld [vmem:[%s3734_s15 + $0x490] sm:$0xff] }
 0x305   :  { %1939 = vmatprep.subr.bf16.mxu0 %v1938_v22  ;;  %2067 = vmatprep.subr.bf16.mxu1 %v2066_v26  ;;  %v1063_v16 = vld [vmem:[%s3734_s15 + $0x4b0] sm:$0xff]  ;;  %v1072_v22 = vld [vmem:[%s3734_s15 + $0x4f8] sm:$0xff]  ;;  %v1069_v26 = vld [vmem:[%s3734_s15 + $0x4e0] sm:$0xff] }
 0x306   :  { %v2080_v24 = vpack.c.bf16 %v1063_v16, %v1059_v15  ;;  %v2082_v28 = vpack.c.bf16 %v1072_v22, %v1068_v55  ;;  %v1956_v36 = vpack.c.bf16 %v1069_v26, %v1065_v25  ;;  %v1106_v55 = vld [vmem:[%s3734_s15 + $0x608] sm:$0xff] }
 0x307   :  { %v1110_v22 = vld [vmem:[%s3734_s15 + $0x628] sm:$0xff] }
 0x308   :  { %1941 = vmatpush1.bf16.msra.mxu0 %v1940_v27  ;;  %2069 = vmatpush1.bf16.msra.mxu1 %v2068_v31  ;;  %v1954_v27 = vpack.c.bf16 %v1070_v21, %v1066_v19  ;;  %v1071_v31 = vld [vmem:[%s3734_s15 + $0x4f0] sm:$0xff] }
 0x309   :  { %1943 = vmatprep.subr.bf16.mxu0 %v1942_v35  ;;  %2071 = vmatprep.subr.bf16.mxu1 %v2070_v37  ;;  %v1080_v35 = vld [vmem:[%s3734_s15 + $0x538] sm:$0xff]  ;;  %v2084_v37 = vpack.c.bf16 %v1071_v31, %v1067_v30  ;;  %v1099_v19 = vld [vmem:[%s3734_s15 + $0x5d0] sm:$0xff]  ;;  %v1974_v30 = vpack.c.bf16 %v1110_v22, %v1106_v55 }
 0x30a   :  { %v1103_v21 = vld [vmem:[%s3734_s15 + $0x5f0] sm:$0xff] }
 0x30b   :  { %v2100_v26 = vpack.c.bf16 %v1103_v21, %v1099_v19  ;;  %v1139_v55 = vld [vmem:[%s3734_s15 + $0x710] sm:$0xff] }
 0x30c   :  { %v1143_v22 = vld [vmem:[%s3734_s15 + $0x730] sm:$0xff] }
 0x39e   :  { %v833_v44 = vpop.f32.mrb[6].mxu0  ;;  %v3333_v45 = vpop.f32.mrb[4].mxu1 }
 0x39f   :  { %v834_v46 = vadd.f32 %v833_v44, %v750_v40  ;;  %v835_v47 = vpop.f32.mrb[7].mxu0  ;;  %v906_v48 = vpop.f32.mrb[5].mxu1  ;;  %v1073_v40 = vld [vmem:[%s3734_s15 + $0x500] sm:$0xff]  ;;  %v2086_v44 = vpack.c.bf16 %v1080_v35, %v1076_v34  ;;  %v1114_v34 = vld [vmem:[%s3734_s15 + $0x648] sm:$0xff] }
 0x3a0   :  { %v836_v52 = vadd.f32 %v835_v47, %v754_v42  ;;  %v907_v54 = vadd.f32 %v906_v48, %v762_v43  ;;  %v1077_v42 = vld [vmem:[%s3734_s15 + $0x520] sm:$0xff]  ;;  %v1958_v43 = vpack.c.bf16 %v1078_v33, %v1074_v32  ;;  %v1082_v47 = vld [vmem:[%s3734_s15 + $0x548] sm:$0xff]  ;;  %v1107_v32 = vld [vmem:[%s3734_s15 + $0x610] sm:$0xff] }
 0x3a1   :  { %v909_v62 = vmax.f32 %v834_v46, 0.0  ;;  %v1079_v46 = vld [vmem:[%s3734_s15 + $0x530] sm:$0xff]  ;;  %v1086_v48 = vld [vmem:[%s3734_s15 + $0x568] sm:$0xff]  ;;  %v1960_v51 = vpack.c.bf16 %v1077_v42, %v1073_v40 }
 0x3a2   :  { %v910_v59 = vmax.f32 %v836_v52, 0.0  ;;  %v912_v8 = vmax.f32 %v907_v54, 0.0  ;;  %v2088_v52 = vpack.c.bf16 %v1079_v46, %v1075_v41  ;;  %v1085_v54 = vld [vmem:[%s3734_s15 + $0x560] sm:$0xff]  ;;  %v1962_v56 = vpack.c.bf16 %v1086_v48, %v1082_v47  ;;  %v1111_v33 = vld [vmem:[%s3734_s15 + $0x630] sm:$0xff]  ;;  %v1118_v35 = vld [vmem:[%s3734_s15 + $0x668] sm:$0xff] }
 0x3a3   :  { %v2104_v42 = vpack.c.bf16 %v1111_v33, %v1107_v32  ;;  %v1978_v41 = vpack.c.bf16 %v1118_v35, %v1114_v34  ;;  %v1115_v47 = vld [vmem:[%s3734_s15 + $0x650] sm:$0xff] }
 0x3a4   :  { %1255 = vmatprep.mubr.f32.mxu0 %v910_v59  ;;  %1397 = vmatprep.mubr.f32.mxu1 %v910_v59  ;;  %v1087_v59 = vld [vmem:[%s3734_s15 + $0x570] sm:$0xff] }
 0x3a5   :  { %1256 = vmatmul.mubr.f32.vlgmr.msra.gmra.mrb[8].mxu0 %v909_v62  ;;  %1398 = vmatmul.mubr.f32.vlgmr.msra.gmra.mrb[6].mxu1 %v909_v62  ;;  %v1964_v62 = vpack.c.bf16 %v1085_v54, %v1081_v53  ;;  %v2092_v63 = vpack.c.bf16 %v1087_v59, %v1083_v58  ;;  %v1119_v48 = vld [vmem:[%s3734_s15 + $0x670] sm:$0xff]  ;;  %v1982_v58 = vpack.c.bf16 %v1126_v50, %v1122_v49 }
 0x3a6   :  { %1945 = vmatpush1.bf16.msra.mxu0 %v1944_v60  ;;  %2073 = vmatpush1.bf16.msra.mxu1 %v2072_v29  ;;  %v1090_v60 = vld [vmem:[%s3734_s15 + $0x588] sm:$0xff]  ;;  %v2108_v54 = vpack.c.bf16 %v1119_v48, %v1115_v47  ;;  %v1147_v34 = vld [vmem:[%s3734_s15 + $0x750] sm:$0xff]  ;;  %v757_v47 = vsub.s32 2, %v2923_v17 }
 0x3a7   :  { %1326 = vmatprep.mubr.f32.mxu0 %v912_v8  ;;  %1468 = vmatprep.mubr.f32.mxu1 %v912_v8  ;;  %v1094_v29 = vld [vmem:[%s3734_s15 + $0x5a8] sm:$0xff]  ;;  %v1151_v35 = vld [vmem:[%s3734_s15 + $0x770] sm:$0xff] }
 0x3a8   :  { %1947 = vmatprep.subr.bf16.mxu0 %v1946_v2  ;;  %2075 = vmatprep.subr.bf16.mxu1 %v2074_v4  ;;  %v1966_v2 = vpack.c.bf16 %v1094_v29, %v1090_v60  ;;  %v2094_v4 = vpack.c.bf16 %v1096_v3, %v1092_v61  ;;  %v1102_v8 = vld [vmem:[%s3734_s15 + $0x5e8] sm:$0xff]  ;;  %v1123_v60 = vld [vmem:[%s3734_s15 + $0x690] sm:$0xff] }
 0x3a9   :  { %v1970_v15 = vpack.c.bf16 %v1102_v8, %v1098_v7  ;;  %v1127_v29 = vld [vmem:[%s3734_s15 + $0x6b0] sm:$0xff]  ;;  %v1130_v61 = vld [vmem:[%s3734_s15 + $0x6c8] sm:$0xff] }
 0x3aa   :  { %1949 = vmatpush1.bf16.msra.mxu0 %v1948_v9  ;;  %2077 = vmatpush1.bf16.msra.mxu1 %v2076_v10  ;;  %v1100_v9 = vld [vmem:[%s3734_s15 + $0x5d8] sm:$0xff]  ;;  %v1134_v3 = vld [vmem:[%s3734_s15 + $0x6e8] sm:$0xff]  ;;  %v2112_v1 = vpack.c.bf16 %v1127_v29, %v1123_v60  ;;  %v1131_v7 = vld [vmem:[%s3734_s15 + $0x6d0] sm:$0xff]  ;;  %v758_v60 = vrot.slane %v3323_v38, %v757_v47 }
 0x3ab   :  { %1951 = vmatprep.subr.bf16.mxu0 %v1950_v13  ;;  %2079 = vmatprep.subr.bf16.mxu1 %v2078_v14  ;;  %v1104_v10 = vld [vmem:[%s3734_s15 + $0x5f8] sm:$0xff]  ;;  %v1097_v13 = vld [vmem:[%s3734_s15 + $0x5c0] sm:$0xff]  ;;  %v1986_v5 = vpack.c.bf16 %v1134_v3, %v1130_v61  ;;  %v1135_v8 = vld [vmem:[%s3734_s15 + $0x6f0] sm:$0xff] }
 0x3ac   :  { %v1101_v14 = vld [vmem:[%s3734_s15 + $0x5e0] sm:$0xff]  ;;  %v2098_v16 = vpack.c.bf16 %v1104_v10, %v1100_v9  ;;  %v1138_v9 = vld [vmem:[%s3734_s15 + $0x708] sm:$0xff]  ;;  %v1155_v50 = vld [vmem:[%s3734_s15 + $0x790] sm:$0xff] }
 0x3ad   :  { %v1972_v25 = vpack.c.bf16 %v1101_v14, %v1097_v13  ;;  %v1142_v10 = vld [vmem:[%s3734_s15 + $0x728] sm:$0xff]  ;;  %v2116_v14 = vpack.c.bf16 %v1135_v8, %v1131_v7  ;;  %v1165_v3 = vld [vmem:[%s3734_s15 + $0x7e0] sm:$0xff] }
 0x3ae   :  { %1953 = vmatpush1.bf16.msra.mxu0 %v1952_v23  ;;  %2081 = vmatpush1.bf16.msra.mxu1 %v2080_v24  ;;  %v1108_v23 = vld [vmem:[%s3734_s15 + $0x618] sm:$0xff]  ;;  %v1990_v19 = vpack.c.bf16 %v1142_v10, %v1138_v9 }
 0x3af   :  { %1955 = vmatprep.subr.bf16.mxu0 %v1954_v27  ;;  %2083 = vmatprep.subr.bf16.mxu1 %v2082_v28  ;;  %v1112_v24 = vld [vmem:[%s3734_s15 + $0x638] sm:$0xff]  ;;  %v1105_v27 = vld [vmem:[%s3734_s15 + $0x600] sm:$0xff] }
 0x3b0   :  { %v1109_v28 = vld [vmem:[%s3734_s15 + $0x620] sm:$0xff]  ;;  %v2102_v31 = vpack.c.bf16 %v1112_v24, %v1108_v23  ;;  %v1146_v23 = vld [vmem:[%s3734_s15 + $0x748] sm:$0xff] }
 0x3b1   :  { %v1976_v40 = vpack.c.bf16 %v1109_v28, %v1105_v27  ;;  %v1150_v24 = vld [vmem:[%s3734_s15 + $0x768] sm:$0xff]  ;;  %v2120_v28 = vpack.c.bf16 %v1143_v22, %v1139_v55 }
 0x3b2   :  { %1957 = vmatpush1.bf16.msra.mxu0 %v1956_v36  ;;  %2085 = vmatpush1.bf16.msra.mxu1 %v2084_v37  ;;  %v1116_v36 = vld [vmem:[%s3734_s15 + $0x658] sm:$0xff]  ;;  %v1994_v32 = vpack.c.bf16 %v1150_v24, %v1146_v23 }
 0x3b3   :  { %1959 = vmatprep.subr.bf16.mxu0 %v1958_v43  ;;  %2087 = vmatprep.subr.bf16.mxu1 %v2086_v44  ;;  %v1120_v37 = vld [vmem:[%s3734_s15 + $0x678] sm:$0xff]  ;;  %v1113_v43 = vld [vmem:[%s3734_s15 + $0x640] sm:$0xff] }
 0x3b4   :  { %v1117_v44 = vld [vmem:[%s3734_s15 + $0x660] sm:$0xff]  ;;  %v2106_v46 = vpack.c.bf16 %v1120_v37, %v1116_v36  ;;  %v1154_v36 = vld [vmem:[%s3734_s15 + $0x788] sm:$0xff] }
 0x3b5   :  { %v1980_v53 = vpack.c.bf16 %v1117_v44, %v1113_v43  ;;  %v1158_v37 = vld [vmem:[%s3734_s15 + $0x7a8] sm:$0xff]  ;;  %v2124_v44 = vpack.c.bf16 %v1151_v35, %v1147_v34 }
 0x3b6   :  { %1961 = vmatpush1.bf16.msra.mxu0 %v1960_v51  ;;  %2089 = vmatpush1.bf16.msra.mxu1 %v2088_v52  ;;  %v1124_v51 = vld [vmem:[%s3734_s15 + $0x698] sm:$0xff]  ;;  %v1998_v48 = vpack.c.bf16 %v1158_v37, %v1154_v36 }
 0x3b7   :  { %1963 = vmatprep.subr.bf16.mxu0 %v1962_v56  ;;  %2091 = vmatprep.subr.bf16.mxu1 %v2090_v57  ;;  %v1128_v52 = vld [vmem:[%s3734_s15 + $0x6b8] sm:$0xff]  ;;  %v1121_v56 = vld [vmem:[%s3734_s15 + $0x680] sm:$0xff] }
 0x3b8   :  { %v1125_v57 = vld [vmem:[%s3734_s15 + $0x6a0] sm:$0xff]  ;;  %v2110_v59 = vpack.c.bf16 %v1128_v52, %v1124_v51  ;;  %v1159_v51 = vld [vmem:[%s3734_s15 + $0x7b0] sm:$0xff]  ;;  %v1162_v52 = vld [vmem:[%s3734_s15 + $0x7c8] sm:$0xff] }
 0x3b9   :  { %v1984_v0 = vpack.c.bf16 %v1125_v57, %v1121_v56  ;;  %v1168_v56 = vld [vmem:[%s3734_s15 + $0x7f8] sm:$0xff] }
 0x3ba   :  { %1965 = vmatpush1.bf16.msra.mxu0 %v1964_v62  ;;  %2093 = vmatpush1.bf16.msra.mxu1 %v2092_v63  ;;  %v1132_v62 = vld [vmem:[%s3734_s15 + $0x6d8] sm:$0xff] }
 0x3bb   :  { %1967 = vmatprep.subr.bf16.mxu0 %v1966_v2  ;;  %2095 = vmatprep.subr.bf16.mxu1 %v2094_v4  ;;  %v1136_v63 = vld [vmem:[%s3734_s15 + $0x6f8] sm:$0xff]  ;;  %v1129_v2 = vld [vmem:[%s3734_s15 + $0x6c0] sm:$0xff] }
 0x3bc   :  { %v1133_v4 = vld [vmem:[%s3734_s15 + $0x6e0] sm:$0xff]  ;;  %v2114_v6 = vpack.c.bf16 %v1136_v63, %v1132_v62  ;;  %v1163_v62 = vld [vmem:[%s3734_s15 + $0x7d0] sm:$0xff] }
 0x3bd   :  { %v1988_v13 = vpack.c.bf16 %v1133_v4, %v1129_v2  ;;  %v1167_v63 = vld [vmem:[%s3734_s15 + $0x7f0] sm:$0xff]  ;;  %v1169_v4 = vld [vmem:[%s3738_s16] sm:$0xf] }
 0x3be   :  { %1969 = vmatpush1.bf16.msra.mxu0 %v1968_v11  ;;  %2097 = vmatpush1.bf16.msra.mxu1 %v2096_v12  ;;  %v1140_v11 = vld [vmem:[%s3734_s15 + $0x718] sm:$0xff]  ;;  %v2132_v38 = vpack.c.bf16 %v1167_v63, %v1163_v62  ;;  %v1174_v7 = vrot.slane %v1169_v4, %v2926_v18  ;;  %v1182_v8 = vrot.slane %v1169_v4, %v757_v47 }
 0x3bf   :  { %1971 = vmatprep.subr.bf16.mxu0 %v1970_v15  ;;  %2099 = vmatprep.subr.bf16.mxu1 %v2098_v16  ;;  %v1144_v12 = vld [vmem:[%s3734_s15 + $0x738] sm:$0xff]  ;;  %v1137_v15 = vld [vmem:[%s3734_s15 + $0x700] sm:$0xff]  ;;  %v1178_v9 = vrot.slane %v1169_v4, %v2932_v20 }
 0x3c0   :  { %v1141_v16 = vld [vmem:[%s3734_s15 + $0x720] sm:$0xff]  ;;  %v2118_v21 = vpack.c.bf16 %v1144_v12, %v1140_v11 }
 0x3c1   :  { %v1992_v27 = vpack.c.bf16 %v1141_v16, %v1137_v15 }
 0x3c2   :  { %1973 = vmatpush1.bf16.msra.mxu0 %v1972_v25  ;;  %2101 = vmatpush1.bf16.msra.mxu1 %v2100_v26  ;;  %v1148_v25 = vld [vmem:[%s3734_s15 + $0x758] sm:$0xff] }
 0x3c3   :  { %1975 = vmatprep.subr.bf16.mxu0 %v1974_v30  ;;  %2103 = vmatprep.subr.bf16.mxu1 %v2102_v31  ;;  %v1152_v26 = vld [vmem:[%s3734_s15 + $0x778] sm:$0xff]  ;;  %v1145_v30 = vld [vmem:[%s3734_s15 + $0x740] sm:$0xff] }
 0x3c4   :  { %v1149_v31 = vld [vmem:[%s3734_s15 + $0x760] sm:$0xff]  ;;  %v2122_v33 = vpack.c.bf16 %v1152_v26, %v1148_v25 }
 0x3c5   :  { %v1996_v43 = vpack.c.bf16 %v1149_v31, %v1145_v30 }
 0x3c6   :  { %1977 = vmatpush1.bf16.msra.mxu0 %v1976_v40  ;;  %2105 = vmatpush1.bf16.msra.mxu1 %v2104_v42  ;;  %v1156_v40 = vld [vmem:[%s3734_s15 + $0x798] sm:$0xff] }
 0x3c7   :  { %1979 = vmatprep.subr.bf16.mxu0 %v1978_v41  ;;  %2107 = vmatprep.subr.bf16.mxu1 %v2106_v46  ;;  %v1160_v42 = vld [vmem:[%s3734_s15 + $0x7b8] sm:$0xff]  ;;  %v1153_v41 = vld [vmem:[%s3734_s15 + $0x780] sm:$0xff] }
 0x3c8   :  { %v1157_v46 = vld [vmem:[%s3734_s15 + $0x7a0] sm:$0xff]  ;;  %v2126_v49 = vpack.c.bf16 %v1160_v42, %v1156_v40 }
 0x3c9   :  { %v2000_v57 = vpack.c.bf16 %v1157_v46, %v1153_v41 }
 0x3ca   :  { %1981 = vmatpush1.bf16.msra.mxu0 %v1980_v53  ;;  %2109 = vmatpush1.bf16.msra.mxu1 %v2108_v54  ;;  %v1166_v53 = vld [vmem:[%s3734_s15 + $0x7e8] sm:$0xff]  ;;  %v1164_v54 = vld [vmem:[%s3734_s15 + $0x7d8] sm:$0xff] }
 0x3cb   :  { %1983 = vmatprep.subr.bf16.mxu0 %v1982_v58  ;;  %2111 = vmatprep.subr.bf16.mxu1 %v2110_v59  ;;  %v2128_v58 = vpack.c.bf16 %v1159_v51, %v1155_v50  ;;  %v1161_v59 = vld [vmem:[%s3734_s15 + $0x7c0] sm:$0xff]  ;;  %v2002_v29 = vpack.c.bf16 %v1166_v53, %v1162_v52  ;;  %v2130_v61 = vpack.c.bf16 %v1168_v56, %v1164_v54 }
 0x3ce   :  { %1985 = vmatpush1.bf16.msra.mxu0 %v1984_v0  ;;  %2113 = vmatpush1.bf16.msra.mxu1 %v2112_v1  ;;  %v2004_v0 = vpack.c.bf16 %v1165_v3, %v1161_v59  ;;  %v905_v1 = vadd.f32 %v3333_v45, %v758_v60  ;;  %v1186_v45 = vrot.slane %v1169_v4, %v761_v39 }
 0x3cf   :  { %1987 = vmatprep.subr.bf16.mxu0 %v1986_v5  ;;  %2115 = vmatprep.subr.bf16.mxu1 %v2114_v6  ;;  %v2155_v5 = vmov 1983009808  }
 0x3d0   :  { %v911_v2 = vmax.f32 %v905_v1, 0.0  ;;  %v1482_v6 = vunpack.c.l.s4 %v2155_v5 }
 0x3d2   :  { %1989 = vmatpush1.bf16.msra.mxu0 %v1988_v13  ;;  %2117 = vmatpush1.bf16.msra.mxu1 %v2116_v14  ;;  %v1483_v10 = vunpack.c.0.s8 %v1482_v6 }
 0x3d3   :  { %1991 = vmatprep.subr.bf16.mxu0 %v1990_v19  ;;  %2119 = vmatprep.subr.bf16.mxu1 %v2118_v21 }
 0x3d4   :  { %v1486_v21 = vsub.s32 %v1483_v10, %v2923_v17 }
 0x3d6   :  { %1993 = vmatpush1.bf16.msra.mxu0 %v1992_v27  ;;  %2121 = vmatpush1.bf16.msra.mxu1 %v2120_v28 }
 0x3d7   :  { %1995 = vmatprep.subr.bf16.mxu0 %v1994_v32  ;;  %2123 = vmatprep.subr.bf16.mxu1 %v2122_v33 }
 0x3da   :  { %1997 = vmatpush1.bf16.msra.mxu0 %v1996_v43  ;;  %2125 = vmatpush1.bf16.msra.mxu1 %v2124_v44 }
 0x3db   :  { %1999 = vmatprep.subr.bf16.mxu0 %v1998_v48  ;;  %2127 = vmatprep.subr.bf16.mxu1 %v2126_v49 }
 0x3de   :  { %2001 = vmatpush1.bf16.msra.mxu0 %v2000_v57  ;;  %2129 = vmatpush1.bf16.msra.mxu1 %v2128_v58 }
 0x3df   :  { %2003 = vmatprep.subr.bf16.mxu0 %v2002_v29  ;;  %2131 = vmatprep.subr.bf16.mxu1 %v2130_v61 }
 0x3e2   :  { %2005 = vmatpush1.bf16.msra.mxu0 %v2004_v0  ;;  %2133 = vmatpush1.bf16.msra.mxu1 %v2132_v38 }
 0x3e5   :  { %1327 = vmatmul.mubr.f32.vlgmr.msra.gmra.mrb[8].mxu0 %v911_v2  ;;  %1469 = vmatmul.mubr.f32.vlgmr.msra.gmra.mrb[6].mxu1 %v911_v2 }
 0x4b8   :  { %v1328_v11 = vpop.f32.mrb[8].mxu0  ;;  %v1470_v12 = vpop.f32.mrb[6].mxu1 }
 0x4b9   :  { %v2134_v13 = vadd.f32 %v1328_v11, %v1174_v7  ;;  %v2136_v14 = vadd.f32 %v1470_v12, %v1182_v8  ;;  %v1330_v15 = vpop.f32.mrb[9].mxu0  ;;  %v1472_v16 = vpop.f32.mrb[7].mxu1 }
 0x4ba   :  { %v2135_v19 = vadd.f32 %v1330_v15, %v1178_v9  ;;  %v2137_v55 = vadd.f32 %v1472_v16, %v1186_v45 }
 0x4bc   :  { %v1479_v22 = vcombine.low %v2134_v13, %v2135_v19  ;;  %v1480_v23 = vcombine.low %v2136_v14, %v2137_v55 }
 0x4be   :  { %v1487_v18 = vrot.slane %v1479_v22, %v1486_v21  ;;  %v1494_v24 = vrot.slane %v1480_v23, %v1486_v21 }
 0x4c0   :  { %v1495_v25 = vcombine.low %v1487_v18, %v1494_v24 }
 0x4c2   :  { %1497 = vst [vmem:[%s3739_s17] sm:$0xff] %v1495_v25 }

</bundles_post_ra>
